<compile_context>
chip_gen: v7x
topology: tpu7x:2x2x1
jax: 0.10.0
libtpu: 0.0.40
codegen_flags: <defaults>
</compile_context>

<pallas_src>
import functools

import numpy as np
import jax
import jax.numpy as jnp
from jax import lax
from jax.experimental import pallas as pl
from jax.experimental.pallas import tpu as pltpu

KH = KW = 3          # conv kernel (stride 1, valid padding)
CONV_OUT = 16        # conv output channels
LANE = 128           # TPU lane width


def _round_up(x, m):
    return (x + m - 1) // m * m


# ----------------------------- Pallas kernel -------------------------------
# One grid step = one network instance (q / q_target / actor).  All weights
# for that instance are streamed as one block each; activations are tiny.

def _fused_net_kernel(n_actions,
                      x_ref, inner_ref,
                      cw_ref, cb_ref, wl_ref, bl_ref,
                      w1i_ref, w1v_ref, b1_ref, w2_ref, b2_ref,
                      hw_ref, hb_ref,
                      head_ref, pi_ref, logpi_ref):
    def mm(a, w_ref):
        # bf16 operands, f32 accumulation on the MXU
        return jnp.dot(a.astype(jnp.bfloat16), w_ref[0],
                       preferred_element_type=jnp.float32)

    # vision: 3x3 conv pre-folded into one dense lane-aligned matmul (+ReLU)
    conv = jnp.maximum(mm(x_ref[0], cw_ref) + cb_ref[0], 0.0)       # (B, VPAD)
    vis = jnp.maximum(mm(conv, wl_ref) + bl_ref[0], 0.0)            # (B, LAT_PAD)
    # trunk: concat(inner, vis) @ W1 realised as split matmuls
    h1 = jnp.maximum(mm(inner_ref[0], w1i_ref) + mm(vis, w1v_ref)
                     + b1_ref[0], 0.0)                              # (B, HID_PAD)
    h2 = jnp.maximum(mm(h1, w2_ref) + b2_ref[0], 0.0)               # (B, HID_PAD)
    # head: q / q_target use the pre-folded dueling weight, actor uses wp
    head = mm(h2, hw_ref) + hb_ref[0]                               # (B, HEAD_PAD)
    head_ref[0] = head

    # masked softmax over the first n_actions lanes (only consumed for the
    # actor instance; computing it unconditionally is cheaper than gating).
    lane = lax.broadcasted_iota(jnp.int32, head.shape, 1)
    logits = jnp.where(lane < n_actions, head, -1e30)
    m = jnp.max(logits, axis=-1, keepdims=True)
    e = jnp.exp(logits - m)
    s = jnp.sum(e, axis=-1, keepdims=True)
    pi_ref[0] = e / s
    logpi_ref[0] = (logits - m) - jnp.log(s)


def _fused_forward(stack, inner_s, x_s, n_actions):
    """Run the fused network on stacked instances.  Shapes:
       x_s (n_inst, B, C*H*W) f32, inner_s (n_inst, B, s_dim) f32,
       every weight in `stack` has a leading n_inst axis."""
    n_inst, B, _ = x_s.shape
    head_pad = stack["hw"].shape[-1]

    def spec(arr):
        nd = arr.ndim
        return pl.BlockSpec((1,) + tuple(arr.shape[1:]),
                            lambda i: (i,) + (0,) * (nd - 1))

    w_names = ("cw", "cb", "wl", "bl", "w1i", "w1v", "b1", "w2", "b2", "hw", "hb")
    w_args = [stack[k] for k in w_names]

    out_spec = pl.BlockSpec((1, B, head_pad), lambda i: (i, 0, 0))
    out_shape = jax.ShapeDtypeStruct((n_inst, B, head_pad), jnp.float32)

    return pl.pallas_call(
        functools.partial(_fused_net_kernel, n_actions),
        grid=(n_inst,),
        in_specs=[spec(x_s), spec(inner_s)] + [spec(w) for w in w_args],
        out_specs=(out_spec, out_spec, out_spec),
        out_shape=(out_shape, out_shape, out_shape),
        compiler_params=pltpu.CompilerParams(
            dimension_semantics=("parallel",),        # v7x: shard across 2 TCs
            vmem_limit_bytes=48 * 1024 * 1024),
    )(x_s, inner_s, *w_args)


# ------------------------------ evaluation ----------------------------------

@functools.partial(jax.jit, static_argnames=("n_heads", "n_actions"))
def _critic_impl(stack, log_alpha, inner, outer, next_inner, next_outer,
                 *, n_heads, n_actions):
    B = inner.shape[0]
    x = outer.reshape(B, -1).astype(jnp.float32)    # NCHW flatten matches cw rows
    nx = next_outer.reshape(B, -1).astype(jnp.float32)
    x3 = jnp.stack([x, nx, nx])                     # inputs for q | q_target | actor
    in3 = jnp.stack([inner, next_inner, next_inner]).astype(jnp.float32)
    head, pi, logpi = _fused_forward(stack, in3, x3, n_actions)
    ha = n_heads * n_actions
    q = head[0, :, :ha].reshape(B, n_heads, n_actions)
    next_q = head[1, :, :ha].reshape(B, n_heads, n_actions)
    return (q, next_q, pi[2, :, :n_actions], logpi[2, :, :n_actions],
            log_alpha.reshape(-1, 1))


def evaluate_critic(net, inner, outer, next_inner, next_outer):
    return _critic_impl(net["stack"], net["log_alpha"], inner, outer,
                        next_inner, next_outer,
                        n_heads=net["n_heads"], n_actions=net["n_actions"])


@functools.partial(jax.jit, static_argnames=("n_heads", "n_actions"))
def _actor_impl(stack, inner, outer, *, n_heads, n_actions):
    # TODO(synk): instance 1 (q_target) is computed and discarded here; the
    # extra work is negligible and keeps evaluate_actor at a single launch.
    B = inner.shape[0]
    x = outer.reshape(B, -1).astype(jnp.float32)
    x3 = jnp.stack([x, x, x])
    in3 = jnp.stack([inner, inner, inner]).astype(jnp.float32)
    head, pi, logpi = _fused_forward(stack, in3, x3, n_actions)
    ha = n_heads * n_actions
    q = head[0, :, :ha].reshape(B, n_heads, n_actions)
    return q, pi[2, :, :n_actions], logpi[2, :, :n_actions]


def evaluate_actor(net, inner, outer):
    return _actor_impl(net["stack"], inner, outer,
                       n_heads=net["n_heads"], n_actions=net["n_actions"])


# --------------------------- parameter init / prep --------------------------

def _dense_init(key, fan_in, fan_out):
    kw, kb = jax.random.split(key)
    lim = 1.0 / np.sqrt(fan_in)
    w = jax.random.uniform(kw, (fan_in, fan_out), jnp.float32, -lim, lim)
    b = jax.random.uniform(kb, (1, fan_out), jnp.float32, -lim, lim)
    return w, b


def _init_raw_trunk(keys, s_dim, latent_dim, vdim, in_ch, hidden):
    conv_w, conv_b = _dense_init(keys[0], KH * KW * in_ch, CONV_OUT)
    wl, bl = _dense_init(keys[1], vdim, latent_dim)
    w1, b1 = _dense_init(keys[2], s_dim + latent_dim, hidden)
    w2, b2 = _dense_init(keys[3], hidden, hidden)
    return dict(conv_w=conv_w, conv_b=conv_b, wl=wl, bl=bl,
                w1=w1, b1=b1, w2=w2, b2=b2)


def init_raw_q(key, s_dim, latent_dim, n_actions, n_heads, in_ch, H, W, hidden):
    oh, ow = H - KH + 1, W - KW + 1
    keys = jax.random.split(key, 6)
    p = _init_raw_trunk(keys[:4], s_dim, latent_dim, oh * ow * CONV_OUT, in_ch, hidden)
    p["wv"], p["bv"] = _dense_init(keys[4], hidden, n_heads)
    p["wa"], p["ba"] = _dense_init(keys[5], hidden, n_heads * n_actions)
    return p


def init_raw_policy(key, s_dim, latent_dim, n_actions, in_ch, H, W, hidden):
    oh, ow = H - KH + 1, W - KW + 1
    keys = jax.random.split(key, 5)
    p = _init_raw_trunk(keys[:4], s_dim, latent_dim, oh * ow * CONV_OUT, in_ch, hidden)
    p["wp"], p["bp"] = _dense_init(keys[4], hidden, n_actions)
    return p


def _conv_to_dense(conv_w, conv_b, in_ch, H, W):
    """Fold the 3x3/stride-1/valid conv (im2col weight layout) into one dense
    (C*H*W, OH*OW*CONV_OUT) matmul acting on NCHW-flattened input."""
    OH, OW = H - KH + 1, W - KW + 1
    w = np.asarray(conv_w, np.float32)                       # (KH*KW*C, CONV_OUT)
    Wd = np.zeros((in_ch * H * W, OH * OW * CONV_OUT), np.float32)
    oh = np.arange(OH)[:, None]
    ow = np.arange(OW)[None, :]
    cols = (np.arange(OH * OW) * CONV_OUT)[:, None] + np.arange(CONV_OUT)[None, :]
    for i in range(KH):
        for j in range(KW):
            for c in range(in_ch):
                rows = (c * H * W + (oh + i) * W + (ow + j)).reshape(-1)
                Wd[rows[:, None], cols] = w[(i * KW + j) * in_ch + c][None, :]
    bd = np.tile(np.asarray(conv_b, np.float32).reshape(1, CONV_OUT), (1, OH * OW))
    return Wd, bd


def _pad2(a, rows, cols):
    a = np.asarray(a, np.float32)
    out = np.zeros((rows, cols), np.float32)
    out[:a.shape[0], :a.shape[1]] = a
    return out


def _prepare_net(raw, kind, s_dim, latent_dim, n_actions, n_heads, in_ch, H, W, hidden):
    OH, OW = H - KH + 1, W - KW + 1
    vdim = OH * OW * CONV_OUT
    vpad = _round_up(vdim, LANE)
    lat_pad = _round_up(latent_dim, LANE)
    hid_pad = _round_up(hidden, LANE)
    head_pad = _round_up(max(n_heads * n_actions, n_actions), LANE)

    Wd, bd = _conv_to_dense(raw["conv_w"], raw["conv_b"], in_ch, H, W)
    w1 = np.asarray(raw["w1"], np.float32)
    p = dict(
        cw=_pad2(Wd, in_ch * H * W, vpad),
        cb=_pad2(bd, 1, vpad),
        wl=_pad2(raw["wl"], vpad, lat_pad),
        bl=_pad2(raw["bl"], 1, lat_pad),
        w1i=_pad2(w1[:s_dim], s_dim, hid_pad),
        w1v=_pad2(w1[s_dim:], lat_pad, hid_pad),
        b1=_pad2(raw["b1"], 1, hid_pad),
        w2=_pad2(raw["w2"], hid_pad, hid_pad),
        b2=_pad2(raw["b2"], 1, hid_pad),
    )
    if kind == "q":
        # Dueling combine  Q = A - mean_actions(A) + broadcast(V)  is linear in
        # (A, V), so it folds exactly into a single head weight / bias.
        ha = n_heads * n_actions
        mean_mat = np.kron(np.eye(n_heads), np.ones((n_actions, 1))) / n_actions
        exp_mat = np.kron(np.eye(n_heads), np.ones((1, n_actions)))
        M = np.eye(ha) - mean_mat @ exp_mat
        hw = np.asarray(raw["wa"], np.float32) @ M \
            + np.asarray(raw["wv"], np.float32) @ exp_mat
        hb = np.asarray(raw["ba"], np.float32) @ M \
            + np.asarray(raw["bv"], np.float32) @ exp_mat
    else:
        hw, hb = raw["wp"], raw["bp"]
    p["hw"] = _pad2(hw, hid_pad, head_pad)
    p["hb"] = _pad2(hb, 1, head_pad)
    return p


_BF16_KEYS = ("cw", "wl", "w1i", "w1v", "w2", "hw")   # matmul operands -> bf16


def build_net(key, s_dim, latent_dim, n_actions, n_heads, in_ch, H, W, hidden,
              init_log_alpha=0.0):
    kq, ka = jax.random.split(key)
    raw_q = init_raw_q(kq, s_dim, latent_dim, n_actions, n_heads, in_ch, H, W, hidden)
    raw_q_target = dict(raw_q)            # update(rate=1.0): exact copy
    raw_actor = init_raw_policy(ka, s_dim, latent_dim, n_actions, in_ch, H, W, hidden)

    cfg = (s_dim, latent_dim, n_actions, n_heads, in_ch, H, W, hidden)
    prep = [_prepare_net(raw_q, "q", *cfg),
            _prepare_net(raw_q_target, "q", *cfg),
            _prepare_net(raw_actor, "pi", *cfg)]
    stack = {}
    for k in prep[0]:
        dt = jnp.bfloat16 if k in _BF16_KEYS else jnp.float32
        stack[k] = jnp.asarray(np.stack([np.asarray(p[k]) for p in prep]), dtype=dt)

    return dict(stack=stack,
                raw=dict(q=raw_q, q_target=raw_q_target, actor=raw_actor),
                n_heads=n_heads, n_actions=n_actions,
                log_alpha=jnp.full((1,), init_log_alpha, jnp.float32))


# --------------------------- pure-JAX reference -----------------------------

def _im2col(x_nhwc, kh, kw):
    B, H, W, C = x_nhwc.shape
    oh, ow = H - kh + 1, W - kw + 1
    cols = [x_nhwc[:, i:i + oh, j:j + ow, :] for i in range(kh) for j in range(kw)]
    patches = jnp.concatenate(cols, axis=-1)
    return patches.reshape(B * oh * ow, kh * kw * C)


def _ref_trunk(p, inner, outer):
    x = jnp.transpose(outer, (0, 2, 3, 1))
    conv = jnp.maximum(_im2col(x, KH, KW) @ p["conv_w"] + p["conv_b"], 0.0)
    vfeat = conv.reshape(outer.shape[0], -1)
    vis = jnp.maximum(vfeat @ p["wl"] + p["bl"], 0.0)
    h1 = jnp.maximum(jnp.concatenate([inner, vis], -1) @ p["w1"] + p["b1"], 0.0)
    return jnp.maximum(h1 @ p["w2"] + p["b2"], 0.0)


def _ref_q(p, inner, outer, n_heads, n_actions):
    h2 = _ref_trunk(p, inner, outer)
    v = h2 @ p["wv"] + p["bv"]
    a = (h2 @ p["wa"] + p["ba"]).reshape(-1, n_heads, n_actions)
    return v[:, :, None] + a - a.mean(-1, keepdims=True)


def _ref_actor(p, inner, outer):
    h2 = _ref_trunk(p, inner, outer)
    logits = h2 @ p["wp"] + p["bp"]
    return jax.nn.softmax(logits, -1), jax.nn.log_softmax(logits, -1)


# --------------------------------- main -------------------------------------

if __name__ == "__main__":
    B, C, H, W = 2, 4, 16, 16
    s_dim, latent_dim, n_actions, n_heads, hidden = 8, 32, 6, 8, 32

    root = jax.random.PRNGKey(0)
    k_in, k_out, k_nin, k_nout, k_net = jax.random.split(root, 5)

    inner = jax.random.normal(k_in, (B, s_dim), jnp.float32)
    outer = jax.random.normal(k_out, (B, C, H, W), jnp.float32)
    next_inner = jax.random.normal(k_nin, (B, s_dim), jnp.float32)
    next_outer = jax.random.normal(k_nout, (B, C, H, W), jnp.float32)

    net = build_net(k_net, s_dim, latent_dim, n_actions, n_heads, C, H, W, hidden)

    q, next_q, next_pi, next_log_pi, log_alpha = jax.block_until_ready(
        evaluate_critic(net, inner, outer, next_inner, next_outer))
    q_a, pi_a, log_pi_a = jax.block_until_ready(evaluate_actor(net, inner, outer))

    # sanity check against a plain-JAX f32 reference on the original
    # (unfolded, unpadded) parameters
    raw = net["raw"]
    q_ref = _ref_q(raw["q"], inner, outer, n_heads, n_actions)
    nq_ref = _ref_q(raw["q_target"], next_inner, next_outer, n_heads, n_actions)
    pi_ref, logpi_ref = _ref_actor(raw["actor"], next_inner, next_outer)
    pi_a_ref, logpi_a_ref = _ref_actor(raw["actor"], inner, outer)

    tol = dict(rtol=2e-2, atol=2e-2)   # bf16 matmuls vs f32 reference
    np.testing.assert_allclose(np.asarray(q), np.asarray(q_ref), **tol)
    np.testing.assert_allclose(np.asarray(next_q), np.asarray(nq_ref), **tol)
    np.testing.assert_allclose(np.asarray(next_pi), np.asarray(pi_ref), **tol)
    np.testing.assert_allclose(np.asarray(next_log_pi), np.asarray(logpi_ref), **tol)
    np.testing.assert_allclose(np.asarray(q_a), np.asarray(q_ref), **tol)
    np.testing.assert_allclose(np.asarray(pi_a), np.asarray(pi_a_ref), **tol)
    np.testing.assert_allclose(np.asarray(log_pi_a), np.asarray(logpi_a_ref), **tol)
    np.testing.assert_allclose(np.asarray(next_pi).sum(-1), np.ones(B),
                               rtol=1e-4, atol=1e-4)
    assert q.shape == (B, n_heads, n_actions) and log_alpha.shape == (1, 1)

    print("KERNEL_OK")
</pallas_src>

<mosaic_0001>
module attributes {stable_mosaic.version = 11 : i64} {
  func.func @_fused_net_kernel(%arg0: i32, %arg1: memref<1x2x1024xf32, #tpu.memory_space<vmem>>, %arg2: memref<1x2x8xf32, #tpu.memory_space<vmem>>, %arg3: memref<1x1024x3200xbf16, #tpu.memory_space<vmem>>, %arg4: memref<1x1x3200xf32, #tpu.memory_space<vmem>>, %arg5: memref<1x3200x128xbf16, #tpu.memory_space<vmem>>, %arg6: memref<1x1x128xf32, #tpu.memory_space<vmem>>, %arg7: memref<1x8x128xbf16, #tpu.memory_space<vmem>>, %arg8: memref<1x128x128xbf16, #tpu.memory_space<vmem>>, %arg9: memref<1x1x128xf32, #tpu.memory_space<vmem>>, %arg10: memref<1x128x128xbf16, #tpu.memory_space<vmem>>, %arg11: memref<1x1x128xf32, #tpu.memory_space<vmem>>, %arg12: memref<1x128x128xbf16, #tpu.memory_space<vmem>>, %arg13: memref<1x1x128xf32, #tpu.memory_space<vmem>>, %arg14: memref<1x2x128xf32, #tpu.memory_space<vmem>>, %arg15: memref<1x2x128xf32, #tpu.memory_space<vmem>>, %arg16: memref<1x2x128xf32, #tpu.memory_space<vmem>>) attributes {dimension_semantics = [#tpu.dimension_semantics<parallel>], iteration_bounds = array<i64: 3>, scalar_prefetch = 0 : i64, scratch_operands = 0 : i64, tpu.core_type = #tpu.core_type<tc>, window_params = [{transform_indices = @transform_0, window_bounds = array<i64: 1, 2, 1024>}, {transform_indices = @transform_1, window_bounds = array<i64: 1, 2, 8>}, {transform_indices = @transform_2, window_bounds = array<i64: 1, 1024, 3200>}, {transform_indices = @transform_3, window_bounds = array<i64: 1, 1, 3200>}, {transform_indices = @transform_4, window_bounds = array<i64: 1, 3200, 128>}, {transform_indices = @transform_5, window_bounds = array<i64: 1, 1, 128>}, {transform_indices = @transform_6, window_bounds = array<i64: 1, 8, 128>}, {transform_indices = @transform_7, window_bounds = array<i64: 1, 128, 128>}, {transform_indices = @transform_8, window_bounds = array<i64: 1, 1, 128>}, {transform_indices = @transform_9, window_bounds = array<i64: 1, 128, 128>}, {transform_indices = @transform_10, window_bounds = array<i64: 1, 1, 128>}, {transform_indices = @transform_11, window_bounds = array<i64: 1, 128, 128>}, {transform_indices = @transform_12, window_bounds = array<i64: 1, 1, 128>}, {transform_indices = @transform_13, window_bounds = array<i64: 1, 2, 128>}, {transform_indices = @transform_14, window_bounds = array<i64: 1, 2, 128>}, {transform_indices = @transform_15, window_bounds = array<i64: 1, 2, 128>}]} {
    %c0 = arith.constant 0 : index
    %c0_0 = arith.constant 0 : index
    %c0_1 = arith.constant 0 : index
    %0 = vector.load %arg1[%c0, %c0_0, %c0_1] : memref<1x2x1024xf32, #tpu.memory_space<vmem>>, vector<1x2x1024xf32>
    %1 = vector.shape_cast %0 : vector<1x2x1024xf32> to vector<2x1024xf32>
    %2 = arith.truncf %1 : vector<2x1024xf32> to vector<2x1024xbf16>
    %c0_2 = arith.constant 0 : index
    %c0_3 = arith.constant 0 : index
    %c0_4 = arith.constant 0 : index
    %3 = vector.load %arg3[%c0_2, %c0_3, %c0_4] : memref<1x1024x3200xbf16, #tpu.memory_space<vmem>>, vector<1x1024x3200xbf16>
    %4 = vector.shape_cast %3 : vector<1x1024x3200xbf16> to vector<1024x3200xbf16>
    %cst = arith.constant dense<0.000000e+00> : vector<2x3200xf32>
    %5 = tpu.matmul %2, %4, %cst {dimension_numbers = #tpu.dot_dimension_numbers<[1], [0], [0], [1], [0, 0, 1, 1], [], []>} : vector<2x1024xbf16>, vector<1024x3200xbf16>, vector<2x3200xf32> -> vector<2x3200xf32>
    %c0_5 = arith.constant 0 : index
    %c0_6 = arith.constant 0 : index
    %c0_7 = arith.constant 0 : index
    %6 = vector.load %arg4[%c0_5, %c0_6, %c0_7] : memref<1x1x3200xf32, #tpu.memory_space<vmem>>, vector<1x1x3200xf32>
    %7 = vector.shape_cast %6 : vector<1x1x3200xf32> to vector<1x3200xf32>
    %8 = vector.broadcast %7 : vector<1x3200xf32> to vector<2x3200xf32>
    %9 = arith.addf %5, %8 : vector<2x3200xf32>
    %cst_8 = arith.constant 0.000000e+00 : f32
    %10 = vector.broadcast %cst_8 : f32 to vector<2x3200xf32>
    %11 = arith.maximumf %9, %10 : vector<2x3200xf32>
    %12 = arith.truncf %11 : vector<2x3200xf32> to vector<2x3200xbf16>
    %c0_9 = arith.constant 0 : index
    %c0_10 = arith.constant 0 : index
    %c0_11 = arith.constant 0 : index
    %13 = vector.load %arg5[%c0_9, %c0_10, %c0_11] : memref<1x3200x128xbf16, #tpu.memory_space<vmem>>, vector<1x3200x128xbf16>
    %14 = vector.shape_cast %13 : vector<1x3200x128xbf16> to vector<3200x128xbf16>
    %cst_12 = arith.constant dense<0.000000e+00> : vector<2x128xf32>
    %15 = tpu.matmul %12, %14, %cst_12 {dimension_numbers = #tpu.dot_dimension_numbers<[1], [0], [0], [1], [0, 0, 1, 1], [], []>} : vector<2x3200xbf16>, vector<3200x128xbf16>, vector<2x128xf32> -> vector<2x128xf32>
    %c0_13 = arith.constant 0 : index
    %c0_14 = arith.constant 0 : index
    %c0_15 = arith.constant 0 : index
    %16 = vector.load %arg6[%c0_13, %c0_14, %c0_15] : memref<1x1x128xf32, #tpu.memory_space<vmem>>, vector<1x1x128xf32>
    %17 = vector.shape_cast %16 : vector<1x1x128xf32> to vector<1x128xf32>
    %18 = vector.broadcast %17 : vector<1x128xf32> to vector<2x128xf32>
    %19 = arith.addf %15, %18 : vector<2x128xf32>
    %cst_16 = arith.constant 0.000000e+00 : f32
    %20 = vector.broadcast %cst_16 : f32 to vector<2x128xf32>
    %21 = arith.maximumf %19, %20 : vector<2x128xf32>
    %c0_17 = arith.constant 0 : index
    %c0_18 = arith.constant 0 : index
    %c0_19 = arith.constant 0 : index
    %22 = vector.load %arg2[%c0_17, %c0_18, %c0_19] : memref<1x2x8xf32, #tpu.memory_space<vmem>>, vector<1x2x8xf32>
    %23 = vector.shape_cast %22 : vector<1x2x8xf32> to vector<2x8xf32>
    %24 = arith.truncf %23 : vector<2x8xf32> to vector<2x8xbf16>
    %c0_20 = arith.constant 0 : index
    %c0_21 = arith.constant 0 : index
    %c0_22 = arith.constant 0 : index
    %25 = vector.load %arg7[%c0_20, %c0_21, %c0_22] : memref<1x8x128xbf16, #tpu.memory_space<vmem>>, vector<1x8x128xbf16>
    %26 = vector.shape_cast %25 : vector<1x8x128xbf16> to vector<8x128xbf16>
    %cst_23 = arith.constant dense<0.000000e+00> : vector<2x128xf32>
    %27 = tpu.matmul %24, %26, %cst_23 {dimension_numbers = #tpu.dot_dimension_numbers<[1], [0], [0], [1], [0, 0, 1, 1], [], []>} : vector<2x8xbf16>, vector<8x128xbf16>, vector<2x128xf32> -> vector<2x128xf32>
    %28 = arith.truncf %21 : vector<2x128xf32> to vector<2x128xbf16>
    %c0_24 = arith.constant 0 : index
    %c0_25 = arith.constant 0 : index
    %c0_26 = arith.constant 0 : index
    %29 = vector.load %arg8[%c0_24, %c0_25, %c0_26] : memref<1x128x128xbf16, #tpu.memory_space<vmem>>, vector<1x128x128xbf16>
    %30 = vector.shape_cast %29 : vector<1x128x128xbf16> to vector<128x128xbf16>
    %cst_27 = arith.constant dense<0.000000e+00> : vector<2x128xf32>
    %31 = tpu.matmul %28, %30, %cst_27 {dimension_numbers = #tpu.dot_dimension_numbers<[1], [0], [0], [1], [0, 0, 1, 1], [], []>} : vector<2x128xbf16>, vector<128x128xbf16>, vector<2x128xf32> -> vector<2x128xf32>
    %32 = arith.addf %27, %31 : vector<2x128xf32>
    %c0_28 = arith.constant 0 : index
    %c0_29 = arith.constant 0 : index
    %c0_30 = arith.constant 0 : index
    %33 = vector.load %arg9[%c0_28, %c0_29, %c0_30] : memref<1x1x128xf32, #tpu.memory_space<vmem>>, vector<1x1x128xf32>
    %34 = vector.shape_cast %33 : vector<1x1x128xf32> to vector<1x128xf32>
    %35 = vector.broadcast %34 : vector<1x128xf32> to vector<2x128xf32>
    %36 = arith.addf %32, %35 : vector<2x128xf32>
    %cst_31 = arith.constant 0.000000e+00 : f32
    %37 = vector.broadcast %cst_31 : f32 to vector<2x128xf32>
    %38 = arith.maximumf %36, %37 : vector<2x128xf32>
    %39 = arith.truncf %38 : vector<2x128xf32> to vector<2x128xbf16>
    %c0_32 = arith.constant 0 : index
    %c0_33 = arith.constant 0 : index
    %c0_34 = arith.constant 0 : index
    %40 = vector.load %arg10[%c0_32, %c0_33, %c0_34] : memref<1x128x128xbf16, #tpu.memory_space<vmem>>, vector<1x128x128xbf16>
    %41 = vector.shape_cast %40 : vector<1x128x128xbf16> to vector<128x128xbf16>
    %cst_35 = arith.constant dense<0.000000e+00> : vector<2x128xf32>
    %42 = tpu.matmul %39, %41, %cst_35 {dimension_numbers = #tpu.dot_dimension_numbers<[1], [0], [0], [1], [0, 0, 1, 1], [], []>} : vector<2x128xbf16>, vector<128x128xbf16>, vector<2x128xf32> -> vector<2x128xf32>
    %c0_36 = arith.constant 0 : index
    %c0_37 = arith.constant 0 : index
    %c0_38 = arith.constant 0 : index
    %43 = vector.load %arg11[%c0_36, %c0_37, %c0_38] : memref<1x1x128xf32, #tpu.memory_space<vmem>>, vector<1x1x128xf32>
    %44 = vector.shape_cast %43 : vector<1x1x128xf32> to vector<1x128xf32>
    %45 = vector.broadcast %44 : vector<1x128xf32> to vector<2x128xf32>
    %46 = arith.addf %42, %45 : vector<2x128xf32>
    %cst_39 = arith.constant 0.000000e+00 : f32
    %47 = vector.broadcast %cst_39 : f32 to vector<2x128xf32>
    %48 = arith.maximumf %46, %47 : vector<2x128xf32>
    %49 = arith.truncf %48 : vector<2x128xf32> to vector<2x128xbf16>
    %c0_40 = arith.constant 0 : index
    %c0_41 = arith.constant 0 : index
    %c0_42 = arith.constant 0 : index
    %50 = vector.load %arg12[%c0_40, %c0_41, %c0_42] : memref<1x128x128xbf16, #tpu.memory_space<vmem>>, vector<1x128x128xbf16>
    %51 = vector.shape_cast %50 : vector<1x128x128xbf16> to vector<128x128xbf16>
    %cst_43 = arith.constant dense<0.000000e+00> : vector<2x128xf32>
    %52 = tpu.matmul %49, %51, %cst_43 {dimension_numbers = #tpu.dot_dimension_numbers<[1], [0], [0], [1], [0, 0, 1, 1], [], []>} : vector<2x128xbf16>, vector<128x128xbf16>, vector<2x128xf32> -> vector<2x128xf32>
    %c0_44 = arith.constant 0 : index
    %c0_45 = arith.constant 0 : index
    %c0_46 = arith.constant 0 : index
    %53 = vector.load %arg13[%c0_44, %c0_45, %c0_46] : memref<1x1x128xf32, #tpu.memory_space<vmem>>, vector<1x1x128xf32>
    %54 = vector.shape_cast %53 : vector<1x1x128xf32> to vector<1x128xf32>
    %55 = vector.broadcast %54 : vector<1x128xf32> to vector<2x128xf32>
    %56 = arith.addf %52, %55 : vector<2x128xf32>
    %c0_47 = arith.constant 0 : index
    %c0_48 = arith.constant 0 : index
    %c0_49 = arith.constant 0 : index
    %57 = vector.load %arg14[%c0_47, %c0_48, %c0_49] : memref<1x2x128xf32, #tpu.memory_space<vmem>>, vector<1x2x128xf32>
    %58 = vector.shape_cast %57 : vector<1x2x128xf32> to vector<2x128xf32>
    %59 = vector.shape_cast %56 : vector<2x128xf32> to vector<1x2x128xf32>
    tpu.vector_store %arg14[%c0_47, %c0_48, %c0_49], %59 {strides = array<i32>} : memref<1x2x128xf32, #tpu.memory_space<vmem>>, vector<1x2x128xf32>,
    %60 = tpu.iota {dimensions = array<i32: 1>} : vector<2x128xi32>
    %c6_i32 = arith.constant 6 : i32
    %61 = vector.broadcast %c6_i32 : i32 to vector<2x128xi32>
    %62 = arith.cmpi slt, %60, %61 : vector<2x128xi32>
    %cst_50 = arith.constant -1.000000e+30 : f32
    %63 = vector.broadcast %cst_50 : f32 to vector<2x128xf32>
    %64 = arith.select %62, %56, %63 : vector<2x128xi1>, vector<2x128xf32>
    %cst_51 = arith.constant dense<0xFF800000> : vector<2xf32>
    %65 = vector.multi_reduction <maximumf>, %64, %cst_51 [1] : vector<2x128xf32> to vector<2xf32>
    %66 = vector.shape_cast %65 : vector<2xf32> to vector<2x1xf32>
    %67 = vector.broadcast %66 : vector<2x1xf32> to vector<2x128xf32>
    %68 = arith.subf %64, %67 : vector<2x128xf32>
    %69 = math.exp %68 : vector<2x128xf32>
    %cst_52 = arith.constant dense<0.000000e+00> : vector<2xf32>
    %70 = vector.multi_reduction <add>, %69, %cst_52 [1] : vector<2x128xf32> to vector<2xf32>
    %71 = vector.shape_cast %70 : vector<2xf32> to vector<2x1xf32>
    %72 = vector.broadcast %71 : vector<2x1xf32> to vector<2x128xf32>
    %73 = arith.divf %69, %72 : vector<2x128xf32>
    %c0_53 = arith.constant 0 : index
    %c0_54 = arith.constant 0 : index
    %c0_55 = arith.constant 0 : index
    %74 = vector.load %arg15[%c0_53, %c0_54, %c0_55] : memref<1x2x128xf32, #tpu.memory_space<vmem>>, vector<1x2x128xf32>
    %75 = vector.shape_cast %74 : vector<1x2x128xf32> to vector<2x128xf32>
    %76 = vector.shape_cast %73 : vector<2x128xf32> to vector<1x2x128xf32>
    tpu.vector_store %arg15[%c0_53, %c0_54, %c0_55], %76 {strides = array<i32>} : memref<1x2x128xf32, #tpu.memory_space<vmem>>, vector<1x2x128xf32>,
    %77 = vector.broadcast %66 : vector<2x1xf32> to vector<2x128xf32>
    %78 = arith.subf %64, %77 : vector<2x128xf32>
    %79 = math.log %71 : vector<2x1xf32>
    %80 = vector.broadcast %79 : vector<2x1xf32> to vector<2x128xf32>
    %81 = arith.subf %78, %80 : vector<2x128xf32>
    %c0_56 = arith.constant 0 : index
    %c0_57 = arith.constant 0 : index
    %c0_58 = arith.constant 0 : index
    %82 = vector.load %arg16[%c0_56, %c0_57, %c0_58] : memref<1x2x128xf32, #tpu.memory_space<vmem>>, vector<1x2x128xf32>
    %83 = vector.shape_cast %82 : vector<1x2x128xf32> to vector<2x128xf32>
    %84 = vector.shape_cast %81 : vector<2x128xf32> to vector<1x2x128xf32>
    tpu.vector_store %arg16[%c0_56, %c0_57, %c0_58], %84 {strides = array<i32>} : memref<1x2x128xf32, #tpu.memory_space<vmem>>, vector<1x2x128xf32>,
    return
  }
  func.func @transform_0(%arg0: i32) -> (i32, i32, i32) {
    %c0_i32 = arith.constant 0 : i32
    %c0_i32_0 = arith.constant 0 : i32
    %c0_i32_1 = arith.constant 0 : i32
    return %arg0, %c0_i32, %c0_i32_0 : i32, i32, i32
  }
  func.func @transform_1(%arg0: i32) -> (i32, i32, i32) {
    %c0_i32 = arith.constant 0 : i32
    %c0_i32_0 = arith.constant 0 : i32
    %c0_i32_1 = arith.constant 0 : i32
    return %arg0, %c0_i32, %c0_i32_0 : i32, i32, i32
  }
  func.func @transform_2(%arg0: i32) -> (i32, i32, i32) {
    %c0_i32 = arith.constant 0 : i32
    %c0_i32_0 = arith.constant 0 : i32
    %c0_i32_1 = arith.constant 0 : i32
    return %arg0, %c0_i32, %c0_i32_0 : i32, i32, i32
  }
  func.func @transform_3(%arg0: i32) -> (i32, i32, i32) {
    %c0_i32 = arith.constant 0 : i32
    %c0_i32_0 = arith.constant 0 : i32
    %c0_i32_1 = arith.constant 0 : i32
    return %arg0, %c0_i32, %c0_i32_0 : i32, i32, i32
  }
  func.func @transform_4(%arg0: i32) -> (i32, i32, i32) {
    %c0_i32 = arith.constant 0 : i32
    %c0_i32_0 = arith.constant 0 : i32
    %c0_i32_1 = arith.constant 0 : i32
    return %arg0, %c0_i32, %c0_i32_0 : i32, i32, i32
  }
  func.func @transform_5(%arg0: i32) -> (i32, i32, i32) {
    %c0_i32 = arith.constant 0 : i32
    %c0_i32_0 = arith.constant 0 : i32
    %c0_i32_1 = arith.constant 0 : i32
    return %arg0, %c0_i32, %c0_i32_0 : i32, i32, i32
  }
  func.func @transform_6(%arg0: i32) -> (i32, i32, i32) {
    %c0_i32 = arith.constant 0 : i32
    %c0_i32_0 = arith.constant 0 : i32
    %c0_i32_1 = arith.constant 0 : i32
    return %arg0, %c0_i32, %c0_i32_0 : i32, i32, i32
  }
  func.func @transform_7(%arg0: i32) -> (i32, i32, i32) {
    %c0_i32 = arith.constant 0 : i32
    %c0_i32_0 = arith.constant 0 : i32
    %c0_i32_1 = arith.constant 0 : i32
    return %arg0, %c0_i32, %c0_i32_0 : i32, i32, i32
  }
  func.func @transform_8(%arg0: i32) -> (i32, i32, i32) {
    %c0_i32 = arith.constant 0 : i32
    %c0_i32_0 = arith.constant 0 : i32
    %c0_i32_1 = arith.constant 0 : i32
    return %arg0, %c0_i32, %c0_i32_0 : i32, i32, i32
  }
  func.func @transform_9(%arg0: i32) -> (i32, i32, i32) {
    %c0_i32 = arith.constant 0 : i32
    %c0_i32_0 = arith.constant 0 : i32
    %c0_i32_1 = arith.constant 0 : i32
    return %arg0, %c0_i32, %c0_i32_0 : i32, i32, i32
  }
  func.func @transform_10(%arg0: i32) -> (i32, i32, i32) {
    %c0_i32 = arith.constant 0 : i32
    %c0_i32_0 = arith.constant 0 : i32
    %c0_i32_1 = arith.constant 0 : i32
    return %arg0, %c0_i32, %c0_i32_0 : i32, i32, i32
  }
  func.func @transform_11(%arg0: i32) -> (i32, i32, i32) {
    %c0_i32 = arith.constant 0 : i32
    %c0_i32_0 = arith.constant 0 : i32
    %c0_i32_1 = arith.constant 0 : i32
    return %arg0, %c0_i32, %c0_i32_0 : i32, i32, i32
  }
  func.func @transform_12(%arg0: i32) -> (i32, i32, i32) {
    %c0_i32 = arith.constant 0 : i32
    %c0_i32_0 = arith.constant 0 : i32
    %c0_i32_1 = arith.constant 0 : i32
    return %arg0, %c0_i32, %c0_i32_0 : i32, i32, i32
  }
  func.func @transform_13(%arg0: i32) -> (i32, i32, i32) {
    %c0_i32 = arith.constant 0 : i32
    %c0_i32_0 = arith.constant 0 : i32
    %c0_i32_1 = arith.constant 0 : i32
    return %arg0, %c0_i32, %c0_i32_0 : i32, i32, i32
  }
  func.func @transform_14(%arg0: i32) -> (i32, i32, i32) {
    %c0_i32 = arith.constant 0 : i32
    %c0_i32_0 = arith.constant 0 : i32
    %c0_i32_1 = arith.constant 0 : i32
    return %arg0, %c0_i32, %c0_i32_0 : i32, i32, i32
  }
  func.func @transform_15(%arg0: i32) -> (i32, i32, i32) {
    %c0_i32 = arith.constant 0 : i32
    %c0_i32_0 = arith.constant 0 : i32
    %c0_i32_1 = arith.constant 0 : i32
    return %arg0, %c0_i32, %c0_i32_0 : i32, i32, i32
  }
}

</mosaic_0001>

<bundles_post_ra>
// kernel: squeeze.4
= control target key start
LH: loop header
LB: loop body
LE: loop exit
PB: predicated region body
PF: predicated region fallthrough
CT: control target
= control target key end

     0   :  { %s66_s8 = smov 110   ;;  %vm7_vm0 = vcmask 48128   ;;  %s67_s11 = smov 116   ;;  %s117_s0 = inlined_call_operand.vmem [shape: f32[1,2,48], index: 0, kind: input, shape index: {}]   ;;  %s118_s1 = inlined_call_operand.vmem [shape: f32[2,8,6], index: 1, kind: output, shape index: {}]  }
   0x1   :  { %v4_v0 = vld [vmem:[%s117_s0] sm:$0x3]  ;;  %s65_s0 = smov 122   ;;  %s68_s12 = smov 104  }
   0x2   :  { %5 = vst [vmem:[#allocation0] sm:$0x3] %v4_v0  ;;  %s69_s13 = smov 98   ;;  %s70_s14 = smov 92  }
   0x3   :  { %s71_s15 = smov 86  }
   0x9   :  { %v9_v1 = vld [vmem:[#allocation0] sm:$0x3]  }
   0xa   :  { %v21_v2 = vld [vmem:[#allocation0] sm:$0x3]   ;;  %10 = vrot.lane.b32.xlu0 %v9_v1, %s65_s0 }
   0xb   :  { %22 = vrot.lane.b32.xlu1 %v21_v2, %s66_s8  ;;  %v15_v3 = vld [vmem:[#allocation0] sm:$0x3]  }
   0xc   :  { %v27_v4 = vld [vmem:[#allocation0] sm:$0x3]  }
   0xd   :  { %v6_v5 = vld [vmem:[#allocation0] sm:$0x3]  }
   0xe   :  { %8 = vst.msk [vmem:[%s118_s1] ss:$8 sm:$0x3] %vm7_vm0, %v6_v5   ;;  %16 = vrot.lane.b32.xlu0 %v15_v3, %s67_s11  ;;  %v33_v6 = vld [vmem:[#allocation0] sm:$0x3]  }
   0xf   :  { %28 = vrot.lane.b32.xlu1 %v27_v4, %s68_s12  ;;  %v39_v7 = vld [vmem:[#allocation0] sm:$0x3]  }
  0x10   :  { %v45_v8 = vld [vmem:[#allocation0] sm:$0x3]  }
  0x12   :  { %34 = vrot.lane.b32.xlu0 %v33_v6, %s69_s13 }
  0x13   :  { %40 = vrot.lane.b32.xlu1 %v39_v7, %s70_s14 }
  0x16   :  { %46 = vrot.lane.b32.xlu0 %v45_v8, %s71_s15 }
  0x7c   :  { %v11_v9 = vpop.permute.xlu0 %10  }
  0x7d   :  { %v23_v10 = vpop.permute.xlu1 %22   ;;  %51 = vst.msk [vmem:[%s118_s1 + $0x1] ss:$8 sm:$0x3] %vm7_vm0, %v11_v9  }
  0x7e   :  { %53 = vst.msk [vmem:[%s118_s1 + $0x3] ss:$8 sm:$0x3] %vm7_vm0, %v23_v10  }
  0x80   :  { %v17_v11 = vpop.permute.xlu0 %16  }
  0x81   :  { %v29_v12 = vpop.permute.xlu1 %28   ;;  %52 = vst.msk [vmem:[%s118_s1 + $0x2] ss:$8 sm:$0x3] %vm7_vm0, %v17_v11  }
  0x82   :  { %54 = vst.msk [vmem:[%s118_s1 + $0x4] ss:$8 sm:$0x3] %vm7_vm0, %v29_v12  }
  0x84   :  { %v35_v13 = vpop.permute.xlu0 %34  }
  0x85   :  { %v41_v14 = vpop.permute.xlu1 %40   ;;  %55 = vst.msk [vmem:[%s118_s1 + $0x5] ss:$8 sm:$0x3] %vm7_vm0, %v35_v13  }
  0x86   :  { %56 = vst.msk [vmem:[%s118_s1 + $0x6] ss:$8 sm:$0x3] %vm7_vm0, %v41_v14  }
  0x88   :  { %v47_v15 = vpop.permute.xlu0 %46  }
  0x89   :  { %57 = vst.msk [vmem:[%s118_s1 + $0x7] ss:$8 sm:$0x3] %vm7_vm0, %v47_v15  }

// kernel: _critic_impl.1
= control target key start
LH: loop header
LB: loop body
LE: loop exit
PB: predicated region body
PF: predicated region fallthrough
CT: control target
= control target key end

     0   :  { %s24312_s0 = inlined_call_operand.vmem [shape: f32[3,2,1024], index: 0, kind: input, shape index: {}]   ;;  %s24313_s1 = inlined_call_operand.vmem [shape: f32[3,2,8], index: 1, kind: input, shape index: {}]   ;;  %s24314_s2 = inlined_call_operand.hbm [shape: bf16[3,1024,3200], index: 2, kind: input, shape index: {}]   ;;  %s24315_s3 = inlined_call_operand.hbm [shape: f32[3,1,3200], index: 3, kind: input, shape index: {}]   ;;  %s24316_s4 = inlined_call_operand.hbm [shape: bf16[3,3200,128], index: 4, kind: input, shape index: {}]   ;;  %s24317_s5 = inlined_call_operand.hbm [shape: f32[3,1,128], index: 5, kind: input, shape index: {}]   ;;  %s24318_s6 = inlined_call_operand.hbm [shape: bf16[3,8,128], index: 6, kind: input, shape index: {}]   ;;  %s24319_s7 = inlined_call_operand.hbm [shape: bf16[3,128,128], index: 7, kind: input, shape index: {}]   ;;  %s24320_s8 = inlined_call_operand.hbm [shape: f32[3,1,128], index: 8, kind: input, shape index: {}]   ;;  %s24321_s9 = inlined_call_operand.hbm [shape: bf16[3,128,128], index: 9, kind: input, shape index: {}]   ;;  %s24322_s10 = inlined_call_operand.hbm [shape: f32[3,1,128], index: 10, kind: input, shape index: {}]   ;;  %s24323_s11 = inlined_call_operand.hbm [shape: bf16[3,128,128], index: 11, kind: input, shape index: {}]   ;;  %s24324_s12 = inlined_call_operand.hbm [shape: f32[3,1,128], index: 12, kind: input, shape index: {}]   ;;  %s24325_s13 = inlined_call_operand.vmem [shape: f32[3,2,128], index: 13, kind: output, shape index: {0}]   ;;  %s24326_s14 = inlined_call_operand.vmem [shape: f32[3,2,128], index: 14, kind: output, shape index: {1}]   ;;  %s24327_s15 = inlined_call_operand.vmem [shape: f32[3,2,128], index: 15, kind: output, shape index: {2}]  }
   0x1   :  { %24341 = sst [smem:[#allocation29_spill]] %s24312_s0 }
   0x2   :  { %24342 = sst [smem:[#allocation30_spill]] %s24313_s1 }
   0x3   :  { %24343 = sst [smem:[#allocation31_spill]] %s24315_s3 }
   0x4   :  { %24344 = sst [smem:[#allocation32_spill]] %s24317_s5 }
   0x5   :  { %24345 = sst [smem:[#allocation33_spill]] %s24319_s7 }
   0x6   :  { %24346 = sst [smem:[#allocation34_spill]] %s24321_s9 }
   0x7   :  { %24347 = sst [smem:[#allocation35_spill]] %s24325_s13 }
   0x8   :  { %24348 = sst [smem:[#allocation36_spill]] %s24326_s14 }
   0x9   :  { %24349 = sst [smem:[#allocation37_spill]] %s24327_s15 }
   0xa   :  { %21 = vsyncpa [#allocation3], 0 }
   0xb   :  { %23 = vsyncpa [#allocation3 + $0x1], 0 }
   0xc   :  { %24 = vsyncpa [#allocation5], 0 }
   0xd   :  { %26 = vsyncpa [#allocation5 + $0x1], 0 }
   0xe   :  { %27 = vsyncpa [#allocation8], 0 }
   0xf   :  { %29 = vsyncpa [#allocation8 + $0x1], 0 }
  0x10   :  { %30 = vsyncpa [#allocation11], 0 }
  0x11   :  { %32 = vsyncpa [#allocation11 + $0x1], 0 }
  0x12   :  { %33 = vsyncpa [#allocation14], 0 }
  0x13   :  { %35 = vsyncpa [#allocation14 + $0x1], 0 }
  0x14   :  { %36 = vsyncpa [#allocation17], 0 }
  0x15   :  { %38 = vsyncpa [#allocation17 + $0x1], 0  ;;  %s21617_s18 = smov 0   ;;  %s21619_s19 = smov 0  }
  0x16   :  { %s21621_s20 = smov 0   ;;  %s21623_s21 = smov 0  }
  0x17 LB: > { %24350 = sst [smem:[#allocation25_spill]] %s21513_s20  ;;  %s21636_s22 = sadd.s32 4294967295, %s21517_s21   ;;  %s21517_s21 = sphi %s21623_s21, %s24385_s21   ;;  %s21513_s20 = sphi %s21621_s20, %s24387_s20   ;;  %s21509_s19 = sphi %s21619_s19, %s24389_s19   ;;  %s21505_s18 = sphi %s21617_s18, %s24388_s18  }
  0x18   : > { %24351 = sst [smem:[#allocation26_spill]] %s21636_s22  ;;  %s21639_s23 = sadd.s32 1, %s21517_s21  }
  0x19   : > { %24352 = sst [smem:[#allocation27_spill]] %s21639_s23  ;;  %s100_s24 = ssub.s32 %s21517_s21, %s21639_s23 }
  0x1a   : > { %s103_s25 = sadd.s32 1, %s21513_s20  ;;  %p101_p0 = scmp.eq.s32.totalorder %s100_s24, 0 }
  0x1b   : > { %p110_p1 = scmp.ne.s32.totalorder %s21513_s20, %s21509_s19  ;;  %p111_p2 = scmp.eq.s32.totalorder %s21517_s21, 0 }
  0x1c   : > { %p116_p3 = scmp.ne.s32.totalorder %s21509_s19, %s21505_s18  ;;  %p117_p5 = scmp.eq.s32.totalorder %s21636_s22, 0 }
  0x1d   : > { %s21649_s26 = scalar_select %p101_p0, %s21513_s20, %s103_s25  }
  0x1e   : > { %p112_p4 = por %p111_p2, %p110_p1  ;;  %p18492_p6 = scmp.lt.s32.totalorder %s21517_s21, 3 }
  0x1f   : > { %24353 = sst [smem:[#allocation28_spill]] %s21649_s26  ;;  %p21653_p7 = por %p117_p5, %p116_p3 }
  0x20   : > { %s21658_s28 = sand.u32 1, %s21513_s20   ;;  %p21660_p8 = pnand %p18492_p6, %p112_p4 }
  0x21   : > { %s24354_s27 = scalar_select %p21653_p7, 1, 0 }
  0x22   : > { %s24355_s29 = scalar_select %p21660_p8, 1, 0 }
  0x23   : > { %s21665_s30 = sand.u32 1, %s21517_s21   ;;  %s18429_s16 = smul.u32 25, %s21658_s28 }
  0x24   : > { %s18430_s17 = smul.u32 400, %s21517_s21  ;;  %s24356_s3 = sld [smem:[#allocation31_spill]] }
  0x25   : > { %s518_s26 = scalar_lea.vmem [#allocation4], %s18429_s16  ;;  %p21683_p12 = pneg %p21660_p8 }
  0x26   : > { %s526_s20 = sshll.u32 %s518_s26, 4  ;;  %s21675_s20 = int_to_ptr.vmem [resolvable:$true] %s526_s20 }
  0x2a   : > { %s21673_s25 = scalar_lea.hbm %s24356_s3, %s18430_s17  ;;  %s21138_s16 = scalar_lea.hbm %s24356_s3, 1200 }
  0x2b   : > { %s21133_s15 = scalar_lea.hbm %s21673_s25, 400  ;;  %p21139_p1 = scmp.lt.u32.totalorder %s21673_s25, %s24356_s3 }
  0x2c   : > { %p21134_p11 = scmp.ne.s32.totalorder %s21673_s25, %s21133_s15  ;;  %p21140_p2 = scmp.lt.u32.totalorder %s21138_s16, %s21133_s15 }
  0x2d   : > { %p21142_p4 = scmp.lt.u32.totalorder %s21133_s15, %s21673_s25 }
  0x2e   : > { %p21136_p13 = pnand %p21683_p12, %p21134_p11  ;;  %p21141_p3 = por %p21140_p2, %p21139_p1 }
  0x30   : > { %p21137_p0 = pneg %p21136_p13  ;;  %p21143_p5 = por %p21142_p4, %p21141_p3 }
  0x32   : > { %p21144_p6 = pnand %p21143_p5, %p21137_p0 }
  0x34   : > { %21147 = shalt.err (!%p21144_p6)
}
  0x35   : > { %s21148_s23 = scalar_lea.vmem %s21675_s20, 400  ;;  %s21519_s17 = smov [#allocation4]  }
  0x36   : > { %p21149_p11 = scmp.ne.s32.totalorder %s21675_s20, %s21148_s23  ;;  %s21153_s18 = sshll.u32 %s21519_s17, 4  ;;  %s21154_s18 = int_to_ptr.vmem [resolvable:$false] %s21153_s18 }
  0x37   : > { %s21155_s26 = scalar_lea.vmem %s21154_s18, 800  ;;  %p21156_p10 = scmp.lt.s32.totalorder %s21675_s20, %s21154_s18 }
  0x38   : > { %p21151_p13 = pnand %p21149_p11, %p21683_p12  ;;  %p21157_p7 = scmp.lt.s32.totalorder %s21155_s26, %s21148_s23 }
  0x3a   : > { %p21152_p9 = pneg %p21151_p13  ;;  %p21158_p1 = por %p21157_p7, %p21156_p10 }
  0x3c   : > { %p21159_p2 = pnand %p21158_p1, %p21152_p9 }
  0x3e   : > { %21162 = shalt.err (!%p21159_p2)
}
  0x3f   : > { %s24358_s15 = scalar_lea.sflag [#allocation5], %s21665_s30  ;;  %p24359_p0 = scmp.lt.s32.totalorder %s21517_s21, 4 }
  0x40   : > { %18464 = dma.hbm_to_vmem [thread:$0]  (!%p21660_p8), %s21673_s25, 400, %s21675_s20, %s24358_s15  }
  0x41   : > { %p24360_p3 = scmp.ge.s32.totalorder %s21517_s21, 1  ;;  %s21717_s16 = sshll.u32 %s21517_s21, 4 }
  0x42   : > { %s24362_s5 = sld [smem:[#allocation32_spill]]  ;;  %s557_s26 = scalar_lea.vmem [#allocation7], %s21658_s28 }
  0x43   : > { %p21712_p4 = pnand %p24360_p3, %p24359_p0  ;;  %s564_s20 = sshll.u32 %s557_s26, 4  ;;  %s565_s20 = int_to_ptr.vmem [resolvable:$true] %s564_s20 }
  0x45   : > { %s24361_s23 = scalar_select %p21712_p4, 1, 0 }
  0x48   : > { %s21723_s18 = scalar_lea.hbm %s24362_s5, %s21717_s16  ;;  %s21168_s1 = scalar_lea.hbm %s24362_s5, 48 }
  0x49   : > { %s21163_s15 = scalar_lea.hbm %s21723_s18, 16  ;;  %p21169_p5 = scmp.lt.u32.totalorder %s21723_s18, %s24362_s5 }
  0x4a   : > { %p21164_p7 = scmp.ne.s32.totalorder %s21723_s18, %s21163_s15  ;;  %p21170_p6 = scmp.lt.u32.totalorder %s21168_s1, %s21163_s15 }
  0x4b   : > { %p21172_p13 = scmp.lt.u32.totalorder %s21163_s15, %s21723_s18 }
  0x4c   : > { %p21166_p9 = pnand %p21164_p7, %p21683_p12  ;;  %p21171_p11 = por %p21170_p6, %p21169_p5 }
  0x4e   : > { %p21167_p10 = pneg %p21166_p9  ;;  %p21173_p1 = por %p21172_p13, %p21171_p11 }
  0x50   : > { %p21174_p2 = pnand %p21173_p1, %p21167_p10 }
  0x52   : > { %21177 = shalt.err (!%p21174_p2)
}
  0x53   : > { %s21178_s26 = scalar_lea.vmem %s565_s20, 16  ;;  %s21520_s25 = smov [#allocation7]  }
  0x54   : > { %p21179_p0 = scmp.ne.s32.totalorder %s565_s20, %s21178_s26  ;;  %s21183_s0 = sshll.u32 %s21520_s25, 4  ;;  %s21184_s0 = int_to_ptr.vmem [resolvable:$false] %s21183_s0 }
  0x55   : > { %s21185_s3 = scalar_lea.vmem %s21184_s0, 32  ;;  %p21186_p9 = scmp.lt.s32.totalorder %s565_s20, %s21184_s0 }
  0x56   : > { %p21181_p3 = pnand %p21179_p0, %p21683_p12  ;;  %p21187_p4 = scmp.lt.s32.totalorder %s21185_s3, %s21178_s26 }
  0x58   : > { %p21182_p7 = pneg %p21181_p3  ;;  %p21188_p8 = por %p21187_p4, %p21186_p9 }
  0x5a   : > { %p21189_p5 = pnand %p21188_p8, %p21182_p7 }
  0x5c   : > { %21192 = shalt.err (!%p21189_p5)
}
  0x5d   : > { %p24363_p6 = scmp.ne.s32.totalorder %s24355_s29, 0  ;;  %s24364_s1 = scalar_lea.sflag [#allocation8], %s21665_s30 }
  0x5e   : > { %s21747_s13 = sshll.u32 %s21658_s28, 6  ;;  %s21750_s25 = sshll.u32 %s21517_s21, 10 }
  0x5f   : > { %18470 = dma.hbm_to_vmem [thread:$0]  (!%p24363_p6), %s21723_s18, 16, %s565_s20, %s24364_s1  }
  0x60   : > { %s24365_s7 = sld [smem:[#allocation33_spill]]  ;;  %s593_s17 = scalar_lea.vmem [#allocation10], %s21747_s13 }
  0x61   : > { %s600_s26 = sshll.u32 %s593_s17, 4  ;;  %s24336_s18 = scalar_lea.sflag [#allocation11], %s21665_s30  ;;  %s21759_s26 = int_to_ptr.vmem [resolvable:$true] %s600_s26 }
  0x66   : > { %s21756_s24 = scalar_lea.hbm %s24365_s7, %s21750_s25  ;;  %s21198_s0 = scalar_lea.hbm %s24365_s7, 3072 }
  0x67   : > { %s21193_s20 = scalar_lea.hbm %s21756_s24, 1024  ;;  %p21199_p11 = scmp.lt.u32.totalorder %s21756_s24, %s24365_s7 }
  0x68   : > { %p21194_p8 = scmp.ne.s32.totalorder %s21756_s24, %s21193_s20  ;;  %p21200_p13 = scmp.lt.u32.totalorder %s21198_s0, %s21193_s20 }
  0x69   : > { %p21202_p2 = scmp.lt.u32.totalorder %s21193_s20, %s21756_s24 }
  0x6a   : > { %p21196_p4 = pnand %p21194_p8, %p21683_p12  ;;  %p21201_p1 = por %p21200_p13, %p21199_p11 }
  0x6c   : > { %p21197_p10 = pneg %p21196_p4  ;;  %p21203_p0 = por %p21202_p2, %p21201_p1 }
  0x6e   : > { %p21204_p3 = pnand %p21203_p0, %p21197_p10 }
  0x70   : > { %21207 = shalt.err (!%p21204_p3)
}
  0x71   : > { %s21208_s17 = scalar_lea.vmem %s21759_s26, 1024  ;;  %s21521_s3 = smov [#allocation10]  }
  0x72   : > { %p21209_p7 = scmp.ne.s32.totalorder %s21759_s26, %s21208_s17  ;;  %s21213_s1 = sshll.u32 %s21521_s3, 4  ;;  %s21214_s1 = int_to_ptr.vmem [resolvable:$false] %s21213_s1 }
  0x73   : > { %s21215_s5 = scalar_lea.vmem %s21214_s1, 2048  ;;  %p21216_p8 = scmp.lt.s32.totalorder %s21759_s26, %s21214_s1 }
  0x74   : > { %p21211_p9 = pnand %p21209_p7, %p21683_p12  ;;  %p21217_p4 = scmp.lt.s32.totalorder %s21215_s5, %s21208_s17 }
  0x76   : > { %p21212_p5 = pneg %p21211_p9  ;;  %p21218_p11 = por %p21217_p4, %p21216_p8 }
  0x78   : > { %p21219_p13 = pnand %p21218_p11, %p21212_p5 }
  0x7a   : > { %21222 = shalt.err (!%p21219_p13)
}
  0x7b   : > { %s24339_s20 = smov 64   ;;  %s21523_s0 = smov 4  }
  0x7c   : > { %18476 = dma.hbm_to_vmem [thread:$0]  (!%p24363_p6), %s21756_s24, 1024, %s21759_s26, %s24336_s18, %s24339_s20, %s24339_s20, %s21523_s0  }
  0x7d   : > { %s24366_s9 = sld [smem:[#allocation34_spill]]  ;;  %s631_s1 = scalar_lea.vmem [#allocation13], %s21747_s13 }
  0x7e   : > { %s638_s5 = sshll.u32 %s631_s1, 4  ;;  %s24337_s7 = scalar_lea.sflag [#allocation14], %s21665_s30  ;;  %s21795_s5 = int_to_ptr.vmem [resolvable:$true] %s638_s5 }
  0x83   : > { %s21792_s3 = scalar_lea.hbm %s24366_s9, %s21750_s25  ;;  %s21228_s15 = scalar_lea.hbm %s24366_s9, 3072 }
  0x84   : > { %s21223_s22 = scalar_lea.hbm %s21792_s3, 1024  ;;  %p21229_p0 = scmp.lt.u32.totalorder %s21792_s3, %s24366_s9 }
  0x85   : > { %p21224_p10 = scmp.ne.s32.totalorder %s21792_s3, %s21223_s22  ;;  %p21230_p3 = scmp.lt.u32.totalorder %s21228_s15, %s21223_s22 }
  0x86   : > { %p21232_p9 = scmp.lt.u32.totalorder %s21223_s22, %s21792_s3 }
  0x87   : > { %p21226_p1 = pnand %p21224_p10, %p21683_p12  ;;  %p21231_p7 = por %p21230_p3, %p21229_p0 }
  0x89   : > { %p21227_p2 = pneg %p21226_p1  ;;  %p21233_p5 = por %p21232_p9, %p21231_p7 }
  0x8b   : > { %p21234_p8 = pnand %p21233_p5, %p21227_p2 }
  0x8d   : > { %21237 = shalt.err (!%p21234_p8)
}
  0x8e   : > { %s21238_s1 = scalar_lea.vmem %s21795_s5, 1024  ;;  %s21524_s24 = smov [#allocation13]  }
  0x8f   : > { %p21239_p4 = scmp.ne.s32.totalorder %s21795_s5, %s21238_s1  ;;  %s21243_s26 = sshll.u32 %s21524_s24, 4  ;;  %s21244_s26 = int_to_ptr.vmem [resolvable:$false] %s21243_s26 }
  0x90   : > { %s21245_s18 = scalar_lea.vmem %s21244_s26, 2048  ;;  %p21246_p10 = scmp.lt.s32.totalorder %s21795_s5, %s21244_s26 }
  0x91   : > { %p21241_p11 = pnand %p21239_p4, %p21683_p12  ;;  %p21247_p1 = scmp.lt.s32.totalorder %s21245_s18, %s21238_s1 }
  0x93   : > { %p21242_p13 = pneg %p21241_p11  ;;  %p21248_p0 = por %p21247_p1, %p21246_p10 }
  0x95   : > { %p21249_p3 = pnand %p21248_p0, %p21242_p13 }
  0x97   : > { %21252 = shalt.err (!%p21249_p3)
}
  0x98   : > { %18482 = dma.hbm_to_vmem [thread:$0]  (!%p24363_p6), %s21792_s3, 1024, %s21795_s5, %s24337_s7, %s24339_s20, %s24339_s20, %s21523_s0  }
  0x99   : > { %s21828_s17 = scalar_lea.hbm %s24323_s11, %s21750_s25  ;;  %s669_s1 = scalar_lea.vmem [#allocation16], %s21747_s13 }
  0x9a   : > { %s676_s24 = sshll.u32 %s669_s1, 4  ;;  %s18427_s26 = smul.u32 12800, %s21658_s28  ;;  %s21831_s24 = int_to_ptr.vmem [resolvable:$true] %s676_s24 }
  0x9b   : > { %s24338_s18 = scalar_lea.sflag [#allocation17], %s21665_s30  ;;  %s21253_s9 = scalar_lea.hbm %s21828_s17, 1024 }
  0x9c   : > { %p21254_p2 = scmp.ne.s32.totalorder %s21828_s17, %s21253_s9  ;;  %s21258_s25 = scalar_lea.hbm %s24323_s11, 3072 }
  0x9d   : > { %p21259_p5 = scmp.lt.u32.totalorder %s21828_s17, %s24323_s11  ;;  %p21260_p8 = scmp.lt.u32.totalorder %s21258_s25, %s21253_s9 }
  0x9e   : > { %p21256_p7 = pnand %p21254_p2, %p21683_p12  ;;  %p21262_p11 = scmp.lt.u32.totalorder %s21253_s9, %s21828_s17 }
  0x9f   : > { %p21261_p4 = por %p21260_p8, %p21259_p5 }
  0xa0   : > { %p21257_p9 = pneg %p21256_p7 }
  0xa1   : > { %p21263_p13 = por %p21262_p11, %p21261_p4 }
  0xa3   : > { %p21264_p10 = pnand %p21263_p13, %p21257_p9 }
  0xa5   : > { %21267 = shalt.err (!%p21264_p10)
}
  0xa6   : > { %s21268_s13 = scalar_lea.vmem %s21831_s24, 1024  ;;  %s21525_s1 = smov [#allocation16]  }
  0xa7   : > { %p21269_p1 = scmp.ne.s32.totalorder %s21831_s24, %s21268_s13  ;;  %s21273_s3 = sshll.u32 %s21525_s1, 4  ;;  %s21274_s3 = int_to_ptr.vmem [resolvable:$false] %s21273_s3 }
  0xa8   : > { %s21275_s5 = scalar_lea.vmem %s21274_s3, 2048  ;;  %p21276_p2 = scmp.lt.s32.totalorder %s21831_s24, %s21274_s3 }
  0xa9   : > { %p21271_p0 = pnand %p21269_p1, %p21683_p12  ;;  %p21277_p7 = scmp.lt.s32.totalorder %s21275_s5, %s21268_s13 }
  0xab   : > { %p21272_p3 = pneg %p21271_p0  ;;  %p21278_p5 = por %p21277_p7, %p21276_p2 }
  0xad   : > { %p21279_p8 = pnand %p21278_p5, %p21272_p3 }
  0xaf   : > { %21282 = shalt.err (!%p21279_p8)
}
  0xb0   : > { %18488 = dma.hbm_to_vmem [thread:$0]  (!%p24363_p6), %s21828_s17, 1024, %s21831_s24, %s24338_s18, %s24339_s20, %s24339_s20, %s21523_s0  }
  0xb1   : > { %s18428_s9 = smul.u32 204800, %s21517_s21  ;;  %s497_s25 = scalar_lea.vmem [#allocation2], %s18427_s26 }
  0xb2   : > { %s504_s22 = sshll.u32 %s497_s25, 4  ;;  %s18431_s3 = smul.u32 1600, %s21658_s28  ;;  %s21869_s22 = int_to_ptr.vmem [resolvable:$true] %s504_s22 }
  0xb3   : > { %s21867_s1 = scalar_lea.hbm %s24314_s2, %s18428_s9  ;;  %s494_s5 = scalar_lea.sflag [#allocation3], %s21658_s28 }
  0xb4   : > { %s21283_s7 = scalar_lea.hbm %s21867_s1, 204800  ;;  %s21288_s26 = scalar_lea.hbm %s24314_s2, 614400 }
  0xb5   : > { %p21284_p9 = scmp.ne.s32.totalorder %s21867_s1, %s21283_s7  ;;  %p21289_p13 = scmp.lt.u32.totalorder %s21867_s1, %s24314_s2 }
  0xb6   : > { %p21290_p10 = scmp.lt.u32.totalorder %s21288_s26, %s21283_s7  ;;  %p21292_p0 = scmp.lt.u32.totalorder %s21283_s7, %s21867_s1 }
  0xb7   : > { %p21286_p4 = pnand %p21284_p9, %p21683_p12 }
  0xb8   : > { %p21291_p1 = por %p21290_p10, %p21289_p13 }
  0xb9   : > { %p21287_p11 = pneg %p21286_p4 }
  0xba   : > { %p21293_p3 = por %p21292_p0, %p21291_p1 }
  0xbc   : > { %p21294_p2 = pnand %p21293_p3, %p21287_p11 }
  0xbe   : > { %21297 = shalt.err (!%p21294_p2)
}
  0xbf   : > { %s21298_s15 = scalar_lea.vmem %s21869_s22, 204800  ;;  %s21526_s13 = smov [#allocation2]  }
  0xc0   : > { %p21299_p7 = scmp.ne.s32.totalorder %s21869_s22, %s21298_s15  ;;  %s21303_s17 = sshll.u32 %s21526_s13, 4  ;;  %s21304_s17 = int_to_ptr.vmem [resolvable:$false] %s21303_s17 }
  0xc1   : > { %s21305_s24 = scalar_lea.vmem %s21304_s17, 409600  ;;  %p21306_p9 = scmp.lt.s32.totalorder %s21869_s22, %s21304_s17 }
  0xc2   : > { %p21301_p5 = pnand %p21299_p7, %p21683_p12  ;;  %p21307_p4 = scmp.lt.s32.totalorder %s21305_s24, %s21298_s15 }
  0xc4   : > { %p21302_p8 = pneg %p21301_p5  ;;  %p21308_p13 = por %p21307_p4, %p21306_p9 }
  0xc6   : > { %p21309_p10 = pnand %p21308_p13, %p21302_p8 }
  0xc8   : > { %21312 = shalt.err (!%p21309_p10)
}
  0xc9   : > { %s21527_s7 = smov 1600   ;;  %s21528_s26 = smov 100  }
  0xca   : > { %18461 = dma.hbm_to_vmem [thread:$0]  (!%p24363_p6), %s21867_s1, 204800, %s21869_s22, %s494_s5, %s21527_s7, %s21527_s7, %s21528_s26  }
  0xcb   : > { %s18432_s25 = smul.u32 25600, %s21517_s21  ;;  %s537_s9 = scalar_lea.vmem [#allocation6], %s18431_s3 }
  0xcc   : > { %s544_s15 = sshll.u32 %s537_s9, 4  ;;  %s15922_s13 = sshll.u32 %s21658_s28, 2  ;;  %s21905_s15 = int_to_ptr.vmem [resolvable:$true] %s544_s15 }
  0xcd   : > { %s21903_s18 = scalar_lea.hbm %s24316_s4, %s18432_s25  ;;  %s21318_s3 = scalar_lea.hbm %s24316_s4, 76800 }
  0xce   : > { %s21313_s20 = scalar_lea.hbm %s21903_s18, 25600  ;;  %p21319_p3 = scmp.lt.u32.totalorder %s21903_s18, %s24316_s4 }
  0xcf   : > { %p21314_p11 = scmp.ne.s32.totalorder %s21903_s18, %s21313_s20  ;;  %p21320_p2 = scmp.lt.u32.totalorder %s21318_s3, %s21313_s20 }
  0xd0   : > { %p21322_p5 = scmp.lt.u32.totalorder %s21313_s20, %s21903_s18 }
  0xd1   : > { %p21316_p1 = pnand %p21314_p11, %p21683_p12  ;;  %p21321_p7 = por %p21320_p2, %p21319_p3 }
  0xd3   : > { %p21317_p0 = pneg %p21316_p1  ;;  %p21323_p8 = por %p21322_p5, %p21321_p7 }
  0xd5   : > { %p21324_p9 = pnand %p21323_p8, %p21317_p0 }
  0xd7   : > { %21327 = shalt.err (!%p21324_p9)
}
  0xd8   : > { %s21328_s26 = scalar_lea.vmem %s21905_s15, 25600  ;;  %s21529_s25 = smov [#allocation6]  }
  0xd9   : > { %p21329_p4 = scmp.ne.s32.totalorder %s21905_s15, %s21328_s26  ;;  %s21333_s9 = sshll.u32 %s21529_s25, 4  ;;  %s21334_s9 = int_to_ptr.vmem [resolvable:$false] %s21333_s9 }
  0xda   : > { %s21335_s17 = scalar_lea.vmem %s21334_s9, 51200  ;;  %p21336_p11 = scmp.lt.s32.totalorder %s21905_s15, %s21334_s9 }
  0xdb   : > { %p21331_p13 = pnand %p21329_p4, %p21683_p12  ;;  %p21337_p1 = scmp.lt.s32.totalorder %s21335_s17, %s21328_s26 }
  0xdd   : > { %p21332_p10 = pneg %p21331_p13  ;;  %p21338_p3 = por %p21337_p1, %p21336_p11 }
  0xdf   : > { %p21339_p2 = pnand %p21338_p3, %p21332_p10 }
  0xe1   : > { %21342 = shalt.err (!%p21339_p2)
}
  0xe2   : > { %s24367_s20 = smov 64   ;;  %s24368_s24 = scalar_lea.sflag [#allocation5], %s21665_s30 }
  0xe3   : > { %18467 = dma.hbm_to_vmem [thread:$0]  (!%p24363_p6), %s21903_s18, 25600, %s21905_s15, %s24368_s24, %s24367_s20, %s24367_s20, %s21523_s0  }
  0xe4   : > { %s15923_s22 = sshll.u32 %s21517_s21, 6  ;;  %s575_s7 = scalar_lea.vmem [#allocation9], %s15922_s13 }
  0xe5   : > { %s21937_s5 = scalar_lea.hbm %s24318_s6, %s15923_s22  ;;  %s582_s26 = sshll.u32 %s575_s7, 4  ;;  %s583_s26 = int_to_ptr.vmem [resolvable:$true] %s582_s26 }
  0xe6   : > { %s21343_s25 = scalar_lea.hbm %s21937_s5, 64  ;;  %s21348_s18 = scalar_lea.hbm %s24318_s6, 192 }
  0xe7   : > { %p21344_p0 = scmp.ne.s32.totalorder %s21937_s5, %s21343_s25  ;;  %p21349_p8 = scmp.lt.u32.totalorder %s21937_s5, %s24318_s6 }
  0xe8   : > { %p21350_p9 = scmp.lt.u32.totalorder %s21348_s18, %s21343_s25  ;;  %p21352_p13 = scmp.lt.u32.totalorder %s21343_s25, %s21937_s5 }
  0xe9   : > { %p21346_p7 = pnand %p21344_p0, %p21683_p12 }
  0xea   : > { %p21351_p4 = por %p21350_p9, %p21349_p8 }
  0xeb   : > { %p21347_p5 = pneg %p21346_p7 }
  0xec   : > { %p21353_p10 = por %p21352_p13, %p21351_p4 }
  0xee   : > { %p21354_p11 = pnand %p21353_p10, %p21347_p5 }
  0xf0   : > { %21357 = shalt.err (!%p21354_p11)
}
  0xf1   : > { %s21358_s13 = scalar_lea.vmem %s583_s26, 64  ;;  %s21530_s17 = smov [#allocation9]  }
  0xf2   : > { %p21359_p1 = scmp.ne.s32.totalorder %s583_s26, %s21358_s13  ;;  %s21363_s20 = sshll.u32 %s21530_s17, 4  ;;  %s21364_s20 = int_to_ptr.vmem [resolvable:$false] %s21363_s20 }
  0xf3   : > { %s21365_s24 = scalar_lea.vmem %s21364_s20, 128  ;;  %p21366_p0 = scmp.lt.s32.totalorder %s583_s26, %s21364_s20 }
  0xf4   : > { %p21361_p3 = pnand %p21359_p1, %p21683_p12  ;;  %p21367_p7 = scmp.lt.s32.totalorder %s21365_s24, %s21358_s13 }
  0xf6   : > { %p21362_p2 = pneg %p21361_p3  ;;  %p21368_p6 = por %p21367_p7, %p21366_p0 }
  0xf8   : > { %p21369_p8 = pnand %p21368_p6, %p21362_p2 }
  0xfa   : > { %21372 = shalt.err (!%p21369_p8)
}
  0xfb   : > { %p24369_p9 = scmp.ne.s32.totalorder %s24355_s29, 0  ;;  %s24370_s22 = scalar_lea.sflag [#allocation8], %s21665_s30 }
  0xfc   : > { %s21964_s7 = scalar_lea.hbm %s24320_s8, %s21717_s16  ;;  %s613_s25 = scalar_lea.vmem [#allocation12], %s21658_s28 }
  0xfd   : > { %18473 = dma.hbm_to_vmem [thread:$0]  (!%p24369_p9), %s21937_s5, 64, %s583_s26, %s24370_s22  }
  0xfe   : > { %s620_s0 = sshll.u32 %s613_s25, 4  ;;  %s21373_s21 = scalar_lea.hbm %s21964_s7, 16  ;;  %s621_s0 = int_to_ptr.vmem [resolvable:$true] %s620_s0 }
  0xff   : > { %p21374_p6 = scmp.ne.s32.totalorder %s21964_s7, %s21373_s21  ;;  %s21378_s5 = scalar_lea.hbm %s24320_s8, 48 }
 0x100   : > { %p21379_p13 = scmp.lt.u32.totalorder %s21964_s7, %s24320_s8  ;;  %p21380_p10 = scmp.lt.u32.totalorder %s21378_s5, %s21373_s21 }
 0x101   : > { %p21376_p5 = pnand %p21374_p6, %p21683_p12  ;;  %p21382_p1 = scmp.lt.u32.totalorder %s21373_s21, %s21964_s7 }
 0x102   : > { %p21381_p11 = por %p21380_p10, %p21379_p13 }
 0x103   : > { %p21377_p4 = pneg %p21376_p5 }
 0x104   : > { %p21383_p3 = por %p21382_p1, %p21381_p11 }
 0x106   : > { %p21384_p2 = pnand %p21383_p3, %p21377_p4 }
 0x108   : > { %21387 = shalt.err (!%p21384_p2)
}
 0x109   : > { %s21388_s13 = scalar_lea.vmem %s621_s0, 16  ;;  %s21531_s17 = smov [#allocation12]  }
 0x10a   : > { %p21389_p0 = scmp.ne.s32.totalorder %s621_s0, %s21388_s13  ;;  %s21393_s20 = sshll.u32 %s21531_s17, 4  ;;  %s21394_s20 = int_to_ptr.vmem [resolvable:$false] %s21393_s20 }
 0x10b   : > { %s21395_s24 = scalar_lea.vmem %s21394_s20, 32  ;;  %p21396_p6 = scmp.lt.s32.totalorder %s621_s0, %s21394_s20 }
 0x10c   : > { %p21391_p7 = pnand %p21389_p0, %p21683_p12  ;;  %p21397_p5 = scmp.lt.s32.totalorder %s21395_s24, %s21388_s13 }
 0x10e   : > { %p21392_p8 = pneg %p21391_p7  ;;  %p21398_p9 = por %p21397_p5, %p21396_p6 }
 0x110   : > { %p21399_p10 = pnand %p21398_p9, %p21392_p8 }
 0x112   : > { %21402 = shalt.err (!%p21399_p10)
}
 0x113   : > { %p24371_p13 = scmp.ne.s32.totalorder %s24355_s29, 0  ;;  %s24372_s22 = scalar_lea.sflag [#allocation11], %s21665_s30 }
 0x114   : > { %s21990_s25 = scalar_lea.hbm %s24322_s10, %s21717_s16  ;;  %s651_s21 = scalar_lea.vmem [#allocation15], %s21658_s28 }
 0x115   : > { %18479 = dma.hbm_to_vmem [thread:$0]  (!%p24371_p13), %s21964_s7, 16, %s621_s0, %s24372_s22  }
 0x116   : > { %s658_s18 = sshll.u32 %s651_s21, 4  ;;  %s21403_s15 = scalar_lea.hbm %s21990_s25, 16  ;;  %s659_s18 = int_to_ptr.vmem [resolvable:$true] %s658_s18 }
 0x117   : > { %p21404_p9 = scmp.ne.s32.totalorder %s21990_s25, %s21403_s15  ;;  %s21408_s7 = scalar_lea.hbm %s24322_s10, 48 }
 0x118   : > { %p21409_p1 = scmp.lt.u32.totalorder %s21990_s25, %s24322_s10  ;;  %p21410_p3 = scmp.lt.u32.totalorder %s21408_s7, %s21403_s15 }
 0x119   : > { %p21406_p4 = pnand %p21404_p9, %p21683_p12  ;;  %p21412_p0 = scmp.lt.u32.totalorder %s21403_s15, %s21990_s25 }
 0x11a   : > { %p21411_p2 = por %p21410_p3, %p21409_p1 }
 0x11b   : > { %p21407_p11 = pneg %p21406_p4 }
 0x11c   : > { %p21413_p7 = por %p21412_p0, %p21411_p2 }
 0x11e   : > { %p21414_p8 = pnand %p21413_p7, %p21407_p11 }
 0x120   : > { %21417 = shalt.err (!%p21414_p8)
}
 0x121   : > { %s21418_s13 = scalar_lea.vmem %s659_s18, 16  ;;  %s21532_s17 = smov [#allocation15]  }
 0x122   : > { %p21419_p6 = scmp.ne.s32.totalorder %s659_s18, %s21418_s13  ;;  %s21423_s20 = sshll.u32 %s21532_s17, 4  ;;  %s21424_s20 = int_to_ptr.vmem [resolvable:$false] %s21423_s20 }
 0x123   : > { %s21425_s24 = scalar_lea.vmem %s21424_s20, 32  ;;  %p21426_p9 = scmp.lt.s32.totalorder %s659_s18, %s21424_s20 }
 0x124   : > { %p21421_p5 = pnand %p21419_p6, %p21683_p12  ;;  %p21427_p4 = scmp.lt.s32.totalorder %s21425_s24, %s21418_s13 }
 0x126   : > { %p21422_p10 = pneg %p21421_p5  ;;  %p21428_p13 = por %p21427_p4, %p21426_p9 }
 0x128   : > { %p21429_p1 = pnand %p21428_p13, %p21422_p10 }
 0x12a   : > { %21432 = shalt.err (!%p21429_p1)
}
 0x12b   : > { %p24373_p3 = scmp.ne.s32.totalorder %s24355_s29, 0  ;;  %s24374_s22 = scalar_lea.sflag [#allocation14], %s21665_s30 }
 0x12c   : > { %s22016_s21 = scalar_lea.hbm %s24324_s12, %s21717_s16  ;;  %s689_s15 = scalar_lea.vmem [#allocation18], %s21658_s28 }
 0x12d   : > { %18485 = dma.hbm_to_vmem [thread:$0]  (!%p24373_p3), %s21990_s25, 16, %s659_s18, %s24374_s22  }
 0x12e   : > { %s696_s5 = sshll.u32 %s689_s15, 4  ;;  %s21433_s26 = scalar_lea.hbm %s22016_s21, 16  ;;  %s697_s5 = int_to_ptr.vmem [resolvable:$true] %s696_s5 }
 0x12f   : > { %p21434_p13 = scmp.ne.s32.totalorder %s22016_s21, %s21433_s26  ;;  %s21438_s25 = scalar_lea.hbm %s24324_s12, 48 }
 0x130   : > { %p21439_p0 = scmp.lt.u32.totalorder %s22016_s21, %s24324_s12  ;;  %p21440_p7 = scmp.lt.u32.totalorder %s21438_s25, %s21433_s26 }
 0x131   : > { %p21436_p11 = pnand %p21434_p13, %p21683_p12  ;;  %p21442_p6 = scmp.lt.u32.totalorder %s21433_s26, %s22016_s21 }
 0x132   : > { %p21441_p8 = por %p21440_p7, %p21439_p0 }
 0x133   : > { %p21437_p2 = pneg %p21436_p11 }
 0x134   : > { %p21443_p5 = por %p21442_p6, %p21441_p8 }
 0x136   : > { %p21444_p10 = pnand %p21443_p5, %p21437_p2 }
 0x138   : > { %21447 = shalt.err (!%p21444_p10)
}
 0x139   : > { %s21448_s28 = scalar_lea.vmem %s697_s5, 16  ;;  %s21533_s16 = smov [#allocation18]  }
 0x13a   : > { %p21449_p9 = scmp.ne.s32.totalorder %s697_s5, %s21448_s28  ;;  %s21453_s13 = sshll.u32 %s21533_s16, 4  ;;  %s21454_s13 = int_to_ptr.vmem [resolvable:$false] %s21453_s13 }
 0x13b   : > { %s21455_s17 = scalar_lea.vmem %s21454_s13, 32  ;;  %p21456_p13 = scmp.lt.s32.totalorder %s697_s5, %s21454_s13 }
 0x13c   : > { %p21451_p4 = pnand %p21449_p9, %p21683_p12  ;;  %p21457_p11 = scmp.lt.s32.totalorder %s21455_s17, %s21448_s28 }
 0x13e   : > { %p21452_p1 = pneg %p21451_p4  ;;  %p21458_p3 = por %p21457_p11, %p21456_p13 }
 0x140   : > { %p21459_p0 = pnand %p21458_p3, %p21452_p1 }
 0x142   : > { %21462 = shalt.err (!%p21459_p0)
}
 0x143   : > { %p24375_p7 = scmp.ne.s32.totalorder %s24355_s29, 0  ;;  %s24376_s20 = scalar_lea.sflag [#allocation17], %s21665_s30 }
 0x144   : > { %p24377_p2 = scmp.ne.s32.totalorder %s24361_s23, 0 }
 0x145   : > { %18491 = dma.hbm_to_vmem [thread:$0]  (!%p24375_p7), %s22016_s21, 16, %s697_s5, %s24376_s20  }
 0x146   : > { %705 = sbr.rel (%p24377_p2) target bundleno = 3371 (0xd2b), region = 72  ;;  %s22041_s14 = sand.u32 (!%p24377_p2), 1, %s21509_s19  }
 0x147   : > { %s18433_s24 = smul.u32 (!%p24377_p2), 12800, %s22041_s14  ;;  %s708_s22 = scalar_lea.sflag (!%p24377_p2), [#allocation3], %s22041_s14 }
 0x148   : > { %p24378_p12 = scmp.ne.s32.totalorder (!%p24377_p2), %s24354_s27, 0 }
 0x149   : > { %s22045_s1 = scalar_lea.vmem (!%p24377_p2), [#allocation2], %s18433_s24 }
 0x14d   : > { %21480 = dma.done.wait (%p24378_p12), %s708_s22, 204800  }
 0x14e   : > { %21482 = vsyncadd (%p24378_p12), %s708_s22, 4294762496  ;;  %s24379_s29 = sld [smem:[#allocation26_spill]]  ;;  %s18434_s23 = smul.u32 25, %s22041_s14 }
 0x150   : > { %s22053_s21 = scalar_lea.vmem [#allocation4], %s18434_s23 }
 0x154   : > { %s716_s30 = sand.u32 1, %s24379_s29  }
 0x155   : > { %s717_s3 = scalar_lea.sflag [#allocation5], %s716_s30 }
 0x156   : > { %21484 = dma.done.wait (%p24378_p12), %s717_s3, 26000  }
 0x157   : > { %21486 = vsyncadd (%p24378_p12), %s717_s3, 4294941296  ;;  %s18435_s15 = smul.u32 1600, %s22041_s14  ;;  %s735_s26 = scalar_lea.sflag [#allocation8], %s716_s30 }
 0x158   : > { %s737_s7 = scalar_lea.vmem [#allocation7], %s22041_s14 }
 0x159   : > { %s22060_s5 = scalar_lea.vmem [#allocation6], %s18435_s15 }
 0x15a   : > { %21488 = dma.done.wait (%p24378_p12), %s735_s26, 80  }
 0x15b   : > { %21490 = vsyncadd (%p24378_p12), %s735_s26, 4294967216  ;;  %s15937_s0 = sshll.u32 %s22041_s14, 2  ;;  %s15938_s25 = sshll.u32 %s22041_s14, 6 }
 0x15c   : > { %s22069_s18 = scalar_lea.vmem [#allocation9], %s15937_s0  ;;  %s752_s9 = scalar_lea.sflag [#allocation11], %s716_s30 }
 0x15d   : > { %s22071_s28 = scalar_lea.vmem [#allocation10], %s15938_s25 }
 0x15e   : > { %21492 = dma.done.wait (%p24378_p12), %s752_s9, 1040  }
 0x15f   : > { %21494 = vsyncadd (%p24378_p12), %s752_s9, 4294966256  ;;  %s763_s16 = scalar_lea.vmem [#allocation12], %s22041_s14  ;;  %s769_s13 = scalar_lea.sflag [#allocation14], %s716_s30 }
 0x160   : > { %s22078_s17 = scalar_lea.vmem [#allocation13], %s15938_s25 }
 0x161   : > { %21496 = dma.done.wait (%p24378_p12), %s769_s13, 1040  }
 0x162   : > { %21498 = vsyncadd (%p24378_p12), %s769_s13, 4294966256  ;;  %s780_s20 = scalar_lea.vmem [#allocation15], %s22041_s14  ;;  %s786_s24 = scalar_lea.sflag [#allocation17], %s716_s30 }
 0x163   : > { %s22085_s22 = scalar_lea.vmem [#allocation16], %s15938_s25 }
 0x164   : > { %21500 = dma.done.wait (%p24378_p12), %s786_s24, 1040  }
 0x165   : > { %21502 = vsyncadd (%p24378_p12), %s786_s24, 4294966256  ;;  %v18532_v0 = vld [vmem:[%s22045_s1 + $0x4] ss:$100 sps:$4 sm:$0xff]   ;;  %v18534_v1 = vld [vmem:[%s22045_s1 + $0xc] ss:$100 sps:$4 sm:$0xff]   ;;  %p906_p3 = scmp.lt.s32.totalorder %s24379_s29, 2  ;;  %v936_v38 = vlaneseq }
 0x166   : > { %10843 = vmatprep.subr.bf16.mxu0 %v18532_v0  ;;  %v18536_v2 = vld [vmem:[%s22045_s1] ss:$100 sps:$4 sm:$0xff]   ;;  %v18537_v3 = vld [vmem:[%s22045_s1 + $0x8] ss:$100 sps:$4 sm:$0xff]   ;;  %11007 = vmatprep.subr.bf16.mxu1 %v18534_v1  ;;  %v18540_v5 = vld [vmem:[%s22045_s1 + $0xd4] ss:$100 sps:$4 sm:$0xff]  }
 0x167   : > { %v18538_v4 = vld [vmem:[%s22045_s1 + $0xcc] ss:$100 sps:$4 sm:$0xff]   ;;  %10844 = vmatpush1.bf16.msra.mxu0 %v18536_v2  ;;  %11008 = vmatpush1.bf16.msra.mxu1 %v18537_v3  ;;  %v18544_v8 = vld [vmem:[%s22045_s1 + $0x194] ss:$100 sps:$4 sm:$0xff]   ;;  %v18546_v9 = vld [vmem:[%s22045_s1 + $0x19c] ss:$100 sps:$4 sm:$0xff]  }
 0x168   : > { %v18542_v6 = vld [vmem:[%s22045_s1 + $0xc8] ss:$100 sps:$4 sm:$0xff]   ;;  %10845 = vmatprep.subr.bf16.mxu0 %v18538_v4  ;;  %v18543_v7 = vld [vmem:[%s22045_s1 + $0xd0] ss:$100 sps:$4 sm:$0xff]   ;;  %11009 = vmatprep.subr.bf16.mxu1 %v18540_v5  ;;  %v18549_v11 = vld [vmem:[%s22045_s1 + $0x198] ss:$100 sps:$4 sm:$0xff]  }
 0x169   : > { %v18548_v10 = vld [vmem:[%s22045_s1 + $0x190] ss:$100 sps:$4 sm:$0xff]   ;;  %v18550_v12 = vld [vmem:[%s22045_s1 + $0x25c] ss:$100 sps:$4 sm:$0xff]   ;;  %v18552_v13 = vld [vmem:[%s22045_s1 + $0x264] ss:$100 sps:$4 sm:$0xff]  }
 0x16a   : > { %v18554_v14 = vld [vmem:[%s22045_s1 + $0x258] ss:$100 sps:$4 sm:$0xff]   ;;  %v18555_v15 = vld [vmem:[%s22045_s1 + $0x260] ss:$100 sps:$4 sm:$0xff]   ;;  %v18558_v17 = vld [vmem:[%s22045_s1 + $0x32c] ss:$100 sps:$4 sm:$0xff]  }
 0x16b   : > { %10846 = vmatpush1.bf16.msra.mxu0 %v18542_v6  ;;  %11010 = vmatpush1.bf16.msra.mxu1 %v18543_v7  ;;  %v18556_v16 = vld [vmem:[%s22045_s1 + $0x324] ss:$100 sps:$4 sm:$0xff]   ;;  %v18562_v20 = vld [vmem:[%s22045_s1 + $0x3ec] ss:$100 sps:$4 sm:$0xff]   ;;  %v18564_v21 = vld [vmem:[%s22045_s1 + $0x3f4] ss:$100 sps:$4 sm:$0xff]  }
 0x16c   : > { %10847 = vmatprep.subr.bf16.mxu0 %v18544_v8  ;;  %11011 = vmatprep.subr.bf16.mxu1 %v18546_v9  ;;  %v18560_v18 = vld [vmem:[%s22045_s1 + $0x320] ss:$100 sps:$4 sm:$0xff]   ;;  %v18561_v19 = vld [vmem:[%s22045_s1 + $0x328] ss:$100 sps:$4 sm:$0xff]   ;;  %v18567_v23 = vld [vmem:[%s22045_s1 + $0x3f0] ss:$100 sps:$4 sm:$0xff]  }
 0x16d   : > { %v18566_v22 = vld [vmem:[%s22045_s1 + $0x3e8] ss:$100 sps:$4 sm:$0xff]   ;;  %v18568_v24 = vld [vmem:[%s22045_s1 + $0x4b4] ss:$100 sps:$4 sm:$0xff]   ;;  %v18570_v25 = vld [vmem:[%s22045_s1 + $0x4bc] ss:$100 sps:$4 sm:$0xff]  }
 0x16e   : > { %v18572_v26 = vld [vmem:[%s22045_s1 + $0x4b0] ss:$100 sps:$4 sm:$0xff]   ;;  %v18573_v27 = vld [vmem:[%s22045_s1 + $0x4b8] ss:$100 sps:$4 sm:$0xff]   ;;  %v18576_v29 = vld [vmem:[%s22045_s1 + $0x584] ss:$100 sps:$4 sm:$0xff]  }
 0x16f   : > { %10848 = vmatpush1.bf16.msra.mxu0 %v18548_v10  ;;  %11012 = vmatpush1.bf16.msra.mxu1 %v18549_v11  ;;  %v18574_v28 = vld [vmem:[%s22045_s1 + $0x57c] ss:$100 sps:$4 sm:$0xff]   ;;  %v18580_v32 = vld [vmem:[%s22045_s1 + $0x644] ss:$100 sps:$4 sm:$0xff]   ;;  %v18582_v33 = vld [vmem:[%s22045_s1 + $0x64c] ss:$100 sps:$4 sm:$0xff]  }
 0x170   : > { %10849 = vmatprep.subr.bf16.mxu0 %v18550_v12  ;;  %11013 = vmatprep.subr.bf16.mxu1 %v18552_v13  ;;  %v18578_v30 = vld [vmem:[%s22045_s1 + $0x578] ss:$100 sps:$4 sm:$0xff]   ;;  %v18579_v31 = vld [vmem:[%s22045_s1 + $0x580] ss:$100 sps:$4 sm:$0xff]   ;;  %v18585_v35 = vld [vmem:[%s22045_s1 + $0x648] ss:$100 sps:$4 sm:$0xff]  }
 0x171   : > { %v18584_v34 = vld [vmem:[%s22045_s1 + $0x640] ss:$100 sps:$4 sm:$0xff]   ;;  %v21534_v36 = vmov 1983009808   ;;  %v18586_v39 = vld [vmem:[%s22045_s1 + $0x70c] ss:$100 sps:$4 sm:$0xff]  }
 0x172   : > { %v934_v37 = vunpack.c.l.s4 %v21534_v36  ;;  %s24391_s29 = smov (!%p906_p3, %s24379_s29), 2  ;;  %v18588_v40 = vld [vmem:[%s22045_s1 + $0x714] ss:$100 sps:$4 sm:$0xff]   ;;  %v18590_v41 = vld [vmem:[%s22045_s1 + $0x708] ss:$100 sps:$4 sm:$0xff]   ;;  %v22135_v43 = vshrl.u32 %v936_v38, 7 }
 0x173   : > { %10850 = vmatpush1.bf16.msra.mxu0 %v18554_v14  ;;  %11014 = vmatpush1.bf16.msra.mxu1 %v18555_v15  ;;  %v18591_v44 = vld [vmem:[%s22045_s1 + $0x710] ss:$100 sps:$4 sm:$0xff]   ;;  %s17782_s27 = sshll.u32 %s24391_s29, 4  ;;  %v18594_v46 = vld [vmem:[%s22045_s1 + $0x7dc] ss:$100 sps:$4 sm:$0xff]   ;;  %s24380_s3 = sld [smem:[#allocation29_spill]] }
 0x174   : > { %10851 = vmatprep.subr.bf16.mxu0 %v18556_v16  ;;  %11015 = vmatprep.subr.bf16.mxu1 %v18558_v17  ;;  %v935_v42 = vunpack.c.0.s8 %v934_v37  ;;  %v18592_v45 = vld [vmem:[%s22045_s1 + $0x7d4] ss:$100 sps:$4 sm:$0xff]   ;;  %v18598_v50 = vld [vmem:[%s22045_s1 + $0x89c] ss:$100 sps:$4 sm:$0xff]   ;;  %v18600_v51 = vld [vmem:[%s22045_s1 + $0x8a4] ss:$100 sps:$4 sm:$0xff]  }
 0x175   : > { %v18596_v47 = vld [vmem:[%s22045_s1 + $0x7d0] ss:$100 sps:$4 sm:$0xff]   ;;  %v18597_v48 = vld [vmem:[%s22045_s1 + $0x7d8] ss:$100 sps:$4 sm:$0xff]   ;;  %v18603_v55 = vld [vmem:[%s22045_s1 + $0x8a0] ss:$100 sps:$4 sm:$0xff]  }
 0x176   : > { %v22149_v49 = vsub.s32 %v935_v42, %v22135_v43  ;;  %v18602_v53 = vld [vmem:[%s22045_s1 + $0x898] ss:$100 sps:$4 sm:$0xff]   ;;  %v18604_v56 = vld [vmem:[%s22045_s1 + $0x964] ss:$100 sps:$4 sm:$0xff]   ;;  %v18606_v57 = vld [vmem:[%s22045_s1 + $0x96c] ss:$100 sps:$4 sm:$0xff]  }
 0x177   : > { %10852 = vmatpush1.bf16.msra.mxu0 %v18560_v18  ;;  %11016 = vmatpush1.bf16.msra.mxu1 %v18561_v19  ;;  %v18608_v59 = vld [vmem:[%s22045_s1 + $0x960] ss:$100 sps:$4 sm:$0xff]   ;;  %v18609_v61 = vld [vmem:[%s22045_s1 + $0x968] ss:$100 sps:$4 sm:$0xff]   ;;  %v18612_v63 = vld [vmem:[%s22045_s1 + $0xa34] ss:$100 sps:$4 sm:$0xff]  }
 0x178   : > { %10853 = vmatprep.subr.bf16.mxu0 %v18562_v20  ;;  %11017 = vmatprep.subr.bf16.mxu1 %v18564_v21  ;;  %v18610_v62 = vld [vmem:[%s22045_s1 + $0xa2c] ss:$100 sps:$4 sm:$0xff]   ;;  %v18616_v2 = vld [vmem:[%s22045_s1 + $0xaf4] ss:$100 sps:$4 sm:$0xff]   ;;  %v18618_v3 = vld [vmem:[%s22045_s1 + $0xafc] ss:$100 sps:$4 sm:$0xff]  }
 0x179   : > { %s22146_s15 = scalar_lea.vmem %s24380_s3, %s17782_s27  ;;  %v18614_v0 = vld [vmem:[%s22045_s1 + $0xa28] ss:$100 sps:$4 sm:$0xff]   ;;  %v18615_v1 = vld [vmem:[%s22045_s1 + $0xa30] ss:$100 sps:$4 sm:$0xff]   ;;  %v18621_v6 = vld [vmem:[%s22045_s1 + $0xaf8] ss:$100 sps:$4 sm:$0xff]  }
 0x17a   : > { %v928_v52 = vld [vmem:[%s22146_s15] sm:$0xff]  ;;  %v18620_v5 = vld [vmem:[%s22045_s1 + $0xaf0] ss:$100 sps:$4 sm:$0xff]   ;;  %v18626_v10 = vld [vmem:[%s22045_s1 + $0xbb8] ss:$100 sps:$4 sm:$0xff]   ;;  %vm21536_vm0 = vmmov 0  }
 0x17b   : > { %10854 = vmatpush1.bf16.msra.mxu0 %v18566_v22  ;;  %11018 = vmatpush1.bf16.msra.mxu1 %v18567_v23  ;;  %v939_v54 = vrot.slane %v928_v52, %v22149_v49  ;;  %v932_v4 = vcombine.high %v928_v52, %v928_v52  ;;  %v18622_v7 = vld [vmem:[%s22045_s1 + $0xbbc] ss:$100 sps:$4 sm:$0xff]   ;;  %v18624_v8 = vld [vmem:[%s22045_s1 + $0xbc4] ss:$100 sps:$4 sm:$0xff]   ;;  %v18633_v13 = vld [vmem:[%s22045_s1 + $0xc8c] ss:$100 sps:$4 sm:$0xff]  }
 0x17c   : > { %10855 = vmatprep.subr.bf16.mxu0 %v18568_v24  ;;  %11019 = vmatprep.subr.bf16.mxu1 %v18570_v25  ;;  %v18627_v11 = vld [vmem:[%s22045_s1 + $0xbc0] ss:$100 sps:$4 sm:$0xff]   ;;  %v18631_v17 = vld [vmem:[%s22045_s1 + $0xc88] ss:$100 sps:$4 sm:$0xff]   ;;  %v18639_v19 = vld [vmem:[%s22045_s1 + $0xd54] ss:$100 sps:$4 sm:$0xff]  }
 0x17d   : > { %v947_v58 = vcombine.high %v939_v54, %v939_v54  ;;  %v22176_v9 = vrot.slane %v932_v4, %v22149_v49  ;;  %v18630_v12 = vld [vmem:[%s22045_s1 + $0xc84] ss:$100 sps:$4 sm:$0xff]   ;;  %v22185_v16 = vpack.c.bf16 %v939_v54, %v939_v54  ;;  %v18636_v18 = vld [vmem:[%s22045_s1 + $0xd4c] ss:$100 sps:$4 sm:$0xff]   ;;  %v18642_v23 = vld [vmem:[%s22045_s1 + $0xe14] ss:$100 sps:$4 sm:$0xff]  }
 0x17e   : > { %v18628_v15 = vld [vmem:[%s22045_s1 + $0xc80] ss:$100 sps:$4 sm:$0xff]   ;;  %v18634_v21 = vld [vmem:[%s22045_s1 + $0xd48] ss:$100 sps:$4 sm:$0xff]   ;;  %v18637_v22 = vld [vmem:[%s22045_s1 + $0xd50] ss:$100 sps:$4 sm:$0xff]  }
 0x17f   : > { %10856 = vmatpush1.bf16.msra.mxu0 %v18572_v26  ;;  %11020 = vmatpush1.bf16.msra.mxu1 %v18573_v27  ;;  %v22160_v60 = vpack.c.bf16 %v947_v58, %v947_v58  ;;  %v948_v14 = vcombine.high %v22176_v9, %v22176_v9  ;;  %v18645_v24 = vld [vmem:[%s22045_s1 + $0xe1c] ss:$100 sps:$4 sm:$0xff]   ;;  %v18640_v25 = vld [vmem:[%s22045_s1 + $0xe10] ss:$100 sps:$4 sm:$0xff]   ;;  %v18658_v37 = vld [vmem:[%s22045_s1 + $0x1068] ss:$100 sps:$4 sm:$0xff]  }
 0x180   : > { %10857 = vmatprep.subr.bf16.mxu0 %v18574_v28  ;;  %11021 = vmatprep.subr.bf16.mxu1 %v18576_v29  ;;  %v18643_v26 = vld [vmem:[%s22045_s1 + $0xe18] ss:$100 sps:$4 sm:$0xff]   ;;  %v18651_v28 = vld [vmem:[%s22045_s1 + $0xee4] ss:$100 sps:$4 sm:$0xff]   ;;  %v18664_v42 = vld [vmem:[%s22045_s1 + $0x1130] ss:$100 sps:$4 sm:$0xff]  }
 0x181   : > { %10875 = vmatprep.mubr.bf16.mxu0 %v22160_v60  ;;  %11039 = vmatprep.mubr.bf16.mxu1 %v22160_v60  ;;  %v22190_v20 = vpack.c.bf16 %v948_v14, %v948_v14  ;;  %v18648_v27 = vld [vmem:[%s22045_s1 + $0xedc] ss:$100 sps:$4 sm:$0xff]   ;;  %v18663_v36 = vld [vmem:[%s22045_s1 + $0x1074] ss:$100 sps:$4 sm:$0xff]   ;;  %v18684_v54 = vld [vmem:[%s22045_s1 + $0x138c] ss:$100 sps:$4 sm:$0xff]  }
 0x182   : > { %v18646_v29 = vld [vmem:[%s22045_s1 + $0xed8] ss:$100 sps:$4 sm:$0xff]   ;;  %v18676_v52 = vld [vmem:[%s22045_s1 + $0x12c0] ss:$100 sps:$4 sm:$0xff]   ;;  %v18705_v4 = vld [vmem:[%s22045_s1 + $0x15ec] ss:$100 sps:$4 sm:$0xff]  }
 0x183   : > { %10858 = vmatpush1.bf16.msra.mxu0 %v18578_v30  ;;  %11022 = vmatpush1.bf16.msra.mxu1 %v18579_v31  ;;  %v18649_v30 = vld [vmem:[%s22045_s1 + $0xee0] ss:$100 sps:$4 sm:$0xff]   ;;  %v18690_v58 = vld [vmem:[%s22045_s1 + $0x1454] ss:$100 sps:$4 sm:$0xff]   ;;  %vm15261_vm1 = vcmask 1043456   ;;  %s24381_s26 = sld [smem:[#allocation30_spill]] }
 0x184   : > { %10859 = vmatprep.subr.bf16.mxu0 %v18580_v32  ;;  %11023 = vmatprep.subr.bf16.mxu1 %v18582_v33  ;;  %v18654_v31 = vld [vmem:[%s22045_s1 + $0xfa4] ss:$100 sps:$4 sm:$0xff]   ;;  %v18657_v32 = vld [vmem:[%s22045_s1 + $0xfac] ss:$100 sps:$4 sm:$0xff]   ;;  %vm15257_vm2 = vcmask 64512   ;;  %vm15544_vm4 = vcmask 1041408  }
 0x185   : > { %v18652_v33 = vld [vmem:[%s22045_s1 + $0xfa0] ss:$100 sps:$4 sm:$0xff]   ;;  %v18712_v14 = vld [vmem:[%s22045_s1 + $0x1770] ss:$100 sps:$4 sm:$0xff]   ;;  %s24384_s24 = sld [smem:[#allocation37_spill]] }
 0x187   : > { %10860 = vmatpush1.bf16.msra.mxu0 %v18584_v34  ;;  %11024 = vmatpush1.bf16.msra.mxu1 %v18585_v35  ;;  %v18655_v34 = vld [vmem:[%s22045_s1 + $0xfa8] ss:$100 sps:$4 sm:$0xff]  }
 0x188   : > { %10861 = vmatprep.subr.bf16.mxu0 %v18586_v39  ;;  %11025 = vmatprep.subr.bf16.mxu1 %v18588_v40  ;;  %v18660_v35 = vld [vmem:[%s22045_s1 + $0x106c] ss:$100 sps:$4 sm:$0xff]   ;;  %v18666_v40 = vld [vmem:[%s22045_s1 + $0x1134] ss:$100 sps:$4 sm:$0xff]  }
 0x189   : > { %v18661_v39 = vld [vmem:[%s22045_s1 + $0x1070] ss:$100 sps:$4 sm:$0xff]  }
 0x18b   : > { %10862 = vmatpush1.bf16.msra.mxu0 %v18590_v41  ;;  %11026 = vmatpush1.bf16.msra.mxu1 %v18591_v44  ;;  %v18669_v41 = vld [vmem:[%s22045_s1 + $0x113c] ss:$100 sps:$4 sm:$0xff]  }
 0x18c   : > { %10863 = vmatprep.subr.bf16.mxu0 %v18592_v45  ;;  %11027 = vmatprep.subr.bf16.mxu1 %v18594_v46  ;;  %v18667_v44 = vld [vmem:[%s22045_s1 + $0x1138] ss:$100 sps:$4 sm:$0xff]   ;;  %v18675_v46 = vld [vmem:[%s22045_s1 + $0x1204] ss:$100 sps:$4 sm:$0xff]  }
 0x18d   : > { %v18672_v45 = vld [vmem:[%s22045_s1 + $0x11fc] ss:$100 sps:$4 sm:$0xff]  }
 0x18f   : > { %10864 = vmatpush1.bf16.msra.mxu0 %v18596_v47  ;;  %11028 = vmatpush1.bf16.msra.mxu1 %v18597_v48  ;;  %v18670_v47 = vld [vmem:[%s22045_s1 + $0x11f8] ss:$100 sps:$4 sm:$0xff]   ;;  %v18673_v48 = vld [vmem:[%s22045_s1 + $0x1200] ss:$100 sps:$4 sm:$0xff]  }
 0x190   : > { %10865 = vmatprep.subr.bf16.mxu0 %v18598_v50  ;;  %11029 = vmatprep.subr.bf16.mxu1 %v18600_v51  ;;  %v18678_v50 = vld [vmem:[%s22045_s1 + $0x12c4] ss:$100 sps:$4 sm:$0xff]   ;;  %v18681_v51 = vld [vmem:[%s22045_s1 + $0x12cc] ss:$100 sps:$4 sm:$0xff]  }
 0x193   : > { %10866 = vmatpush1.bf16.msra.mxu0 %v18602_v53  ;;  %11030 = vmatpush1.bf16.msra.mxu1 %v18603_v55  ;;  %v18679_v53 = vld [vmem:[%s22045_s1 + $0x12c8] ss:$100 sps:$4 sm:$0xff]   ;;  %v18687_v55 = vld [vmem:[%s22045_s1 + $0x1394] ss:$100 sps:$4 sm:$0xff]  }
 0x194   : > { %10867 = vmatprep.subr.bf16.mxu0 %v18604_v56  ;;  %11031 = vmatprep.subr.bf16.mxu1 %v18606_v57  ;;  %v18682_v56 = vld [vmem:[%s22045_s1 + $0x1388] ss:$100 sps:$4 sm:$0xff]   ;;  %v18685_v57 = vld [vmem:[%s22045_s1 + $0x1390] ss:$100 sps:$4 sm:$0xff]  }
 0x197   : > { %10868 = vmatpush1.bf16.msra.mxu0 %v18608_v59  ;;  %11032 = vmatpush1.bf16.msra.mxu1 %v18609_v61  ;;  %v18693_v59 = vld [vmem:[%s22045_s1 + $0x145c] ss:$100 sps:$4 sm:$0xff]   ;;  %v18688_v61 = vld [vmem:[%s22045_s1 + $0x1450] ss:$100 sps:$4 sm:$0xff]  }
 0x198   : > { %10869 = vmatprep.subr.bf16.mxu0 %v18610_v62  ;;  %11033 = vmatprep.subr.bf16.mxu1 %v18612_v63  ;;  %v18691_v62 = vld [vmem:[%s22045_s1 + $0x1458] ss:$100 sps:$4 sm:$0xff]  }
 0x199   : > { %v18696_v63 = vld [vmem:[%s22045_s1 + $0x151c] ss:$100 sps:$4 sm:$0xff]  }
 0x19b   : > { %10870 = vmatpush1.bf16.msra.mxu0 %v18614_v0  ;;  %11034 = vmatpush1.bf16.msra.mxu1 %v18615_v1  ;;  %v18699_v0 = vld [vmem:[%s22045_s1 + $0x1524] ss:$100 sps:$4 sm:$0xff]   ;;  %v18694_v1 = vld [vmem:[%s22045_s1 + $0x1518] ss:$100 sps:$4 sm:$0xff]  }
 0x19c   : > { %10871 = vmatprep.subr.bf16.mxu0 %v18616_v2  ;;  %11035 = vmatprep.subr.bf16.mxu1 %v18618_v3  ;;  %v18697_v2 = vld [vmem:[%s22045_s1 + $0x1520] ss:$100 sps:$4 sm:$0xff]  }
 0x19d   : > { %v18702_v3 = vld [vmem:[%s22045_s1 + $0x15e4] ss:$100 sps:$4 sm:$0xff]  }
 0x19f   : > { %10872 = vmatpush1.bf16.msra.mxu0 %v18620_v5  ;;  %11036 = vmatpush1.bf16.msra.mxu1 %v18621_v6  ;;  %v18700_v5 = vld [vmem:[%s22045_s1 + $0x15e0] ss:$100 sps:$4 sm:$0xff]   ;;  %v18703_v6 = vld [vmem:[%s22045_s1 + $0x15e8] ss:$100 sps:$4 sm:$0xff]  }
 0x1a0   : > { %10873 = vmatprep.subr.bf16.mxu0 %v18622_v7  ;;  %11037 = vmatprep.subr.bf16.mxu1 %v18624_v8  ;;  %v18708_v7 = vld [vmem:[%s22045_s1 + $0x16ac] ss:$100 sps:$4 sm:$0xff]   ;;  %v18711_v8 = vld [vmem:[%s22045_s1 + $0x16b4] ss:$100 sps:$4 sm:$0xff]  }
 0x1a3   : > { %10874 = vmatpush1.bf16.msra.mxu0 %v18626_v10  ;;  %11038 = vmatpush1.bf16.msra.mxu1 %v18627_v11  ;;  %v18706_v10 = vld [vmem:[%s22045_s1 + $0x16a8] ss:$100 sps:$4 sm:$0xff]   ;;  %v18709_v11 = vld [vmem:[%s22045_s1 + $0x16b0] ss:$100 sps:$4 sm:$0xff]  }
 0x1a4   : > { %10884 = vmatprep.subr.bf16.mxu0 %v18630_v12  ;;  %11048 = vmatprep.subr.bf16.mxu1 %v18633_v13  ;;  %v18714_v12 = vld [vmem:[%s22045_s1 + $0x1774] ss:$100 sps:$4 sm:$0xff]   ;;  %v18717_v13 = vld [vmem:[%s22045_s1 + $0x177c] ss:$100 sps:$4 sm:$0xff]  }
 0x1a6   : > { %10876 = vmatmul.mubr.bf16.vlgmr.msra.gmra.mrb[0].mxu0 %v22185_v16  ;;  %11040 = vmatmul.mubr.bf16.vlgmr.msra.gmra.mrb[0].mxu1 %v22185_v16 }
 0x1a7   : > { %10885 = vmatpush1.bf16.msra.mxu0 %v18628_v15  ;;  %11049 = vmatpush1.bf16.msra.mxu1 %v18631_v17  ;;  %v18715_v15 = vld [vmem:[%s22045_s1 + $0x1778] ss:$100 sps:$4 sm:$0xff]  }
 0x1a8   : > { %10886 = vmatprep.subr.bf16.mxu0 %v18636_v18  ;;  %11050 = vmatprep.subr.bf16.mxu1 %v18639_v19  ;;  %v18720_v17 = vld [vmem:[%s22045_s1 + $0x183c] ss:$100 sps:$4 sm:$0xff]   ;;  %v18723_v18 = vld [vmem:[%s22045_s1 + $0x1844] ss:$100 sps:$4 sm:$0xff]  }
 0x1a9   : > { %10916 = vmatprep.mubr.bf16.mxu0 %v22190_v20  ;;  %11080 = vmatprep.mubr.bf16.mxu1 %v22190_v20  ;;  %v18718_v19 = vld [vmem:[%s22045_s1 + $0x1838] ss:$100 sps:$4 sm:$0xff]  }
 0x1ab   : > { %10887 = vmatpush1.bf16.msra.mxu0 %v18634_v21  ;;  %11051 = vmatpush1.bf16.msra.mxu1 %v18637_v22  ;;  %v18721_v21 = vld [vmem:[%s22045_s1 + $0x1840] ss:$100 sps:$4 sm:$0xff]  }
 0x1ac   : > { %10888 = vmatprep.subr.bf16.mxu0 %v18642_v23  ;;  %11052 = vmatprep.subr.bf16.mxu1 %v18645_v24  ;;  %v18727_v22 = vld [vmem:[%s22045_s1 + $0x1904] ss:$100 sps:$4 sm:$0xff]   ;;  %v18730_v23 = vld [vmem:[%s22045_s1 + $0x190c] ss:$100 sps:$4 sm:$0xff]  }
 0x1ad   : > { %v18725_v24 = vld [vmem:[%s22045_s1 + $0x1900] ss:$100 sps:$4 sm:$0xff]  }
 0x1af   : > { %10889 = vmatpush1.bf16.msra.mxu0 %v18640_v25  ;;  %11053 = vmatpush1.bf16.msra.mxu1 %v18643_v26  ;;  %v22259_v25 = vpack.c.bf16 %v22176_v9, %v22176_v9  ;;  %v18728_v26 = vld [vmem:[%s22045_s1 + $0x1908] ss:$100 sps:$4 sm:$0xff]  }
 0x1b0   : > { %10890 = vmatprep.subr.bf16.mxu0 %v18648_v27  ;;  %11054 = vmatprep.subr.bf16.mxu1 %v18651_v28  ;;  %v22263_v27 = vld [vmem:[%s22146_s15 + $0x8] sm:$0xff] }
 0x1b1   : > { %v18733_v28 = vld [vmem:[%s22045_s1 + $0x19cc] ss:$100 sps:$4 sm:$0xff]  }
 0x1b3   : > { %10891 = vmatpush1.bf16.msra.mxu0 %v18646_v29  ;;  %11055 = vmatpush1.bf16.msra.mxu1 %v18649_v30  ;;  %v18736_v29 = vld [vmem:[%s22045_s1 + $0x19d4] ss:$100 sps:$4 sm:$0xff]   ;;  %v22269_v30 = vrot.slane %v22263_v27, %v22149_v49 }
 0x1b4   : > { %10892 = vmatprep.subr.bf16.mxu0 %v18654_v31  ;;  %11056 = vmatprep.subr.bf16.mxu1 %v18657_v32  ;;  %v18731_v31 = vld [vmem:[%s22045_s1 + $0x19c8] ss:$100 sps:$4 sm:$0xff]   ;;  %v18734_v32 = vld [vmem:[%s22045_s1 + $0x19d0] ss:$100 sps:$4 sm:$0xff]  }
 0x1b5   : > { %v964_v9 = vcombine.high %v22269_v30, %v22269_v30 }
 0x1b7   : > { %10893 = vmatpush1.bf16.msra.mxu0 %v18652_v33  ;;  %11057 = vmatpush1.bf16.msra.mxu1 %v18655_v34  ;;  %v18739_v33 = vld [vmem:[%s22045_s1 + $0x1a94] ss:$100 sps:$4 sm:$0xff]   ;;  %v18742_v34 = vld [vmem:[%s22045_s1 + $0x1a9c] ss:$100 sps:$4 sm:$0xff]  }
 0x1b8   : > { %10894 = vmatprep.subr.bf16.mxu0 %v18660_v35  ;;  %11058 = vmatprep.subr.bf16.mxu1 %v18663_v36  ;;  %v22279_v35 = vpack.c.bf16 %v964_v9, %v964_v9  ;;  %v18737_v36 = vld [vmem:[%s22045_s1 + $0x1a90] ss:$100 sps:$4 sm:$0xff]  }
 0x1b9   : > { %v18809_v9 = vld [vmem:[%s22045_s1 + $0x23f0] ss:$100 sps:$4 sm:$0xff]  }
 0x1bb   : > { %10895 = vmatpush1.bf16.msra.mxu0 %v18658_v37  ;;  %11059 = vmatpush1.bf16.msra.mxu1 %v18661_v39  ;;  %v18740_v37 = vld [vmem:[%s22045_s1 + $0x1a98] ss:$100 sps:$4 sm:$0xff]  }
 0x1bc   : > { %10896 = vmatprep.subr.bf16.mxu0 %v18666_v40  ;;  %11060 = vmatprep.subr.bf16.mxu1 %v18669_v41  ;;  %v18745_v39 = vld [vmem:[%s22045_s1 + $0x1b5c] ss:$100 sps:$4 sm:$0xff]   ;;  %v18748_v40 = vld [vmem:[%s22045_s1 + $0x1b64] ss:$100 sps:$4 sm:$0xff]  }
 0x1bd   : > { %v18743_v41 = vld [vmem:[%s22045_s1 + $0x1b58] ss:$100 sps:$4 sm:$0xff]  }
 0x1bf   : > { %10897 = vmatpush1.bf16.msra.mxu0 %v18664_v42  ;;  %11061 = vmatpush1.bf16.msra.mxu1 %v18667_v44  ;;  %v18746_v42 = vld [vmem:[%s22045_s1 + $0x1b60] ss:$100 sps:$4 sm:$0xff]  }
 0x1c0   : > { %10898 = vmatprep.subr.bf16.mxu0 %v18672_v45  ;;  %11062 = vmatprep.subr.bf16.mxu1 %v18675_v46  ;;  %v18751_v44 = vld [vmem:[%s22045_s1 + $0x1c24] ss:$100 sps:$4 sm:$0xff]   ;;  %v18754_v45 = vld [vmem:[%s22045_s1 + $0x1c2c] ss:$100 sps:$4 sm:$0xff]  }
 0x1c1   : > { %v18749_v46 = vld [vmem:[%s22045_s1 + $0x1c20] ss:$100 sps:$4 sm:$0xff]  }
 0x1c3   : > { %10899 = vmatpush1.bf16.msra.mxu0 %v18670_v47  ;;  %11063 = vmatpush1.bf16.msra.mxu1 %v18673_v48  ;;  %v18752_v47 = vld [vmem:[%s22045_s1 + $0x1c28] ss:$100 sps:$4 sm:$0xff]  }
 0x1c4   : > { %10900 = vmatprep.subr.bf16.mxu0 %v18678_v50  ;;  %11064 = vmatprep.subr.bf16.mxu1 %v18681_v51  ;;  %v18757_v48 = vld [vmem:[%s22045_s1 + $0x1cec] ss:$100 sps:$4 sm:$0xff]   ;;  %v18760_v50 = vld [vmem:[%s22045_s1 + $0x1cf4] ss:$100 sps:$4 sm:$0xff]  }
 0x1c5   : > { %v18755_v51 = vld [vmem:[%s22045_s1 + $0x1ce8] ss:$100 sps:$4 sm:$0xff]  }
 0x1c7   : > { %10901 = vmatpush1.bf16.msra.mxu0 %v18676_v52  ;;  %11065 = vmatpush1.bf16.msra.mxu1 %v18679_v53  ;;  %v18758_v52 = vld [vmem:[%s22045_s1 + $0x1cf0] ss:$100 sps:$4 sm:$0xff]  }
 0x1c8   : > { %10902 = vmatprep.subr.bf16.mxu0 %v18684_v54  ;;  %11066 = vmatprep.subr.bf16.mxu1 %v18687_v55  ;;  %v18763_v53 = vld [vmem:[%s22045_s1 + $0x1db4] ss:$100 sps:$4 sm:$0xff]   ;;  %v18766_v54 = vld [vmem:[%s22045_s1 + $0x1dbc] ss:$100 sps:$4 sm:$0xff]  }
 0x1c9   : > { %v18761_v55 = vld [vmem:[%s22045_s1 + $0x1db0] ss:$100 sps:$4 sm:$0xff]  }
 0x1cb   : > { %10903 = vmatpush1.bf16.msra.mxu0 %v18682_v56  ;;  %11067 = vmatpush1.bf16.msra.mxu1 %v18685_v57  ;;  %v18764_v56 = vld [vmem:[%s22045_s1 + $0x1db8] ss:$100 sps:$4 sm:$0xff]  }
 0x1cc   : > { %10904 = vmatprep.subr.bf16.mxu0 %v18690_v58  ;;  %11068 = vmatprep.subr.bf16.mxu1 %v18693_v59  ;;  %v18769_v57 = vld [vmem:[%s22045_s1 + $0x1e7c] ss:$100 sps:$4 sm:$0xff]   ;;  %v18772_v58 = vld [vmem:[%s22045_s1 + $0x1e84] ss:$100 sps:$4 sm:$0xff]  }
 0x1cd   : > { %v18767_v59 = vld [vmem:[%s22045_s1 + $0x1e78] ss:$100 sps:$4 sm:$0xff]  }
 0x1cf   : > { %10905 = vmatpush1.bf16.msra.mxu0 %v18688_v61  ;;  %11069 = vmatpush1.bf16.msra.mxu1 %v18691_v62  ;;  %v18770_v61 = vld [vmem:[%s22045_s1 + $0x1e80] ss:$100 sps:$4 sm:$0xff]  }
 0x1d0   : > { %10906 = vmatprep.subr.bf16.mxu0 %v18696_v63  ;;  %11070 = vmatprep.subr.bf16.mxu1 %v18699_v0  ;;  %v18775_v62 = vld [vmem:[%s22045_s1 + $0x1f44] ss:$100 sps:$4 sm:$0xff]   ;;  %v18778_v63 = vld [vmem:[%s22045_s1 + $0x1f4c] ss:$100 sps:$4 sm:$0xff]  }
 0x1d1   : > { %v18773_v0 = vld [vmem:[%s22045_s1 + $0x1f40] ss:$100 sps:$4 sm:$0xff]  }
 0x1d3   : > { %10907 = vmatpush1.bf16.msra.mxu0 %v18694_v1  ;;  %11071 = vmatpush1.bf16.msra.mxu1 %v18697_v2  ;;  %v18776_v1 = vld [vmem:[%s22045_s1 + $0x1f48] ss:$100 sps:$4 sm:$0xff]  }
 0x1d4   : > { %10908 = vmatprep.subr.bf16.mxu0 %v18702_v3  ;;  %11072 = vmatprep.subr.bf16.mxu1 %v18705_v4  ;;  %v18781_v2 = vld [vmem:[%s22045_s1 + $0x200c] ss:$100 sps:$4 sm:$0xff]   ;;  %v18784_v3 = vld [vmem:[%s22045_s1 + $0x2014] ss:$100 sps:$4 sm:$0xff]  }
 0x1d5   : > { %v18779_v4 = vld [vmem:[%s22045_s1 + $0x2008] ss:$100 sps:$4 sm:$0xff]  }
 0x1d7   : > { %10909 = vmatpush1.bf16.msra.mxu0 %v18700_v5  ;;  %11073 = vmatpush1.bf16.msra.mxu1 %v18703_v6  ;;  %v18782_v5 = vld [vmem:[%s22045_s1 + $0x2010] ss:$100 sps:$4 sm:$0xff]  }
 0x1d8   : > { %10910 = vmatprep.subr.bf16.mxu0 %v18708_v7  ;;  %11074 = vmatprep.subr.bf16.mxu1 %v18711_v8  ;;  %v18787_v6 = vld [vmem:[%s22045_s1 + $0x20d4] ss:$100 sps:$4 sm:$0xff]   ;;  %v18790_v7 = vld [vmem:[%s22045_s1 + $0x20dc] ss:$100 sps:$4 sm:$0xff]  }
 0x1d9   : > { %v18785_v8 = vld [vmem:[%s22045_s1 + $0x20d0] ss:$100 sps:$4 sm:$0xff]  }
 0x1db   : > { %10911 = vmatpush1.bf16.msra.mxu0 %v18706_v10  ;;  %11075 = vmatpush1.bf16.msra.mxu1 %v18709_v11  ;;  %v18788_v10 = vld [vmem:[%s22045_s1 + $0x20d8] ss:$100 sps:$4 sm:$0xff]  }
 0x1dc   : > { %10912 = vmatprep.subr.bf16.mxu0 %v18714_v12  ;;  %11076 = vmatprep.subr.bf16.mxu1 %v18717_v13  ;;  %v18793_v11 = vld [vmem:[%s22045_s1 + $0x219c] ss:$100 sps:$4 sm:$0xff]   ;;  %v18796_v12 = vld [vmem:[%s22045_s1 + $0x21a4] ss:$100 sps:$4 sm:$0xff]  }
 0x1dd   : > { %v18791_v13 = vld [vmem:[%s22045_s1 + $0x2198] ss:$100 sps:$4 sm:$0xff]  }
 0x1df   : > { %10913 = vmatpush1.bf16.msra.mxu0 %v18712_v14  ;;  %11077 = vmatpush1.bf16.msra.mxu1 %v18715_v15  ;;  %v18794_v14 = vld [vmem:[%s22045_s1 + $0x21a0] ss:$100 sps:$4 sm:$0xff]  }
 0x1e0   : > { %10914 = vmatprep.subr.bf16.mxu0 %v18720_v17  ;;  %11078 = vmatprep.subr.bf16.mxu1 %v18723_v18  ;;  %v18799_v15 = vld [vmem:[%s22045_s1 + $0x2264] ss:$100 sps:$4 sm:$0xff]   ;;  %v18802_v17 = vld [vmem:[%s22045_s1 + $0x226c] ss:$100 sps:$4 sm:$0xff]  }
 0x1e1   : > { %v18797_v18 = vld [vmem:[%s22045_s1 + $0x2260] ss:$100 sps:$4 sm:$0xff]  }
 0x1e3   : > { %10915 = vmatpush1.bf16.msra.mxu0 %v18718_v19  ;;  %11079 = vmatpush1.bf16.msra.mxu1 %v18721_v21  ;;  %v18800_v19 = vld [vmem:[%s22045_s1 + $0x2268] ss:$100 sps:$4 sm:$0xff]  }
 0x1e4   : > { %10925 = vmatprep.subr.bf16.mxu0 %v18727_v22  ;;  %11089 = vmatprep.subr.bf16.mxu1 %v18730_v23  ;;  %v18805_v21 = vld [vmem:[%s22045_s1 + $0x232c] ss:$100 sps:$4 sm:$0xff]   ;;  %v18808_v22 = vld [vmem:[%s22045_s1 + $0x2334] ss:$100 sps:$4 sm:$0xff]  }
 0x1e5   : > { %v18803_v23 = vld [vmem:[%s22045_s1 + $0x2328] ss:$100 sps:$4 sm:$0xff]  }
 0x1e6   : > { %10917 = vmatmul.mubr.bf16.vlgmr.msra.gmra.mrb[0].mxu0 %v22259_v25  ;;  %11081 = vmatmul.mubr.bf16.vlgmr.msra.gmra.mrb[0].mxu1 %v22259_v25 }
 0x1e7   : > { %10926 = vmatpush1.bf16.msra.mxu0 %v18725_v24  ;;  %11090 = vmatpush1.bf16.msra.mxu1 %v18728_v26  ;;  %v18806_v24 = vld [vmem:[%s22045_s1 + $0x2330] ss:$100 sps:$4 sm:$0xff]  }
 0x1e8   : > { %10927 = vmatprep.subr.bf16.mxu0 %v18733_v28  ;;  %11091 = vmatprep.subr.bf16.mxu1 %v18736_v29  ;;  %v18811_v26 = vld [vmem:[%s22045_s1 + $0x23f4] ss:$100 sps:$4 sm:$0xff]   ;;  %v18814_v28 = vld [vmem:[%s22045_s1 + $0x23fc] ss:$100 sps:$4 sm:$0xff]   ;;  %v949_v29 = vcombine.high %v22263_v27, %v22263_v27 }
 0x1e9   : > { %10957 = vmatprep.mubr.bf16.mxu0 %v22279_v35  ;;  %11121 = vmatprep.mubr.bf16.mxu1 %v22279_v35  ;;  %v18815_v27 = vld [vmem:[%s22045_s1 + $0x24b8] ss:$100 sps:$4 sm:$0xff]  }
 0x1eb   : > { %10928 = vmatpush1.bf16.msra.mxu0 %v18731_v31  ;;  %11092 = vmatpush1.bf16.msra.mxu1 %v18734_v32  ;;  %v18812_v31 = vld [vmem:[%s22045_s1 + $0x23f8] ss:$100 sps:$4 sm:$0xff]  }
 0x1ec   : > { %10929 = vmatprep.subr.bf16.mxu0 %v18739_v33  ;;  %11093 = vmatprep.subr.bf16.mxu1 %v18742_v34  ;;  %v18817_v32 = vld [vmem:[%s22045_s1 + $0x24bc] ss:$100 sps:$4 sm:$0xff]   ;;  %v18820_v33 = vld [vmem:[%s22045_s1 + $0x24c4] ss:$100 sps:$4 sm:$0xff]   ;;  %v22338_v34 = vrot.slane %v949_v29, %v22149_v49 }
 0x1ed   : > { %v18821_v49 = vld [vmem:[%s22045_s1 + $0x2580] ss:$100 sps:$4 sm:$0xff]   ;;  %v18887_v29 = vld [vmem:[%s22045_s1 + $0x2e18] ss:$100 sps:$4 sm:$0xff]  }
 0x1ef   : > { %10930 = vmatpush1.bf16.msra.mxu0 %v18737_v36  ;;  %11094 = vmatpush1.bf16.msra.mxu1 %v18740_v37  ;;  %v18818_v36 = vld [vmem:[%s22045_s1 + $0x24c0] ss:$100 sps:$4 sm:$0xff]  }
 0x1f0   : > { %10931 = vmatprep.subr.bf16.mxu0 %v18745_v39  ;;  %11095 = vmatprep.subr.bf16.mxu1 %v18748_v40  ;;  %v18823_v37 = vld [vmem:[%s22045_s1 + $0x2584] ss:$100 sps:$4 sm:$0xff]   ;;  %v18826_v39 = vld [vmem:[%s22045_s1 + $0x258c] ss:$100 sps:$4 sm:$0xff]   ;;  %v965_v40 = vcombine.high %v22338_v34, %v22338_v34 }
 0x1f3   : > { %10932 = vmatpush1.bf16.msra.mxu0 %v18743_v41  ;;  %11096 = vmatpush1.bf16.msra.mxu1 %v18746_v42  ;;  %v22348_v41 = vpack.c.bf16 %v22269_v30, %v22269_v30  ;;  %v18824_v42 = vld [vmem:[%s22045_s1 + $0x2588] ss:$100 sps:$4 sm:$0xff]  }
 0x1f4   : > { %10933 = vmatprep.subr.bf16.mxu0 %v18751_v44  ;;  %11097 = vmatprep.subr.bf16.mxu1 %v18754_v45  ;;  %v18829_v44 = vld [vmem:[%s22045_s1 + $0x264c] ss:$100 sps:$4 sm:$0xff]   ;;  %v18832_v45 = vld [vmem:[%s22045_s1 + $0x2654] ss:$100 sps:$4 sm:$0xff]  }
 0x1f5   : > { %v18827_v30 = vld [vmem:[%s22045_s1 + $0x2648] ss:$100 sps:$4 sm:$0xff]  }
 0x1f7   : > { %10934 = vmatpush1.bf16.msra.mxu0 %v18749_v46  ;;  %11098 = vmatpush1.bf16.msra.mxu1 %v18752_v47  ;;  %v22354_v46 = vpack.c.bf16 %v965_v40, %v965_v40  ;;  %v18830_v47 = vld [vmem:[%s22045_s1 + $0x2650] ss:$100 sps:$4 sm:$0xff]  }
 0x1f8   : > { %10935 = vmatprep.subr.bf16.mxu0 %v18757_v48  ;;  %11099 = vmatprep.subr.bf16.mxu1 %v18760_v50  ;;  %v18835_v48 = vld [vmem:[%s22045_s1 + $0x2714] ss:$100 sps:$4 sm:$0xff]   ;;  %v18838_v50 = vld [vmem:[%s22045_s1 + $0x271c] ss:$100 sps:$4 sm:$0xff]  }
 0x1f9   : > { %v18902_v40 = vld [vmem:[%s22045_s1 + $0x2fb0] ss:$100 sps:$4 sm:$0xff]  }
 0x1fb   : > { %10936 = vmatpush1.bf16.msra.mxu0 %v18755_v51  ;;  %11100 = vmatpush1.bf16.msra.mxu1 %v18758_v52  ;;  %v18833_v51 = vld [vmem:[%s22045_s1 + $0x2710] ss:$100 sps:$4 sm:$0xff]   ;;  %v18836_v52 = vld [vmem:[%s22045_s1 + $0x2718] ss:$100 sps:$4 sm:$0xff]  }
 0x1fc   : > { %10937 = vmatprep.subr.bf16.mxu0 %v18763_v53  ;;  %11101 = vmatprep.subr.bf16.mxu1 %v18766_v54  ;;  %v18841_v53 = vld [vmem:[%s22045_s1 + $0x27dc] ss:$100 sps:$4 sm:$0xff]   ;;  %v18844_v54 = vld [vmem:[%s22045_s1 + $0x27e4] ss:$100 sps:$4 sm:$0xff]  }
 0x1ff   : > { %10938 = vmatpush1.bf16.msra.mxu0 %v18761_v55  ;;  %11102 = vmatpush1.bf16.msra.mxu1 %v18764_v56  ;;  %v18839_v55 = vld [vmem:[%s22045_s1 + $0x27d8] ss:$100 sps:$4 sm:$0xff]   ;;  %v18842_v56 = vld [vmem:[%s22045_s1 + $0x27e0] ss:$100 sps:$4 sm:$0xff]  }
 0x200   : > { %10939 = vmatprep.subr.bf16.mxu0 %v18769_v57  ;;  %11103 = vmatprep.subr.bf16.mxu1 %v18772_v58  ;;  %v18847_v57 = vld [vmem:[%s22045_s1 + $0x28a4] ss:$100 sps:$4 sm:$0xff]   ;;  %v18850_v58 = vld [vmem:[%s22045_s1 + $0x28ac] ss:$100 sps:$4 sm:$0xff]  }
 0x203   : > { %10940 = vmatpush1.bf16.msra.mxu0 %v18767_v59  ;;  %11104 = vmatpush1.bf16.msra.mxu1 %v18770_v61  ;;  %v18845_v59 = vld [vmem:[%s22045_s1 + $0x28a0] ss:$100 sps:$4 sm:$0xff]   ;;  %v18848_v61 = vld [vmem:[%s22045_s1 + $0x28a8] ss:$100 sps:$4 sm:$0xff]  }
 0x204   : > { %10941 = vmatprep.subr.bf16.mxu0 %v18775_v62  ;;  %11105 = vmatprep.subr.bf16.mxu1 %v18778_v63  ;;  %v18853_v62 = vld [vmem:[%s22045_s1 + $0x296c] ss:$100 sps:$4 sm:$0xff]   ;;  %v18856_v63 = vld [vmem:[%s22045_s1 + $0x2974] ss:$100 sps:$4 sm:$0xff]  }
 0x207   : > { %10942 = vmatpush1.bf16.msra.mxu0 %v18773_v0  ;;  %11106 = vmatpush1.bf16.msra.mxu1 %v18776_v1  ;;  %v18851_v0 = vld [vmem:[%s22045_s1 + $0x2968] ss:$100 sps:$4 sm:$0xff]   ;;  %v18854_v1 = vld [vmem:[%s22045_s1 + $0x2970] ss:$100 sps:$4 sm:$0xff]  }
 0x208   : > { %10943 = vmatprep.subr.bf16.mxu0 %v18781_v2  ;;  %11107 = vmatprep.subr.bf16.mxu1 %v18784_v3  ;;  %v18859_v2 = vld [vmem:[%s22045_s1 + $0x2a34] ss:$100 sps:$4 sm:$0xff]   ;;  %v18862_v3 = vld [vmem:[%s22045_s1 + $0x2a3c] ss:$100 sps:$4 sm:$0xff]  }
 0x20b   : > { %10944 = vmatpush1.bf16.msra.mxu0 %v18779_v4  ;;  %11108 = vmatpush1.bf16.msra.mxu1 %v18782_v5  ;;  %v18857_v4 = vld [vmem:[%s22045_s1 + $0x2a30] ss:$100 sps:$4 sm:$0xff]   ;;  %v18860_v5 = vld [vmem:[%s22045_s1 + $0x2a38] ss:$100 sps:$4 sm:$0xff]  }
 0x20c   : > { %10945 = vmatprep.subr.bf16.mxu0 %v18787_v6  ;;  %11109 = vmatprep.subr.bf16.mxu1 %v18790_v7  ;;  %v18865_v6 = vld [vmem:[%s22045_s1 + $0x2afc] ss:$100 sps:$4 sm:$0xff]   ;;  %v18868_v7 = vld [vmem:[%s22045_s1 + $0x2b04] ss:$100 sps:$4 sm:$0xff]  }
 0x20f   : > { %10946 = vmatpush1.bf16.msra.mxu0 %v18785_v8  ;;  %11110 = vmatpush1.bf16.msra.mxu1 %v18788_v10  ;;  %v18863_v8 = vld [vmem:[%s22045_s1 + $0x2af8] ss:$100 sps:$4 sm:$0xff]   ;;  %v18866_v10 = vld [vmem:[%s22045_s1 + $0x2b00] ss:$100 sps:$4 sm:$0xff]  }
 0x210   : > { %10947 = vmatprep.subr.bf16.mxu0 %v18793_v11  ;;  %11111 = vmatprep.subr.bf16.mxu1 %v18796_v12  ;;  %v18871_v11 = vld [vmem:[%s22045_s1 + $0x2bc4] ss:$100 sps:$4 sm:$0xff]   ;;  %v18874_v12 = vld [vmem:[%s22045_s1 + $0x2bcc] ss:$100 sps:$4 sm:$0xff]  }
 0x213   : > { %10948 = vmatpush1.bf16.msra.mxu0 %v18791_v13  ;;  %11112 = vmatpush1.bf16.msra.mxu1 %v18794_v14  ;;  %v18869_v13 = vld [vmem:[%s22045_s1 + $0x2bc0] ss:$100 sps:$4 sm:$0xff]   ;;  %v18872_v14 = vld [vmem:[%s22045_s1 + $0x2bc8] ss:$100 sps:$4 sm:$0xff]  }
 0x214   : > { %10949 = vmatprep.subr.bf16.mxu0 %v18799_v15  ;;  %11113 = vmatprep.subr.bf16.mxu1 %v18802_v17  ;;  %v18877_v15 = vld [vmem:[%s22045_s1 + $0x2c8c] ss:$100 sps:$4 sm:$0xff]   ;;  %v18880_v17 = vld [vmem:[%s22045_s1 + $0x2c94] ss:$100 sps:$4 sm:$0xff]  }
 0x217   : > { %10950 = vmatpush1.bf16.msra.mxu0 %v18797_v18  ;;  %11114 = vmatpush1.bf16.msra.mxu1 %v18800_v19  ;;  %v18875_v18 = vld [vmem:[%s22045_s1 + $0x2c88] ss:$100 sps:$4 sm:$0xff]   ;;  %v18878_v19 = vld [vmem:[%s22045_s1 + $0x2c90] ss:$100 sps:$4 sm:$0xff]  }
 0x218   : > { %10951 = vmatprep.subr.bf16.mxu0 %v18805_v21  ;;  %11115 = vmatprep.subr.bf16.mxu1 %v18808_v22  ;;  %v18883_v21 = vld [vmem:[%s22045_s1 + $0x2d54] ss:$100 sps:$4 sm:$0xff]   ;;  %v18886_v22 = vld [vmem:[%s22045_s1 + $0x2d5c] ss:$100 sps:$4 sm:$0xff]  }
 0x21b   : > { %10952 = vmatpush1.bf16.msra.mxu0 %v18803_v23  ;;  %11116 = vmatpush1.bf16.msra.mxu1 %v18806_v24  ;;  %v18881_v23 = vld [vmem:[%s22045_s1 + $0x2d50] ss:$100 sps:$4 sm:$0xff]   ;;  %v18884_v24 = vld [vmem:[%s22045_s1 + $0x2d58] ss:$100 sps:$4 sm:$0xff]  }
 0x21c   : > { %10953 = vmatprep.subr.bf16.mxu0 %v18811_v26  ;;  %11117 = vmatprep.subr.bf16.mxu1 %v18814_v28  ;;  %v18889_v26 = vld [vmem:[%s22045_s1 + $0x2e1c] ss:$100 sps:$4 sm:$0xff]   ;;  %v18892_v28 = vld [vmem:[%s22045_s1 + $0x2e24] ss:$100 sps:$4 sm:$0xff]  }
 0x21f   : > { %10954 = vmatpush1.bf16.msra.mxu0 %v18809_v9  ;;  %11118 = vmatpush1.bf16.msra.mxu1 %v18812_v31  ;;  %v18890_v9 = vld [vmem:[%s22045_s1 + $0x2e20] ss:$100 sps:$4 sm:$0xff]  }
 0x220   : > { %10955 = vmatprep.subr.bf16.mxu0 %v18817_v32  ;;  %11119 = vmatprep.subr.bf16.mxu1 %v18820_v33  ;;  %v18895_v31 = vld [vmem:[%s22045_s1 + $0x2ee4] ss:$100 sps:$4 sm:$0xff]   ;;  %v18898_v32 = vld [vmem:[%s22045_s1 + $0x2eec] ss:$100 sps:$4 sm:$0xff]  }
 0x221   : > { %v18893_v33 = vld [vmem:[%s22045_s1 + $0x2ee0] ss:$100 sps:$4 sm:$0xff]  }
 0x223   : > { %10956 = vmatpush1.bf16.msra.mxu0 %v18815_v27  ;;  %11120 = vmatpush1.bf16.msra.mxu1 %v18818_v36  ;;  %v18896_v27 = vld [vmem:[%s22045_s1 + $0x2ee8] ss:$100 sps:$4 sm:$0xff]  }
 0x224   : > { %10966 = vmatprep.subr.bf16.mxu0 %v18823_v37  ;;  %11130 = vmatprep.subr.bf16.mxu1 %v18826_v39  ;;  %v18901_v36 = vld [vmem:[%s22045_s1 + $0x2fac] ss:$100 sps:$4 sm:$0xff]   ;;  %v18904_v37 = vld [vmem:[%s22045_s1 + $0x2fb4] ss:$100 sps:$4 sm:$0xff]  }
 0x225   : > { %v18899_v39 = vld [vmem:[%s22045_s1 + $0x2fa8] ss:$100 sps:$4 sm:$0xff]  }
 0x226   : > { %10958 = vmatmul.mubr.bf16.vlgmr.msra.gmra.mrb[0].mxu0 %v22348_v41  ;;  %11122 = vmatmul.mubr.bf16.vlgmr.msra.gmra.mrb[0].mxu1 %v22348_v41 }
 0x227   : > { %10967 = vmatpush1.bf16.msra.mxu0 %v18821_v49  ;;  %11131 = vmatpush1.bf16.msra.mxu1 %v18824_v42  ;;  %v18907_v49 = vld [vmem:[%s22045_s1 + $0x3074] ss:$100 sps:$4 sm:$0xff]   ;;  %v18910_v42 = vld [vmem:[%s22045_s1 + $0x307c] ss:$100 sps:$4 sm:$0xff]  }
 0x228   : > { %10968 = vmatprep.subr.bf16.mxu0 %v18829_v44  ;;  %11132 = vmatprep.subr.bf16.mxu1 %v18832_v45  ;;  %v18905_v44 = vld [vmem:[%s22045_s1 + $0x3070] ss:$100 sps:$4 sm:$0xff]   ;;  %v18908_v45 = vld [vmem:[%s22045_s1 + $0x3078] ss:$100 sps:$4 sm:$0xff]  }
 0x229   : > { %10998 = vmatprep.mubr.bf16.mxu0 %v22354_v46  ;;  %11162 = vmatprep.mubr.bf16.mxu1 %v22354_v46 }
 0x22b   : > { %10969 = vmatpush1.bf16.msra.mxu0 %v18827_v30  ;;  %11133 = vmatpush1.bf16.msra.mxu1 %v18830_v47  ;;  %v18913_v30 = vld [vmem:[%s22045_s1 + $0x313c] ss:$100 sps:$4 sm:$0xff]   ;;  %v18916_v47 = vld [vmem:[%s22045_s1 + $0x3144] ss:$100 sps:$4 sm:$0xff]  }
 0x22c   : > { %10970 = vmatprep.subr.bf16.mxu0 %v18835_v48  ;;  %11134 = vmatprep.subr.bf16.mxu1 %v18838_v50  ;;  %v18911_v48 = vld [vmem:[%s22045_s1 + $0x3138] ss:$100 sps:$4 sm:$0xff]   ;;  %v18914_v50 = vld [vmem:[%s22045_s1 + $0x3140] ss:$100 sps:$4 sm:$0xff]  }
 0x22f   : > { %10971 = vmatpush1.bf16.msra.mxu0 %v18833_v51  ;;  %11135 = vmatpush1.bf16.msra.mxu1 %v18836_v52  ;;  %v18920_v51 = vld [vmem:[%s22045_s1 + $0x14] ss:$100 sps:$4 sm:$0xff]   ;;  %v18923_v52 = vld [vmem:[%s22045_s1 + $0x1c] ss:$100 sps:$4 sm:$0xff]  }
 0x230   : > { %10972 = vmatprep.subr.bf16.mxu0 %v18841_v53  ;;  %11136 = vmatprep.subr.bf16.mxu1 %v18844_v54  ;;  %v22422_v53 = vpack.c.bf16 %v22338_v34, %v22338_v34  ;;  %v18918_v54 = vld [vmem:[%s22045_s1 + $0x10] ss:$100 sps:$4 sm:$0xff]   ;;  %v18924_v34 = vld [vmem:[%s22045_s1 + $0xd8] ss:$100 sps:$4 sm:$0xff]  }
 0x233   : > { %10973 = vmatpush1.bf16.msra.mxu0 %v18839_v55  ;;  %11137 = vmatpush1.bf16.msra.mxu1 %v18842_v56  ;;  %v18921_v55 = vld [vmem:[%s22045_s1 + $0x18] ss:$100 sps:$4 sm:$0xff]  }
 0x234   : > { %10974 = vmatprep.subr.bf16.mxu0 %v18847_v57  ;;  %11138 = vmatprep.subr.bf16.mxu1 %v18850_v58  ;;  %v18926_v56 = vld [vmem:[%s22045_s1 + $0xdc] ss:$100 sps:$4 sm:$0xff]   ;;  %v18929_v57 = vld [vmem:[%s22045_s1 + $0xe4] ss:$100 sps:$4 sm:$0xff]  }
 0x235   : > { %v18927_v58 = vld [vmem:[%s22045_s1 + $0xe0] ss:$100 sps:$4 sm:$0xff]  }
 0x237   : > { %10975 = vmatpush1.bf16.msra.mxu0 %v18845_v59  ;;  %11139 = vmatpush1.bf16.msra.mxu1 %v18848_v61  ;;  %v18932_v59 = vld [vmem:[%s22045_s1 + $0x1a4] ss:$100 sps:$4 sm:$0xff]   ;;  %v18935_v61 = vld [vmem:[%s22045_s1 + $0x1ac] ss:$100 sps:$4 sm:$0xff]  }
 0x238   : > { %10976 = vmatprep.subr.bf16.mxu0 %v18853_v62  ;;  %11140 = vmatprep.subr.bf16.mxu1 %v18856_v63  ;;  %v18930_v62 = vld [vmem:[%s22045_s1 + $0x1a0] ss:$100 sps:$4 sm:$0xff]   ;;  %v18933_v63 = vld [vmem:[%s22045_s1 + $0x1a8] ss:$100 sps:$4 sm:$0xff]  }
 0x23b   : > { %10977 = vmatpush1.bf16.msra.mxu0 %v18851_v0  ;;  %11141 = vmatpush1.bf16.msra.mxu1 %v18854_v1  ;;  %v18938_v0 = vld [vmem:[%s22045_s1 + $0x26c] ss:$100 sps:$4 sm:$0xff]   ;;  %v18941_v1 = vld [vmem:[%s22045_s1 + $0x274] ss:$100 sps:$4 sm:$0xff]  }
 0x23c   : > { %10978 = vmatprep.subr.bf16.mxu0 %v18859_v2  ;;  %11142 = vmatprep.subr.bf16.mxu1 %v18862_v3  ;;  %v18936_v2 = vld [vmem:[%s22045_s1 + $0x268] ss:$100 sps:$4 sm:$0xff]   ;;  %v18939_v3 = vld [vmem:[%s22045_s1 + $0x270] ss:$100 sps:$4 sm:$0xff]  }
 0x23f   : > { %10979 = vmatpush1.bf16.msra.mxu0 %v18857_v4  ;;  %11143 = vmatpush1.bf16.msra.mxu1 %v18860_v5  ;;  %v18944_v4 = vld [vmem:[%s22045_s1 + $0x334] ss:$100 sps:$4 sm:$0xff]   ;;  %v18947_v5 = vld [vmem:[%s22045_s1 + $0x33c] ss:$100 sps:$4 sm:$0xff]  }
 0x240   : > { %10980 = vmatprep.subr.bf16.mxu0 %v18865_v6  ;;  %11144 = vmatprep.subr.bf16.mxu1 %v18868_v7  ;;  %v18942_v6 = vld [vmem:[%s22045_s1 + $0x330] ss:$100 sps:$4 sm:$0xff]   ;;  %v18945_v7 = vld [vmem:[%s22045_s1 + $0x338] ss:$100 sps:$4 sm:$0xff]  }
 0x243   : > { %10981 = vmatpush1.bf16.msra.mxu0 %v18863_v8  ;;  %11145 = vmatpush1.bf16.msra.mxu1 %v18866_v10  ;;  %v18950_v8 = vld [vmem:[%s22045_s1 + $0x3fc] ss:$100 sps:$4 sm:$0xff]   ;;  %v18953_v10 = vld [vmem:[%s22045_s1 + $0x404] ss:$100 sps:$4 sm:$0xff]  }
 0x244   : > { %10982 = vmatprep.subr.bf16.mxu0 %v18871_v11  ;;  %11146 = vmatprep.subr.bf16.mxu1 %v18874_v12  ;;  %v18948_v11 = vld [vmem:[%s22045_s1 + $0x3f8] ss:$100 sps:$4 sm:$0xff]   ;;  %v18951_v12 = vld [vmem:[%s22045_s1 + $0x400] ss:$100 sps:$4 sm:$0xff]  }
 0x247   : > { %10983 = vmatpush1.bf16.msra.mxu0 %v18869_v13  ;;  %11147 = vmatpush1.bf16.msra.mxu1 %v18872_v14  ;;  %v18956_v13 = vld [vmem:[%s22045_s1 + $0x4c4] ss:$100 sps:$4 sm:$0xff]   ;;  %v18959_v14 = vld [vmem:[%s22045_s1 + $0x4cc] ss:$100 sps:$4 sm:$0xff]  }
 0x248   : > { %10984 = vmatprep.subr.bf16.mxu0 %v18877_v15  ;;  %11148 = vmatprep.subr.bf16.mxu1 %v18880_v17  ;;  %v18954_v15 = vld [vmem:[%s22045_s1 + $0x4c0] ss:$100 sps:$4 sm:$0xff]   ;;  %v18957_v17 = vld [vmem:[%s22045_s1 + $0x4c8] ss:$100 sps:$4 sm:$0xff]  }
 0x24b   : > { %10985 = vmatpush1.bf16.msra.mxu0 %v18875_v18  ;;  %11149 = vmatpush1.bf16.msra.mxu1 %v18878_v19  ;;  %v18962_v18 = vld [vmem:[%s22045_s1 + $0x58c] ss:$100 sps:$4 sm:$0xff]   ;;  %v18965_v19 = vld [vmem:[%s22045_s1 + $0x594] ss:$100 sps:$4 sm:$0xff]  }
 0x24c   : > { %10986 = vmatprep.subr.bf16.mxu0 %v18883_v21  ;;  %11150 = vmatprep.subr.bf16.mxu1 %v18886_v22  ;;  %v18960_v21 = vld [vmem:[%s22045_s1 + $0x588] ss:$100 sps:$4 sm:$0xff]   ;;  %v18963_v22 = vld [vmem:[%s22045_s1 + $0x590] ss:$100 sps:$4 sm:$0xff]  }
 0x24f   : > { %10987 = vmatpush1.bf16.msra.mxu0 %v18881_v23  ;;  %11151 = vmatpush1.bf16.msra.mxu1 %v18884_v24  ;;  %v18968_v23 = vld [vmem:[%s22045_s1 + $0x654] ss:$100 sps:$4 sm:$0xff]   ;;  %v18971_v24 = vld [vmem:[%s22045_s1 + $0x65c] ss:$100 sps:$4 sm:$0xff]  }
 0x250   : > { %10988 = vmatprep.subr.bf16.mxu0 %v18889_v26  ;;  %11152 = vmatprep.subr.bf16.mxu1 %v18892_v28  ;;  %v18966_v26 = vld [vmem:[%s22045_s1 + $0x650] ss:$100 sps:$4 sm:$0xff]   ;;  %v18969_v28 = vld [vmem:[%s22045_s1 + $0x658] ss:$100 sps:$4 sm:$0xff]  }
 0x253   : > { %10989 = vmatpush1.bf16.msra.mxu0 %v18887_v29  ;;  %11153 = vmatpush1.bf16.msra.mxu1 %v18890_v9  ;;  %v18974_v29 = vld [vmem:[%s22045_s1 + $0x71c] ss:$100 sps:$4 sm:$0xff]   ;;  %v18977_v9 = vld [vmem:[%s22045_s1 + $0x724] ss:$100 sps:$4 sm:$0xff]  }
 0x254   : > { %10990 = vmatprep.subr.bf16.mxu0 %v18895_v31  ;;  %11154 = vmatprep.subr.bf16.mxu1 %v18898_v32  ;;  %v18972_v31 = vld [vmem:[%s22045_s1 + $0x718] ss:$100 sps:$4 sm:$0xff]   ;;  %v18975_v32 = vld [vmem:[%s22045_s1 + $0x720] ss:$100 sps:$4 sm:$0xff]  }
 0x257   : > { %10991 = vmatpush1.bf16.msra.mxu0 %v18893_v33  ;;  %11155 = vmatpush1.bf16.msra.mxu1 %v18896_v27  ;;  %v18980_v33 = vld [vmem:[%s22045_s1 + $0x7e4] ss:$100 sps:$4 sm:$0xff]   ;;  %v18983_v27 = vld [vmem:[%s22045_s1 + $0x7ec] ss:$100 sps:$4 sm:$0xff]  }
 0x258   : > { %10992 = vmatprep.subr.bf16.mxu0 %v18901_v36  ;;  %11156 = vmatprep.subr.bf16.mxu1 %v18904_v37  ;;  %v18978_v36 = vld [vmem:[%s22045_s1 + $0x7e0] ss:$100 sps:$4 sm:$0xff]   ;;  %v18981_v37 = vld [vmem:[%s22045_s1 + $0x7e8] ss:$100 sps:$4 sm:$0xff]  }
 0x25b   : > { %10993 = vmatpush1.bf16.msra.mxu0 %v18899_v39  ;;  %11157 = vmatpush1.bf16.msra.mxu1 %v18902_v40  ;;  %v18986_v39 = vld [vmem:[%s22045_s1 + $0x8ac] ss:$100 sps:$4 sm:$0xff]   ;;  %v18989_v40 = vld [vmem:[%s22045_s1 + $0x8b4] ss:$100 sps:$4 sm:$0xff]  }
 0x25c   : > { %10994 = vmatprep.subr.bf16.mxu0 %v18907_v49  ;;  %11158 = vmatprep.subr.bf16.mxu1 %v18910_v42  ;;  %v18984_v49 = vld [vmem:[%s22045_s1 + $0x8a8] ss:$100 sps:$4 sm:$0xff]   ;;  %v18987_v42 = vld [vmem:[%s22045_s1 + $0x8b0] ss:$100 sps:$4 sm:$0xff]  }
 0x25f   : > { %10995 = vmatpush1.bf16.msra.mxu0 %v18905_v44  ;;  %11159 = vmatpush1.bf16.msra.mxu1 %v18908_v45  ;;  %v18992_v44 = vld [vmem:[%s22045_s1 + $0x974] ss:$100 sps:$4 sm:$0xff]   ;;  %v18995_v45 = vld [vmem:[%s22045_s1 + $0x97c] ss:$100 sps:$4 sm:$0xff]  }
 0x260   : > { %10996 = vmatprep.subr.bf16.mxu0 %v18913_v30  ;;  %11160 = vmatprep.subr.bf16.mxu1 %v18916_v47  ;;  %v18990_v30 = vld [vmem:[%s22045_s1 + $0x970] ss:$100 sps:$4 sm:$0xff]   ;;  %v18993_v47 = vld [vmem:[%s22045_s1 + $0x978] ss:$100 sps:$4 sm:$0xff]  }
 0x263   : > { %10997 = vmatpush1.bf16.msra.mxu0 %v18911_v48  ;;  %11161 = vmatpush1.bf16.msra.mxu1 %v18914_v50  ;;  %v18998_v48 = vld [vmem:[%s22045_s1 + $0xa3c] ss:$100 sps:$4 sm:$0xff]   ;;  %v19001_v50 = vld [vmem:[%s22045_s1 + $0xa44] ss:$100 sps:$4 sm:$0xff]  }
 0x264   : > { %11171 = vmatprep.subr.bf16.mxu0 %v18920_v51  ;;  %11335 = vmatprep.subr.bf16.mxu1 %v18923_v52  ;;  %v18996_v51 = vld [vmem:[%s22045_s1 + $0xa38] ss:$100 sps:$4 sm:$0xff]   ;;  %v18999_v52 = vld [vmem:[%s22045_s1 + $0xa40] ss:$100 sps:$4 sm:$0xff]  }
 0x266   : > { %10999 = vmatmul.mubr.bf16.vlgmr.msra.gmra.mrb[0].mxu0 %v22422_v53  ;;  %11163 = vmatmul.mubr.bf16.vlgmr.msra.gmra.mrb[0].mxu1 %v22422_v53 }
 0x267   : > { %11172 = vmatpush1.bf16.msra.mxu0 %v18918_v54  ;;  %11336 = vmatpush1.bf16.msra.mxu1 %v18921_v55  ;;  %v19004_v54 = vld [vmem:[%s22045_s1 + $0xb04] ss:$100 sps:$4 sm:$0xff]   ;;  %v19007_v55 = vld [vmem:[%s22045_s1 + $0xb0c] ss:$100 sps:$4 sm:$0xff]  }
 0x268   : > { %11173 = vmatprep.subr.bf16.mxu0 %v18926_v56  ;;  %11337 = vmatprep.subr.bf16.mxu1 %v18929_v57  ;;  %v19002_v56 = vld [vmem:[%s22045_s1 + $0xb00] ss:$100 sps:$4 sm:$0xff]   ;;  %v19005_v57 = vld [vmem:[%s22045_s1 + $0xb08] ss:$100 sps:$4 sm:$0xff]  }
 0x269   : > { %11203 = vmatprep.mubr.bf16.mxu0 %v22160_v60  ;;  %11367 = vmatprep.mubr.bf16.mxu1 %v22160_v60 }
 0x26b   : > { %11174 = vmatpush1.bf16.msra.mxu0 %v18924_v34  ;;  %11338 = vmatpush1.bf16.msra.mxu1 %v18927_v58  ;;  %v19010_v34 = vld [vmem:[%s22045_s1 + $0xbcc] ss:$100 sps:$4 sm:$0xff]   ;;  %v19013_v58 = vld [vmem:[%s22045_s1 + $0xbd4] ss:$100 sps:$4 sm:$0xff]  }
 0x26c   : > { %11175 = vmatprep.subr.bf16.mxu0 %v18932_v59  ;;  %11339 = vmatprep.subr.bf16.mxu1 %v18935_v61  ;;  %v19008_v59 = vld [vmem:[%s22045_s1 + $0xbc8] ss:$100 sps:$4 sm:$0xff]   ;;  %v19011_v61 = vld [vmem:[%s22045_s1 + $0xbd0] ss:$100 sps:$4 sm:$0xff]  }
 0x26f   : > { %11176 = vmatpush1.bf16.msra.mxu0 %v18930_v62  ;;  %11340 = vmatpush1.bf16.msra.mxu1 %v18933_v63  ;;  %v19016_v62 = vld [vmem:[%s22045_s1 + $0xc94] ss:$100 sps:$4 sm:$0xff]   ;;  %v19019_v63 = vld [vmem:[%s22045_s1 + $0xc9c] ss:$100 sps:$4 sm:$0xff]  }
 0x270   : > { %11177 = vmatprep.subr.bf16.mxu0 %v18938_v0  ;;  %11341 = vmatprep.subr.bf16.mxu1 %v18941_v1  ;;  %v19014_v0 = vld [vmem:[%s22045_s1 + $0xc90] ss:$100 sps:$4 sm:$0xff]   ;;  %v19017_v1 = vld [vmem:[%s22045_s1 + $0xc98] ss:$100 sps:$4 sm:$0xff]  }
 0x273   : > { %11178 = vmatpush1.bf16.msra.mxu0 %v18936_v2  ;;  %11342 = vmatpush1.bf16.msra.mxu1 %v18939_v3  ;;  %v19022_v2 = vld [vmem:[%s22045_s1 + $0xd5c] ss:$100 sps:$4 sm:$0xff]   ;;  %v19025_v3 = vld [vmem:[%s22045_s1 + $0xd64] ss:$100 sps:$4 sm:$0xff]  }
 0x274   : > { %11179 = vmatprep.subr.bf16.mxu0 %v18944_v4  ;;  %11343 = vmatprep.subr.bf16.mxu1 %v18947_v5  ;;  %v19020_v4 = vld [vmem:[%s22045_s1 + $0xd58] ss:$100 sps:$4 sm:$0xff]   ;;  %v19023_v5 = vld [vmem:[%s22045_s1 + $0xd60] ss:$100 sps:$4 sm:$0xff]  }
 0x277   : > { %11180 = vmatpush1.bf16.msra.mxu0 %v18942_v6  ;;  %11344 = vmatpush1.bf16.msra.mxu1 %v18945_v7  ;;  %v19028_v6 = vld [vmem:[%s22045_s1 + $0xe24] ss:$100 sps:$4 sm:$0xff]   ;;  %v19031_v7 = vld [vmem:[%s22045_s1 + $0xe2c] ss:$100 sps:$4 sm:$0xff]  }
 0x278   : > { %11181 = vmatprep.subr.bf16.mxu0 %v18950_v8  ;;  %11345 = vmatprep.subr.bf16.mxu1 %v18953_v10  ;;  %v19026_v8 = vld [vmem:[%s22045_s1 + $0xe20] ss:$100 sps:$4 sm:$0xff]   ;;  %v19029_v10 = vld [vmem:[%s22045_s1 + $0xe28] ss:$100 sps:$4 sm:$0xff]  }
 0x27b   : > { %11182 = vmatpush1.bf16.msra.mxu0 %v18948_v11  ;;  %11346 = vmatpush1.bf16.msra.mxu1 %v18951_v12  ;;  %v19034_v11 = vld [vmem:[%s22045_s1 + $0xeec] ss:$100 sps:$4 sm:$0xff]   ;;  %v19037_v12 = vld [vmem:[%s22045_s1 + $0xef4] ss:$100 sps:$4 sm:$0xff]  }
 0x27c   : > { %11183 = vmatprep.subr.bf16.mxu0 %v18956_v13  ;;  %11347 = vmatprep.subr.bf16.mxu1 %v18959_v14  ;;  %v19032_v13 = vld [vmem:[%s22045_s1 + $0xee8] ss:$100 sps:$4 sm:$0xff]   ;;  %v19035_v14 = vld [vmem:[%s22045_s1 + $0xef0] ss:$100 sps:$4 sm:$0xff]  }
 0x27f   : > { %11184 = vmatpush1.bf16.msra.mxu0 %v18954_v15  ;;  %11348 = vmatpush1.bf16.msra.mxu1 %v18957_v17  ;;  %v19040_v15 = vld [vmem:[%s22045_s1 + $0xfb4] ss:$100 sps:$4 sm:$0xff]   ;;  %v19043_v17 = vld [vmem:[%s22045_s1 + $0xfbc] ss:$100 sps:$4 sm:$0xff]  }
 0x280   : > { %11185 = vmatprep.subr.bf16.mxu0 %v18962_v18  ;;  %11349 = vmatprep.subr.bf16.mxu1 %v18965_v19  ;;  %v19038_v18 = vld [vmem:[%s22045_s1 + $0xfb0] ss:$100 sps:$4 sm:$0xff]   ;;  %v19041_v19 = vld [vmem:[%s22045_s1 + $0xfb8] ss:$100 sps:$4 sm:$0xff]  }
 0x283   : > { %11186 = vmatpush1.bf16.msra.mxu0 %v18960_v21  ;;  %11350 = vmatpush1.bf16.msra.mxu1 %v18963_v22  ;;  %v19046_v21 = vld [vmem:[%s22045_s1 + $0x107c] ss:$100 sps:$4 sm:$0xff]   ;;  %v19049_v22 = vld [vmem:[%s22045_s1 + $0x1084] ss:$100 sps:$4 sm:$0xff]  }
 0x284   : > { %11187 = vmatprep.subr.bf16.mxu0 %v18968_v23  ;;  %11351 = vmatprep.subr.bf16.mxu1 %v18971_v24  ;;  %v19044_v23 = vld [vmem:[%s22045_s1 + $0x1078] ss:$100 sps:$4 sm:$0xff]   ;;  %v19047_v24 = vld [vmem:[%s22045_s1 + $0x1080] ss:$100 sps:$4 sm:$0xff]  }
 0x287   : > { %11188 = vmatpush1.bf16.msra.mxu0 %v18966_v26  ;;  %11352 = vmatpush1.bf16.msra.mxu1 %v18969_v28  ;;  %v19052_v26 = vld [vmem:[%s22045_s1 + $0x1144] ss:$100 sps:$4 sm:$0xff]   ;;  %v19055_v28 = vld [vmem:[%s22045_s1 + $0x114c] ss:$100 sps:$4 sm:$0xff]  }
 0x288   : > { %11189 = vmatprep.subr.bf16.mxu0 %v18974_v29  ;;  %11353 = vmatprep.subr.bf16.mxu1 %v18977_v9  ;;  %v19050_v29 = vld [vmem:[%s22045_s1 + $0x1140] ss:$100 sps:$4 sm:$0xff]   ;;  %v19053_v9 = vld [vmem:[%s22045_s1 + $0x1148] ss:$100 sps:$4 sm:$0xff]  }
 0x28b   : > { %11190 = vmatpush1.bf16.msra.mxu0 %v18972_v31  ;;  %11354 = vmatpush1.bf16.msra.mxu1 %v18975_v32  ;;  %v19058_v31 = vld [vmem:[%s22045_s1 + $0x120c] ss:$100 sps:$4 sm:$0xff]   ;;  %v19061_v32 = vld [vmem:[%s22045_s1 + $0x1214] ss:$100 sps:$4 sm:$0xff]  }
 0x28c   : > { %11191 = vmatprep.subr.bf16.mxu0 %v18980_v33  ;;  %11355 = vmatprep.subr.bf16.mxu1 %v18983_v27  ;;  %v19056_v33 = vld [vmem:[%s22045_s1 + $0x1208] ss:$100 sps:$4 sm:$0xff]   ;;  %v19059_v27 = vld [vmem:[%s22045_s1 + $0x1210] ss:$100 sps:$4 sm:$0xff]  }
 0x28f   : > { %11192 = vmatpush1.bf16.msra.mxu0 %v18978_v36  ;;  %11356 = vmatpush1.bf16.msra.mxu1 %v18981_v37  ;;  %v19064_v36 = vld [vmem:[%s22045_s1 + $0x12d4] ss:$100 sps:$4 sm:$0xff]   ;;  %v19067_v37 = vld [vmem:[%s22045_s1 + $0x12dc] ss:$100 sps:$4 sm:$0xff]  }
 0x290   : > { %11193 = vmatprep.subr.bf16.mxu0 %v18986_v39  ;;  %11357 = vmatprep.subr.bf16.mxu1 %v18989_v40  ;;  %v19062_v39 = vld [vmem:[%s22045_s1 + $0x12d0] ss:$100 sps:$4 sm:$0xff]   ;;  %v19065_v40 = vld [vmem:[%s22045_s1 + $0x12d8] ss:$100 sps:$4 sm:$0xff]  }
 0x293   : > { %11194 = vmatpush1.bf16.msra.mxu0 %v18984_v49  ;;  %11358 = vmatpush1.bf16.msra.mxu1 %v18987_v42  ;;  %v19070_v49 = vld [vmem:[%s22045_s1 + $0x139c] ss:$100 sps:$4 sm:$0xff]   ;;  %v19073_v42 = vld [vmem:[%s22045_s1 + $0x13a4] ss:$100 sps:$4 sm:$0xff]  }
 0x294   : > { %11195 = vmatprep.subr.bf16.mxu0 %v18992_v44  ;;  %11359 = vmatprep.subr.bf16.mxu1 %v18995_v45  ;;  %v19068_v44 = vld [vmem:[%s22045_s1 + $0x1398] ss:$100 sps:$4 sm:$0xff]   ;;  %v19071_v45 = vld [vmem:[%s22045_s1 + $0x13a0] ss:$100 sps:$4 sm:$0xff]  }
 0x297   : > { %11196 = vmatpush1.bf16.msra.mxu0 %v18990_v30  ;;  %11360 = vmatpush1.bf16.msra.mxu1 %v18993_v47  ;;  %v19076_v30 = vld [vmem:[%s22045_s1 + $0x1464] ss:$100 sps:$4 sm:$0xff]   ;;  %v19079_v47 = vld [vmem:[%s22045_s1 + $0x146c] ss:$100 sps:$4 sm:$0xff]  }
 0x298   : > { %11197 = vmatprep.subr.bf16.mxu0 %v18998_v48  ;;  %11361 = vmatprep.subr.bf16.mxu1 %v19001_v50  ;;  %v19074_v48 = vld [vmem:[%s22045_s1 + $0x1460] ss:$100 sps:$4 sm:$0xff]   ;;  %v19077_v50 = vld [vmem:[%s22045_s1 + $0x1468] ss:$100 sps:$4 sm:$0xff]  }
 0x29b   : > { %11198 = vmatpush1.bf16.msra.mxu0 %v18996_v51  ;;  %11362 = vmatpush1.bf16.msra.mxu1 %v18999_v52  ;;  %v19082_v51 = vld [vmem:[%s22045_s1 + $0x152c] ss:$100 sps:$4 sm:$0xff]   ;;  %v19085_v52 = vld [vmem:[%s22045_s1 + $0x1534] ss:$100 sps:$4 sm:$0xff]  }
 0x29c   : > { %11199 = vmatprep.subr.bf16.mxu0 %v19004_v54  ;;  %11363 = vmatprep.subr.bf16.mxu1 %v19007_v55  ;;  %v19080_v54 = vld [vmem:[%s22045_s1 + $0x1528] ss:$100 sps:$4 sm:$0xff]   ;;  %v19083_v55 = vld [vmem:[%s22045_s1 + $0x1530] ss:$100 sps:$4 sm:$0xff]  }
 0x29f   : > { %11200 = vmatpush1.bf16.msra.mxu0 %v19002_v56  ;;  %11364 = vmatpush1.bf16.msra.mxu1 %v19005_v57  ;;  %v19088_v56 = vld [vmem:[%s22045_s1 + $0x15f4] ss:$100 sps:$4 sm:$0xff]   ;;  %v19091_v57 = vld [vmem:[%s22045_s1 + $0x15fc] ss:$100 sps:$4 sm:$0xff]  }
 0x2a0   : > { %11201 = vmatprep.subr.bf16.mxu0 %v19010_v34  ;;  %11365 = vmatprep.subr.bf16.mxu1 %v19013_v58  ;;  %v19086_v34 = vld [vmem:[%s22045_s1 + $0x15f0] ss:$100 sps:$4 sm:$0xff]   ;;  %v19089_v58 = vld [vmem:[%s22045_s1 + $0x15f8] ss:$100 sps:$4 sm:$0xff]  }
 0x2a3   : > { %11202 = vmatpush1.bf16.msra.mxu0 %v19008_v59  ;;  %11366 = vmatpush1.bf16.msra.mxu1 %v19011_v61  ;;  %v19094_v59 = vld [vmem:[%s22045_s1 + $0x16bc] ss:$100 sps:$4 sm:$0xff]   ;;  %v19097_v61 = vld [vmem:[%s22045_s1 + $0x16c4] ss:$100 sps:$4 sm:$0xff]  }
 0x2a4   : > { %11212 = vmatprep.subr.bf16.mxu0 %v19016_v62  ;;  %11376 = vmatprep.subr.bf16.mxu1 %v19019_v63  ;;  %v19092_v62 = vld [vmem:[%s22045_s1 + $0x16b8] ss:$100 sps:$4 sm:$0xff]   ;;  %v19095_v63 = vld [vmem:[%s22045_s1 + $0x16c0] ss:$100 sps:$4 sm:$0xff]  }
 0x2a6   : > { %11204 = vmatmul.mubr.bf16.vlgmr.msra.gmra.mrb[4].mxu0 %v22185_v16  ;;  %11368 = vmatmul.mubr.bf16.vlgmr.msra.gmra.mrb[4].mxu1 %v22185_v16 }
 0x2a7   : > { %11213 = vmatpush1.bf16.msra.mxu0 %v19014_v0  ;;  %11377 = vmatpush1.bf16.msra.mxu1 %v19017_v1  ;;  %v19100_v0 = vld [vmem:[%s22045_s1 + $0x1784] ss:$100 sps:$4 sm:$0xff]   ;;  %v19103_v1 = vld [vmem:[%s22045_s1 + $0x178c] ss:$100 sps:$4 sm:$0xff]  }
 0x2a8   : > { %11214 = vmatprep.subr.bf16.mxu0 %v19022_v2  ;;  %11378 = vmatprep.subr.bf16.mxu1 %v19025_v3  ;;  %v19098_v2 = vld [vmem:[%s22045_s1 + $0x1780] ss:$100 sps:$4 sm:$0xff]   ;;  %v19101_v3 = vld [vmem:[%s22045_s1 + $0x1788] ss:$100 sps:$4 sm:$0xff]  }
 0x2a9   : > { %11244 = vmatprep.mubr.bf16.mxu0 %v22190_v20  ;;  %11408 = vmatprep.mubr.bf16.mxu1 %v22190_v20 }
 0x2ab   : > { %11215 = vmatpush1.bf16.msra.mxu0 %v19020_v4  ;;  %11379 = vmatpush1.bf16.msra.mxu1 %v19023_v5  ;;  %v19106_v4 = vld [vmem:[%s22045_s1 + $0x184c] ss:$100 sps:$4 sm:$0xff]   ;;  %v19109_v5 = vld [vmem:[%s22045_s1 + $0x1854] ss:$100 sps:$4 sm:$0xff]  }
 0x2ac   : > { %11216 = vmatprep.subr.bf16.mxu0 %v19028_v6  ;;  %11380 = vmatprep.subr.bf16.mxu1 %v19031_v7  ;;  %v19104_v6 = vld [vmem:[%s22045_s1 + $0x1848] ss:$100 sps:$4 sm:$0xff]   ;;  %v19107_v7 = vld [vmem:[%s22045_s1 + $0x1850] ss:$100 sps:$4 sm:$0xff]  }
 0x2af   : > { %11217 = vmatpush1.bf16.msra.mxu0 %v19026_v8  ;;  %11381 = vmatpush1.bf16.msra.mxu1 %v19029_v10  ;;  %v19112_v8 = vld [vmem:[%s22045_s1 + $0x1914] ss:$100 sps:$4 sm:$0xff]   ;;  %v19115_v10 = vld [vmem:[%s22045_s1 + $0x191c] ss:$100 sps:$4 sm:$0xff]  }
 0x2b0   : > { %11218 = vmatprep.subr.bf16.mxu0 %v19034_v11  ;;  %11382 = vmatprep.subr.bf16.mxu1 %v19037_v12  ;;  %v19110_v11 = vld [vmem:[%s22045_s1 + $0x1910] ss:$100 sps:$4 sm:$0xff]   ;;  %v19113_v12 = vld [vmem:[%s22045_s1 + $0x1918] ss:$100 sps:$4 sm:$0xff]  }
 0x2b3   : > { %11219 = vmatpush1.bf16.msra.mxu0 %v19032_v13  ;;  %11383 = vmatpush1.bf16.msra.mxu1 %v19035_v14  ;;  %v19118_v13 = vld [vmem:[%s22045_s1 + $0x19dc] ss:$100 sps:$4 sm:$0xff]   ;;  %v19121_v14 = vld [vmem:[%s22045_s1 + $0x19e4] ss:$100 sps:$4 sm:$0xff]  }
 0x2b4   : > { %11220 = vmatprep.subr.bf16.mxu0 %v19040_v15  ;;  %11384 = vmatprep.subr.bf16.mxu1 %v19043_v17  ;;  %v19116_v15 = vld [vmem:[%s22045_s1 + $0x19d8] ss:$100 sps:$4 sm:$0xff]   ;;  %v19119_v17 = vld [vmem:[%s22045_s1 + $0x19e0] ss:$100 sps:$4 sm:$0xff]  }
 0x2b7   : > { %11221 = vmatpush1.bf16.msra.mxu0 %v19038_v18  ;;  %11385 = vmatpush1.bf16.msra.mxu1 %v19041_v19  ;;  %v19124_v18 = vld [vmem:[%s22045_s1 + $0x1aa4] ss:$100 sps:$4 sm:$0xff]   ;;  %v19127_v19 = vld [vmem:[%s22045_s1 + $0x1aac] ss:$100 sps:$4 sm:$0xff]  }
 0x2b8   : > { %11222 = vmatprep.subr.bf16.mxu0 %v19046_v21  ;;  %11386 = vmatprep.subr.bf16.mxu1 %v19049_v22  ;;  %v19122_v21 = vld [vmem:[%s22045_s1 + $0x1aa0] ss:$100 sps:$4 sm:$0xff]   ;;  %v19125_v22 = vld [vmem:[%s22045_s1 + $0x1aa8] ss:$100 sps:$4 sm:$0xff]  }
 0x2bb   : > { %11223 = vmatpush1.bf16.msra.mxu0 %v19044_v23  ;;  %11387 = vmatpush1.bf16.msra.mxu1 %v19047_v24  ;;  %v19130_v23 = vld [vmem:[%s22045_s1 + $0x1b6c] ss:$100 sps:$4 sm:$0xff]   ;;  %v19133_v24 = vld [vmem:[%s22045_s1 + $0x1b74] ss:$100 sps:$4 sm:$0xff]  }
 0x2bc   : > { %11224 = vmatprep.subr.bf16.mxu0 %v19052_v26  ;;  %11388 = vmatprep.subr.bf16.mxu1 %v19055_v28  ;;  %v19128_v26 = vld [vmem:[%s22045_s1 + $0x1b68] ss:$100 sps:$4 sm:$0xff]   ;;  %v19131_v28 = vld [vmem:[%s22045_s1 + $0x1b70] ss:$100 sps:$4 sm:$0xff]  }
 0x2bf   : > { %11225 = vmatpush1.bf16.msra.mxu0 %v19050_v29  ;;  %11389 = vmatpush1.bf16.msra.mxu1 %v19053_v9  ;;  %v19136_v29 = vld [vmem:[%s22045_s1 + $0x1c34] ss:$100 sps:$4 sm:$0xff]   ;;  %v19139_v9 = vld [vmem:[%s22045_s1 + $0x1c3c] ss:$100 sps:$4 sm:$0xff]  }
 0x2c0   : > { %11226 = vmatprep.subr.bf16.mxu0 %v19058_v31  ;;  %11390 = vmatprep.subr.bf16.mxu1 %v19061_v32  ;;  %v19134_v31 = vld [vmem:[%s22045_s1 + $0x1c30] ss:$100 sps:$4 sm:$0xff]   ;;  %v19137_v32 = vld [vmem:[%s22045_s1 + $0x1c38] ss:$100 sps:$4 sm:$0xff]  }
 0x2c3   : > { %11227 = vmatpush1.bf16.msra.mxu0 %v19056_v33  ;;  %11391 = vmatpush1.bf16.msra.mxu1 %v19059_v27  ;;  %v19142_v33 = vld [vmem:[%s22045_s1 + $0x1cfc] ss:$100 sps:$4 sm:$0xff]   ;;  %v19145_v27 = vld [vmem:[%s22045_s1 + $0x1d04] ss:$100 sps:$4 sm:$0xff]  }
 0x2c4   : > { %11228 = vmatprep.subr.bf16.mxu0 %v19064_v36  ;;  %11392 = vmatprep.subr.bf16.mxu1 %v19067_v37  ;;  %v19140_v36 = vld [vmem:[%s22045_s1 + $0x1cf8] ss:$100 sps:$4 sm:$0xff]   ;;  %v19143_v37 = vld [vmem:[%s22045_s1 + $0x1d00] ss:$100 sps:$4 sm:$0xff]  }
 0x2c7   : > { %11229 = vmatpush1.bf16.msra.mxu0 %v19062_v39  ;;  %11393 = vmatpush1.bf16.msra.mxu1 %v19065_v40  ;;  %v19148_v39 = vld [vmem:[%s22045_s1 + $0x1dc4] ss:$100 sps:$4 sm:$0xff]   ;;  %v19151_v40 = vld [vmem:[%s22045_s1 + $0x1dcc] ss:$100 sps:$4 sm:$0xff]  }
 0x2c8   : > { %11230 = vmatprep.subr.bf16.mxu0 %v19070_v49  ;;  %11394 = vmatprep.subr.bf16.mxu1 %v19073_v42  ;;  %v19146_v49 = vld [vmem:[%s22045_s1 + $0x1dc0] ss:$100 sps:$4 sm:$0xff]   ;;  %v19149_v42 = vld [vmem:[%s22045_s1 + $0x1dc8] ss:$100 sps:$4 sm:$0xff]  }
 0x2cb   : > { %11231 = vmatpush1.bf16.msra.mxu0 %v19068_v44  ;;  %11395 = vmatpush1.bf16.msra.mxu1 %v19071_v45  ;;  %v19154_v44 = vld [vmem:[%s22045_s1 + $0x1e8c] ss:$100 sps:$4 sm:$0xff]   ;;  %v19157_v45 = vld [vmem:[%s22045_s1 + $0x1e94] ss:$100 sps:$4 sm:$0xff]  }
 0x2cc   : > { %11232 = vmatprep.subr.bf16.mxu0 %v19076_v30  ;;  %11396 = vmatprep.subr.bf16.mxu1 %v19079_v47  ;;  %v19152_v30 = vld [vmem:[%s22045_s1 + $0x1e88] ss:$100 sps:$4 sm:$0xff]   ;;  %v19155_v47 = vld [vmem:[%s22045_s1 + $0x1e90] ss:$100 sps:$4 sm:$0xff]  }
 0x2cf   : > { %11233 = vmatpush1.bf16.msra.mxu0 %v19074_v48  ;;  %11397 = vmatpush1.bf16.msra.mxu1 %v19077_v50  ;;  %v19160_v48 = vld [vmem:[%s22045_s1 + $0x1f54] ss:$100 sps:$4 sm:$0xff]   ;;  %v19163_v50 = vld [vmem:[%s22045_s1 + $0x1f5c] ss:$100 sps:$4 sm:$0xff]  }
 0x2d0   : > { %11234 = vmatprep.subr.bf16.mxu0 %v19082_v51  ;;  %11398 = vmatprep.subr.bf16.mxu1 %v19085_v52  ;;  %v19158_v51 = vld [vmem:[%s22045_s1 + $0x1f50] ss:$100 sps:$4 sm:$0xff]   ;;  %v19161_v52 = vld [vmem:[%s22045_s1 + $0x1f58] ss:$100 sps:$4 sm:$0xff]  }
 0x2d3   : > { %11235 = vmatpush1.bf16.msra.mxu0 %v19080_v54  ;;  %11399 = vmatpush1.bf16.msra.mxu1 %v19083_v55  ;;  %v19166_v54 = vld [vmem:[%s22045_s1 + $0x201c] ss:$100 sps:$4 sm:$0xff]   ;;  %v19169_v55 = vld [vmem:[%s22045_s1 + $0x2024] ss:$100 sps:$4 sm:$0xff]  }
 0x2d4   : > { %11236 = vmatprep.subr.bf16.mxu0 %v19088_v56  ;;  %11400 = vmatprep.subr.bf16.mxu1 %v19091_v57  ;;  %v19164_v56 = vld [vmem:[%s22045_s1 + $0x2018] ss:$100 sps:$4 sm:$0xff]   ;;  %v19167_v57 = vld [vmem:[%s22045_s1 + $0x2020] ss:$100 sps:$4 sm:$0xff]  }
 0x2d7   : > { %11237 = vmatpush1.bf16.msra.mxu0 %v19086_v34  ;;  %11401 = vmatpush1.bf16.msra.mxu1 %v19089_v58  ;;  %v19172_v34 = vld [vmem:[%s22045_s1 + $0x20e4] ss:$100 sps:$4 sm:$0xff]   ;;  %v19175_v58 = vld [vmem:[%s22045_s1 + $0x20ec] ss:$100 sps:$4 sm:$0xff]  }
 0x2d8   : > { %11238 = vmatprep.subr.bf16.mxu0 %v19094_v59  ;;  %11402 = vmatprep.subr.bf16.mxu1 %v19097_v61  ;;  %v19170_v59 = vld [vmem:[%s22045_s1 + $0x20e0] ss:$100 sps:$4 sm:$0xff]   ;;  %v19173_v61 = vld [vmem:[%s22045_s1 + $0x20e8] ss:$100 sps:$4 sm:$0xff]  }
 0x2db   : > { %11239 = vmatpush1.bf16.msra.mxu0 %v19092_v62  ;;  %11403 = vmatpush1.bf16.msra.mxu1 %v19095_v63  ;;  %v19178_v62 = vld [vmem:[%s22045_s1 + $0x21ac] ss:$100 sps:$4 sm:$0xff]   ;;  %v19181_v63 = vld [vmem:[%s22045_s1 + $0x21b4] ss:$100 sps:$4 sm:$0xff]  }
 0x2dc   : > { %11240 = vmatprep.subr.bf16.mxu0 %v19100_v0  ;;  %11404 = vmatprep.subr.bf16.mxu1 %v19103_v1  ;;  %v19176_v0 = vld [vmem:[%s22045_s1 + $0x21a8] ss:$100 sps:$4 sm:$0xff]   ;;  %v19179_v1 = vld [vmem:[%s22045_s1 + $0x21b0] ss:$100 sps:$4 sm:$0xff]  }
 0x2df   : > { %11241 = vmatpush1.bf16.msra.mxu0 %v19098_v2  ;;  %11405 = vmatpush1.bf16.msra.mxu1 %v19101_v3  ;;  %v19184_v2 = vld [vmem:[%s22045_s1 + $0x2274] ss:$100 sps:$4 sm:$0xff]   ;;  %v19187_v3 = vld [vmem:[%s22045_s1 + $0x227c] ss:$100 sps:$4 sm:$0xff]  }
 0x2e0   : > { %11242 = vmatprep.subr.bf16.mxu0 %v19106_v4  ;;  %11406 = vmatprep.subr.bf16.mxu1 %v19109_v5  ;;  %v19182_v4 = vld [vmem:[%s22045_s1 + $0x2270] ss:$100 sps:$4 sm:$0xff]   ;;  %v19185_v5 = vld [vmem:[%s22045_s1 + $0x2278] ss:$100 sps:$4 sm:$0xff]  }
 0x2e3   : > { %11243 = vmatpush1.bf16.msra.mxu0 %v19104_v6  ;;  %11407 = vmatpush1.bf16.msra.mxu1 %v19107_v7  ;;  %v19190_v6 = vld [vmem:[%s22045_s1 + $0x233c] ss:$100 sps:$4 sm:$0xff]   ;;  %v19193_v7 = vld [vmem:[%s22045_s1 + $0x2344] ss:$100 sps:$4 sm:$0xff]  }
 0x2e4   : > { %11253 = vmatprep.subr.bf16.mxu0 %v19112_v8  ;;  %11417 = vmatprep.subr.bf16.mxu1 %v19115_v10  ;;  %v19188_v8 = vld [vmem:[%s22045_s1 + $0x2338] ss:$100 sps:$4 sm:$0xff]   ;;  %v19191_v10 = vld [vmem:[%s22045_s1 + $0x2340] ss:$100 sps:$4 sm:$0xff]  }
 0x2e6   : > { %11245 = vmatmul.mubr.bf16.vlgmr.msra.gmra.mrb[4].mxu0 %v22259_v25  ;;  %11409 = vmatmul.mubr.bf16.vlgmr.msra.gmra.mrb[4].mxu1 %v22259_v25 }
 0x2e7   : > { %11254 = vmatpush1.bf16.msra.mxu0 %v19110_v11  ;;  %11418 = vmatpush1.bf16.msra.mxu1 %v19113_v12  ;;  %v19196_v11 = vld [vmem:[%s22045_s1 + $0x2404] ss:$100 sps:$4 sm:$0xff]   ;;  %v19199_v12 = vld [vmem:[%s22045_s1 + $0x240c] ss:$100 sps:$4 sm:$0xff]  }
 0x2e8   : > { %11255 = vmatprep.subr.bf16.mxu0 %v19118_v13  ;;  %11419 = vmatprep.subr.bf16.mxu1 %v19121_v14  ;;  %v19194_v13 = vld [vmem:[%s22045_s1 + $0x2400] ss:$100 sps:$4 sm:$0xff]   ;;  %v19197_v14 = vld [vmem:[%s22045_s1 + $0x2408] ss:$100 sps:$4 sm:$0xff]  }
 0x2e9   : > { %11285 = vmatprep.mubr.bf16.mxu0 %v22279_v35  ;;  %11449 = vmatprep.mubr.bf16.mxu1 %v22279_v35 }
 0x2eb   : > { %11256 = vmatpush1.bf16.msra.mxu0 %v19116_v15  ;;  %11420 = vmatpush1.bf16.msra.mxu1 %v19119_v17  ;;  %v19202_v15 = vld [vmem:[%s22045_s1 + $0x24cc] ss:$100 sps:$4 sm:$0xff]   ;;  %v19205_v17 = vld [vmem:[%s22045_s1 + $0x24d4] ss:$100 sps:$4 sm:$0xff]  }
 0x2ec   : > { %11257 = vmatprep.subr.bf16.mxu0 %v19124_v18  ;;  %11421 = vmatprep.subr.bf16.mxu1 %v19127_v19  ;;  %v19200_v18 = vld [vmem:[%s22045_s1 + $0x24c8] ss:$100 sps:$4 sm:$0xff]   ;;  %v19203_v19 = vld [vmem:[%s22045_s1 + $0x24d0] ss:$100 sps:$4 sm:$0xff]  }
 0x2ef   : > { %11258 = vmatpush1.bf16.msra.mxu0 %v19122_v21  ;;  %11422 = vmatpush1.bf16.msra.mxu1 %v19125_v22  ;;  %v19208_v21 = vld [vmem:[%s22045_s1 + $0x2594] ss:$100 sps:$4 sm:$0xff]   ;;  %v19211_v22 = vld [vmem:[%s22045_s1 + $0x259c] ss:$100 sps:$4 sm:$0xff]  }
 0x2f0   : > { %11259 = vmatprep.subr.bf16.mxu0 %v19130_v23  ;;  %11423 = vmatprep.subr.bf16.mxu1 %v19133_v24  ;;  %v19206_v23 = vld [vmem:[%s22045_s1 + $0x2590] ss:$100 sps:$4 sm:$0xff]   ;;  %v19209_v24 = vld [vmem:[%s22045_s1 + $0x2598] ss:$100 sps:$4 sm:$0xff]  }
 0x2f3   : > { %11260 = vmatpush1.bf16.msra.mxu0 %v19128_v26  ;;  %11424 = vmatpush1.bf16.msra.mxu1 %v19131_v28  ;;  %v19214_v26 = vld [vmem:[%s22045_s1 + $0x265c] ss:$100 sps:$4 sm:$0xff]   ;;  %v19217_v28 = vld [vmem:[%s22045_s1 + $0x2664] ss:$100 sps:$4 sm:$0xff]  }
 0x2f4   : > { %11261 = vmatprep.subr.bf16.mxu0 %v19136_v29  ;;  %11425 = vmatprep.subr.bf16.mxu1 %v19139_v9  ;;  %v19212_v29 = vld [vmem:[%s22045_s1 + $0x2658] ss:$100 sps:$4 sm:$0xff]   ;;  %v19215_v9 = vld [vmem:[%s22045_s1 + $0x2660] ss:$100 sps:$4 sm:$0xff]  }
 0x2f7   : > { %11262 = vmatpush1.bf16.msra.mxu0 %v19134_v31  ;;  %11426 = vmatpush1.bf16.msra.mxu1 %v19137_v32  ;;  %v19220_v31 = vld [vmem:[%s22045_s1 + $0x2724] ss:$100 sps:$4 sm:$0xff]   ;;  %v19223_v32 = vld [vmem:[%s22045_s1 + $0x272c] ss:$100 sps:$4 sm:$0xff]  }
 0x2f8   : > { %11263 = vmatprep.subr.bf16.mxu0 %v19142_v33  ;;  %11427 = vmatprep.subr.bf16.mxu1 %v19145_v27  ;;  %v19218_v33 = vld [vmem:[%s22045_s1 + $0x2720] ss:$100 sps:$4 sm:$0xff]   ;;  %v19221_v27 = vld [vmem:[%s22045_s1 + $0x2728] ss:$100 sps:$4 sm:$0xff]  }
 0x2fb   : > { %11264 = vmatpush1.bf16.msra.mxu0 %v19140_v36  ;;  %11428 = vmatpush1.bf16.msra.mxu1 %v19143_v37  ;;  %v19226_v36 = vld [vmem:[%s22045_s1 + $0x27ec] ss:$100 sps:$4 sm:$0xff]   ;;  %v19229_v37 = vld [vmem:[%s22045_s1 + $0x27f4] ss:$100 sps:$4 sm:$0xff]  }
 0x2fc   : > { %11265 = vmatprep.subr.bf16.mxu0 %v19148_v39  ;;  %11429 = vmatprep.subr.bf16.mxu1 %v19151_v40  ;;  %v19224_v39 = vld [vmem:[%s22045_s1 + $0x27e8] ss:$100 sps:$4 sm:$0xff]   ;;  %v19227_v40 = vld [vmem:[%s22045_s1 + $0x27f0] ss:$100 sps:$4 sm:$0xff]  }
 0x2ff   : > { %11266 = vmatpush1.bf16.msra.mxu0 %v19146_v49  ;;  %11430 = vmatpush1.bf16.msra.mxu1 %v19149_v42  ;;  %v19232_v49 = vld [vmem:[%s22045_s1 + $0x28b4] ss:$100 sps:$4 sm:$0xff]   ;;  %v19235_v42 = vld [vmem:[%s22045_s1 + $0x28bc] ss:$100 sps:$4 sm:$0xff]  }
 0x300   : > { %11267 = vmatprep.subr.bf16.mxu0 %v19154_v44  ;;  %11431 = vmatprep.subr.bf16.mxu1 %v19157_v45  ;;  %v19230_v44 = vld [vmem:[%s22045_s1 + $0x28b0] ss:$100 sps:$4 sm:$0xff]   ;;  %v19233_v45 = vld [vmem:[%s22045_s1 + $0x28b8] ss:$100 sps:$4 sm:$0xff]  }
 0x303   : > { %11268 = vmatpush1.bf16.msra.mxu0 %v19152_v30  ;;  %11432 = vmatpush1.bf16.msra.mxu1 %v19155_v47  ;;  %v19238_v30 = vld [vmem:[%s22045_s1 + $0x297c] ss:$100 sps:$4 sm:$0xff]   ;;  %v19241_v47 = vld [vmem:[%s22045_s1 + $0x2984] ss:$100 sps:$4 sm:$0xff]  }
 0x304   : > { %11269 = vmatprep.subr.bf16.mxu0 %v19160_v48  ;;  %11433 = vmatprep.subr.bf16.mxu1 %v19163_v50  ;;  %v19236_v48 = vld [vmem:[%s22045_s1 + $0x2978] ss:$100 sps:$4 sm:$0xff]   ;;  %v19239_v50 = vld [vmem:[%s22045_s1 + $0x2980] ss:$100 sps:$4 sm:$0xff]  }
 0x307   : > { %11270 = vmatpush1.bf16.msra.mxu0 %v19158_v51  ;;  %11434 = vmatpush1.bf16.msra.mxu1 %v19161_v52  ;;  %v19244_v51 = vld [vmem:[%s22045_s1 + $0x2a44] ss:$100 sps:$4 sm:$0xff]   ;;  %v19247_v52 = vld [vmem:[%s22045_s1 + $0x2a4c] ss:$100 sps:$4 sm:$0xff]  }
 0x308   : > { %11271 = vmatprep.subr.bf16.mxu0 %v19166_v54  ;;  %11435 = vmatprep.subr.bf16.mxu1 %v19169_v55 }
 0x30b   : > { %11272 = vmatpush1.bf16.msra.mxu0 %v19164_v56  ;;  %11436 = vmatpush1.bf16.msra.mxu1 %v19167_v57 }
 0x30c   : > { %11273 = vmatprep.subr.bf16.mxu0 %v19172_v34  ;;  %11437 = vmatprep.subr.bf16.mxu1 %v19175_v58 }
 0x30f   : > { %11274 = vmatpush1.bf16.msra.mxu0 %v19170_v59  ;;  %11438 = vmatpush1.bf16.msra.mxu1 %v19173_v61  ;;  %v19242_v59 = vld [vmem:[%s22045_s1 + $0x2a40] ss:$100 sps:$4 sm:$0xff]   ;;  %v19245_v61 = vld [vmem:[%s22045_s1 + $0x2a48] ss:$100 sps:$4 sm:$0xff]  }
 0x310   : > { %11275 = vmatprep.subr.bf16.mxu0 %v19178_v62  ;;  %11439 = vmatprep.subr.bf16.mxu1 %v19181_v63 }
 0x313   : > { %11276 = vmatpush1.bf16.msra.mxu0 %v19176_v0  ;;  %11440 = vmatpush1.bf16.msra.mxu1 %v19179_v1  ;;  %v19250_v0 = vld [vmem:[%s22045_s1 + $0x2b0c] ss:$100 sps:$4 sm:$0xff]   ;;  %v19253_v1 = vld [vmem:[%s22045_s1 + $0x2b14] ss:$100 sps:$4 sm:$0xff]  }
 0x314   : > { %11277 = vmatprep.subr.bf16.mxu0 %v19184_v2  ;;  %11441 = vmatprep.subr.bf16.mxu1 %v19187_v3  ;;  %v19248_v2 = vld [vmem:[%s22045_s1 + $0x2b08] ss:$100 sps:$4 sm:$0xff]   ;;  %v19251_v3 = vld [vmem:[%s22045_s1 + $0x2b10] ss:$100 sps:$4 sm:$0xff]  }
 0x317   : > { %11278 = vmatpush1.bf16.msra.mxu0 %v19182_v4  ;;  %11442 = vmatpush1.bf16.msra.mxu1 %v19185_v5  ;;  %v19256_v4 = vld [vmem:[%s22045_s1 + $0x2bd4] ss:$100 sps:$4 sm:$0xff]   ;;  %v19259_v5 = vld [vmem:[%s22045_s1 + $0x2bdc] ss:$100 sps:$4 sm:$0xff]  }
 0x318   : > { %11279 = vmatprep.subr.bf16.mxu0 %v19190_v6  ;;  %11443 = vmatprep.subr.bf16.mxu1 %v19193_v7  ;;  %v19254_v6 = vld [vmem:[%s22045_s1 + $0x2bd0] ss:$100 sps:$4 sm:$0xff]   ;;  %v19257_v7 = vld [vmem:[%s22045_s1 + $0x2bd8] ss:$100 sps:$4 sm:$0xff]  }
 0x31b   : > { %11280 = vmatpush1.bf16.msra.mxu0 %v19188_v8  ;;  %11444 = vmatpush1.bf16.msra.mxu1 %v19191_v10  ;;  %v19262_v8 = vld [vmem:[%s22045_s1 + $0x2c9c] ss:$100 sps:$4 sm:$0xff]   ;;  %v19265_v10 = vld [vmem:[%s22045_s1 + $0x2ca4] ss:$100 sps:$4 sm:$0xff]  }
 0x31c   : > { %11281 = vmatprep.subr.bf16.mxu0 %v19196_v11  ;;  %11445 = vmatprep.subr.bf16.mxu1 %v19199_v12  ;;  %v19260_v11 = vld [vmem:[%s22045_s1 + $0x2c98] ss:$100 sps:$4 sm:$0xff]   ;;  %v19263_v12 = vld [vmem:[%s22045_s1 + $0x2ca0] ss:$100 sps:$4 sm:$0xff]  }
 0x31f   : > { %11282 = vmatpush1.bf16.msra.mxu0 %v19194_v13  ;;  %11446 = vmatpush1.bf16.msra.mxu1 %v19197_v14  ;;  %v19268_v13 = vld [vmem:[%s22045_s1 + $0x2d64] ss:$100 sps:$4 sm:$0xff]   ;;  %v19271_v14 = vld [vmem:[%s22045_s1 + $0x2d6c] ss:$100 sps:$4 sm:$0xff]  }
 0x320   : > { %11283 = vmatprep.subr.bf16.mxu0 %v19202_v15  ;;  %11447 = vmatprep.subr.bf16.mxu1 %v19205_v17  ;;  %v19266_v15 = vld [vmem:[%s22045_s1 + $0x2d60] ss:$100 sps:$4 sm:$0xff]   ;;  %v19269_v17 = vld [vmem:[%s22045_s1 + $0x2d68] ss:$100 sps:$4 sm:$0xff]  }
 0x323   : > { %11284 = vmatpush1.bf16.msra.mxu0 %v19200_v18  ;;  %11448 = vmatpush1.bf16.msra.mxu1 %v19203_v19  ;;  %v19274_v18 = vld [vmem:[%s22045_s1 + $0x2e2c] ss:$100 sps:$4 sm:$0xff]   ;;  %v19277_v19 = vld [vmem:[%s22045_s1 + $0x2e34] ss:$100 sps:$4 sm:$0xff]  }
 0x324   : > { %11294 = vmatprep.subr.bf16.mxu0 %v19208_v21  ;;  %11458 = vmatprep.subr.bf16.mxu1 %v19211_v22  ;;  %v19272_v21 = vld [vmem:[%s22045_s1 + $0x2e28] ss:$100 sps:$4 sm:$0xff]   ;;  %v19275_v22 = vld [vmem:[%s22045_s1 + $0x2e30] ss:$100 sps:$4 sm:$0xff]  }
 0x326   : > { %11286 = vmatmul.mubr.bf16.vlgmr.msra.gmra.mrb[4].mxu0 %v22348_v41  ;;  %11450 = vmatmul.mubr.bf16.vlgmr.msra.gmra.mrb[4].mxu1 %v22348_v41 }
 0x327   : > { %11295 = vmatpush1.bf16.msra.mxu0 %v19206_v23  ;;  %11459 = vmatpush1.bf16.msra.mxu1 %v19209_v24  ;;  %v19280_v23 = vld [vmem:[%s22045_s1 + $0x2ef4] ss:$100 sps:$4 sm:$0xff]   ;;  %v19283_v24 = vld [vmem:[%s22045_s1 + $0x2efc] ss:$100 sps:$4 sm:$0xff]  }
 0x328   : > { %11296 = vmatprep.subr.bf16.mxu0 %v19214_v26  ;;  %11460 = vmatprep.subr.bf16.mxu1 %v19217_v28  ;;  %v19278_v26 = vld [vmem:[%s22045_s1 + $0x2ef0] ss:$100 sps:$4 sm:$0xff]   ;;  %v19281_v28 = vld [vmem:[%s22045_s1 + $0x2ef8] ss:$100 sps:$4 sm:$0xff]  }
 0x329   : > { %11326 = vmatprep.mubr.bf16.mxu0 %v22354_v46  ;;  %11490 = vmatprep.mubr.bf16.mxu1 %v22354_v46 }
 0x32b   : > { %11297 = vmatpush1.bf16.msra.mxu0 %v19212_v29  ;;  %11461 = vmatpush1.bf16.msra.mxu1 %v19215_v9  ;;  %v19286_v29 = vld [vmem:[%s22045_s1 + $0x2fbc] ss:$100 sps:$4 sm:$0xff]   ;;  %v19289_v9 = vld [vmem:[%s22045_s1 + $0x2fc4] ss:$100 sps:$4 sm:$0xff]  }
 0x32c   : > { %11298 = vmatprep.subr.bf16.mxu0 %v19220_v31  ;;  %11462 = vmatprep.subr.bf16.mxu1 %v19223_v32  ;;  %v19284_v31 = vld [vmem:[%s22045_s1 + $0x2fb8] ss:$100 sps:$4 sm:$0xff]   ;;  %v19287_v32 = vld [vmem:[%s22045_s1 + $0x2fc0] ss:$100 sps:$4 sm:$0xff]  }
 0x32f   : > { %11299 = vmatpush1.bf16.msra.mxu0 %v19218_v33  ;;  %11463 = vmatpush1.bf16.msra.mxu1 %v19221_v27  ;;  %v19292_v33 = vld [vmem:[%s22045_s1 + $0x3084] ss:$100 sps:$4 sm:$0xff]   ;;  %v19295_v27 = vld [vmem:[%s22045_s1 + $0x308c] ss:$100 sps:$4 sm:$0xff]  }
 0x330   : > { %11300 = vmatprep.subr.bf16.mxu0 %v19226_v36  ;;  %11464 = vmatprep.subr.bf16.mxu1 %v19229_v37  ;;  %v19290_v36 = vld [vmem:[%s22045_s1 + $0x3080] ss:$100 sps:$4 sm:$0xff]   ;;  %v19293_v37 = vld [vmem:[%s22045_s1 + $0x3088] ss:$100 sps:$4 sm:$0xff]  }
 0x333   : > { %11301 = vmatpush1.bf16.msra.mxu0 %v19224_v39  ;;  %11465 = vmatpush1.bf16.msra.mxu1 %v19227_v40  ;;  %v19298_v39 = vld [vmem:[%s22045_s1 + $0x314c] ss:$100 sps:$4 sm:$0xff]   ;;  %v19301_v40 = vld [vmem:[%s22045_s1 + $0x3154] ss:$100 sps:$4 sm:$0xff]  }
 0x334   : > { %11302 = vmatprep.subr.bf16.mxu0 %v19232_v49  ;;  %11466 = vmatprep.subr.bf16.mxu1 %v19235_v42  ;;  %v19296_v49 = vld [vmem:[%s22045_s1 + $0x3148] ss:$100 sps:$4 sm:$0xff]   ;;  %v19299_v42 = vld [vmem:[%s22045_s1 + $0x3150] ss:$100 sps:$4 sm:$0xff]  }
 0x337   : > { %11303 = vmatpush1.bf16.msra.mxu0 %v19230_v44  ;;  %11467 = vmatpush1.bf16.msra.mxu1 %v19233_v45  ;;  %v19304_v44 = vld [vmem:[%s22045_s1 + $0x24] ss:$100 sps:$4 sm:$0xff]   ;;  %v19307_v45 = vld [vmem:[%s22045_s1 + $0x2c] ss:$100 sps:$4 sm:$0xff]  }
 0x338   : > { %11304 = vmatprep.subr.bf16.mxu0 %v19238_v30  ;;  %11468 = vmatprep.subr.bf16.mxu1 %v19241_v47  ;;  %v19302_v30 = vld [vmem:[%s22045_s1 + $0x20] ss:$100 sps:$4 sm:$0xff]   ;;  %v19305_v47 = vld [vmem:[%s22045_s1 + $0x28] ss:$100 sps:$4 sm:$0xff]  }
 0x339   : > { %v22656_v54 = vpop.f32.mrb[0].mxu0  ;;  %v22658_v55 = vpop.f32.mrb[0].mxu1 }
 0x33a   : > { %v22660_v56 = vpop.f32.mrb[1].mxu0  ;;  %v22662_v57 = vpop.f32.mrb[1].mxu1 }
 0x33b   : > { %v11004_v34 = vpop.f32.mrb[2].mxu0  ;;  %v11168_v58 = vpop.f32.mrb[2].mxu1  ;;  %11305 = vmatpush1.bf16.msra.mxu0 %v19236_v48  ;;  %11469 = vmatpush1.bf16.msra.mxu1 %v19239_v50  ;;  %v19310_v48 = vld [vmem:[%s22045_s1 + $0xec] ss:$100 sps:$4 sm:$0xff]   ;;  %v19313_v50 = vld [vmem:[%s22045_s1 + $0xf4] ss:$100 sps:$4 sm:$0xff]  }
 0x33c   : > { %v11005_v62 = vpop.f32.mrb[3].mxu0  ;;  %v11169_v63 = vpop.f32.mrb[3].mxu1  ;;  %11306 = vmatprep.subr.bf16.mxu0 %v19244_v51  ;;  %11470 = vmatprep.subr.bf16.mxu1 %v19247_v52  ;;  %v19308_v51 = vld [vmem:[%s22045_s1 + $0xe8] ss:$100 sps:$4 sm:$0xff]   ;;  %v19311_v52 = vld [vmem:[%s22045_s1 + $0xf0] ss:$100 sps:$4 sm:$0xff]  }
 0x33d   : > { %v19316_v34 = vld [vmem:[%s22045_s1 + $0x1b4] ss:$100 sps:$4 sm:$0xff]   ;;  %v19319_v58 = vld [vmem:[%s22045_s1 + $0x1bc] ss:$100 sps:$4 sm:$0xff]   ;;  %v19325_v63 = vld [vmem:[%s22045_s1 + $0x284] ss:$100 sps:$4 sm:$0xff]  }
 0x33e   : > { %v19322_v62 = vld [vmem:[%s22045_s1 + $0x27c] ss:$100 sps:$4 sm:$0xff]  }
 0x33f   : > { %11307 = vmatpush1.bf16.msra.mxu0 %v19242_v59  ;;  %11471 = vmatpush1.bf16.msra.mxu1 %v19245_v61  ;;  %v19314_v59 = vld [vmem:[%s22045_s1 + $0x1b0] ss:$100 sps:$4 sm:$0xff]   ;;  %v19317_v61 = vld [vmem:[%s22045_s1 + $0x1b8] ss:$100 sps:$4 sm:$0xff]  }
 0x340   : > { %11308 = vmatprep.subr.bf16.mxu0 %v19250_v0  ;;  %11472 = vmatprep.subr.bf16.mxu1 %v19253_v1  ;;  %v19320_v0 = vld [vmem:[%s22045_s1 + $0x278] ss:$100 sps:$4 sm:$0xff]   ;;  %v19323_v1 = vld [vmem:[%s22045_s1 + $0x280] ss:$100 sps:$4 sm:$0xff]  }
 0x343   : > { %11309 = vmatpush1.bf16.msra.mxu0 %v19248_v2  ;;  %11473 = vmatpush1.bf16.msra.mxu1 %v19251_v3  ;;  %v19328_v2 = vld [vmem:[%s22045_s1 + $0x344] ss:$100 sps:$4 sm:$0xff]   ;;  %v19331_v3 = vld [vmem:[%s22045_s1 + $0x34c] ss:$100 sps:$4 sm:$0xff]  }
 0x344   : > { %11310 = vmatprep.subr.bf16.mxu0 %v19256_v4  ;;  %11474 = vmatprep.subr.bf16.mxu1 %v19259_v5  ;;  %v19326_v4 = vld [vmem:[%s22045_s1 + $0x340] ss:$100 sps:$4 sm:$0xff]   ;;  %v19329_v5 = vld [vmem:[%s22045_s1 + $0x348] ss:$100 sps:$4 sm:$0xff]  }
 0x347   : > { %11311 = vmatpush1.bf16.msra.mxu0 %v19254_v6  ;;  %11475 = vmatpush1.bf16.msra.mxu1 %v19257_v7  ;;  %v19334_v6 = vld [vmem:[%s22045_s1 + $0x40c] ss:$100 sps:$4 sm:$0xff]   ;;  %v19337_v7 = vld [vmem:[%s22045_s1 + $0x414] ss:$100 sps:$4 sm:$0xff]  }
 0x348   : > { %11312 = vmatprep.subr.bf16.mxu0 %v19262_v8  ;;  %11476 = vmatprep.subr.bf16.mxu1 %v19265_v10  ;;  %v19332_v8 = vld [vmem:[%s22045_s1 + $0x408] ss:$100 sps:$4 sm:$0xff]   ;;  %v19335_v10 = vld [vmem:[%s22045_s1 + $0x410] ss:$100 sps:$4 sm:$0xff]  }
 0x34b   : > { %11313 = vmatpush1.bf16.msra.mxu0 %v19260_v11  ;;  %11477 = vmatpush1.bf16.msra.mxu1 %v19263_v12  ;;  %v19340_v11 = vld [vmem:[%s22045_s1 + $0x4d4] ss:$100 sps:$4 sm:$0xff]   ;;  %v19343_v12 = vld [vmem:[%s22045_s1 + $0x4dc] ss:$100 sps:$4 sm:$0xff]  }
 0x34c   : > { %11314 = vmatprep.subr.bf16.mxu0 %v19268_v13  ;;  %11478 = vmatprep.subr.bf16.mxu1 %v19271_v14  ;;  %v19338_v13 = vld [vmem:[%s22045_s1 + $0x4d0] ss:$100 sps:$4 sm:$0xff]   ;;  %v19341_v14 = vld [vmem:[%s22045_s1 + $0x4d8] ss:$100 sps:$4 sm:$0xff]  }
 0x34f   : > { %11315 = vmatpush1.bf16.msra.mxu0 %v19266_v15  ;;  %11479 = vmatpush1.bf16.msra.mxu1 %v19269_v17  ;;  %v19346_v15 = vld [vmem:[%s22045_s1 + $0x59c] ss:$100 sps:$4 sm:$0xff]   ;;  %v19349_v17 = vld [vmem:[%s22045_s1 + $0x5a4] ss:$100 sps:$4 sm:$0xff]  }
 0x350   : > { %11316 = vmatprep.subr.bf16.mxu0 %v19274_v18  ;;  %11480 = vmatprep.subr.bf16.mxu1 %v19277_v19  ;;  %v19344_v18 = vld [vmem:[%s22045_s1 + $0x598] ss:$100 sps:$4 sm:$0xff]   ;;  %v19347_v19 = vld [vmem:[%s22045_s1 + $0x5a0] ss:$100 sps:$4 sm:$0xff]  }
 0x353   : > { %11317 = vmatpush1.bf16.msra.mxu0 %v19272_v21  ;;  %11481 = vmatpush1.bf16.msra.mxu1 %v19275_v22  ;;  %v19352_v21 = vld [vmem:[%s22045_s1 + $0x664] ss:$100 sps:$4 sm:$0xff]   ;;  %v19355_v22 = vld [vmem:[%s22045_s1 + $0x66c] ss:$100 sps:$4 sm:$0xff]  }
 0x354   : > { %11318 = vmatprep.subr.bf16.mxu0 %v19280_v23  ;;  %11482 = vmatprep.subr.bf16.mxu1 %v19283_v24  ;;  %v19350_v23 = vld [vmem:[%s22045_s1 + $0x660] ss:$100 sps:$4 sm:$0xff]   ;;  %v19353_v24 = vld [vmem:[%s22045_s1 + $0x668] ss:$100 sps:$4 sm:$0xff]  }
 0x357   : > { %11319 = vmatpush1.bf16.msra.mxu0 %v19278_v26  ;;  %11483 = vmatpush1.bf16.msra.mxu1 %v19281_v28  ;;  %v19358_v26 = vld [vmem:[%s22045_s1 + $0x72c] ss:$100 sps:$4 sm:$0xff]   ;;  %v19361_v28 = vld [vmem:[%s22045_s1 + $0x734] ss:$100 sps:$4 sm:$0xff]  }
 0x358   : > { %11320 = vmatprep.subr.bf16.mxu0 %v19286_v29  ;;  %11484 = vmatprep.subr.bf16.mxu1 %v19289_v9  ;;  %v19356_v29 = vld [vmem:[%s22045_s1 + $0x728] ss:$100 sps:$4 sm:$0xff]   ;;  %v19359_v9 = vld [vmem:[%s22045_s1 + $0x730] ss:$100 sps:$4 sm:$0xff]  }
 0x35b   : > { %11321 = vmatpush1.bf16.msra.mxu0 %v19284_v31  ;;  %11485 = vmatpush1.bf16.msra.mxu1 %v19287_v32  ;;  %v19364_v31 = vld [vmem:[%s22045_s1 + $0x7f4] ss:$100 sps:$4 sm:$0xff]   ;;  %v19367_v32 = vld [vmem:[%s22045_s1 + $0x7fc] ss:$100 sps:$4 sm:$0xff]  }
 0x35c   : > { %11322 = vmatprep.subr.bf16.mxu0 %v19292_v33  ;;  %11486 = vmatprep.subr.bf16.mxu1 %v19295_v27  ;;  %v19362_v33 = vld [vmem:[%s22045_s1 + $0x7f0] ss:$100 sps:$4 sm:$0xff]   ;;  %v19365_v27 = vld [vmem:[%s22045_s1 + $0x7f8] ss:$100 sps:$4 sm:$0xff]  }
 0x35f   : > { %11323 = vmatpush1.bf16.msra.mxu0 %v19290_v36  ;;  %11487 = vmatpush1.bf16.msra.mxu1 %v19293_v37  ;;  %v19370_v36 = vld [vmem:[%s22045_s1 + $0x8bc] ss:$100 sps:$4 sm:$0xff]   ;;  %v19373_v37 = vld [vmem:[%s22045_s1 + $0x8c4] ss:$100 sps:$4 sm:$0xff]  }
 0x360   : > { %11324 = vmatprep.subr.bf16.mxu0 %v19298_v39  ;;  %11488 = vmatprep.subr.bf16.mxu1 %v19301_v40  ;;  %v19368_v39 = vld [vmem:[%s22045_s1 + $0x8b8] ss:$100 sps:$4 sm:$0xff]   ;;  %v19371_v40 = vld [vmem:[%s22045_s1 + $0x8c0] ss:$100 sps:$4 sm:$0xff]  }
 0x363   : > { %11325 = vmatpush1.bf16.msra.mxu0 %v19296_v49  ;;  %11489 = vmatpush1.bf16.msra.mxu1 %v19299_v42  ;;  %v19376_v49 = vld [vmem:[%s22045_s1 + $0x984] ss:$100 sps:$4 sm:$0xff]   ;;  %v19379_v42 = vld [vmem:[%s22045_s1 + $0x98c] ss:$100 sps:$4 sm:$0xff]  }
 0x364   : > { %11499 = vmatprep.subr.bf16.mxu0 %v19304_v44  ;;  %11663 = vmatprep.subr.bf16.mxu1 %v19307_v45  ;;  %v19374_v44 = vld [vmem:[%s22045_s1 + $0x980] ss:$100 sps:$4 sm:$0xff]   ;;  %v19377_v45 = vld [vmem:[%s22045_s1 + $0x988] ss:$100 sps:$4 sm:$0xff]  }
 0x366   : > { %11327 = vmatmul.mubr.bf16.vlgmr.msra.gmra.mrb[4].mxu0 %v22422_v53  ;;  %11491 = vmatmul.mubr.bf16.vlgmr.msra.gmra.mrb[4].mxu1 %v22422_v53 }
 0x367   : > { %11500 = vmatpush1.bf16.msra.mxu0 %v19302_v30  ;;  %11664 = vmatpush1.bf16.msra.mxu1 %v19305_v47  ;;  %v19382_v30 = vld [vmem:[%s22045_s1 + $0xa4c] ss:$100 sps:$4 sm:$0xff]   ;;  %v19385_v47 = vld [vmem:[%s22045_s1 + $0xa54] ss:$100 sps:$4 sm:$0xff]  }
 0x368   : > { %11501 = vmatprep.subr.bf16.mxu0 %v19310_v48  ;;  %11665 = vmatprep.subr.bf16.mxu1 %v19313_v50  ;;  %v19380_v48 = vld [vmem:[%s22045_s1 + $0xa48] ss:$100 sps:$4 sm:$0xff]   ;;  %v19383_v50 = vld [vmem:[%s22045_s1 + $0xa50] ss:$100 sps:$4 sm:$0xff]  }
 0x369   : > { %11531 = vmatprep.mubr.bf16.mxu0 %v22160_v60  ;;  %11695 = vmatprep.mubr.bf16.mxu1 %v22160_v60 }
 0x36b   : > { %11502 = vmatpush1.bf16.msra.mxu0 %v19308_v51  ;;  %11666 = vmatpush1.bf16.msra.mxu1 %v19311_v52  ;;  %v19388_v51 = vld [vmem:[%s22045_s1 + $0xb14] ss:$100 sps:$4 sm:$0xff]   ;;  %v19391_v52 = vld [vmem:[%s22045_s1 + $0xb1c] ss:$100 sps:$4 sm:$0xff]  }
 0x36c   : > { %11503 = vmatprep.subr.bf16.mxu0 %v19316_v34  ;;  %11667 = vmatprep.subr.bf16.mxu1 %v19319_v58  ;;  %v19386_v34 = vld [vmem:[%s22045_s1 + $0xb10] ss:$100 sps:$4 sm:$0xff]   ;;  %v19389_v58 = vld [vmem:[%s22045_s1 + $0xb18] ss:$100 sps:$4 sm:$0xff]  }
 0x36f   : > { %11504 = vmatpush1.bf16.msra.mxu0 %v19314_v59  ;;  %11668 = vmatpush1.bf16.msra.mxu1 %v19317_v61  ;;  %v19394_v59 = vld [vmem:[%s22045_s1 + $0xbdc] ss:$100 sps:$4 sm:$0xff]   ;;  %v19397_v61 = vld [vmem:[%s22045_s1 + $0xbe4] ss:$100 sps:$4 sm:$0xff]  }
 0x370   : > { %11505 = vmatprep.subr.bf16.mxu0 %v19322_v62  ;;  %11669 = vmatprep.subr.bf16.mxu1 %v19325_v63  ;;  %v19392_v62 = vld [vmem:[%s22045_s1 + $0xbd8] ss:$100 sps:$4 sm:$0xff]   ;;  %v19395_v63 = vld [vmem:[%s22045_s1 + $0xbe0] ss:$100 sps:$4 sm:$0xff]  }
 0x373   : > { %11506 = vmatpush1.bf16.msra.mxu0 %v19320_v0  ;;  %11670 = vmatpush1.bf16.msra.mxu1 %v19323_v1  ;;  %v19400_v0 = vld [vmem:[%s22045_s1 + $0xca4] ss:$100 sps:$4 sm:$0xff]   ;;  %v19403_v1 = vld [vmem:[%s22045_s1 + $0xcac] ss:$100 sps:$4 sm:$0xff]  }
 0x374   : > { %11507 = vmatprep.subr.bf16.mxu0 %v19328_v2  ;;  %11671 = vmatprep.subr.bf16.mxu1 %v19331_v3  ;;  %v19398_v2 = vld [vmem:[%s22045_s1 + $0xca0] ss:$100 sps:$4 sm:$0xff]   ;;  %v19401_v3 = vld [vmem:[%s22045_s1 + $0xca8] ss:$100 sps:$4 sm:$0xff]  }
 0x377   : > { %11508 = vmatpush1.bf16.msra.mxu0 %v19326_v4  ;;  %11672 = vmatpush1.bf16.msra.mxu1 %v19329_v5  ;;  %v19406_v4 = vld [vmem:[%s22045_s1 + $0xd6c] ss:$100 sps:$4 sm:$0xff]   ;;  %v19409_v5 = vld [vmem:[%s22045_s1 + $0xd74] ss:$100 sps:$4 sm:$0xff]  }
 0x378   : > { %11509 = vmatprep.subr.bf16.mxu0 %v19334_v6  ;;  %11673 = vmatprep.subr.bf16.mxu1 %v19337_v7  ;;  %v19404_v6 = vld [vmem:[%s22045_s1 + $0xd68] ss:$100 sps:$4 sm:$0xff]   ;;  %v19407_v7 = vld [vmem:[%s22045_s1 + $0xd70] ss:$100 sps:$4 sm:$0xff]  }
 0x37b   : > { %11510 = vmatpush1.bf16.msra.mxu0 %v19332_v8  ;;  %11674 = vmatpush1.bf16.msra.mxu1 %v19335_v10  ;;  %v19412_v8 = vld [vmem:[%s22045_s1 + $0xe34] ss:$100 sps:$4 sm:$0xff]   ;;  %v19415_v10 = vld [vmem:[%s22045_s1 + $0xe3c] ss:$100 sps:$4 sm:$0xff]  }
 0x37c   : > { %11511 = vmatprep.subr.bf16.mxu0 %v19340_v11  ;;  %11675 = vmatprep.subr.bf16.mxu1 %v19343_v12  ;;  %v19410_v11 = vld [vmem:[%s22045_s1 + $0xe30] ss:$100 sps:$4 sm:$0xff]   ;;  %v19413_v12 = vld [vmem:[%s22045_s1 + $0xe38] ss:$100 sps:$4 sm:$0xff]  }
 0x37f   : > { %11512 = vmatpush1.bf16.msra.mxu0 %v19338_v13  ;;  %11676 = vmatpush1.bf16.msra.mxu1 %v19341_v14  ;;  %v19418_v13 = vld [vmem:[%s22045_s1 + $0xefc] ss:$100 sps:$4 sm:$0xff]   ;;  %v19421_v14 = vld [vmem:[%s22045_s1 + $0xf04] ss:$100 sps:$4 sm:$0xff]  }
 0x380   : > { %11513 = vmatprep.subr.bf16.mxu0 %v19346_v15  ;;  %11677 = vmatprep.subr.bf16.mxu1 %v19349_v17  ;;  %v19416_v15 = vld [vmem:[%s22045_s1 + $0xef8] ss:$100 sps:$4 sm:$0xff]   ;;  %v19419_v17 = vld [vmem:[%s22045_s1 + $0xf00] ss:$100 sps:$4 sm:$0xff]  }
 0x383   : > { %11514 = vmatpush1.bf16.msra.mxu0 %v19344_v18  ;;  %11678 = vmatpush1.bf16.msra.mxu1 %v19347_v19  ;;  %v19424_v18 = vld [vmem:[%s22045_s1 + $0xfc4] ss:$100 sps:$4 sm:$0xff]   ;;  %v19427_v19 = vld [vmem:[%s22045_s1 + $0xfcc] ss:$100 sps:$4 sm:$0xff]  }
 0x384   : > { %11515 = vmatprep.subr.bf16.mxu0 %v19352_v21  ;;  %11679 = vmatprep.subr.bf16.mxu1 %v19355_v22  ;;  %v19422_v21 = vld [vmem:[%s22045_s1 + $0xfc0] ss:$100 sps:$4 sm:$0xff]   ;;  %v19425_v22 = vld [vmem:[%s22045_s1 + $0xfc8] ss:$100 sps:$4 sm:$0xff]  }
 0x387   : > { %11516 = vmatpush1.bf16.msra.mxu0 %v19350_v23  ;;  %11680 = vmatpush1.bf16.msra.mxu1 %v19353_v24  ;;  %v19430_v23 = vld [vmem:[%s22045_s1 + $0x108c] ss:$100 sps:$4 sm:$0xff]   ;;  %v19433_v24 = vld [vmem:[%s22045_s1 + $0x1094] ss:$100 sps:$4 sm:$0xff]  }
 0x388   : > { %11517 = vmatprep.subr.bf16.mxu0 %v19358_v26  ;;  %11681 = vmatprep.subr.bf16.mxu1 %v19361_v28  ;;  %v19428_v26 = vld [vmem:[%s22045_s1 + $0x1088] ss:$100 sps:$4 sm:$0xff]   ;;  %v19431_v28 = vld [vmem:[%s22045_s1 + $0x1090] ss:$100 sps:$4 sm:$0xff]  }
 0x38b   : > { %11518 = vmatpush1.bf16.msra.mxu0 %v19356_v29  ;;  %11682 = vmatpush1.bf16.msra.mxu1 %v19359_v9  ;;  %v19436_v29 = vld [vmem:[%s22045_s1 + $0x1154] ss:$100 sps:$4 sm:$0xff]   ;;  %v19439_v9 = vld [vmem:[%s22045_s1 + $0x115c] ss:$100 sps:$4 sm:$0xff]  }
 0x38c   : > { %11519 = vmatprep.subr.bf16.mxu0 %v19364_v31  ;;  %11683 = vmatprep.subr.bf16.mxu1 %v19367_v32  ;;  %v19434_v31 = vld [vmem:[%s22045_s1 + $0x1150] ss:$100 sps:$4 sm:$0xff]   ;;  %v19437_v32 = vld [vmem:[%s22045_s1 + $0x1158] ss:$100 sps:$4 sm:$0xff]  }
 0x38f   : > { %11520 = vmatpush1.bf16.msra.mxu0 %v19362_v33  ;;  %11684 = vmatpush1.bf16.msra.mxu1 %v19365_v27  ;;  %v19442_v33 = vld [vmem:[%s22045_s1 + $0x121c] ss:$100 sps:$4 sm:$0xff]   ;;  %v19445_v27 = vld [vmem:[%s22045_s1 + $0x1224] ss:$100 sps:$4 sm:$0xff]  }
 0x390   : > { %11521 = vmatprep.subr.bf16.mxu0 %v19370_v36  ;;  %11685 = vmatprep.subr.bf16.mxu1 %v19373_v37  ;;  %v19440_v36 = vld [vmem:[%s22045_s1 + $0x1218] ss:$100 sps:$4 sm:$0xff]   ;;  %v19443_v37 = vld [vmem:[%s22045_s1 + $0x1220] ss:$100 sps:$4 sm:$0xff]  }
 0x393   : > { %11522 = vmatpush1.bf16.msra.mxu0 %v19368_v39  ;;  %11686 = vmatpush1.bf16.msra.mxu1 %v19371_v40  ;;  %v19448_v39 = vld [vmem:[%s22045_s1 + $0x12e4] ss:$100 sps:$4 sm:$0xff]   ;;  %v19451_v40 = vld [vmem:[%s22045_s1 + $0x12ec] ss:$100 sps:$4 sm:$0xff]  }
 0x394   : > { %11523 = vmatprep.subr.bf16.mxu0 %v19376_v49  ;;  %11687 = vmatprep.subr.bf16.mxu1 %v19379_v42  ;;  %v19446_v49 = vld [vmem:[%s22045_s1 + $0x12e0] ss:$100 sps:$4 sm:$0xff]   ;;  %v19449_v42 = vld [vmem:[%s22045_s1 + $0x12e8] ss:$100 sps:$4 sm:$0xff]  }
 0x397   : > { %11524 = vmatpush1.bf16.msra.mxu0 %v19374_v44  ;;  %11688 = vmatpush1.bf16.msra.mxu1 %v19377_v45  ;;  %v19454_v44 = vld [vmem:[%s22045_s1 + $0x13ac] ss:$100 sps:$4 sm:$0xff]   ;;  %v19457_v45 = vld [vmem:[%s22045_s1 + $0x13b4] ss:$100 sps:$4 sm:$0xff]  }
 0x398   : > { %11525 = vmatprep.subr.bf16.mxu0 %v19382_v30  ;;  %11689 = vmatprep.subr.bf16.mxu1 %v19385_v47  ;;  %v19452_v30 = vld [vmem:[%s22045_s1 + $0x13a8] ss:$100 sps:$4 sm:$0xff]   ;;  %v19455_v47 = vld [vmem:[%s22045_s1 + $0x13b0] ss:$100 sps:$4 sm:$0xff]  }
 0x39b   : > { %11526 = vmatpush1.bf16.msra.mxu0 %v19380_v48  ;;  %11690 = vmatpush1.bf16.msra.mxu1 %v19383_v50  ;;  %v19460_v48 = vld [vmem:[%s22045_s1 + $0x1474] ss:$100 sps:$4 sm:$0xff]   ;;  %v19463_v50 = vld [vmem:[%s22045_s1 + $0x147c] ss:$100 sps:$4 sm:$0xff]  }
 0x39c   : > { %11527 = vmatprep.subr.bf16.mxu0 %v19388_v51  ;;  %11691 = vmatprep.subr.bf16.mxu1 %v19391_v52  ;;  %v19458_v51 = vld [vmem:[%s22045_s1 + $0x1470] ss:$100 sps:$4 sm:$0xff]   ;;  %v19461_v52 = vld [vmem:[%s22045_s1 + $0x1478] ss:$100 sps:$4 sm:$0xff]  }
 0x39f   : > { %11528 = vmatpush1.bf16.msra.mxu0 %v19386_v34  ;;  %11692 = vmatpush1.bf16.msra.mxu1 %v19389_v58  ;;  %v19466_v34 = vld [vmem:[%s22045_s1 + $0x153c] ss:$100 sps:$4 sm:$0xff]   ;;  %v19469_v58 = vld [vmem:[%s22045_s1 + $0x1544] ss:$100 sps:$4 sm:$0xff]  }
 0x3a0   : > { %11529 = vmatprep.subr.bf16.mxu0 %v19394_v59  ;;  %11693 = vmatprep.subr.bf16.mxu1 %v19397_v61  ;;  %v19464_v59 = vld [vmem:[%s22045_s1 + $0x1538] ss:$100 sps:$4 sm:$0xff]   ;;  %v19467_v61 = vld [vmem:[%s22045_s1 + $0x1540] ss:$100 sps:$4 sm:$0xff]  }
 0x3a3   : > { %11530 = vmatpush1.bf16.msra.mxu0 %v19392_v62  ;;  %11694 = vmatpush1.bf16.msra.mxu1 %v19395_v63  ;;  %v19472_v62 = vld [vmem:[%s22045_s1 + $0x1604] ss:$100 sps:$4 sm:$0xff]   ;;  %v19475_v63 = vld [vmem:[%s22045_s1 + $0x160c] ss:$100 sps:$4 sm:$0xff]  }
 0x3a4   : > { %11540 = vmatprep.subr.bf16.mxu0 %v19400_v0  ;;  %11704 = vmatprep.subr.bf16.mxu1 %v19403_v1  ;;  %v19470_v0 = vld [vmem:[%s22045_s1 + $0x1600] ss:$100 sps:$4 sm:$0xff]   ;;  %v19473_v1 = vld [vmem:[%s22045_s1 + $0x1608] ss:$100 sps:$4 sm:$0xff]  }
 0x3a6   : > { %11532 = vmatmul.mubr.bf16.vlgmr.msra.gmra.mrb[8].mxu0 %v22185_v16  ;;  %11696 = vmatmul.mubr.bf16.vlgmr.msra.gmra.mrb[8].mxu1 %v22185_v16 }
 0x3a7   : > { %11541 = vmatpush1.bf16.msra.mxu0 %v19398_v2  ;;  %11705 = vmatpush1.bf16.msra.mxu1 %v19401_v3  ;;  %v19478_v2 = vld [vmem:[%s22045_s1 + $0x16cc] ss:$100 sps:$4 sm:$0xff]   ;;  %v19481_v3 = vld [vmem:[%s22045_s1 + $0x16d4] ss:$100 sps:$4 sm:$0xff]  }
 0x3a8   : > { %11542 = vmatprep.subr.bf16.mxu0 %v19406_v4  ;;  %11706 = vmatprep.subr.bf16.mxu1 %v19409_v5  ;;  %v19476_v4 = vld [vmem:[%s22045_s1 + $0x16c8] ss:$100 sps:$4 sm:$0xff]   ;;  %v19479_v5 = vld [vmem:[%s22045_s1 + $0x16d0] ss:$100 sps:$4 sm:$0xff]  }
 0x3a9   : > { %11572 = vmatprep.mubr.bf16.mxu0 %v22190_v20  ;;  %11736 = vmatprep.mubr.bf16.mxu1 %v22190_v20 }
 0x3ab   : > { %11543 = vmatpush1.bf16.msra.mxu0 %v19404_v6  ;;  %11707 = vmatpush1.bf16.msra.mxu1 %v19407_v7  ;;  %v19484_v6 = vld [vmem:[%s22045_s1 + $0x1794] ss:$100 sps:$4 sm:$0xff]   ;;  %v19487_v7 = vld [vmem:[%s22045_s1 + $0x179c] ss:$100 sps:$4 sm:$0xff]  }
 0x3ac   : > { %11544 = vmatprep.subr.bf16.mxu0 %v19412_v8  ;;  %11708 = vmatprep.subr.bf16.mxu1 %v19415_v10  ;;  %v19482_v8 = vld [vmem:[%s22045_s1 + $0x1790] ss:$100 sps:$4 sm:$0xff]   ;;  %v19485_v10 = vld [vmem:[%s22045_s1 + $0x1798] ss:$100 sps:$4 sm:$0xff]  }
 0x3af   : > { %11545 = vmatpush1.bf16.msra.mxu0 %v19410_v11  ;;  %11709 = vmatpush1.bf16.msra.mxu1 %v19413_v12  ;;  %v19490_v11 = vld [vmem:[%s22045_s1 + $0x185c] ss:$100 sps:$4 sm:$0xff]   ;;  %v19493_v12 = vld [vmem:[%s22045_s1 + $0x1864] ss:$100 sps:$4 sm:$0xff]  }
 0x3b0   : > { %11546 = vmatprep.subr.bf16.mxu0 %v19418_v13  ;;  %11710 = vmatprep.subr.bf16.mxu1 %v19421_v14  ;;  %v19488_v13 = vld [vmem:[%s22045_s1 + $0x1858] ss:$100 sps:$4 sm:$0xff]   ;;  %v19491_v14 = vld [vmem:[%s22045_s1 + $0x1860] ss:$100 sps:$4 sm:$0xff]  }
 0x3b3   : > { %11547 = vmatpush1.bf16.msra.mxu0 %v19416_v15  ;;  %11711 = vmatpush1.bf16.msra.mxu1 %v19419_v17  ;;  %v19496_v15 = vld [vmem:[%s22045_s1 + $0x1924] ss:$100 sps:$4 sm:$0xff]   ;;  %v19499_v17 = vld [vmem:[%s22045_s1 + $0x192c] ss:$100 sps:$4 sm:$0xff]  }
 0x3b4   : > { %11548 = vmatprep.subr.bf16.mxu0 %v19424_v18  ;;  %11712 = vmatprep.subr.bf16.mxu1 %v19427_v19  ;;  %v19494_v18 = vld [vmem:[%s22045_s1 + $0x1920] ss:$100 sps:$4 sm:$0xff]   ;;  %v19497_v19 = vld [vmem:[%s22045_s1 + $0x1928] ss:$100 sps:$4 sm:$0xff]  }
 0x3b7   : > { %11549 = vmatpush1.bf16.msra.mxu0 %v19422_v21  ;;  %11713 = vmatpush1.bf16.msra.mxu1 %v19425_v22  ;;  %v19502_v21 = vld [vmem:[%s22045_s1 + $0x19ec] ss:$100 sps:$4 sm:$0xff]   ;;  %v19505_v22 = vld [vmem:[%s22045_s1 + $0x19f4] ss:$100 sps:$4 sm:$0xff]  }
 0x3b8   : > { %11550 = vmatprep.subr.bf16.mxu0 %v19430_v23  ;;  %11714 = vmatprep.subr.bf16.mxu1 %v19433_v24  ;;  %v19500_v23 = vld [vmem:[%s22045_s1 + $0x19e8] ss:$100 sps:$4 sm:$0xff]   ;;  %v19503_v24 = vld [vmem:[%s22045_s1 + $0x19f0] ss:$100 sps:$4 sm:$0xff]  }
 0x3bb   : > { %11551 = vmatpush1.bf16.msra.mxu0 %v19428_v26  ;;  %11715 = vmatpush1.bf16.msra.mxu1 %v19431_v28  ;;  %v19508_v26 = vld [vmem:[%s22045_s1 + $0x1ab4] ss:$100 sps:$4 sm:$0xff]   ;;  %v19511_v28 = vld [vmem:[%s22045_s1 + $0x1abc] ss:$100 sps:$4 sm:$0xff]  }
 0x3bc   : > { %11552 = vmatprep.subr.bf16.mxu0 %v19436_v29  ;;  %11716 = vmatprep.subr.bf16.mxu1 %v19439_v9  ;;  %v19506_v29 = vld [vmem:[%s22045_s1 + $0x1ab0] ss:$100 sps:$4 sm:$0xff]   ;;  %v19509_v9 = vld [vmem:[%s22045_s1 + $0x1ab8] ss:$100 sps:$4 sm:$0xff]  }
 0x3bf   : > { %11553 = vmatpush1.bf16.msra.mxu0 %v19434_v31  ;;  %11717 = vmatpush1.bf16.msra.mxu1 %v19437_v32  ;;  %v19514_v31 = vld [vmem:[%s22045_s1 + $0x1b7c] ss:$100 sps:$4 sm:$0xff]   ;;  %v19517_v32 = vld [vmem:[%s22045_s1 + $0x1b84] ss:$100 sps:$4 sm:$0xff]  }
 0x3c0   : > { %11554 = vmatprep.subr.bf16.mxu0 %v19442_v33  ;;  %11718 = vmatprep.subr.bf16.mxu1 %v19445_v27  ;;  %v19512_v33 = vld [vmem:[%s22045_s1 + $0x1b78] ss:$100 sps:$4 sm:$0xff]   ;;  %v19515_v27 = vld [vmem:[%s22045_s1 + $0x1b80] ss:$100 sps:$4 sm:$0xff]  }
 0x3c3   : > { %11555 = vmatpush1.bf16.msra.mxu0 %v19440_v36  ;;  %11719 = vmatpush1.bf16.msra.mxu1 %v19443_v37  ;;  %v19520_v36 = vld [vmem:[%s22045_s1 + $0x1c44] ss:$100 sps:$4 sm:$0xff]   ;;  %v19523_v37 = vld [vmem:[%s22045_s1 + $0x1c4c] ss:$100 sps:$4 sm:$0xff]  }
 0x3c4   : > { %11556 = vmatprep.subr.bf16.mxu0 %v19448_v39  ;;  %11720 = vmatprep.subr.bf16.mxu1 %v19451_v40  ;;  %v19518_v39 = vld [vmem:[%s22045_s1 + $0x1c40] ss:$100 sps:$4 sm:$0xff]   ;;  %v19521_v40 = vld [vmem:[%s22045_s1 + $0x1c48] ss:$100 sps:$4 sm:$0xff]  }
 0x3c7   : > { %11557 = vmatpush1.bf16.msra.mxu0 %v19446_v49  ;;  %11721 = vmatpush1.bf16.msra.mxu1 %v19449_v42  ;;  %v19526_v49 = vld [vmem:[%s22045_s1 + $0x1d0c] ss:$100 sps:$4 sm:$0xff]   ;;  %v19529_v42 = vld [vmem:[%s22045_s1 + $0x1d14] ss:$100 sps:$4 sm:$0xff]  }
 0x3c8   : > { %11558 = vmatprep.subr.bf16.mxu0 %v19454_v44  ;;  %11722 = vmatprep.subr.bf16.mxu1 %v19457_v45  ;;  %v19524_v44 = vld [vmem:[%s22045_s1 + $0x1d08] ss:$100 sps:$4 sm:$0xff]   ;;  %v19527_v45 = vld [vmem:[%s22045_s1 + $0x1d10] ss:$100 sps:$4 sm:$0xff]  }
 0x3cb   : > { %11559 = vmatpush1.bf16.msra.mxu0 %v19452_v30  ;;  %11723 = vmatpush1.bf16.msra.mxu1 %v19455_v47  ;;  %v19532_v30 = vld [vmem:[%s22045_s1 + $0x1dd4] ss:$100 sps:$4 sm:$0xff]   ;;  %v19535_v47 = vld [vmem:[%s22045_s1 + $0x1ddc] ss:$100 sps:$4 sm:$0xff]  }
 0x3cc   : > { %11560 = vmatprep.subr.bf16.mxu0 %v19460_v48  ;;  %11724 = vmatprep.subr.bf16.mxu1 %v19463_v50  ;;  %v19530_v48 = vld [vmem:[%s22045_s1 + $0x1dd0] ss:$100 sps:$4 sm:$0xff]   ;;  %v19533_v50 = vld [vmem:[%s22045_s1 + $0x1dd8] ss:$100 sps:$4 sm:$0xff]  }
 0x3cf   : > { %11561 = vmatpush1.bf16.msra.mxu0 %v19458_v51  ;;  %11725 = vmatpush1.bf16.msra.mxu1 %v19461_v52  ;;  %v19538_v51 = vld [vmem:[%s22045_s1 + $0x1e9c] ss:$100 sps:$4 sm:$0xff]   ;;  %v19541_v52 = vld [vmem:[%s22045_s1 + $0x1ea4] ss:$100 sps:$4 sm:$0xff]  }
 0x3d0   : > { %11562 = vmatprep.subr.bf16.mxu0 %v19466_v34  ;;  %11726 = vmatprep.subr.bf16.mxu1 %v19469_v58  ;;  %v19536_v34 = vld [vmem:[%s22045_s1 + $0x1e98] ss:$100 sps:$4 sm:$0xff]   ;;  %v19539_v58 = vld [vmem:[%s22045_s1 + $0x1ea0] ss:$100 sps:$4 sm:$0xff]  }
 0x3d3   : > { %11563 = vmatpush1.bf16.msra.mxu0 %v19464_v59  ;;  %11727 = vmatpush1.bf16.msra.mxu1 %v19467_v61  ;;  %v19544_v59 = vld [vmem:[%s22045_s1 + $0x1f64] ss:$100 sps:$4 sm:$0xff]   ;;  %v19547_v61 = vld [vmem:[%s22045_s1 + $0x1f6c] ss:$100 sps:$4 sm:$0xff]  }
 0x3d4   : > { %11564 = vmatprep.subr.bf16.mxu0 %v19472_v62  ;;  %11728 = vmatprep.subr.bf16.mxu1 %v19475_v63  ;;  %v19542_v62 = vld [vmem:[%s22045_s1 + $0x1f60] ss:$100 sps:$4 sm:$0xff]   ;;  %v19545_v63 = vld [vmem:[%s22045_s1 + $0x1f68] ss:$100 sps:$4 sm:$0xff]  }
 0x3d7   : > { %11565 = vmatpush1.bf16.msra.mxu0 %v19470_v0  ;;  %11729 = vmatpush1.bf16.msra.mxu1 %v19473_v1  ;;  %v19550_v0 = vld [vmem:[%s22045_s1 + $0x202c] ss:$100 sps:$4 sm:$0xff]   ;;  %v19553_v1 = vld [vmem:[%s22045_s1 + $0x2034] ss:$100 sps:$4 sm:$0xff]  }
 0x3d8   : > { %11566 = vmatprep.subr.bf16.mxu0 %v19478_v2  ;;  %11730 = vmatprep.subr.bf16.mxu1 %v19481_v3  ;;  %v19548_v2 = vld [vmem:[%s22045_s1 + $0x2028] ss:$100 sps:$4 sm:$0xff]   ;;  %v19551_v3 = vld [vmem:[%s22045_s1 + $0x2030] ss:$100 sps:$4 sm:$0xff]  }
 0x3db   : > { %11567 = vmatpush1.bf16.msra.mxu0 %v19476_v4  ;;  %11731 = vmatpush1.bf16.msra.mxu1 %v19479_v5  ;;  %v19556_v4 = vld [vmem:[%s22045_s1 + $0x20f4] ss:$100 sps:$4 sm:$0xff]   ;;  %v19559_v5 = vld [vmem:[%s22045_s1 + $0x20fc] ss:$100 sps:$4 sm:$0xff]  }
 0x3dc   : > { %11568 = vmatprep.subr.bf16.mxu0 %v19484_v6  ;;  %11732 = vmatprep.subr.bf16.mxu1 %v19487_v7  ;;  %v19554_v6 = vld [vmem:[%s22045_s1 + $0x20f0] ss:$100 sps:$4 sm:$0xff]   ;;  %v19557_v7 = vld [vmem:[%s22045_s1 + $0x20f8] ss:$100 sps:$4 sm:$0xff]  }
 0x3df   : > { %11569 = vmatpush1.bf16.msra.mxu0 %v19482_v8  ;;  %11733 = vmatpush1.bf16.msra.mxu1 %v19485_v10  ;;  %v19562_v8 = vld [vmem:[%s22045_s1 + $0x21bc] ss:$100 sps:$4 sm:$0xff]   ;;  %v19565_v10 = vld [vmem:[%s22045_s1 + $0x21c4] ss:$100 sps:$4 sm:$0xff]  }
 0x3e0   : > { %11570 = vmatprep.subr.bf16.mxu0 %v19490_v11  ;;  %11734 = vmatprep.subr.bf16.mxu1 %v19493_v12  ;;  %v19560_v11 = vld [vmem:[%s22045_s1 + $0x21b8] ss:$100 sps:$4 sm:$0xff]   ;;  %v19563_v12 = vld [vmem:[%s22045_s1 + $0x21c0] ss:$100 sps:$4 sm:$0xff]  }
 0x3e3   : > { %11571 = vmatpush1.bf16.msra.mxu0 %v19488_v13  ;;  %11735 = vmatpush1.bf16.msra.mxu1 %v19491_v14  ;;  %v19568_v13 = vld [vmem:[%s22045_s1 + $0x2284] ss:$100 sps:$4 sm:$0xff]   ;;  %v19571_v14 = vld [vmem:[%s22045_s1 + $0x228c] ss:$100 sps:$4 sm:$0xff]  }
 0x3e4   : > { %11581 = vmatprep.subr.bf16.mxu0 %v19496_v15  ;;  %11745 = vmatprep.subr.bf16.mxu1 %v19499_v17  ;;  %v19566_v15 = vld [vmem:[%s22045_s1 + $0x2280] ss:$100 sps:$4 sm:$0xff]   ;;  %v19569_v17 = vld [vmem:[%s22045_s1 + $0x2288] ss:$100 sps:$4 sm:$0xff]  }
 0x3e6   : > { %11573 = vmatmul.mubr.bf16.vlgmr.msra.gmra.mrb[8].mxu0 %v22259_v25  ;;  %11737 = vmatmul.mubr.bf16.vlgmr.msra.gmra.mrb[8].mxu1 %v22259_v25 }
 0x3e7   : > { %11582 = vmatpush1.bf16.msra.mxu0 %v19494_v18  ;;  %11746 = vmatpush1.bf16.msra.mxu1 %v19497_v19  ;;  %v19574_v18 = vld [vmem:[%s22045_s1 + $0x234c] ss:$100 sps:$4 sm:$0xff]   ;;  %v19577_v19 = vld [vmem:[%s22045_s1 + $0x2354] ss:$100 sps:$4 sm:$0xff]  }
 0x3e8   : > { %11583 = vmatprep.subr.bf16.mxu0 %v19502_v21  ;;  %11747 = vmatprep.subr.bf16.mxu1 %v19505_v22  ;;  %v19572_v21 = vld [vmem:[%s22045_s1 + $0x2348] ss:$100 sps:$4 sm:$0xff]   ;;  %v19575_v22 = vld [vmem:[%s22045_s1 + $0x2350] ss:$100 sps:$4 sm:$0xff]  }
 0x3e9   : > { %11613 = vmatprep.mubr.bf16.mxu0 %v22279_v35  ;;  %11777 = vmatprep.mubr.bf16.mxu1 %v22279_v35 }
 0x3eb   : > { %11584 = vmatpush1.bf16.msra.mxu0 %v19500_v23  ;;  %11748 = vmatpush1.bf16.msra.mxu1 %v19503_v24  ;;  %v19580_v23 = vld [vmem:[%s22045_s1 + $0x2414] ss:$100 sps:$4 sm:$0xff]   ;;  %v19583_v24 = vld [vmem:[%s22045_s1 + $0x241c] ss:$100 sps:$4 sm:$0xff]  }
 0x3ec   : > { %11585 = vmatprep.subr.bf16.mxu0 %v19508_v26  ;;  %11749 = vmatprep.subr.bf16.mxu1 %v19511_v28  ;;  %v19578_v26 = vld [vmem:[%s22045_s1 + $0x2410] ss:$100 sps:$4 sm:$0xff]   ;;  %v19581_v28 = vld [vmem:[%s22045_s1 + $0x2418] ss:$100 sps:$4 sm:$0xff]  }
 0x3ef   : > { %11586 = vmatpush1.bf16.msra.mxu0 %v19506_v29  ;;  %11750 = vmatpush1.bf16.msra.mxu1 %v19509_v9  ;;  %v19586_v29 = vld [vmem:[%s22045_s1 + $0x24dc] ss:$100 sps:$4 sm:$0xff]   ;;  %v19589_v9 = vld [vmem:[%s22045_s1 + $0x24e4] ss:$100 sps:$4 sm:$0xff]  }
 0x3f0   : > { %11587 = vmatprep.subr.bf16.mxu0 %v19514_v31  ;;  %11751 = vmatprep.subr.bf16.mxu1 %v19517_v32  ;;  %v19584_v31 = vld [vmem:[%s22045_s1 + $0x24d8] ss:$100 sps:$4 sm:$0xff]   ;;  %v19587_v32 = vld [vmem:[%s22045_s1 + $0x24e0] ss:$100 sps:$4 sm:$0xff]  }
 0x3f3   : > { %11588 = vmatpush1.bf16.msra.mxu0 %v19512_v33  ;;  %11752 = vmatpush1.bf16.msra.mxu1 %v19515_v27  ;;  %v19592_v33 = vld [vmem:[%s22045_s1 + $0x25a4] ss:$100 sps:$4 sm:$0xff]   ;;  %v19595_v27 = vld [vmem:[%s22045_s1 + $0x25ac] ss:$100 sps:$4 sm:$0xff]  }
 0x3f4   : > { %11589 = vmatprep.subr.bf16.mxu0 %v19520_v36  ;;  %11753 = vmatprep.subr.bf16.mxu1 %v19523_v37  ;;  %v19590_v36 = vld [vmem:[%s22045_s1 + $0x25a0] ss:$100 sps:$4 sm:$0xff]   ;;  %v19593_v37 = vld [vmem:[%s22045_s1 + $0x25a8] ss:$100 sps:$4 sm:$0xff]  }
 0x3f7   : > { %11590 = vmatpush1.bf16.msra.mxu0 %v19518_v39  ;;  %11754 = vmatpush1.bf16.msra.mxu1 %v19521_v40  ;;  %v19598_v39 = vld [vmem:[%s22045_s1 + $0x266c] ss:$100 sps:$4 sm:$0xff]   ;;  %v19601_v40 = vld [vmem:[%s22045_s1 + $0x2674] ss:$100 sps:$4 sm:$0xff]  }
 0x3f8   : > { %11591 = vmatprep.subr.bf16.mxu0 %v19526_v49  ;;  %11755 = vmatprep.subr.bf16.mxu1 %v19529_v42  ;;  %v19596_v49 = vld [vmem:[%s22045_s1 + $0x2668] ss:$100 sps:$4 sm:$0xff]   ;;  %v19599_v42 = vld [vmem:[%s22045_s1 + $0x2670] ss:$100 sps:$4 sm:$0xff]  }
 0x3fb   : > { %11592 = vmatpush1.bf16.msra.mxu0 %v19524_v44  ;;  %11756 = vmatpush1.bf16.msra.mxu1 %v19527_v45  ;;  %v19604_v44 = vld [vmem:[%s22045_s1 + $0x2734] ss:$100 sps:$4 sm:$0xff]   ;;  %v19607_v45 = vld [vmem:[%s22045_s1 + $0x273c] ss:$100 sps:$4 sm:$0xff]  }
 0x3fc   : > { %11593 = vmatprep.subr.bf16.mxu0 %v19532_v30  ;;  %11757 = vmatprep.subr.bf16.mxu1 %v19535_v47  ;;  %v19602_v30 = vld [vmem:[%s22045_s1 + $0x2730] ss:$100 sps:$4 sm:$0xff]   ;;  %v19605_v47 = vld [vmem:[%s22045_s1 + $0x2738] ss:$100 sps:$4 sm:$0xff]  }
 0x3ff   : > { %11594 = vmatpush1.bf16.msra.mxu0 %v19530_v48  ;;  %11758 = vmatpush1.bf16.msra.mxu1 %v19533_v50  ;;  %v19610_v48 = vld [vmem:[%s22045_s1 + $0x27fc] ss:$100 sps:$4 sm:$0xff]   ;;  %v19613_v50 = vld [vmem:[%s22045_s1 + $0x2804] ss:$100 sps:$4 sm:$0xff]  }
 0x400   : > { %11595 = vmatprep.subr.bf16.mxu0 %v19538_v51  ;;  %11759 = vmatprep.subr.bf16.mxu1 %v19541_v52  ;;  %v19608_v51 = vld [vmem:[%s22045_s1 + $0x27f8] ss:$100 sps:$4 sm:$0xff]   ;;  %v19611_v52 = vld [vmem:[%s22045_s1 + $0x2800] ss:$100 sps:$4 sm:$0xff]  }
 0x403   : > { %11596 = vmatpush1.bf16.msra.mxu0 %v19536_v34  ;;  %11760 = vmatpush1.bf16.msra.mxu1 %v19539_v58  ;;  %v19616_v34 = vld [vmem:[%s22045_s1 + $0x28c4] ss:$100 sps:$4 sm:$0xff]   ;;  %v19619_v58 = vld [vmem:[%s22045_s1 + $0x28cc] ss:$100 sps:$4 sm:$0xff]  }
 0x404   : > { %11597 = vmatprep.subr.bf16.mxu0 %v19544_v59  ;;  %11761 = vmatprep.subr.bf16.mxu1 %v19547_v61  ;;  %v22929_v59 = vsub.s32 6, %v22135_v43  ;;  %v2646_v61 = vld [vmem:[%s22053_s21] sm:$0xff] }
 0x407   : > { %11598 = vmatpush1.bf16.msra.mxu0 %v19542_v62  ;;  %11762 = vmatpush1.bf16.msra.mxu1 %v19545_v63  ;;  %v19614_v62 = vld [vmem:[%s22045_s1 + $0x28c0] ss:$100 sps:$4 sm:$0xff]   ;;  %v19617_v63 = vld [vmem:[%s22045_s1 + $0x28c8] ss:$100 sps:$4 sm:$0xff]  }
 0x408   : > { %11599 = vmatprep.subr.bf16.mxu0 %v19550_v0  ;;  %11763 = vmatprep.subr.bf16.mxu1 %v19553_v1  ;;  %v19622_v0 = vld [vmem:[%s22045_s1 + $0x298c] ss:$100 sps:$4 sm:$0xff]   ;;  %v19625_v1 = vld [vmem:[%s22045_s1 + $0x2994] ss:$100 sps:$4 sm:$0xff]  }
 0x40b   : > { %11600 = vmatpush1.bf16.msra.mxu0 %v19548_v2  ;;  %11764 = vmatpush1.bf16.msra.mxu1 %v19551_v3  ;;  %v2681_v2 = vrot.slane %v2646_v61, %v22929_v59  ;;  %v19620_v3 = vld [vmem:[%s22045_s1 + $0x2988] ss:$100 sps:$4 sm:$0xff]   ;;  %v19676_v61 = vld [vmem:[%s22045_s1 + $0x3094] ss:$100 sps:$4 sm:$0xff]  }
 0x40c   : > { %11601 = vmatprep.subr.bf16.mxu0 %v19556_v4  ;;  %11765 = vmatprep.subr.bf16.mxu1 %v19559_v5  ;;  %v19623_v4 = vld [vmem:[%s22045_s1 + $0x2990] ss:$100 sps:$4 sm:$0xff]  }
 0x40d   : > { %v19628_v5 = vld [vmem:[%s22045_s1 + $0x2a54] ss:$100 sps:$4 sm:$0xff]  }
 0x40f   : > { %11602 = vmatpush1.bf16.msra.mxu0 %v19554_v6  ;;  %11766 = vmatpush1.bf16.msra.mxu1 %v19557_v7  ;;  %v19631_v6 = vld [vmem:[%s22045_s1 + $0x2a5c] ss:$100 sps:$4 sm:$0xff]  }
 0x410   : > { %11603 = vmatprep.subr.bf16.mxu0 %v19562_v8  ;;  %11767 = vmatprep.subr.bf16.mxu1 %v19565_v10 }
 0x413   : > { %11604 = vmatpush1.bf16.msra.mxu0 %v19560_v11  ;;  %11768 = vmatpush1.bf16.msra.mxu1 %v19563_v12 }
 0x414   : > { %11605 = vmatprep.subr.bf16.mxu0 %v19568_v13  ;;  %11769 = vmatprep.subr.bf16.mxu1 %v19571_v14 }
 0x417   : > { %11606 = vmatpush1.bf16.msra.mxu0 %v19566_v15  ;;  %11770 = vmatpush1.bf16.msra.mxu1 %v19569_v17  ;;  %v19626_v15 = vld [vmem:[%s22045_s1 + $0x2a50] ss:$100 sps:$4 sm:$0xff]   ;;  %v19629_v17 = vld [vmem:[%s22045_s1 + $0x2a58] ss:$100 sps:$4 sm:$0xff]  }
 0x418   : > { %11607 = vmatprep.subr.bf16.mxu0 %v19574_v18  ;;  %11771 = vmatprep.subr.bf16.mxu1 %v19577_v19 }
 0x41b   : > { %11608 = vmatpush1.bf16.msra.mxu0 %v19572_v21  ;;  %11772 = vmatpush1.bf16.msra.mxu1 %v19575_v22  ;;  %v19634_v21 = vld [vmem:[%s22045_s1 + $0x2b1c] ss:$100 sps:$4 sm:$0xff]   ;;  %v19637_v22 = vld [vmem:[%s22045_s1 + $0x2b24] ss:$100 sps:$4 sm:$0xff]  }
 0x41c   : > { %11609 = vmatprep.subr.bf16.mxu0 %v19580_v23  ;;  %11773 = vmatprep.subr.bf16.mxu1 %v19583_v24  ;;  %v19632_v23 = vld [vmem:[%s22045_s1 + $0x2b18] ss:$100 sps:$4 sm:$0xff]   ;;  %v19635_v24 = vld [vmem:[%s22045_s1 + $0x2b20] ss:$100 sps:$4 sm:$0xff]  }
 0x41f   : > { %11610 = vmatpush1.bf16.msra.mxu0 %v19578_v26  ;;  %11774 = vmatpush1.bf16.msra.mxu1 %v19581_v28  ;;  %v19640_v26 = vld [vmem:[%s22045_s1 + $0x2be4] ss:$100 sps:$4 sm:$0xff]   ;;  %v19643_v28 = vld [vmem:[%s22045_s1 + $0x2bec] ss:$100 sps:$4 sm:$0xff]  }
 0x420   : > { %11611 = vmatprep.subr.bf16.mxu0 %v19586_v29  ;;  %11775 = vmatprep.subr.bf16.mxu1 %v19589_v9  ;;  %v19638_v29 = vld [vmem:[%s22045_s1 + $0x2be0] ss:$100 sps:$4 sm:$0xff]   ;;  %v19641_v9 = vld [vmem:[%s22045_s1 + $0x2be8] ss:$100 sps:$4 sm:$0xff]  }
 0x423   : > { %11612 = vmatpush1.bf16.msra.mxu0 %v19584_v31  ;;  %11776 = vmatpush1.bf16.msra.mxu1 %v19587_v32  ;;  %v19646_v31 = vld [vmem:[%s22045_s1 + $0x2cac] ss:$100 sps:$4 sm:$0xff]   ;;  %v19649_v32 = vld [vmem:[%s22045_s1 + $0x2cb4] ss:$100 sps:$4 sm:$0xff]  }
 0x424   : > { %11622 = vmatprep.subr.bf16.mxu0 %v19592_v33  ;;  %11786 = vmatprep.subr.bf16.mxu1 %v19595_v27  ;;  %v19644_v33 = vld [vmem:[%s22045_s1 + $0x2ca8] ss:$100 sps:$4 sm:$0xff]   ;;  %v19647_v27 = vld [vmem:[%s22045_s1 + $0x2cb0] ss:$100 sps:$4 sm:$0xff]  }
 0x426   : > { %11614 = vmatmul.mubr.bf16.vlgmr.msra.gmra.mrb[8].mxu0 %v22348_v41  ;;  %11778 = vmatmul.mubr.bf16.vlgmr.msra.gmra.mrb[8].mxu1 %v22348_v41 }
 0x427   : > { %11623 = vmatpush1.bf16.msra.mxu0 %v19590_v36  ;;  %11787 = vmatpush1.bf16.msra.mxu1 %v19593_v37  ;;  %v19652_v36 = vld [vmem:[%s22045_s1 + $0x2d74] ss:$100 sps:$4 sm:$0xff]   ;;  %v19655_v37 = vld [vmem:[%s22045_s1 + $0x2d7c] ss:$100 sps:$4 sm:$0xff]  }
 0x428   : > { %11624 = vmatprep.subr.bf16.mxu0 %v19598_v39  ;;  %11788 = vmatprep.subr.bf16.mxu1 %v19601_v40  ;;  %v19650_v39 = vld [vmem:[%s22045_s1 + $0x2d70] ss:$100 sps:$4 sm:$0xff]   ;;  %v19653_v40 = vld [vmem:[%s22045_s1 + $0x2d78] ss:$100 sps:$4 sm:$0xff]  }
 0x429   : > { %11654 = vmatprep.mubr.bf16.mxu0 %v22354_v46  ;;  %11818 = vmatprep.mubr.bf16.mxu1 %v22354_v46 }
 0x42b   : > { %11625 = vmatpush1.bf16.msra.mxu0 %v19596_v49  ;;  %11789 = vmatpush1.bf16.msra.mxu1 %v19599_v42  ;;  %v19658_v49 = vld [vmem:[%s22045_s1 + $0x2e3c] ss:$100 sps:$4 sm:$0xff]   ;;  %v19661_v42 = vld [vmem:[%s22045_s1 + $0x2e44] ss:$100 sps:$4 sm:$0xff]  }
 0x42c   : > { %11626 = vmatprep.subr.bf16.mxu0 %v19604_v44  ;;  %11790 = vmatprep.subr.bf16.mxu1 %v19607_v45  ;;  %v19656_v44 = vld [vmem:[%s22045_s1 + $0x2e38] ss:$100 sps:$4 sm:$0xff]   ;;  %v19659_v45 = vld [vmem:[%s22045_s1 + $0x2e40] ss:$100 sps:$4 sm:$0xff]  }
 0x42f   : > { %11627 = vmatpush1.bf16.msra.mxu0 %v19602_v30  ;;  %11791 = vmatpush1.bf16.msra.mxu1 %v19605_v47  ;;  %v19664_v30 = vld [vmem:[%s22045_s1 + $0x2f04] ss:$100 sps:$4 sm:$0xff]   ;;  %v19667_v47 = vld [vmem:[%s22045_s1 + $0x2f0c] ss:$100 sps:$4 sm:$0xff]  }
 0x430   : > { %11628 = vmatprep.subr.bf16.mxu0 %v19610_v48  ;;  %11792 = vmatprep.subr.bf16.mxu1 %v19613_v50  ;;  %v19662_v48 = vld [vmem:[%s22045_s1 + $0x2f00] ss:$100 sps:$4 sm:$0xff]   ;;  %v19665_v50 = vld [vmem:[%s22045_s1 + $0x2f08] ss:$100 sps:$4 sm:$0xff]  }
 0x433   : > { %11629 = vmatpush1.bf16.msra.mxu0 %v19608_v51  ;;  %11793 = vmatpush1.bf16.msra.mxu1 %v19611_v52  ;;  %v19670_v51 = vld [vmem:[%s22045_s1 + $0x2fcc] ss:$100 sps:$4 sm:$0xff]   ;;  %v19673_v52 = vld [vmem:[%s22045_s1 + $0x2fd4] ss:$100 sps:$4 sm:$0xff]  }
 0x434   : > { %11630 = vmatprep.subr.bf16.mxu0 %v19616_v34  ;;  %11794 = vmatprep.subr.bf16.mxu1 %v19619_v58  ;;  %v19668_v34 = vld [vmem:[%s22045_s1 + $0x2fc8] ss:$100 sps:$4 sm:$0xff]   ;;  %v19671_v58 = vld [vmem:[%s22045_s1 + $0x2fd0] ss:$100 sps:$4 sm:$0xff]  }
 0x437   : > { %11631 = vmatpush1.bf16.msra.mxu0 %v19614_v62  ;;  %11795 = vmatpush1.bf16.msra.mxu1 %v19617_v63  ;;  %v19679_v62 = vld [vmem:[%s22045_s1 + $0x309c] ss:$100 sps:$4 sm:$0xff]   ;;  %v19674_v63 = vld [vmem:[%s22045_s1 + $0x3090] ss:$100 sps:$4 sm:$0xff]  }
 0x438   : > { %11632 = vmatprep.subr.bf16.mxu0 %v19622_v0  ;;  %11796 = vmatprep.subr.bf16.mxu1 %v19625_v1  ;;  %v19677_v0 = vld [vmem:[%s22045_s1 + $0x3098] ss:$100 sps:$4 sm:$0xff]  }
 0x439   : > { %v22941_v7 = vpop.f32.mrb[4].mxu0  ;;  %v11492_v8 = vpop.f32.mrb[4].mxu1  ;;  %v19682_v1 = vld [vmem:[%s22045_s1 + $0x315c] ss:$100 sps:$4 sm:$0xff]  }
 0x43a   : > { %v22943_v10 = vadd.f32 %v11492_v8, %v2681_v2  ;;  %v22945_v11 = vpop.f32.mrb[5].mxu0  ;;  %v22947_v12 = vpop.f32.mrb[5].mxu1  ;;  %v19685_v2 = vld [vmem:[%s22045_s1 + $0x3164] ss:$100 sps:$4 sm:$0xff]   ;;  %v19686_v8 = vld [vmem:[%s22045_s1 + $0x30] ss:$100 sps:$4 sm:$0xff]  }
 0x43b   : > { %v11332_v13 = vpop.f32.mrb[6].mxu0  ;;  %v11496_v14 = vpop.f32.mrb[6].mxu1  ;;  %11633 = vmatpush1.bf16.msra.mxu0 %v19620_v3  ;;  %11797 = vmatpush1.bf16.msra.mxu1 %v19623_v4  ;;  %v19680_v3 = vld [vmem:[%s22045_s1 + $0x3158] ss:$100 sps:$4 sm:$0xff]   ;;  %v19683_v4 = vld [vmem:[%s22045_s1 + $0x3160] ss:$100 sps:$4 sm:$0xff]  }
 0x43c   : > { %v11333_v18 = vpop.f32.mrb[7].mxu0  ;;  %v11497_v19 = vpop.f32.mrb[7].mxu1  ;;  %11634 = vmatprep.subr.bf16.mxu0 %v19628_v5  ;;  %11798 = vmatprep.subr.bf16.mxu1 %v19631_v6  ;;  %v19688_v5 = vld [vmem:[%s22045_s1 + $0x34] ss:$100 sps:$4 sm:$0xff]   ;;  %v19691_v6 = vld [vmem:[%s22045_s1 + $0x3c] ss:$100 sps:$4 sm:$0xff]  }
 0x43d   : > { %v19689_v13 = vld [vmem:[%s22045_s1 + $0x38] ss:$100 sps:$4 sm:$0xff]   ;;  %v19695_v18 = vld [vmem:[%s22045_s1 + $0x100] ss:$100 sps:$4 sm:$0xff]  }
 0x43e   : > { %v19694_v14 = vld [vmem:[%s22045_s1 + $0xfc] ss:$100 sps:$4 sm:$0xff]   ;;  %v19700_v19 = vld [vmem:[%s22045_s1 + $0x1c4] ss:$100 sps:$4 sm:$0xff]  }
 0x43f   : > { %11635 = vmatpush1.bf16.msra.mxu0 %v19626_v15  ;;  %11799 = vmatpush1.bf16.msra.mxu1 %v19629_v17  ;;  %v19697_v15 = vld [vmem:[%s22045_s1 + $0x104] ss:$100 sps:$4 sm:$0xff]   ;;  %v19692_v17 = vld [vmem:[%s22045_s1 + $0xf8] ss:$100 sps:$4 sm:$0xff]  }
 0x440   : > { %11636 = vmatprep.subr.bf16.mxu0 %v19634_v21  ;;  %11800 = vmatprep.subr.bf16.mxu1 %v19637_v22  ;;  %v19703_v21 = vld [vmem:[%s22045_s1 + $0x1cc] ss:$100 sps:$4 sm:$0xff]   ;;  %v19698_v22 = vld [vmem:[%s22045_s1 + $0x1c0] ss:$100 sps:$4 sm:$0xff]  }
 0x443   : > { %11637 = vmatpush1.bf16.msra.mxu0 %v19632_v23  ;;  %11801 = vmatpush1.bf16.msra.mxu1 %v19635_v24  ;;  %v19701_v23 = vld [vmem:[%s22045_s1 + $0x1c8] ss:$100 sps:$4 sm:$0xff]  }
 0x444   : > { %11638 = vmatprep.subr.bf16.mxu0 %v19640_v26  ;;  %11802 = vmatprep.subr.bf16.mxu1 %v19643_v28  ;;  %v19706_v24 = vld [vmem:[%s22045_s1 + $0x28c] ss:$100 sps:$4 sm:$0xff]   ;;  %v19709_v26 = vld [vmem:[%s22045_s1 + $0x294] ss:$100 sps:$4 sm:$0xff]  }
 0x445   : > { %v19704_v28 = vld [vmem:[%s22045_s1 + $0x288] ss:$100 sps:$4 sm:$0xff]  }
 0x447   : > { %11639 = vmatpush1.bf16.msra.mxu0 %v19638_v29  ;;  %11803 = vmatpush1.bf16.msra.mxu1 %v19641_v9  ;;  %v19707_v29 = vld [vmem:[%s22045_s1 + $0x290] ss:$100 sps:$4 sm:$0xff]  }
 0x448   : > { %11640 = vmatprep.subr.bf16.mxu0 %v19646_v31  ;;  %11804 = vmatprep.subr.bf16.mxu1 %v19649_v32  ;;  %v19712_v9 = vld [vmem:[%s22045_s1 + $0x354] ss:$100 sps:$4 sm:$0xff]   ;;  %v19715_v31 = vld [vmem:[%s22045_s1 + $0x35c] ss:$100 sps:$4 sm:$0xff]  }
 0x449   : > { %v19710_v32 = vld [vmem:[%s22045_s1 + $0x350] ss:$100 sps:$4 sm:$0xff]  }
 0x44b   : > { %11641 = vmatpush1.bf16.msra.mxu0 %v19644_v33  ;;  %11805 = vmatpush1.bf16.msra.mxu1 %v19647_v27  ;;  %v19713_v33 = vld [vmem:[%s22045_s1 + $0x358] ss:$100 sps:$4 sm:$0xff]  }
 0x44c   : > { %11642 = vmatprep.subr.bf16.mxu0 %v19652_v36  ;;  %11806 = vmatprep.subr.bf16.mxu1 %v19655_v37  ;;  %v19718_v27 = vld [vmem:[%s22045_s1 + $0x41c] ss:$100 sps:$4 sm:$0xff]   ;;  %v19721_v36 = vld [vmem:[%s22045_s1 + $0x424] ss:$100 sps:$4 sm:$0xff]  }
 0x44d   : > { %v19716_v37 = vld [vmem:[%s22045_s1 + $0x418] ss:$100 sps:$4 sm:$0xff]  }
 0x44f   : > { %11643 = vmatpush1.bf16.msra.mxu0 %v19650_v39  ;;  %11807 = vmatpush1.bf16.msra.mxu1 %v19653_v40  ;;  %v19719_v39 = vld [vmem:[%s22045_s1 + $0x420] ss:$100 sps:$4 sm:$0xff]  }
 0x450   : > { %11644 = vmatprep.subr.bf16.mxu0 %v19658_v49  ;;  %11808 = vmatprep.subr.bf16.mxu1 %v19661_v42  ;;  %v19724_v40 = vld [vmem:[%s22045_s1 + $0x4e4] ss:$100 sps:$4 sm:$0xff]   ;;  %v19727_v49 = vld [vmem:[%s22045_s1 + $0x4ec] ss:$100 sps:$4 sm:$0xff]  }
 0x451   : > { %v19722_v42 = vld [vmem:[%s22045_s1 + $0x4e0] ss:$100 sps:$4 sm:$0xff]  }
 0x453   : > { %11645 = vmatpush1.bf16.msra.mxu0 %v19656_v44  ;;  %11809 = vmatpush1.bf16.msra.mxu1 %v19659_v45  ;;  %v19725_v44 = vld [vmem:[%s22045_s1 + $0x4e8] ss:$100 sps:$4 sm:$0xff]  }
 0x454   : > { %11646 = vmatprep.subr.bf16.mxu0 %v19664_v30  ;;  %11810 = vmatprep.subr.bf16.mxu1 %v19667_v47  ;;  %v19730_v45 = vld [vmem:[%s22045_s1 + $0x5ac] ss:$100 sps:$4 sm:$0xff]   ;;  %v19733_v30 = vld [vmem:[%s22045_s1 + $0x5b4] ss:$100 sps:$4 sm:$0xff]  }
 0x455   : > { %v19728_v47 = vld [vmem:[%s22045_s1 + $0x5a8] ss:$100 sps:$4 sm:$0xff]  }
 0x457   : > { %11647 = vmatpush1.bf16.msra.mxu0 %v19662_v48  ;;  %11811 = vmatpush1.bf16.msra.mxu1 %v19665_v50  ;;  %v19731_v48 = vld [vmem:[%s22045_s1 + $0x5b0] ss:$100 sps:$4 sm:$0xff]  }
 0x458   : > { %11648 = vmatprep.subr.bf16.mxu0 %v19670_v51  ;;  %11812 = vmatprep.subr.bf16.mxu1 %v19673_v52  ;;  %v19736_v50 = vld [vmem:[%s22045_s1 + $0x674] ss:$100 sps:$4 sm:$0xff]   ;;  %v19739_v51 = vld [vmem:[%s22045_s1 + $0x67c] ss:$100 sps:$4 sm:$0xff]  }
 0x459   : > { %v19734_v52 = vld [vmem:[%s22045_s1 + $0x670] ss:$100 sps:$4 sm:$0xff]  }
 0x45b   : > { %11649 = vmatpush1.bf16.msra.mxu0 %v19668_v34  ;;  %11813 = vmatpush1.bf16.msra.mxu1 %v19671_v58  ;;  %v19737_v34 = vld [vmem:[%s22045_s1 + $0x678] ss:$100 sps:$4 sm:$0xff]  }
 0x45c   : > { %11650 = vmatprep.subr.bf16.mxu0 %v19676_v61  ;;  %11814 = vmatprep.subr.bf16.mxu1 %v19679_v62  ;;  %v19742_v58 = vld [vmem:[%s22045_s1 + $0x73c] ss:$100 sps:$4 sm:$0xff]   ;;  %v19745_v61 = vld [vmem:[%s22045_s1 + $0x744] ss:$100 sps:$4 sm:$0xff]  }
 0x45d   : > { %v19740_v62 = vld [vmem:[%s22045_s1 + $0x738] ss:$100 sps:$4 sm:$0xff]  }
 0x45f   : > { %11651 = vmatpush1.bf16.msra.mxu0 %v19674_v63  ;;  %11815 = vmatpush1.bf16.msra.mxu1 %v19677_v0  ;;  %v19743_v63 = vld [vmem:[%s22045_s1 + $0x740] ss:$100 sps:$4 sm:$0xff]  }
 0x460   : > { %11652 = vmatprep.subr.bf16.mxu0 %v19682_v1  ;;  %11816 = vmatprep.subr.bf16.mxu1 %v19685_v2  ;;  %v19748_v0 = vld [vmem:[%s22045_s1 + $0x804] ss:$100 sps:$4 sm:$0xff]   ;;  %v19751_v1 = vld [vmem:[%s22045_s1 + $0x80c] ss:$100 sps:$4 sm:$0xff]  }
 0x461   : > { %v19746_v2 = vld [vmem:[%s22045_s1 + $0x800] ss:$100 sps:$4 sm:$0xff]  }
 0x463   : > { %11653 = vmatpush1.bf16.msra.mxu0 %v19680_v3  ;;  %11817 = vmatpush1.bf16.msra.mxu1 %v19683_v4  ;;  %v19749_v3 = vld [vmem:[%s22045_s1 + $0x808] ss:$100 sps:$4 sm:$0xff]  }
 0x464   : > { %11827 = vmatprep.subr.bf16.mxu0 %v19688_v5  ;;  %11991 = vmatprep.subr.bf16.mxu1 %v19691_v6  ;;  %v19754_v4 = vld [vmem:[%s22045_s1 + $0x8cc] ss:$100 sps:$4 sm:$0xff]   ;;  %v19757_v5 = vld [vmem:[%s22045_s1 + $0x8d4] ss:$100 sps:$4 sm:$0xff]  }
 0x465   : > { %v19752_v6 = vld [vmem:[%s22045_s1 + $0x8c8] ss:$100 sps:$4 sm:$0xff]  }
 0x466   : > { %11655 = vmatmul.mubr.bf16.vlgmr.msra.gmra.mrb[8].mxu0 %v22422_v53  ;;  %11819 = vmatmul.mubr.bf16.vlgmr.msra.gmra.mrb[8].mxu1 %v22422_v53 }
 0x467   : > { %11828 = vmatpush1.bf16.msra.mxu0 %v19686_v8  ;;  %11992 = vmatpush1.bf16.msra.mxu1 %v19689_v13  ;;  %v19755_v8 = vld [vmem:[%s22045_s1 + $0x8d0] ss:$100 sps:$4 sm:$0xff]  }
 0x468   : > { %11829 = vmatprep.subr.bf16.mxu0 %v19694_v14  ;;  %11993 = vmatprep.subr.bf16.mxu1 %v19697_v15  ;;  %v19760_v13 = vld [vmem:[%s22045_s1 + $0x994] ss:$100 sps:$4 sm:$0xff]   ;;  %v19763_v14 = vld [vmem:[%s22045_s1 + $0x99c] ss:$100 sps:$4 sm:$0xff]  }
 0x469   : > { %11859 = vmatprep.mubr.bf16.mxu0 %v22160_v60  ;;  %12023 = vmatprep.mubr.bf16.mxu1 %v22160_v60  ;;  %v19758_v15 = vld [vmem:[%s22045_s1 + $0x990] ss:$100 sps:$4 sm:$0xff]  }
 0x46b   : > { %11830 = vmatpush1.bf16.msra.mxu0 %v19692_v17  ;;  %11994 = vmatpush1.bf16.msra.mxu1 %v19695_v18  ;;  %v19761_v17 = vld [vmem:[%s22045_s1 + $0x998] ss:$100 sps:$4 sm:$0xff]  }
 0x46c   : > { %11831 = vmatprep.subr.bf16.mxu0 %v19700_v19  ;;  %11995 = vmatprep.subr.bf16.mxu1 %v19703_v21  ;;  %v19766_v18 = vld [vmem:[%s22045_s1 + $0xa5c] ss:$100 sps:$4 sm:$0xff]   ;;  %v19769_v19 = vld [vmem:[%s22045_s1 + $0xa64] ss:$100 sps:$4 sm:$0xff]  }
 0x46d   : > { %v19764_v21 = vld [vmem:[%s22045_s1 + $0xa58] ss:$100 sps:$4 sm:$0xff]  }
 0x46f   : > { %11832 = vmatpush1.bf16.msra.mxu0 %v19698_v22  ;;  %11996 = vmatpush1.bf16.msra.mxu1 %v19701_v23  ;;  %v19767_v22 = vld [vmem:[%s22045_s1 + $0xa60] ss:$100 sps:$4 sm:$0xff]  }
 0x470   : > { %11833 = vmatprep.subr.bf16.mxu0 %v19706_v24  ;;  %11997 = vmatprep.subr.bf16.mxu1 %v19709_v26  ;;  %v19772_v23 = vld [vmem:[%s22045_s1 + $0xb24] ss:$100 sps:$4 sm:$0xff]   ;;  %v19775_v24 = vld [vmem:[%s22045_s1 + $0xb2c] ss:$100 sps:$4 sm:$0xff]  }
 0x471   : > { %v19770_v26 = vld [vmem:[%s22045_s1 + $0xb20] ss:$100 sps:$4 sm:$0xff]  }
 0x473   : > { %11834 = vmatpush1.bf16.msra.mxu0 %v19704_v28  ;;  %11998 = vmatpush1.bf16.msra.mxu1 %v19707_v29  ;;  %v19773_v28 = vld [vmem:[%s22045_s1 + $0xb28] ss:$100 sps:$4 sm:$0xff]  }
 0x474   : > { %11835 = vmatprep.subr.bf16.mxu0 %v19712_v9  ;;  %11999 = vmatprep.subr.bf16.mxu1 %v19715_v31  ;;  %v19778_v29 = vld [vmem:[%s22045_s1 + $0xbec] ss:$100 sps:$4 sm:$0xff]   ;;  %v19781_v9 = vld [vmem:[%s22045_s1 + $0xbf4] ss:$100 sps:$4 sm:$0xff]  }
 0x475   : > { %v19776_v31 = vld [vmem:[%s22045_s1 + $0xbe8] ss:$100 sps:$4 sm:$0xff]  }
 0x477   : > { %11836 = vmatpush1.bf16.msra.mxu0 %v19710_v32  ;;  %12000 = vmatpush1.bf16.msra.mxu1 %v19713_v33  ;;  %v19779_v32 = vld [vmem:[%s22045_s1 + $0xbf0] ss:$100 sps:$4 sm:$0xff]  }
 0x478   : > { %11837 = vmatprep.subr.bf16.mxu0 %v19718_v27  ;;  %12001 = vmatprep.subr.bf16.mxu1 %v19721_v36  ;;  %v19784_v33 = vld [vmem:[%s22045_s1 + $0xcb4] ss:$100 sps:$4 sm:$0xff]   ;;  %v19787_v27 = vld [vmem:[%s22045_s1 + $0xcbc] ss:$100 sps:$4 sm:$0xff]  }
 0x479   : > { %v19782_v36 = vld [vmem:[%s22045_s1 + $0xcb0] ss:$100 sps:$4 sm:$0xff]  }
 0x47b   : > { %11838 = vmatpush1.bf16.msra.mxu0 %v19716_v37  ;;  %12002 = vmatpush1.bf16.msra.mxu1 %v19719_v39  ;;  %v19785_v37 = vld [vmem:[%s22045_s1 + $0xcb8] ss:$100 sps:$4 sm:$0xff]  }
 0x47c   : > { %11839 = vmatprep.subr.bf16.mxu0 %v19724_v40  ;;  %12003 = vmatprep.subr.bf16.mxu1 %v19727_v49  ;;  %v19790_v39 = vld [vmem:[%s22045_s1 + $0xd7c] ss:$100 sps:$4 sm:$0xff]   ;;  %v19793_v40 = vld [vmem:[%s22045_s1 + $0xd84] ss:$100 sps:$4 sm:$0xff]  }
 0x47d   : > { %v19788_v49 = vld [vmem:[%s22045_s1 + $0xd78] ss:$100 sps:$4 sm:$0xff]  }
 0x47f   : > { %11840 = vmatpush1.bf16.msra.mxu0 %v19722_v42  ;;  %12004 = vmatpush1.bf16.msra.mxu1 %v19725_v44  ;;  %v19791_v42 = vld [vmem:[%s22045_s1 + $0xd80] ss:$100 sps:$4 sm:$0xff]  }
 0x480   : > { %11841 = vmatprep.subr.bf16.mxu0 %v19730_v45  ;;  %12005 = vmatprep.subr.bf16.mxu1 %v19733_v30  ;;  %v19796_v44 = vld [vmem:[%s22045_s1 + $0xe44] ss:$100 sps:$4 sm:$0xff]   ;;  %v19799_v45 = vld [vmem:[%s22045_s1 + $0xe4c] ss:$100 sps:$4 sm:$0xff]  }
 0x481   : > { %v19794_v30 = vld [vmem:[%s22045_s1 + $0xe40] ss:$100 sps:$4 sm:$0xff]  }
 0x483   : > { %11842 = vmatpush1.bf16.msra.mxu0 %v19728_v47  ;;  %12006 = vmatpush1.bf16.msra.mxu1 %v19731_v48  ;;  %v19797_v47 = vld [vmem:[%s22045_s1 + $0xe48] ss:$100 sps:$4 sm:$0xff]  }
 0x484   : > { %11843 = vmatprep.subr.bf16.mxu0 %v19736_v50  ;;  %12007 = vmatprep.subr.bf16.mxu1 %v19739_v51  ;;  %v19802_v48 = vld [vmem:[%s22045_s1 + $0xf0c] ss:$100 sps:$4 sm:$0xff]   ;;  %v19805_v50 = vld [vmem:[%s22045_s1 + $0xf14] ss:$100 sps:$4 sm:$0xff]  }
 0x485   : > { %v19800_v51 = vld [vmem:[%s22045_s1 + $0xf08] ss:$100 sps:$4 sm:$0xff]  }
 0x487   : > { %11844 = vmatpush1.bf16.msra.mxu0 %v19734_v52  ;;  %12008 = vmatpush1.bf16.msra.mxu1 %v19737_v34  ;;  %v19803_v52 = vld [vmem:[%s22045_s1 + $0xf10] ss:$100 sps:$4 sm:$0xff]  }
 0x488   : > { %11845 = vmatprep.subr.bf16.mxu0 %v19742_v58  ;;  %12009 = vmatprep.subr.bf16.mxu1 %v19745_v61  ;;  %v19808_v34 = vld [vmem:[%s22045_s1 + $0xfd4] ss:$100 sps:$4 sm:$0xff]   ;;  %v19811_v58 = vld [vmem:[%s22045_s1 + $0xfdc] ss:$100 sps:$4 sm:$0xff]  }
 0x489   : > { %v19806_v61 = vld [vmem:[%s22045_s1 + $0xfd0] ss:$100 sps:$4 sm:$0xff]  }
 0x48b   : > { %11846 = vmatpush1.bf16.msra.mxu0 %v19740_v62  ;;  %12010 = vmatpush1.bf16.msra.mxu1 %v19743_v63  ;;  %v19809_v62 = vld [vmem:[%s22045_s1 + $0xfd8] ss:$100 sps:$4 sm:$0xff]  }
 0x48c   : > { %11847 = vmatprep.subr.bf16.mxu0 %v19748_v0  ;;  %12011 = vmatprep.subr.bf16.mxu1 %v19751_v1  ;;  %v19814_v63 = vld [vmem:[%s22045_s1 + $0x109c] ss:$100 sps:$4 sm:$0xff]   ;;  %v19817_v0 = vld [vmem:[%s22045_s1 + $0x10a4] ss:$100 sps:$4 sm:$0xff]  }
 0x48d   : > { %v19812_v1 = vld [vmem:[%s22045_s1 + $0x1098] ss:$100 sps:$4 sm:$0xff]  }
 0x48f   : > { %11848 = vmatpush1.bf16.msra.mxu0 %v19746_v2  ;;  %12012 = vmatpush1.bf16.msra.mxu1 %v19749_v3  ;;  %v19815_v2 = vld [vmem:[%s22045_s1 + $0x10a0] ss:$100 sps:$4 sm:$0xff]  }
 0x490   : > { %11849 = vmatprep.subr.bf16.mxu0 %v19754_v4  ;;  %12013 = vmatprep.subr.bf16.mxu1 %v19757_v5  ;;  %v19820_v3 = vld [vmem:[%s22045_s1 + $0x1164] ss:$100 sps:$4 sm:$0xff]   ;;  %v19823_v4 = vld [vmem:[%s22045_s1 + $0x116c] ss:$100 sps:$4 sm:$0xff]  }
 0x491   : > { %v19818_v5 = vld [vmem:[%s22045_s1 + $0x1160] ss:$100 sps:$4 sm:$0xff]  }
 0x493   : > { %11850 = vmatpush1.bf16.msra.mxu0 %v19752_v6  ;;  %12014 = vmatpush1.bf16.msra.mxu1 %v19755_v8  ;;  %v19821_v6 = vld [vmem:[%s22045_s1 + $0x1168] ss:$100 sps:$4 sm:$0xff]  }
 0x494   : > { %11851 = vmatprep.subr.bf16.mxu0 %v19760_v13  ;;  %12015 = vmatprep.subr.bf16.mxu1 %v19763_v14  ;;  %v19826_v8 = vld [vmem:[%s22045_s1 + $0x122c] ss:$100 sps:$4 sm:$0xff]   ;;  %v19829_v13 = vld [vmem:[%s22045_s1 + $0x1234] ss:$100 sps:$4 sm:$0xff]  }
 0x495   : > { %v19824_v14 = vld [vmem:[%s22045_s1 + $0x1228] ss:$100 sps:$4 sm:$0xff]  }
 0x497   : > { %11852 = vmatpush1.bf16.msra.mxu0 %v19758_v15  ;;  %12016 = vmatpush1.bf16.msra.mxu1 %v19761_v17  ;;  %v19827_v15 = vld [vmem:[%s22045_s1 + $0x1230] ss:$100 sps:$4 sm:$0xff]  }
 0x498   : > { %11853 = vmatprep.subr.bf16.mxu0 %v19766_v18  ;;  %12017 = vmatprep.subr.bf16.mxu1 %v19769_v19  ;;  %v19832_v17 = vld [vmem:[%s22045_s1 + $0x12f4] ss:$100 sps:$4 sm:$0xff]   ;;  %v19835_v18 = vld [vmem:[%s22045_s1 + $0x12fc] ss:$100 sps:$4 sm:$0xff]  }
 0x499   : > { %v19830_v19 = vld [vmem:[%s22045_s1 + $0x12f0] ss:$100 sps:$4 sm:$0xff]  }
 0x49b   : > { %11854 = vmatpush1.bf16.msra.mxu0 %v19764_v21  ;;  %12018 = vmatpush1.bf16.msra.mxu1 %v19767_v22  ;;  %v19833_v21 = vld [vmem:[%s22045_s1 + $0x12f8] ss:$100 sps:$4 sm:$0xff]  }
 0x49c   : > { %11855 = vmatprep.subr.bf16.mxu0 %v19772_v23  ;;  %12019 = vmatprep.subr.bf16.mxu1 %v19775_v24  ;;  %v19838_v22 = vld [vmem:[%s22045_s1 + $0x13bc] ss:$100 sps:$4 sm:$0xff]   ;;  %v19841_v23 = vld [vmem:[%s22045_s1 + $0x13c4] ss:$100 sps:$4 sm:$0xff]  }
 0x49d   : > { %v19836_v24 = vld [vmem:[%s22045_s1 + $0x13b8] ss:$100 sps:$4 sm:$0xff]  }
 0x49f   : > { %11856 = vmatpush1.bf16.msra.mxu0 %v19770_v26  ;;  %12020 = vmatpush1.bf16.msra.mxu1 %v19773_v28  ;;  %v19839_v26 = vld [vmem:[%s22045_s1 + $0x13c0] ss:$100 sps:$4 sm:$0xff]  }
 0x4a0   : > { %11857 = vmatprep.subr.bf16.mxu0 %v19778_v29  ;;  %12021 = vmatprep.subr.bf16.mxu1 %v19781_v9  ;;  %v19844_v28 = vld [vmem:[%s22045_s1 + $0x1484] ss:$100 sps:$4 sm:$0xff]   ;;  %v19847_v29 = vld [vmem:[%s22045_s1 + $0x148c] ss:$100 sps:$4 sm:$0xff]  }
 0x4a1   : > { %v19842_v9 = vld [vmem:[%s22045_s1 + $0x1480] ss:$100 sps:$4 sm:$0xff]  }
 0x4a3   : > { %11858 = vmatpush1.bf16.msra.mxu0 %v19776_v31  ;;  %12022 = vmatpush1.bf16.msra.mxu1 %v19779_v32  ;;  %v19845_v31 = vld [vmem:[%s22045_s1 + $0x1488] ss:$100 sps:$4 sm:$0xff]  }
 0x4a4   : > { %11868 = vmatprep.subr.bf16.mxu0 %v19784_v33  ;;  %12032 = vmatprep.subr.bf16.mxu1 %v19787_v27  ;;  %v19850_v32 = vld [vmem:[%s22045_s1 + $0x154c] ss:$100 sps:$4 sm:$0xff]   ;;  %v19853_v33 = vld [vmem:[%s22045_s1 + $0x1554] ss:$100 sps:$4 sm:$0xff]  }
 0x4a5   : > { %v19848_v27 = vld [vmem:[%s22045_s1 + $0x1548] ss:$100 sps:$4 sm:$0xff]  }
 0x4a6   : > { %11860 = vmatmul.mubr.bf16.vlgmr.msra.gmra.mrb[12].mxu0 %v22185_v16  ;;  %12024 = vmatmul.mubr.bf16.vlgmr.msra.gmra.mrb[12].mxu1 %v22185_v16 }
 0x4a7   : > { %11869 = vmatpush1.bf16.msra.mxu0 %v19782_v36  ;;  %12033 = vmatpush1.bf16.msra.mxu1 %v19785_v37  ;;  %v19851_v36 = vld [vmem:[%s22045_s1 + $0x1550] ss:$100 sps:$4 sm:$0xff]  }
 0x4a8   : > { %11870 = vmatprep.subr.bf16.mxu0 %v19790_v39  ;;  %12034 = vmatprep.subr.bf16.mxu1 %v19793_v40  ;;  %v19856_v37 = vld [vmem:[%s22045_s1 + $0x1614] ss:$100 sps:$4 sm:$0xff]   ;;  %v19859_v39 = vld [vmem:[%s22045_s1 + $0x161c] ss:$100 sps:$4 sm:$0xff]  }
 0x4a9   : > { %11900 = vmatprep.mubr.bf16.mxu0 %v22190_v20  ;;  %12064 = vmatprep.mubr.bf16.mxu1 %v22190_v20  ;;  %v19854_v40 = vld [vmem:[%s22045_s1 + $0x1610] ss:$100 sps:$4 sm:$0xff]  }
 0x4ab   : > { %11871 = vmatpush1.bf16.msra.mxu0 %v19788_v49  ;;  %12035 = vmatpush1.bf16.msra.mxu1 %v19791_v42  ;;  %v19857_v49 = vld [vmem:[%s22045_s1 + $0x1618] ss:$100 sps:$4 sm:$0xff]  }
 0x4ac   : > { %11872 = vmatprep.subr.bf16.mxu0 %v19796_v44  ;;  %12036 = vmatprep.subr.bf16.mxu1 %v19799_v45  ;;  %v19862_v42 = vld [vmem:[%s22045_s1 + $0x16dc] ss:$100 sps:$4 sm:$0xff]   ;;  %v19865_v44 = vld [vmem:[%s22045_s1 + $0x16e4] ss:$100 sps:$4 sm:$0xff]  }
 0x4ad   : > { %v19860_v45 = vld [vmem:[%s22045_s1 + $0x16d8] ss:$100 sps:$4 sm:$0xff]  }
 0x4af   : > { %11873 = vmatpush1.bf16.msra.mxu0 %v19794_v30  ;;  %12037 = vmatpush1.bf16.msra.mxu1 %v19797_v47  ;;  %v19863_v30 = vld [vmem:[%s22045_s1 + $0x16e0] ss:$100 sps:$4 sm:$0xff]  }
 0x4b0   : > { %11874 = vmatprep.subr.bf16.mxu0 %v19802_v48  ;;  %12038 = vmatprep.subr.bf16.mxu1 %v19805_v50  ;;  %v19868_v47 = vld [vmem:[%s22045_s1 + $0x17a4] ss:$100 sps:$4 sm:$0xff]   ;;  %v19871_v48 = vld [vmem:[%s22045_s1 + $0x17ac] ss:$100 sps:$4 sm:$0xff]  }
 0x4b1   : > { %v19866_v50 = vld [vmem:[%s22045_s1 + $0x17a0] ss:$100 sps:$4 sm:$0xff]  }
 0x4b3   : > { %11875 = vmatpush1.bf16.msra.mxu0 %v19800_v51  ;;  %12039 = vmatpush1.bf16.msra.mxu1 %v19803_v52  ;;  %v19869_v51 = vld [vmem:[%s22045_s1 + $0x17a8] ss:$100 sps:$4 sm:$0xff]  }
 0x4b4   : > { %11876 = vmatprep.subr.bf16.mxu0 %v19808_v34  ;;  %12040 = vmatprep.subr.bf16.mxu1 %v19811_v58  ;;  %v19874_v52 = vld [vmem:[%s22045_s1 + $0x186c] ss:$100 sps:$4 sm:$0xff]   ;;  %v19877_v34 = vld [vmem:[%s22045_s1 + $0x1874] ss:$100 sps:$4 sm:$0xff]  }
 0x4b5   : > { %v19872_v58 = vld [vmem:[%s22045_s1 + $0x1868] ss:$100 sps:$4 sm:$0xff]  }
 0x4b7   : > { %11877 = vmatpush1.bf16.msra.mxu0 %v19806_v61  ;;  %12041 = vmatpush1.bf16.msra.mxu1 %v19809_v62  ;;  %v19875_v61 = vld [vmem:[%s22045_s1 + $0x1870] ss:$100 sps:$4 sm:$0xff]  }
 0x4b8   : > { %11878 = vmatprep.subr.bf16.mxu0 %v19814_v63  ;;  %12042 = vmatprep.subr.bf16.mxu1 %v19817_v0  ;;  %v19880_v62 = vld [vmem:[%s22045_s1 + $0x1934] ss:$100 sps:$4 sm:$0xff]   ;;  %v19883_v63 = vld [vmem:[%s22045_s1 + $0x193c] ss:$100 sps:$4 sm:$0xff]  }
 0x4b9   : > { %v19878_v0 = vld [vmem:[%s22045_s1 + $0x1930] ss:$100 sps:$4 sm:$0xff]  }
 0x4bb   : > { %11879 = vmatpush1.bf16.msra.mxu0 %v19812_v1  ;;  %12043 = vmatpush1.bf16.msra.mxu1 %v19815_v2  ;;  %v19881_v1 = vld [vmem:[%s22045_s1 + $0x1938] ss:$100 sps:$4 sm:$0xff]  }
 0x4bc   : > { %11880 = vmatprep.subr.bf16.mxu0 %v19820_v3  ;;  %12044 = vmatprep.subr.bf16.mxu1 %v19823_v4  ;;  %v19886_v2 = vld [vmem:[%s22045_s1 + $0x19fc] ss:$100 sps:$4 sm:$0xff]   ;;  %v19889_v3 = vld [vmem:[%s22045_s1 + $0x1a04] ss:$100 sps:$4 sm:$0xff]  }
 0x4bd   : > { %v19884_v4 = vld [vmem:[%s22045_s1 + $0x19f8] ss:$100 sps:$4 sm:$0xff]  }
 0x4bf   : > { %11881 = vmatpush1.bf16.msra.mxu0 %v19818_v5  ;;  %12045 = vmatpush1.bf16.msra.mxu1 %v19821_v6  ;;  %v19887_v5 = vld [vmem:[%s22045_s1 + $0x1a00] ss:$100 sps:$4 sm:$0xff]  }
 0x4c0   : > { %11882 = vmatprep.subr.bf16.mxu0 %v19826_v8  ;;  %12046 = vmatprep.subr.bf16.mxu1 %v19829_v13  ;;  %v19892_v6 = vld [vmem:[%s22045_s1 + $0x1ac4] ss:$100 sps:$4 sm:$0xff]   ;;  %v19895_v8 = vld [vmem:[%s22045_s1 + $0x1acc] ss:$100 sps:$4 sm:$0xff]  }
 0x4c1   : > { %v19890_v13 = vld [vmem:[%s22045_s1 + $0x1ac0] ss:$100 sps:$4 sm:$0xff]  }
 0x4c3   : > { %11883 = vmatpush1.bf16.msra.mxu0 %v19824_v14  ;;  %12047 = vmatpush1.bf16.msra.mxu1 %v19827_v15  ;;  %v19893_v14 = vld [vmem:[%s22045_s1 + $0x1ac8] ss:$100 sps:$4 sm:$0xff]  }
 0x4c4   : > { %11884 = vmatprep.subr.bf16.mxu0 %v19832_v17  ;;  %12048 = vmatprep.subr.bf16.mxu1 %v19835_v18  ;;  %v19898_v15 = vld [vmem:[%s22045_s1 + $0x1b8c] ss:$100 sps:$4 sm:$0xff]   ;;  %v19901_v17 = vld [vmem:[%s22045_s1 + $0x1b94] ss:$100 sps:$4 sm:$0xff]  }
 0x4c5   : > { %v19896_v18 = vld [vmem:[%s22045_s1 + $0x1b88] ss:$100 sps:$4 sm:$0xff]  }
 0x4c7   : > { %11885 = vmatpush1.bf16.msra.mxu0 %v19830_v19  ;;  %12049 = vmatpush1.bf16.msra.mxu1 %v19833_v21  ;;  %v19899_v19 = vld [vmem:[%s22045_s1 + $0x1b90] ss:$100 sps:$4 sm:$0xff]  }
 0x4c8   : > { %11886 = vmatprep.subr.bf16.mxu0 %v19838_v22  ;;  %12050 = vmatprep.subr.bf16.mxu1 %v19841_v23  ;;  %v19904_v21 = vld [vmem:[%s22045_s1 + $0x1c54] ss:$100 sps:$4 sm:$0xff]   ;;  %v19907_v22 = vld [vmem:[%s22045_s1 + $0x1c5c] ss:$100 sps:$4 sm:$0xff]  }
 0x4c9   : > { %v19902_v23 = vld [vmem:[%s22045_s1 + $0x1c50] ss:$100 sps:$4 sm:$0xff]  }
 0x4cb   : > { %11887 = vmatpush1.bf16.msra.mxu0 %v19836_v24  ;;  %12051 = vmatpush1.bf16.msra.mxu1 %v19839_v26  ;;  %v19905_v24 = vld [vmem:[%s22045_s1 + $0x1c58] ss:$100 sps:$4 sm:$0xff]  }
 0x4cc   : > { %11888 = vmatprep.subr.bf16.mxu0 %v19844_v28  ;;  %12052 = vmatprep.subr.bf16.mxu1 %v19847_v29  ;;  %v19910_v26 = vld [vmem:[%s22045_s1 + $0x1d1c] ss:$100 sps:$4 sm:$0xff]   ;;  %v19913_v28 = vld [vmem:[%s22045_s1 + $0x1d24] ss:$100 sps:$4 sm:$0xff]  }
 0x4cd   : > { %v19908_v29 = vld [vmem:[%s22045_s1 + $0x1d18] ss:$100 sps:$4 sm:$0xff]  }
 0x4cf   : > { %11889 = vmatpush1.bf16.msra.mxu0 %v19842_v9  ;;  %12053 = vmatpush1.bf16.msra.mxu1 %v19845_v31  ;;  %v19911_v9 = vld [vmem:[%s22045_s1 + $0x1d20] ss:$100 sps:$4 sm:$0xff]  }
 0x4d0   : > { %11890 = vmatprep.subr.bf16.mxu0 %v19850_v32  ;;  %12054 = vmatprep.subr.bf16.mxu1 %v19853_v33  ;;  %v19916_v31 = vld [vmem:[%s22045_s1 + $0x1de4] ss:$100 sps:$4 sm:$0xff]   ;;  %v19919_v32 = vld [vmem:[%s22045_s1 + $0x1dec] ss:$100 sps:$4 sm:$0xff]  }
 0x4d1   : > { %v19914_v33 = vld [vmem:[%s22045_s1 + $0x1de0] ss:$100 sps:$4 sm:$0xff]  }
 0x4d3   : > { %11891 = vmatpush1.bf16.msra.mxu0 %v19848_v27  ;;  %12055 = vmatpush1.bf16.msra.mxu1 %v19851_v36  ;;  %v19917_v27 = vld [vmem:[%s22045_s1 + $0x1de8] ss:$100 sps:$4 sm:$0xff]  }
 0x4d4   : > { %11892 = vmatprep.subr.bf16.mxu0 %v19856_v37  ;;  %12056 = vmatprep.subr.bf16.mxu1 %v19859_v39  ;;  %v19922_v36 = vld [vmem:[%s22045_s1 + $0x1eac] ss:$100 sps:$4 sm:$0xff]   ;;  %v19925_v37 = vld [vmem:[%s22045_s1 + $0x1eb4] ss:$100 sps:$4 sm:$0xff]  }
 0x4d5   : > { %v19920_v39 = vld [vmem:[%s22045_s1 + $0x1ea8] ss:$100 sps:$4 sm:$0xff]  }
 0x4d7   : > { %11893 = vmatpush1.bf16.msra.mxu0 %v19854_v40  ;;  %12057 = vmatpush1.bf16.msra.mxu1 %v19857_v49  ;;  %v19923_v40 = vld [vmem:[%s22045_s1 + $0x1eb0] ss:$100 sps:$4 sm:$0xff]  }
 0x4d8   : > { %11894 = vmatprep.subr.bf16.mxu0 %v19862_v42  ;;  %12058 = vmatprep.subr.bf16.mxu1 %v19865_v44  ;;  %v19928_v49 = vld [vmem:[%s22045_s1 + $0x1f74] ss:$100 sps:$4 sm:$0xff]   ;;  %v19931_v42 = vld [vmem:[%s22045_s1 + $0x1f7c] ss:$100 sps:$4 sm:$0xff]  }
 0x4d9   : > { %v19926_v44 = vld [vmem:[%s22045_s1 + $0x1f70] ss:$100 sps:$4 sm:$0xff]  }
 0x4db   : > { %11895 = vmatpush1.bf16.msra.mxu0 %v19860_v45  ;;  %12059 = vmatpush1.bf16.msra.mxu1 %v19863_v30  ;;  %v19929_v45 = vld [vmem:[%s22045_s1 + $0x1f78] ss:$100 sps:$4 sm:$0xff]  }
 0x4dc   : > { %11896 = vmatprep.subr.bf16.mxu0 %v19868_v47  ;;  %12060 = vmatprep.subr.bf16.mxu1 %v19871_v48  ;;  %v19934_v30 = vld [vmem:[%s22045_s1 + $0x203c] ss:$100 sps:$4 sm:$0xff]   ;;  %v19937_v47 = vld [vmem:[%s22045_s1 + $0x2044] ss:$100 sps:$4 sm:$0xff]  }
 0x4dd   : > { %v19932_v48 = vld [vmem:[%s22045_s1 + $0x2038] ss:$100 sps:$4 sm:$0xff]  }
 0x4df   : > { %11897 = vmatpush1.bf16.msra.mxu0 %v19866_v50  ;;  %12061 = vmatpush1.bf16.msra.mxu1 %v19869_v51  ;;  %v19935_v50 = vld [vmem:[%s22045_s1 + $0x2040] ss:$100 sps:$4 sm:$0xff]  }
 0x4e0   : > { %11898 = vmatprep.subr.bf16.mxu0 %v19874_v52  ;;  %12062 = vmatprep.subr.bf16.mxu1 %v19877_v34  ;;  %v19940_v51 = vld [vmem:[%s22045_s1 + $0x2104] ss:$100 sps:$4 sm:$0xff]   ;;  %v19943_v52 = vld [vmem:[%s22045_s1 + $0x210c] ss:$100 sps:$4 sm:$0xff]  }
 0x4e1   : > { %v19938_v34 = vld [vmem:[%s22045_s1 + $0x2100] ss:$100 sps:$4 sm:$0xff]  }
 0x4e3   : > { %11899 = vmatpush1.bf16.msra.mxu0 %v19872_v58  ;;  %12063 = vmatpush1.bf16.msra.mxu1 %v19875_v61  ;;  %v19941_v58 = vld [vmem:[%s22045_s1 + $0x2108] ss:$100 sps:$4 sm:$0xff]  }
 0x4e4   : > { %11909 = vmatprep.subr.bf16.mxu0 %v19880_v62  ;;  %12073 = vmatprep.subr.bf16.mxu1 %v19883_v63  ;;  %v19946_v61 = vld [vmem:[%s22045_s1 + $0x21cc] ss:$100 sps:$4 sm:$0xff]   ;;  %v19949_v62 = vld [vmem:[%s22045_s1 + $0x21d4] ss:$100 sps:$4 sm:$0xff]  }
 0x4e5   : > { %v19944_v63 = vld [vmem:[%s22045_s1 + $0x21c8] ss:$100 sps:$4 sm:$0xff]  }
 0x4e6   : > { %11901 = vmatmul.mubr.bf16.vlgmr.msra.gmra.mrb[12].mxu0 %v22259_v25  ;;  %12065 = vmatmul.mubr.bf16.vlgmr.msra.gmra.mrb[12].mxu1 %v22259_v25 }
 0x4e7   : > { %11910 = vmatpush1.bf16.msra.mxu0 %v19878_v0  ;;  %12074 = vmatpush1.bf16.msra.mxu1 %v19881_v1  ;;  %v19947_v0 = vld [vmem:[%s22045_s1 + $0x21d0] ss:$100 sps:$4 sm:$0xff]  }
 0x4e8   : > { %11911 = vmatprep.subr.bf16.mxu0 %v19886_v2  ;;  %12075 = vmatprep.subr.bf16.mxu1 %v19889_v3  ;;  %v19952_v1 = vld [vmem:[%s22045_s1 + $0x2294] ss:$100 sps:$4 sm:$0xff]   ;;  %v19955_v2 = vld [vmem:[%s22045_s1 + $0x229c] ss:$100 sps:$4 sm:$0xff]  }
 0x4e9   : > { %11941 = vmatprep.mubr.bf16.mxu0 %v22279_v35  ;;  %12105 = vmatprep.mubr.bf16.mxu1 %v22279_v35  ;;  %v19950_v3 = vld [vmem:[%s22045_s1 + $0x2290] ss:$100 sps:$4 sm:$0xff]  }
 0x4eb   : > { %11912 = vmatpush1.bf16.msra.mxu0 %v19884_v4  ;;  %12076 = vmatpush1.bf16.msra.mxu1 %v19887_v5  ;;  %v19953_v4 = vld [vmem:[%s22045_s1 + $0x2298] ss:$100 sps:$4 sm:$0xff]  }
 0x4ec   : > { %11913 = vmatprep.subr.bf16.mxu0 %v19892_v6  ;;  %12077 = vmatprep.subr.bf16.mxu1 %v19895_v8  ;;  %v19958_v5 = vld [vmem:[%s22045_s1 + $0x235c] ss:$100 sps:$4 sm:$0xff]   ;;  %v19961_v6 = vld [vmem:[%s22045_s1 + $0x2364] ss:$100 sps:$4 sm:$0xff]  }
 0x4ed   : > { %v19956_v8 = vld [vmem:[%s22045_s1 + $0x2358] ss:$100 sps:$4 sm:$0xff]  }
 0x4ef   : > { %11914 = vmatpush1.bf16.msra.mxu0 %v19890_v13  ;;  %12078 = vmatpush1.bf16.msra.mxu1 %v19893_v14  ;;  %v19959_v13 = vld [vmem:[%s22045_s1 + $0x2360] ss:$100 sps:$4 sm:$0xff]  }
 0x4f0   : > { %11915 = vmatprep.subr.bf16.mxu0 %v19898_v15  ;;  %12079 = vmatprep.subr.bf16.mxu1 %v19901_v17  ;;  %v19964_v14 = vld [vmem:[%s22045_s1 + $0x2424] ss:$100 sps:$4 sm:$0xff]   ;;  %v19967_v15 = vld [vmem:[%s22045_s1 + $0x242c] ss:$100 sps:$4 sm:$0xff]  }
 0x4f1   : > { %v19962_v17 = vld [vmem:[%s22045_s1 + $0x2420] ss:$100 sps:$4 sm:$0xff]  }
 0x4f3   : > { %11916 = vmatpush1.bf16.msra.mxu0 %v19896_v18  ;;  %12080 = vmatpush1.bf16.msra.mxu1 %v19899_v19  ;;  %v19965_v18 = vld [vmem:[%s22045_s1 + $0x2428] ss:$100 sps:$4 sm:$0xff]  }
 0x4f4   : > { %11917 = vmatprep.subr.bf16.mxu0 %v19904_v21  ;;  %12081 = vmatprep.subr.bf16.mxu1 %v19907_v22  ;;  %v19970_v19 = vld [vmem:[%s22045_s1 + $0x24ec] ss:$100 sps:$4 sm:$0xff]   ;;  %v19973_v21 = vld [vmem:[%s22045_s1 + $0x24f4] ss:$100 sps:$4 sm:$0xff]  }
 0x4f5   : > { %v19968_v22 = vld [vmem:[%s22045_s1 + $0x24e8] ss:$100 sps:$4 sm:$0xff]  }
 0x4f7   : > { %11918 = vmatpush1.bf16.msra.mxu0 %v19902_v23  ;;  %12082 = vmatpush1.bf16.msra.mxu1 %v19905_v24  ;;  %v19971_v23 = vld [vmem:[%s22045_s1 + $0x24f0] ss:$100 sps:$4 sm:$0xff]  }
 0x4f8   : > { %11919 = vmatprep.subr.bf16.mxu0 %v19910_v26  ;;  %12083 = vmatprep.subr.bf16.mxu1 %v19913_v28  ;;  %v19976_v24 = vld [vmem:[%s22045_s1 + $0x25b4] ss:$100 sps:$4 sm:$0xff]   ;;  %v19979_v26 = vld [vmem:[%s22045_s1 + $0x25bc] ss:$100 sps:$4 sm:$0xff]  }
 0x4f9   : > { %v19974_v28 = vld [vmem:[%s22045_s1 + $0x25b0] ss:$100 sps:$4 sm:$0xff]  }
 0x4fb   : > { %11920 = vmatpush1.bf16.msra.mxu0 %v19908_v29  ;;  %12084 = vmatpush1.bf16.msra.mxu1 %v19911_v9  ;;  %v19977_v29 = vld [vmem:[%s22045_s1 + $0x25b8] ss:$100 sps:$4 sm:$0xff]  }
 0x4fc   : > { %11921 = vmatprep.subr.bf16.mxu0 %v19916_v31  ;;  %12085 = vmatprep.subr.bf16.mxu1 %v19919_v32  ;;  %v19982_v9 = vld [vmem:[%s22045_s1 + $0x267c] ss:$100 sps:$4 sm:$0xff]   ;;  %v19985_v31 = vld [vmem:[%s22045_s1 + $0x2684] ss:$100 sps:$4 sm:$0xff]  }
 0x4fd   : > { %v19980_v32 = vld [vmem:[%s22045_s1 + $0x2678] ss:$100 sps:$4 sm:$0xff]  }
 0x4ff   : > { %11922 = vmatpush1.bf16.msra.mxu0 %v19914_v33  ;;  %12086 = vmatpush1.bf16.msra.mxu1 %v19917_v27  ;;  %v19983_v33 = vld [vmem:[%s22045_s1 + $0x2680] ss:$100 sps:$4 sm:$0xff]  }
 0x500   : > { %11923 = vmatprep.subr.bf16.mxu0 %v19922_v36  ;;  %12087 = vmatprep.subr.bf16.mxu1 %v19925_v37  ;;  %v19988_v27 = vld [vmem:[%s22045_s1 + $0x2744] ss:$100 sps:$4 sm:$0xff]   ;;  %v19991_v36 = vld [vmem:[%s22045_s1 + $0x274c] ss:$100 sps:$4 sm:$0xff]  }
 0x501   : > { %v19986_v37 = vld [vmem:[%s22045_s1 + $0x2740] ss:$100 sps:$4 sm:$0xff]  }
 0x503   : > { %11924 = vmatpush1.bf16.msra.mxu0 %v19920_v39  ;;  %12088 = vmatpush1.bf16.msra.mxu1 %v19923_v40  ;;  %v19989_v39 = vld [vmem:[%s22045_s1 + $0x2748] ss:$100 sps:$4 sm:$0xff]  }
 0x504   : > { %11925 = vmatprep.subr.bf16.mxu0 %v19928_v49  ;;  %12089 = vmatprep.subr.bf16.mxu1 %v19931_v42  ;;  %v19994_v40 = vld [vmem:[%s22045_s1 + $0x280c] ss:$100 sps:$4 sm:$0xff]   ;;  %v19997_v49 = vld [vmem:[%s22045_s1 + $0x2814] ss:$100 sps:$4 sm:$0xff]  }
 0x505   : > { %v19992_v42 = vld [vmem:[%s22045_s1 + $0x2808] ss:$100 sps:$4 sm:$0xff]  }
 0x507   : > { %11926 = vmatpush1.bf16.msra.mxu0 %v19926_v44  ;;  %12090 = vmatpush1.bf16.msra.mxu1 %v19929_v45  ;;  %v19995_v44 = vld [vmem:[%s22045_s1 + $0x2810] ss:$100 sps:$4 sm:$0xff]  }
 0x508   : > { %11927 = vmatprep.subr.bf16.mxu0 %v19934_v30  ;;  %12091 = vmatprep.subr.bf16.mxu1 %v19937_v47  ;;  %v20000_v45 = vld [vmem:[%s22045_s1 + $0x28d4] ss:$100 sps:$4 sm:$0xff]   ;;  %v20003_v30 = vld [vmem:[%s22045_s1 + $0x28dc] ss:$100 sps:$4 sm:$0xff]  }
 0x509   : > { %v19998_v47 = vld [vmem:[%s22045_s1 + $0x28d0] ss:$100 sps:$4 sm:$0xff]  }
 0x50b   : > { %11928 = vmatpush1.bf16.msra.mxu0 %v19932_v48  ;;  %12092 = vmatpush1.bf16.msra.mxu1 %v19935_v50  ;;  %v20001_v48 = vld [vmem:[%s22045_s1 + $0x28d8] ss:$100 sps:$4 sm:$0xff]  }
 0x50c   : > { %11929 = vmatprep.subr.bf16.mxu0 %v19940_v51  ;;  %12093 = vmatprep.subr.bf16.mxu1 %v19943_v52  ;;  %v20006_v50 = vld [vmem:[%s22045_s1 + $0x299c] ss:$100 sps:$4 sm:$0xff]   ;;  %v20009_v51 = vld [vmem:[%s22045_s1 + $0x29a4] ss:$100 sps:$4 sm:$0xff]  }
 0x50d   : > { %v20004_v52 = vld [vmem:[%s22045_s1 + $0x2998] ss:$100 sps:$4 sm:$0xff]  }
 0x50f   : > { %11930 = vmatpush1.bf16.msra.mxu0 %v19938_v34  ;;  %12094 = vmatpush1.bf16.msra.mxu1 %v19941_v58  ;;  %v20007_v34 = vld [vmem:[%s22045_s1 + $0x29a0] ss:$100 sps:$4 sm:$0xff]  }
 0x510   : > { %11931 = vmatprep.subr.bf16.mxu0 %v19946_v61  ;;  %12095 = vmatprep.subr.bf16.mxu1 %v19949_v62  ;;  %v20012_v58 = vld [vmem:[%s22045_s1 + $0x2a64] ss:$100 sps:$4 sm:$0xff]   ;;  %v20015_v61 = vld [vmem:[%s22045_s1 + $0x2a6c] ss:$100 sps:$4 sm:$0xff]  }
 0x513   : > { %11932 = vmatpush1.bf16.msra.mxu0 %v19944_v63  ;;  %12096 = vmatpush1.bf16.msra.mxu1 %v19947_v0 }
 0x514   : > { %11933 = vmatprep.subr.bf16.mxu0 %v19952_v1  ;;  %12097 = vmatprep.subr.bf16.mxu1 %v19955_v2 }
 0x517   : > { %11934 = vmatpush1.bf16.msra.mxu0 %v19950_v3  ;;  %12098 = vmatpush1.bf16.msra.mxu1 %v19953_v4  ;;  %v20010_v4 = vld [vmem:[%s22045_s1 + $0x2a60] ss:$100 sps:$4 sm:$0xff]  }
 0x518   : > { %11935 = vmatprep.subr.bf16.mxu0 %v19958_v5  ;;  %12099 = vmatprep.subr.bf16.mxu1 %v19961_v6  ;;  %v20013_v5 = vld [vmem:[%s22045_s1 + $0x2a68] ss:$100 sps:$4 sm:$0xff]  }
 0x51b   : > { %11936 = vmatpush1.bf16.msra.mxu0 %v19956_v8  ;;  %12100 = vmatpush1.bf16.msra.mxu1 %v19959_v13  ;;  %v20018_v13 = vld [vmem:[%s22045_s1 + $0x2b2c] ss:$100 sps:$4 sm:$0xff]  }
 0x51c   : > { %11937 = vmatprep.subr.bf16.mxu0 %v19964_v14  ;;  %12101 = vmatprep.subr.bf16.mxu1 %v19967_v15  ;;  %v20021_v14 = vld [vmem:[%s22045_s1 + $0x2b34] ss:$100 sps:$4 sm:$0xff]   ;;  %v20016_v15 = vld [vmem:[%s22045_s1 + $0x2b28] ss:$100 sps:$4 sm:$0xff]  }
 0x51f   : > { %11938 = vmatpush1.bf16.msra.mxu0 %v19962_v17  ;;  %12102 = vmatpush1.bf16.msra.mxu1 %v19965_v18  ;;  %v20019_v17 = vld [vmem:[%s22045_s1 + $0x2b30] ss:$100 sps:$4 sm:$0xff]  }
 0x520   : > { %11939 = vmatprep.subr.bf16.mxu0 %v19970_v19  ;;  %12103 = vmatprep.subr.bf16.mxu1 %v19973_v21  ;;  %v20024_v18 = vld [vmem:[%s22045_s1 + $0x2bf4] ss:$100 sps:$4 sm:$0xff]   ;;  %v20027_v19 = vld [vmem:[%s22045_s1 + $0x2bfc] ss:$100 sps:$4 sm:$0xff]  }
 0x521   : > { %v20022_v21 = vld [vmem:[%s22045_s1 + $0x2bf0] ss:$100 sps:$4 sm:$0xff]  }
 0x523   : > { %11940 = vmatpush1.bf16.msra.mxu0 %v19968_v22  ;;  %12104 = vmatpush1.bf16.msra.mxu1 %v19971_v23  ;;  %v20025_v22 = vld [vmem:[%s22045_s1 + $0x2bf8] ss:$100 sps:$4 sm:$0xff]  }
 0x524   : > { %11950 = vmatprep.subr.bf16.mxu0 %v19976_v24  ;;  %12114 = vmatprep.subr.bf16.mxu1 %v19979_v26  ;;  %v20030_v23 = vld [vmem:[%s22045_s1 + $0x2cbc] ss:$100 sps:$4 sm:$0xff]   ;;  %v20033_v24 = vld [vmem:[%s22045_s1 + $0x2cc4] ss:$100 sps:$4 sm:$0xff]  }
 0x525   : > { %v20028_v26 = vld [vmem:[%s22045_s1 + $0x2cb8] ss:$100 sps:$4 sm:$0xff]  }
 0x526   : > { %11942 = vmatmul.mubr.bf16.vlgmr.msra.gmra.mrb[12].mxu0 %v22348_v41  ;;  %12106 = vmatmul.mubr.bf16.vlgmr.msra.gmra.mrb[12].mxu1 %v22348_v41 }
 0x527   : > { %11951 = vmatpush1.bf16.msra.mxu0 %v19974_v28  ;;  %12115 = vmatpush1.bf16.msra.mxu1 %v19977_v29  ;;  %v20031_v28 = vld [vmem:[%s22045_s1 + $0x2cc0] ss:$100 sps:$4 sm:$0xff]  }
 0x528   : > { %11952 = vmatprep.subr.bf16.mxu0 %v19982_v9  ;;  %12116 = vmatprep.subr.bf16.mxu1 %v19985_v31  ;;  %v20036_v29 = vld [vmem:[%s22045_s1 + $0x2d84] ss:$100 sps:$4 sm:$0xff]   ;;  %v20039_v9 = vld [vmem:[%s22045_s1 + $0x2d8c] ss:$100 sps:$4 sm:$0xff]  }
 0x529   : > { %11982 = vmatprep.mubr.bf16.mxu0 %v22354_v46  ;;  %12146 = vmatprep.mubr.bf16.mxu1 %v22354_v46  ;;  %v20034_v31 = vld [vmem:[%s22045_s1 + $0x2d80] ss:$100 sps:$4 sm:$0xff]  }
 0x52b   : > { %11953 = vmatpush1.bf16.msra.mxu0 %v19980_v32  ;;  %12117 = vmatpush1.bf16.msra.mxu1 %v19983_v33  ;;  %v20037_v32 = vld [vmem:[%s22045_s1 + $0x2d88] ss:$100 sps:$4 sm:$0xff]  }
 0x52c   : > { %11954 = vmatprep.subr.bf16.mxu0 %v19988_v27  ;;  %12118 = vmatprep.subr.bf16.mxu1 %v19991_v36  ;;  %v20042_v33 = vld [vmem:[%s22045_s1 + $0x2e4c] ss:$100 sps:$4 sm:$0xff]   ;;  %v20045_v27 = vld [vmem:[%s22045_s1 + $0x2e54] ss:$100 sps:$4 sm:$0xff]  }
 0x52d   : > { %v20040_v36 = vld [vmem:[%s22045_s1 + $0x2e48] ss:$100 sps:$4 sm:$0xff]  }
 0x52f   : > { %11955 = vmatpush1.bf16.msra.mxu0 %v19986_v37  ;;  %12119 = vmatpush1.bf16.msra.mxu1 %v19989_v39  ;;  %v20043_v37 = vld [vmem:[%s22045_s1 + $0x2e50] ss:$100 sps:$4 sm:$0xff]  }
 0x530   : > { %11956 = vmatprep.subr.bf16.mxu0 %v19994_v40  ;;  %12120 = vmatprep.subr.bf16.mxu1 %v19997_v49  ;;  %v20048_v39 = vld [vmem:[%s22045_s1 + $0x2f14] ss:$100 sps:$4 sm:$0xff]   ;;  %v20051_v40 = vld [vmem:[%s22045_s1 + $0x2f1c] ss:$100 sps:$4 sm:$0xff]  }
 0x531   : > { %v20046_v49 = vld [vmem:[%s22045_s1 + $0x2f10] ss:$100 sps:$4 sm:$0xff]  }
 0x533   : > { %11957 = vmatpush1.bf16.msra.mxu0 %v19992_v42  ;;  %12121 = vmatpush1.bf16.msra.mxu1 %v19995_v44  ;;  %v20049_v42 = vld [vmem:[%s22045_s1 + $0x2f18] ss:$100 sps:$4 sm:$0xff]  }
 0x534   : > { %11958 = vmatprep.subr.bf16.mxu0 %v20000_v45  ;;  %12122 = vmatprep.subr.bf16.mxu1 %v20003_v30  ;;  %v20054_v44 = vld [vmem:[%s22045_s1 + $0x2fdc] ss:$100 sps:$4 sm:$0xff]   ;;  %v20057_v45 = vld [vmem:[%s22045_s1 + $0x2fe4] ss:$100 sps:$4 sm:$0xff]  }
 0x535   : > { %v20052_v30 = vld [vmem:[%s22045_s1 + $0x2fd8] ss:$100 sps:$4 sm:$0xff]  }
 0x537   : > { %11959 = vmatpush1.bf16.msra.mxu0 %v19998_v47  ;;  %12123 = vmatpush1.bf16.msra.mxu1 %v20001_v48  ;;  %v20055_v47 = vld [vmem:[%s22045_s1 + $0x2fe0] ss:$100 sps:$4 sm:$0xff]  }
 0x538   : > { %11960 = vmatprep.subr.bf16.mxu0 %v20006_v50  ;;  %12124 = vmatprep.subr.bf16.mxu1 %v20009_v51  ;;  %v20060_v48 = vld [vmem:[%s22045_s1 + $0x30a4] ss:$100 sps:$4 sm:$0xff]   ;;  %v20063_v50 = vld [vmem:[%s22045_s1 + $0x30ac] ss:$100 sps:$4 sm:$0xff]  }
 0x539   : > { %v23221_v62 = vpop.f32.mrb[8].mxu0  ;;  %v23223_v63 = vpop.f32.mrb[8].mxu1  ;;  %v20058_v51 = vld [vmem:[%s22045_s1 + $0x30a0] ss:$100 sps:$4 sm:$0xff]  }
 0x53a   : > { %v23225_v0 = vpop.f32.mrb[9].mxu0  ;;  %v23227_v1 = vpop.f32.mrb[9].mxu1 }
 0x53b   : > { %v11660_v2 = vpop.f32.mrb[10].mxu0  ;;  %v11824_v3 = vpop.f32.mrb[10].mxu1  ;;  %11961 = vmatpush1.bf16.msra.mxu0 %v20004_v52  ;;  %12125 = vmatpush1.bf16.msra.mxu1 %v20007_v34  ;;  %v20061_v52 = vld [vmem:[%s22045_s1 + $0x30a8] ss:$100 sps:$4 sm:$0xff]  }
 0x53c   : > { %v11661_v6 = vpop.f32.mrb[11].mxu0  ;;  %v11825_v8 = vpop.f32.mrb[11].mxu1  ;;  %11962 = vmatprep.subr.bf16.mxu0 %v20012_v58  ;;  %12126 = vmatprep.subr.bf16.mxu1 %v20015_v61  ;;  %v20066_v34 = vld [vmem:[%s22045_s1 + $0x316c] ss:$100 sps:$4 sm:$0xff]   ;;  %v20069_v58 = vld [vmem:[%s22045_s1 + $0x3174] ss:$100 sps:$4 sm:$0xff]  }
 0x53d   : > { %v20064_v61 = vld [vmem:[%s22045_s1 + $0x3168] ss:$100 sps:$4 sm:$0xff]   ;;  %v20067_v2 = vld [vmem:[%s22045_s1 + $0x3170] ss:$100 sps:$4 sm:$0xff]  }
 0x53e   : > { %v20072_v3 = vld [vmem:[%s22045_s1 + $0x44] ss:$100 sps:$4 sm:$0xff]   ;;  %v20078_v8 = vld [vmem:[%s22045_s1 + $0x10c] ss:$100 sps:$4 sm:$0xff]  }
 0x53f   : > { %11963 = vmatpush1.bf16.msra.mxu0 %v20010_v4  ;;  %12127 = vmatpush1.bf16.msra.mxu1 %v20013_v5  ;;  %v20075_v4 = vld [vmem:[%s22045_s1 + $0x4c] ss:$100 sps:$4 sm:$0xff]   ;;  %v20070_v5 = vld [vmem:[%s22045_s1 + $0x40] ss:$100 sps:$4 sm:$0xff]  }
 0x540   : > { %11964 = vmatprep.subr.bf16.mxu0 %v20018_v13  ;;  %12128 = vmatprep.subr.bf16.mxu1 %v20021_v14  ;;  %v20073_v6 = vld [vmem:[%s22045_s1 + $0x48] ss:$100 sps:$4 sm:$0xff]   ;;  %v20081_v13 = vld [vmem:[%s22045_s1 + $0x114] ss:$100 sps:$4 sm:$0xff]  }
 0x541   : > { %v20076_v14 = vld [vmem:[%s22045_s1 + $0x108] ss:$100 sps:$4 sm:$0xff]  }
 0x543   : > { %11965 = vmatpush1.bf16.msra.mxu0 %v20016_v15  ;;  %12129 = vmatpush1.bf16.msra.mxu1 %v20019_v17  ;;  %v20079_v15 = vld [vmem:[%s22045_s1 + $0x110] ss:$100 sps:$4 sm:$0xff]  }
 0x544   : > { %11966 = vmatprep.subr.bf16.mxu0 %v20024_v18  ;;  %12130 = vmatprep.subr.bf16.mxu1 %v20027_v19  ;;  %v20084_v17 = vld [vmem:[%s22045_s1 + $0x1d4] ss:$100 sps:$4 sm:$0xff]   ;;  %v20087_v18 = vld [vmem:[%s22045_s1 + $0x1dc] ss:$100 sps:$4 sm:$0xff]  }
 0x545   : > { %v20082_v19 = vld [vmem:[%s22045_s1 + $0x1d0] ss:$100 sps:$4 sm:$0xff]  }
 0x547   : > { %11967 = vmatpush1.bf16.msra.mxu0 %v20022_v21  ;;  %12131 = vmatpush1.bf16.msra.mxu1 %v20025_v22  ;;  %v20085_v21 = vld [vmem:[%s22045_s1 + $0x1d8] ss:$100 sps:$4 sm:$0xff]  }
 0x548   : > { %11968 = vmatprep.subr.bf16.mxu0 %v20030_v23  ;;  %12132 = vmatprep.subr.bf16.mxu1 %v20033_v24  ;;  %v20090_v22 = vld [vmem:[%s22045_s1 + $0x29c] ss:$100 sps:$4 sm:$0xff]   ;;  %v20093_v23 = vld [vmem:[%s22045_s1 + $0x2a4] ss:$100 sps:$4 sm:$0xff]  }
 0x549   : > { %v20088_v24 = vld [vmem:[%s22045_s1 + $0x298] ss:$100 sps:$4 sm:$0xff]  }
 0x54b   : > { %11969 = vmatpush1.bf16.msra.mxu0 %v20028_v26  ;;  %12133 = vmatpush1.bf16.msra.mxu1 %v20031_v28  ;;  %v20091_v26 = vld [vmem:[%s22045_s1 + $0x2a0] ss:$100 sps:$4 sm:$0xff]  }
 0x54c   : > { %11970 = vmatprep.subr.bf16.mxu0 %v20036_v29  ;;  %12134 = vmatprep.subr.bf16.mxu1 %v20039_v9  ;;  %v20096_v28 = vld [vmem:[%s22045_s1 + $0x364] ss:$100 sps:$4 sm:$0xff]   ;;  %v20099_v29 = vld [vmem:[%s22045_s1 + $0x36c] ss:$100 sps:$4 sm:$0xff]  }
 0x54d   : > { %v20094_v9 = vld [vmem:[%s22045_s1 + $0x360] ss:$100 sps:$4 sm:$0xff]  }
 0x54f   : > { %11971 = vmatpush1.bf16.msra.mxu0 %v20034_v31  ;;  %12135 = vmatpush1.bf16.msra.mxu1 %v20037_v32  ;;  %v20097_v31 = vld [vmem:[%s22045_s1 + $0x368] ss:$100 sps:$4 sm:$0xff]  }
 0x550   : > { %11972 = vmatprep.subr.bf16.mxu0 %v20042_v33  ;;  %12136 = vmatprep.subr.bf16.mxu1 %v20045_v27  ;;  %v20102_v32 = vld [vmem:[%s22045_s1 + $0x42c] ss:$100 sps:$4 sm:$0xff]   ;;  %v20105_v33 = vld [vmem:[%s22045_s1 + $0x434] ss:$100 sps:$4 sm:$0xff]  }
 0x551   : > { %v20100_v27 = vld [vmem:[%s22045_s1 + $0x428] ss:$100 sps:$4 sm:$0xff]  }
 0x553   : > { %11973 = vmatpush1.bf16.msra.mxu0 %v20040_v36  ;;  %12137 = vmatpush1.bf16.msra.mxu1 %v20043_v37  ;;  %v20103_v36 = vld [vmem:[%s22045_s1 + $0x430] ss:$100 sps:$4 sm:$0xff]  }
 0x554   : > { %11974 = vmatprep.subr.bf16.mxu0 %v20048_v39  ;;  %12138 = vmatprep.subr.bf16.mxu1 %v20051_v40  ;;  %v20108_v37 = vld [vmem:[%s22045_s1 + $0x4f4] ss:$100 sps:$4 sm:$0xff]   ;;  %v20111_v39 = vld [vmem:[%s22045_s1 + $0x4fc] ss:$100 sps:$4 sm:$0xff]  }
 0x555   : > { %v20106_v40 = vld [vmem:[%s22045_s1 + $0x4f0] ss:$100 sps:$4 sm:$0xff]  }
 0x557   : > { %11975 = vmatpush1.bf16.msra.mxu0 %v20046_v49  ;;  %12139 = vmatpush1.bf16.msra.mxu1 %v20049_v42  ;;  %v20109_v49 = vld [vmem:[%s22045_s1 + $0x4f8] ss:$100 sps:$4 sm:$0xff]  }
 0x558   : > { %11976 = vmatprep.subr.bf16.mxu0 %v20054_v44  ;;  %12140 = vmatprep.subr.bf16.mxu1 %v20057_v45  ;;  %v20114_v42 = vld [vmem:[%s22045_s1 + $0x5bc] ss:$100 sps:$4 sm:$0xff]   ;;  %v20117_v44 = vld [vmem:[%s22045_s1 + $0x5c4] ss:$100 sps:$4 sm:$0xff]  }
 0x559   : > { %v20112_v45 = vld [vmem:[%s22045_s1 + $0x5b8] ss:$100 sps:$4 sm:$0xff]  }
 0x55b   : > { %11977 = vmatpush1.bf16.msra.mxu0 %v20052_v30  ;;  %12141 = vmatpush1.bf16.msra.mxu1 %v20055_v47  ;;  %v20115_v30 = vld [vmem:[%s22045_s1 + $0x5c0] ss:$100 sps:$4 sm:$0xff]  }
 0x55c   : > { %11978 = vmatprep.subr.bf16.mxu0 %v20060_v48  ;;  %12142 = vmatprep.subr.bf16.mxu1 %v20063_v50  ;;  %v20120_v47 = vld [vmem:[%s22045_s1 + $0x684] ss:$100 sps:$4 sm:$0xff]   ;;  %v20123_v48 = vld [vmem:[%s22045_s1 + $0x68c] ss:$100 sps:$4 sm:$0xff]  }
 0x55d   : > { %v20118_v50 = vld [vmem:[%s22045_s1 + $0x680] ss:$100 sps:$4 sm:$0xff]  }
 0x55f   : > { %11979 = vmatpush1.bf16.msra.mxu0 %v20058_v51  ;;  %12143 = vmatpush1.bf16.msra.mxu1 %v20061_v52  ;;  %v20121_v51 = vld [vmem:[%s22045_s1 + $0x688] ss:$100 sps:$4 sm:$0xff]  }
 0x560   : > { %11980 = vmatprep.subr.bf16.mxu0 %v20066_v34  ;;  %12144 = vmatprep.subr.bf16.mxu1 %v20069_v58  ;;  %v20126_v52 = vld [vmem:[%s22045_s1 + $0x74c] ss:$100 sps:$4 sm:$0xff]   ;;  %v20129_v34 = vld [vmem:[%s22045_s1 + $0x754] ss:$100 sps:$4 sm:$0xff]  }
 0x561   : > { %v20124_v58 = vld [vmem:[%s22045_s1 + $0x748] ss:$100 sps:$4 sm:$0xff]  }
 0x563   : > { %11981 = vmatpush1.bf16.msra.mxu0 %v20064_v61  ;;  %12145 = vmatpush1.bf16.msra.mxu1 %v20067_v2  ;;  %v20127_v61 = vld [vmem:[%s22045_s1 + $0x750] ss:$100 sps:$4 sm:$0xff]  }
 0x564   : > { %12155 = vmatprep.subr.bf16.mxu0 %v20072_v3  ;;  %12319 = vmatprep.subr.bf16.mxu1 %v20075_v4  ;;  %v20132_v2 = vld [vmem:[%s22045_s1 + $0x814] ss:$100 sps:$4 sm:$0xff]   ;;  %v20135_v3 = vld [vmem:[%s22045_s1 + $0x81c] ss:$100 sps:$4 sm:$0xff]  }
 0x565   : > { %v20130_v4 = vld [vmem:[%s22045_s1 + $0x810] ss:$100 sps:$4 sm:$0xff]  }
 0x566   : > { %11983 = vmatmul.mubr.bf16.vlgmr.msra.gmra.mrb[12].mxu0 %v22422_v53  ;;  %12147 = vmatmul.mubr.bf16.vlgmr.msra.gmra.mrb[12].mxu1 %v22422_v53 }
 0x567   : > { %12156 = vmatpush1.bf16.msra.mxu0 %v20070_v5  ;;  %12320 = vmatpush1.bf16.msra.mxu1 %v20073_v6  ;;  %v20133_v5 = vld [vmem:[%s22045_s1 + $0x818] ss:$100 sps:$4 sm:$0xff]  }
 0x568   : > { %12157 = vmatprep.subr.bf16.mxu0 %v20078_v8  ;;  %12321 = vmatprep.subr.bf16.mxu1 %v20081_v13  ;;  %v20138_v6 = vld [vmem:[%s22045_s1 + $0x8dc] ss:$100 sps:$4 sm:$0xff]   ;;  %v20141_v8 = vld [vmem:[%s22045_s1 + $0x8e4] ss:$100 sps:$4 sm:$0xff]  }
 0x569   : > { %12187 = vmatprep.mubr.bf16.mxu0 %v22160_v60  ;;  %12351 = vmatprep.mubr.bf16.mxu1 %v22160_v60  ;;  %v20136_v13 = vld [vmem:[%s22045_s1 + $0x8d8] ss:$100 sps:$4 sm:$0xff]  }
 0x56b   : > { %12158 = vmatpush1.bf16.msra.mxu0 %v20076_v14  ;;  %12322 = vmatpush1.bf16.msra.mxu1 %v20079_v15  ;;  %v20139_v14 = vld [vmem:[%s22045_s1 + $0x8e0] ss:$100 sps:$4 sm:$0xff]  }
 0x56c   : > { %12159 = vmatprep.subr.bf16.mxu0 %v20084_v17  ;;  %12323 = vmatprep.subr.bf16.mxu1 %v20087_v18  ;;  %v20144_v15 = vld [vmem:[%s22045_s1 + $0x9a4] ss:$100 sps:$4 sm:$0xff]   ;;  %v20147_v17 = vld [vmem:[%s22045_s1 + $0x9ac] ss:$100 sps:$4 sm:$0xff]  }
 0x56d   : > { %v20142_v18 = vld [vmem:[%s22045_s1 + $0x9a0] ss:$100 sps:$4 sm:$0xff]  }
 0x56f   : > { %12160 = vmatpush1.bf16.msra.mxu0 %v20082_v19  ;;  %12324 = vmatpush1.bf16.msra.mxu1 %v20085_v21  ;;  %v20145_v19 = vld [vmem:[%s22045_s1 + $0x9a8] ss:$100 sps:$4 sm:$0xff]  }
 0x570   : > { %12161 = vmatprep.subr.bf16.mxu0 %v20090_v22  ;;  %12325 = vmatprep.subr.bf16.mxu1 %v20093_v23  ;;  %v20150_v21 = vld [vmem:[%s22045_s1 + $0xa6c] ss:$100 sps:$4 sm:$0xff]   ;;  %v20153_v22 = vld [vmem:[%s22045_s1 + $0xa74] ss:$100 sps:$4 sm:$0xff]  }
 0x571   : > { %v20148_v23 = vld [vmem:[%s22045_s1 + $0xa68] ss:$100 sps:$4 sm:$0xff]  }
 0x573   : > { %12162 = vmatpush1.bf16.msra.mxu0 %v20088_v24  ;;  %12326 = vmatpush1.bf16.msra.mxu1 %v20091_v26  ;;  %v20151_v24 = vld [vmem:[%s22045_s1 + $0xa70] ss:$100 sps:$4 sm:$0xff]  }
 0x574   : > { %12163 = vmatprep.subr.bf16.mxu0 %v20096_v28  ;;  %12327 = vmatprep.subr.bf16.mxu1 %v20099_v29  ;;  %v20156_v26 = vld [vmem:[%s22045_s1 + $0xb34] ss:$100 sps:$4 sm:$0xff]   ;;  %v20159_v28 = vld [vmem:[%s22045_s1 + $0xb3c] ss:$100 sps:$4 sm:$0xff]  }
 0x575   : > { %v20154_v29 = vld [vmem:[%s22045_s1 + $0xb30] ss:$100 sps:$4 sm:$0xff]  }
 0x577   : > { %12164 = vmatpush1.bf16.msra.mxu0 %v20094_v9  ;;  %12328 = vmatpush1.bf16.msra.mxu1 %v20097_v31  ;;  %v20157_v9 = vld [vmem:[%s22045_s1 + $0xb38] ss:$100 sps:$4 sm:$0xff]  }
 0x578   : > { %12165 = vmatprep.subr.bf16.mxu0 %v20102_v32  ;;  %12329 = vmatprep.subr.bf16.mxu1 %v20105_v33  ;;  %v20162_v31 = vld [vmem:[%s22045_s1 + $0xbfc] ss:$100 sps:$4 sm:$0xff]   ;;  %v20165_v32 = vld [vmem:[%s22045_s1 + $0xc04] ss:$100 sps:$4 sm:$0xff]  }
 0x579   : > { %v20160_v33 = vld [vmem:[%s22045_s1 + $0xbf8] ss:$100 sps:$4 sm:$0xff]  }
 0x57b   : > { %12166 = vmatpush1.bf16.msra.mxu0 %v20100_v27  ;;  %12330 = vmatpush1.bf16.msra.mxu1 %v20103_v36  ;;  %v20163_v27 = vld [vmem:[%s22045_s1 + $0xc00] ss:$100 sps:$4 sm:$0xff]  }
 0x57c   : > { %12167 = vmatprep.subr.bf16.mxu0 %v20108_v37  ;;  %12331 = vmatprep.subr.bf16.mxu1 %v20111_v39  ;;  %v20168_v36 = vld [vmem:[%s22045_s1 + $0xcc4] ss:$100 sps:$4 sm:$0xff]   ;;  %v20171_v37 = vld [vmem:[%s22045_s1 + $0xccc] ss:$100 sps:$4 sm:$0xff]  }
 0x57d   : > { %v20166_v39 = vld [vmem:[%s22045_s1 + $0xcc0] ss:$100 sps:$4 sm:$0xff]  }
 0x57f   : > { %12168 = vmatpush1.bf16.msra.mxu0 %v20106_v40  ;;  %12332 = vmatpush1.bf16.msra.mxu1 %v20109_v49  ;;  %v20169_v40 = vld [vmem:[%s22045_s1 + $0xcc8] ss:$100 sps:$4 sm:$0xff]  }
 0x580   : > { %12169 = vmatprep.subr.bf16.mxu0 %v20114_v42  ;;  %12333 = vmatprep.subr.bf16.mxu1 %v20117_v44  ;;  %v20174_v49 = vld [vmem:[%s22045_s1 + $0xd8c] ss:$100 sps:$4 sm:$0xff]   ;;  %v20177_v42 = vld [vmem:[%s22045_s1 + $0xd94] ss:$100 sps:$4 sm:$0xff]  }
 0x581   : > { %v20172_v44 = vld [vmem:[%s22045_s1 + $0xd88] ss:$100 sps:$4 sm:$0xff]  }
 0x583   : > { %12170 = vmatpush1.bf16.msra.mxu0 %v20112_v45  ;;  %12334 = vmatpush1.bf16.msra.mxu1 %v20115_v30  ;;  %v20175_v45 = vld [vmem:[%s22045_s1 + $0xd90] ss:$100 sps:$4 sm:$0xff]  }
 0x584   : > { %12171 = vmatprep.subr.bf16.mxu0 %v20120_v47  ;;  %12335 = vmatprep.subr.bf16.mxu1 %v20123_v48  ;;  %v20180_v30 = vld [vmem:[%s22045_s1 + $0xe54] ss:$100 sps:$4 sm:$0xff]   ;;  %v20183_v47 = vld [vmem:[%s22045_s1 + $0xe5c] ss:$100 sps:$4 sm:$0xff]  }
 0x585   : > { %v20178_v48 = vld [vmem:[%s22045_s1 + $0xe50] ss:$100 sps:$4 sm:$0xff]  }
 0x587   : > { %12172 = vmatpush1.bf16.msra.mxu0 %v20118_v50  ;;  %12336 = vmatpush1.bf16.msra.mxu1 %v20121_v51  ;;  %v20181_v50 = vld [vmem:[%s22045_s1 + $0xe58] ss:$100 sps:$4 sm:$0xff]  }
 0x588   : > { %12173 = vmatprep.subr.bf16.mxu0 %v20126_v52  ;;  %12337 = vmatprep.subr.bf16.mxu1 %v20129_v34  ;;  %v20186_v51 = vld [vmem:[%s22045_s1 + $0xf1c] ss:$100 sps:$4 sm:$0xff]   ;;  %v20189_v52 = vld [vmem:[%s22045_s1 + $0xf24] ss:$100 sps:$4 sm:$0xff]  }
 0x589   : > { %v20184_v34 = vld [vmem:[%s22045_s1 + $0xf18] ss:$100 sps:$4 sm:$0xff]  }
 0x58b   : > { %12174 = vmatpush1.bf16.msra.mxu0 %v20124_v58  ;;  %12338 = vmatpush1.bf16.msra.mxu1 %v20127_v61  ;;  %v20187_v58 = vld [vmem:[%s22045_s1 + $0xf20] ss:$100 sps:$4 sm:$0xff]  }
 0x58c   : > { %12175 = vmatprep.subr.bf16.mxu0 %v20132_v2  ;;  %12339 = vmatprep.subr.bf16.mxu1 %v20135_v3  ;;  %v20192_v61 = vld [vmem:[%s22045_s1 + $0xfe4] ss:$100 sps:$4 sm:$0xff]   ;;  %v20195_v2 = vld [vmem:[%s22045_s1 + $0xfec] ss:$100 sps:$4 sm:$0xff]  }
 0x58d   : > { %v20190_v3 = vld [vmem:[%s22045_s1 + $0xfe0] ss:$100 sps:$4 sm:$0xff]  }
 0x58f   : > { %12176 = vmatpush1.bf16.msra.mxu0 %v20130_v4  ;;  %12340 = vmatpush1.bf16.msra.mxu1 %v20133_v5  ;;  %v20193_v4 = vld [vmem:[%s22045_s1 + $0xfe8] ss:$100 sps:$4 sm:$0xff]  }
 0x590   : > { %12177 = vmatprep.subr.bf16.mxu0 %v20138_v6  ;;  %12341 = vmatprep.subr.bf16.mxu1 %v20141_v8  ;;  %v20198_v5 = vld [vmem:[%s22045_s1 + $0x10ac] ss:$100 sps:$4 sm:$0xff]   ;;  %v20201_v6 = vld [vmem:[%s22045_s1 + $0x10b4] ss:$100 sps:$4 sm:$0xff]  }
 0x591   : > { %v20196_v8 = vld [vmem:[%s22045_s1 + $0x10a8] ss:$100 sps:$4 sm:$0xff]  }
 0x593   : > { %12178 = vmatpush1.bf16.msra.mxu0 %v20136_v13  ;;  %12342 = vmatpush1.bf16.msra.mxu1 %v20139_v14  ;;  %v20199_v13 = vld [vmem:[%s22045_s1 + $0x10b0] ss:$100 sps:$4 sm:$0xff]  }
 0x594   : > { %12179 = vmatprep.subr.bf16.mxu0 %v20144_v15  ;;  %12343 = vmatprep.subr.bf16.mxu1 %v20147_v17  ;;  %v20204_v14 = vld [vmem:[%s22045_s1 + $0x1174] ss:$100 sps:$4 sm:$0xff]   ;;  %v20207_v15 = vld [vmem:[%s22045_s1 + $0x117c] ss:$100 sps:$4 sm:$0xff]  }
 0x595   : > { %v20202_v17 = vld [vmem:[%s22045_s1 + $0x1170] ss:$100 sps:$4 sm:$0xff]  }
 0x597   : > { %12180 = vmatpush1.bf16.msra.mxu0 %v20142_v18  ;;  %12344 = vmatpush1.bf16.msra.mxu1 %v20145_v19  ;;  %v20205_v18 = vld [vmem:[%s22045_s1 + $0x1178] ss:$100 sps:$4 sm:$0xff]  }
 0x598   : > { %12181 = vmatprep.subr.bf16.mxu0 %v20150_v21  ;;  %12345 = vmatprep.subr.bf16.mxu1 %v20153_v22  ;;  %v20210_v19 = vld [vmem:[%s22045_s1 + $0x123c] ss:$100 sps:$4 sm:$0xff]   ;;  %v20213_v21 = vld [vmem:[%s22045_s1 + $0x1244] ss:$100 sps:$4 sm:$0xff]  }
 0x599   : > { %v20208_v22 = vld [vmem:[%s22045_s1 + $0x1238] ss:$100 sps:$4 sm:$0xff]  }
 0x59b   : > { %12182 = vmatpush1.bf16.msra.mxu0 %v20148_v23  ;;  %12346 = vmatpush1.bf16.msra.mxu1 %v20151_v24  ;;  %v20211_v23 = vld [vmem:[%s22045_s1 + $0x1240] ss:$100 sps:$4 sm:$0xff]  }
 0x59c   : > { %12183 = vmatprep.subr.bf16.mxu0 %v20156_v26  ;;  %12347 = vmatprep.subr.bf16.mxu1 %v20159_v28  ;;  %v20216_v24 = vld [vmem:[%s22045_s1 + $0x1304] ss:$100 sps:$4 sm:$0xff]   ;;  %v20219_v26 = vld [vmem:[%s22045_s1 + $0x130c] ss:$100 sps:$4 sm:$0xff]  }
 0x59d   : > { %v20214_v28 = vld [vmem:[%s22045_s1 + $0x1300] ss:$100 sps:$4 sm:$0xff]  }
 0x59f   : > { %12184 = vmatpush1.bf16.msra.mxu0 %v20154_v29  ;;  %12348 = vmatpush1.bf16.msra.mxu1 %v20157_v9  ;;  %v20217_v29 = vld [vmem:[%s22045_s1 + $0x1308] ss:$100 sps:$4 sm:$0xff]  }
 0x5a0   : > { %12185 = vmatprep.subr.bf16.mxu0 %v20162_v31  ;;  %12349 = vmatprep.subr.bf16.mxu1 %v20165_v32  ;;  %v20222_v9 = vld [vmem:[%s22045_s1 + $0x13cc] ss:$100 sps:$4 sm:$0xff]   ;;  %v20225_v31 = vld [vmem:[%s22045_s1 + $0x13d4] ss:$100 sps:$4 sm:$0xff]  }
 0x5a1   : > { %v20220_v32 = vld [vmem:[%s22045_s1 + $0x13c8] ss:$100 sps:$4 sm:$0xff]  }
 0x5a3   : > { %12186 = vmatpush1.bf16.msra.mxu0 %v20160_v33  ;;  %12350 = vmatpush1.bf16.msra.mxu1 %v20163_v27  ;;  %v20223_v33 = vld [vmem:[%s22045_s1 + $0x13d0] ss:$100 sps:$4 sm:$0xff]  }
 0x5a4   : > { %12196 = vmatprep.subr.bf16.mxu0 %v20168_v36  ;;  %12360 = vmatprep.subr.bf16.mxu1 %v20171_v37  ;;  %v20228_v27 = vld [vmem:[%s22045_s1 + $0x1494] ss:$100 sps:$4 sm:$0xff]   ;;  %v20231_v36 = vld [vmem:[%s22045_s1 + $0x149c] ss:$100 sps:$4 sm:$0xff]  }
 0x5a5   : > { %v20226_v37 = vld [vmem:[%s22045_s1 + $0x1490] ss:$100 sps:$4 sm:$0xff]  }
 0x5a6   : > { %12188 = vmatmul.mubr.bf16.vlgmr.msra.gmra.mrb[16].mxu0 %v22185_v16  ;;  %12352 = vmatmul.mubr.bf16.vlgmr.msra.gmra.mrb[16].mxu1 %v22185_v16 }
 0x5a7   : > { %12197 = vmatpush1.bf16.msra.mxu0 %v20166_v39  ;;  %12361 = vmatpush1.bf16.msra.mxu1 %v20169_v40  ;;  %v20229_v39 = vld [vmem:[%s22045_s1 + $0x1498] ss:$100 sps:$4 sm:$0xff]  }
 0x5a8   : > { %12198 = vmatprep.subr.bf16.mxu0 %v20174_v49  ;;  %12362 = vmatprep.subr.bf16.mxu1 %v20177_v42  ;;  %v20234_v40 = vld [vmem:[%s22045_s1 + $0x155c] ss:$100 sps:$4 sm:$0xff]   ;;  %v20237_v49 = vld [vmem:[%s22045_s1 + $0x1564] ss:$100 sps:$4 sm:$0xff]  }
 0x5a9   : > { %12228 = vmatprep.mubr.bf16.mxu0 %v22190_v20  ;;  %12392 = vmatprep.mubr.bf16.mxu1 %v22190_v20  ;;  %v20232_v42 = vld [vmem:[%s22045_s1 + $0x1558] ss:$100 sps:$4 sm:$0xff]  }
 0x5ab   : > { %12199 = vmatpush1.bf16.msra.mxu0 %v20172_v44  ;;  %12363 = vmatpush1.bf16.msra.mxu1 %v20175_v45  ;;  %v20235_v44 = vld [vmem:[%s22045_s1 + $0x1560] ss:$100 sps:$4 sm:$0xff]  }
 0x5ac   : > { %12200 = vmatprep.subr.bf16.mxu0 %v20180_v30  ;;  %12364 = vmatprep.subr.bf16.mxu1 %v20183_v47  ;;  %v20240_v45 = vld [vmem:[%s22045_s1 + $0x1624] ss:$100 sps:$4 sm:$0xff]   ;;  %v20243_v30 = vld [vmem:[%s22045_s1 + $0x162c] ss:$100 sps:$4 sm:$0xff]  }
 0x5ad   : > { %v20238_v47 = vld [vmem:[%s22045_s1 + $0x1620] ss:$100 sps:$4 sm:$0xff]  }
 0x5af   : > { %12201 = vmatpush1.bf16.msra.mxu0 %v20178_v48  ;;  %12365 = vmatpush1.bf16.msra.mxu1 %v20181_v50  ;;  %v20241_v48 = vld [vmem:[%s22045_s1 + $0x1628] ss:$100 sps:$4 sm:$0xff]  }
 0x5b0   : > { %12202 = vmatprep.subr.bf16.mxu0 %v20186_v51  ;;  %12366 = vmatprep.subr.bf16.mxu1 %v20189_v52  ;;  %v20246_v50 = vld [vmem:[%s22045_s1 + $0x16ec] ss:$100 sps:$4 sm:$0xff]   ;;  %v20249_v51 = vld [vmem:[%s22045_s1 + $0x16f4] ss:$100 sps:$4 sm:$0xff]  }
 0x5b1   : > { %v20244_v52 = vld [vmem:[%s22045_s1 + $0x16e8] ss:$100 sps:$4 sm:$0xff]  }
 0x5b3   : > { %12203 = vmatpush1.bf16.msra.mxu0 %v20184_v34  ;;  %12367 = vmatpush1.bf16.msra.mxu1 %v20187_v58  ;;  %v20247_v34 = vld [vmem:[%s22045_s1 + $0x16f0] ss:$100 sps:$4 sm:$0xff]  }
 0x5b4   : > { %12204 = vmatprep.subr.bf16.mxu0 %v20192_v61  ;;  %12368 = vmatprep.subr.bf16.mxu1 %v20195_v2  ;;  %v20252_v58 = vld [vmem:[%s22045_s1 + $0x17b4] ss:$100 sps:$4 sm:$0xff]   ;;  %v20255_v61 = vld [vmem:[%s22045_s1 + $0x17bc] ss:$100 sps:$4 sm:$0xff]  }
 0x5b5   : > { %v20250_v2 = vld [vmem:[%s22045_s1 + $0x17b0] ss:$100 sps:$4 sm:$0xff]  }
 0x5b7   : > { %12205 = vmatpush1.bf16.msra.mxu0 %v20190_v3  ;;  %12369 = vmatpush1.bf16.msra.mxu1 %v20193_v4  ;;  %v20253_v3 = vld [vmem:[%s22045_s1 + $0x17b8] ss:$100 sps:$4 sm:$0xff]  }
 0x5b8   : > { %12206 = vmatprep.subr.bf16.mxu0 %v20198_v5  ;;  %12370 = vmatprep.subr.bf16.mxu1 %v20201_v6  ;;  %v20258_v4 = vld [vmem:[%s22045_s1 + $0x187c] ss:$100 sps:$4 sm:$0xff]   ;;  %v20261_v5 = vld [vmem:[%s22045_s1 + $0x1884] ss:$100 sps:$4 sm:$0xff]  }
 0x5b9   : > { %v20256_v6 = vld [vmem:[%s22045_s1 + $0x1878] ss:$100 sps:$4 sm:$0xff]  }
 0x5bb   : > { %12207 = vmatpush1.bf16.msra.mxu0 %v20196_v8  ;;  %12371 = vmatpush1.bf16.msra.mxu1 %v20199_v13  ;;  %v20259_v8 = vld [vmem:[%s22045_s1 + $0x1880] ss:$100 sps:$4 sm:$0xff]  }
 0x5bc   : > { %12208 = vmatprep.subr.bf16.mxu0 %v20204_v14  ;;  %12372 = vmatprep.subr.bf16.mxu1 %v20207_v15  ;;  %v20264_v13 = vld [vmem:[%s22045_s1 + $0x1944] ss:$100 sps:$4 sm:$0xff]   ;;  %v20267_v14 = vld [vmem:[%s22045_s1 + $0x194c] ss:$100 sps:$4 sm:$0xff]  }
 0x5bd   : > { %v20262_v15 = vld [vmem:[%s22045_s1 + $0x1940] ss:$100 sps:$4 sm:$0xff]  }
 0x5bf   : > { %12209 = vmatpush1.bf16.msra.mxu0 %v20202_v17  ;;  %12373 = vmatpush1.bf16.msra.mxu1 %v20205_v18  ;;  %v20265_v17 = vld [vmem:[%s22045_s1 + $0x1948] ss:$100 sps:$4 sm:$0xff]  }
 0x5c0   : > { %12210 = vmatprep.subr.bf16.mxu0 %v20210_v19  ;;  %12374 = vmatprep.subr.bf16.mxu1 %v20213_v21  ;;  %v20270_v18 = vld [vmem:[%s22045_s1 + $0x1a0c] ss:$100 sps:$4 sm:$0xff]   ;;  %v20273_v19 = vld [vmem:[%s22045_s1 + $0x1a14] ss:$100 sps:$4 sm:$0xff]  }
 0x5c1   : > { %v20268_v21 = vld [vmem:[%s22045_s1 + $0x1a08] ss:$100 sps:$4 sm:$0xff]  }
 0x5c3   : > { %12211 = vmatpush1.bf16.msra.mxu0 %v20208_v22  ;;  %12375 = vmatpush1.bf16.msra.mxu1 %v20211_v23  ;;  %v20271_v22 = vld [vmem:[%s22045_s1 + $0x1a10] ss:$100 sps:$4 sm:$0xff]  }
 0x5c4   : > { %12212 = vmatprep.subr.bf16.mxu0 %v20216_v24  ;;  %12376 = vmatprep.subr.bf16.mxu1 %v20219_v26  ;;  %v20276_v23 = vld [vmem:[%s22045_s1 + $0x1ad4] ss:$100 sps:$4 sm:$0xff]   ;;  %v20279_v24 = vld [vmem:[%s22045_s1 + $0x1adc] ss:$100 sps:$4 sm:$0xff]  }
 0x5c5   : > { %v20274_v26 = vld [vmem:[%s22045_s1 + $0x1ad0] ss:$100 sps:$4 sm:$0xff]  }
 0x5c7   : > { %12213 = vmatpush1.bf16.msra.mxu0 %v20214_v28  ;;  %12377 = vmatpush1.bf16.msra.mxu1 %v20217_v29  ;;  %v20277_v28 = vld [vmem:[%s22045_s1 + $0x1ad8] ss:$100 sps:$4 sm:$0xff]  }
 0x5c8   : > { %12214 = vmatprep.subr.bf16.mxu0 %v20222_v9  ;;  %12378 = vmatprep.subr.bf16.mxu1 %v20225_v31  ;;  %v20282_v29 = vld [vmem:[%s22045_s1 + $0x1b9c] ss:$100 sps:$4 sm:$0xff]   ;;  %v20285_v9 = vld [vmem:[%s22045_s1 + $0x1ba4] ss:$100 sps:$4 sm:$0xff]  }
 0x5c9   : > { %v20280_v31 = vld [vmem:[%s22045_s1 + $0x1b98] ss:$100 sps:$4 sm:$0xff]  }
 0x5cb   : > { %12215 = vmatpush1.bf16.msra.mxu0 %v20220_v32  ;;  %12379 = vmatpush1.bf16.msra.mxu1 %v20223_v33  ;;  %v20283_v32 = vld [vmem:[%s22045_s1 + $0x1ba0] ss:$100 sps:$4 sm:$0xff]  }
 0x5cc   : > { %12216 = vmatprep.subr.bf16.mxu0 %v20228_v27  ;;  %12380 = vmatprep.subr.bf16.mxu1 %v20231_v36  ;;  %v20288_v33 = vld [vmem:[%s22045_s1 + $0x1c64] ss:$100 sps:$4 sm:$0xff]   ;;  %v20291_v27 = vld [vmem:[%s22045_s1 + $0x1c6c] ss:$100 sps:$4 sm:$0xff]  }
 0x5cd   : > { %v20286_v36 = vld [vmem:[%s22045_s1 + $0x1c60] ss:$100 sps:$4 sm:$0xff]  }
 0x5cf   : > { %12217 = vmatpush1.bf16.msra.mxu0 %v20226_v37  ;;  %12381 = vmatpush1.bf16.msra.mxu1 %v20229_v39  ;;  %v20289_v37 = vld [vmem:[%s22045_s1 + $0x1c68] ss:$100 sps:$4 sm:$0xff]  }
 0x5d0   : > { %12218 = vmatprep.subr.bf16.mxu0 %v20234_v40  ;;  %12382 = vmatprep.subr.bf16.mxu1 %v20237_v49  ;;  %v20294_v39 = vld [vmem:[%s22045_s1 + $0x1d2c] ss:$100 sps:$4 sm:$0xff]   ;;  %v20297_v40 = vld [vmem:[%s22045_s1 + $0x1d34] ss:$100 sps:$4 sm:$0xff]  }
 0x5d1   : > { %v20292_v49 = vld [vmem:[%s22045_s1 + $0x1d28] ss:$100 sps:$4 sm:$0xff]  }
 0x5d3   : > { %12219 = vmatpush1.bf16.msra.mxu0 %v20232_v42  ;;  %12383 = vmatpush1.bf16.msra.mxu1 %v20235_v44  ;;  %v20295_v42 = vld [vmem:[%s22045_s1 + $0x1d30] ss:$100 sps:$4 sm:$0xff]  }
 0x5d4   : > { %12220 = vmatprep.subr.bf16.mxu0 %v20240_v45  ;;  %12384 = vmatprep.subr.bf16.mxu1 %v20243_v30  ;;  %v20300_v44 = vld [vmem:[%s22045_s1 + $0x1df4] ss:$100 sps:$4 sm:$0xff]   ;;  %v20303_v45 = vld [vmem:[%s22045_s1 + $0x1dfc] ss:$100 sps:$4 sm:$0xff]  }
 0x5d5   : > { %v20298_v30 = vld [vmem:[%s22045_s1 + $0x1df0] ss:$100 sps:$4 sm:$0xff]  }
 0x5d7   : > { %12221 = vmatpush1.bf16.msra.mxu0 %v20238_v47  ;;  %12385 = vmatpush1.bf16.msra.mxu1 %v20241_v48  ;;  %v20301_v47 = vld [vmem:[%s22045_s1 + $0x1df8] ss:$100 sps:$4 sm:$0xff]  }
 0x5d8   : > { %12222 = vmatprep.subr.bf16.mxu0 %v20246_v50  ;;  %12386 = vmatprep.subr.bf16.mxu1 %v20249_v51  ;;  %v20306_v48 = vld [vmem:[%s22045_s1 + $0x1ebc] ss:$100 sps:$4 sm:$0xff]   ;;  %v20309_v50 = vld [vmem:[%s22045_s1 + $0x1ec4] ss:$100 sps:$4 sm:$0xff]  }
 0x5d9   : > { %v20304_v51 = vld [vmem:[%s22045_s1 + $0x1eb8] ss:$100 sps:$4 sm:$0xff]  }
 0x5db   : > { %12223 = vmatpush1.bf16.msra.mxu0 %v20244_v52  ;;  %12387 = vmatpush1.bf16.msra.mxu1 %v20247_v34  ;;  %v20307_v52 = vld [vmem:[%s22045_s1 + $0x1ec0] ss:$100 sps:$4 sm:$0xff]  }
 0x5dc   : > { %12224 = vmatprep.subr.bf16.mxu0 %v20252_v58  ;;  %12388 = vmatprep.subr.bf16.mxu1 %v20255_v61  ;;  %v20312_v34 = vld [vmem:[%s22045_s1 + $0x1f84] ss:$100 sps:$4 sm:$0xff]   ;;  %v20315_v58 = vld [vmem:[%s22045_s1 + $0x1f8c] ss:$100 sps:$4 sm:$0xff]  }
 0x5dd   : > { %v20310_v61 = vld [vmem:[%s22045_s1 + $0x1f80] ss:$100 sps:$4 sm:$0xff]  }
 0x5df   : > { %12225 = vmatpush1.bf16.msra.mxu0 %v20250_v2  ;;  %12389 = vmatpush1.bf16.msra.mxu1 %v20253_v3  ;;  %v20313_v2 = vld [vmem:[%s22045_s1 + $0x1f88] ss:$100 sps:$4 sm:$0xff]  }
 0x5e0   : > { %12226 = vmatprep.subr.bf16.mxu0 %v20258_v4  ;;  %12390 = vmatprep.subr.bf16.mxu1 %v20261_v5  ;;  %v20318_v3 = vld [vmem:[%s22045_s1 + $0x204c] ss:$100 sps:$4 sm:$0xff]   ;;  %v20321_v4 = vld [vmem:[%s22045_s1 + $0x2054] ss:$100 sps:$4 sm:$0xff]  }
 0x5e1   : > { %v20316_v5 = vld [vmem:[%s22045_s1 + $0x2048] ss:$100 sps:$4 sm:$0xff]  }
 0x5e3   : > { %12227 = vmatpush1.bf16.msra.mxu0 %v20256_v6  ;;  %12391 = vmatpush1.bf16.msra.mxu1 %v20259_v8  ;;  %v20319_v6 = vld [vmem:[%s22045_s1 + $0x2050] ss:$100 sps:$4 sm:$0xff]  }
 0x5e4   : > { %12237 = vmatprep.subr.bf16.mxu0 %v20264_v13  ;;  %12401 = vmatprep.subr.bf16.mxu1 %v20267_v14  ;;  %v20324_v8 = vld [vmem:[%s22045_s1 + $0x2114] ss:$100 sps:$4 sm:$0xff]   ;;  %v20327_v13 = vld [vmem:[%s22045_s1 + $0x211c] ss:$100 sps:$4 sm:$0xff]  }
 0x5e5   : > { %v20322_v14 = vld [vmem:[%s22045_s1 + $0x2110] ss:$100 sps:$4 sm:$0xff]  }
 0x5e6   : > { %12229 = vmatmul.mubr.bf16.vlgmr.msra.gmra.mrb[16].mxu0 %v22259_v25  ;;  %12393 = vmatmul.mubr.bf16.vlgmr.msra.gmra.mrb[16].mxu1 %v22259_v25 }
 0x5e7   : > { %12238 = vmatpush1.bf16.msra.mxu0 %v20262_v15  ;;  %12402 = vmatpush1.bf16.msra.mxu1 %v20265_v17  ;;  %v20325_v15 = vld [vmem:[%s22045_s1 + $0x2118] ss:$100 sps:$4 sm:$0xff]  }
 0x5e8   : > { %12239 = vmatprep.subr.bf16.mxu0 %v20270_v18  ;;  %12403 = vmatprep.subr.bf16.mxu1 %v20273_v19  ;;  %v20330_v17 = vld [vmem:[%s22045_s1 + $0x21dc] ss:$100 sps:$4 sm:$0xff]   ;;  %v20333_v18 = vld [vmem:[%s22045_s1 + $0x21e4] ss:$100 sps:$4 sm:$0xff]  }
 0x5e9   : > { %12269 = vmatprep.mubr.bf16.mxu0 %v22279_v35  ;;  %12433 = vmatprep.mubr.bf16.mxu1 %v22279_v35  ;;  %v20328_v19 = vld [vmem:[%s22045_s1 + $0x21d8] ss:$100 sps:$4 sm:$0xff]  }
 0x5eb   : > { %12240 = vmatpush1.bf16.msra.mxu0 %v20268_v21  ;;  %12404 = vmatpush1.bf16.msra.mxu1 %v20271_v22  ;;  %v20331_v21 = vld [vmem:[%s22045_s1 + $0x21e0] ss:$100 sps:$4 sm:$0xff]  }
 0x5ec   : > { %12241 = vmatprep.subr.bf16.mxu0 %v20276_v23  ;;  %12405 = vmatprep.subr.bf16.mxu1 %v20279_v24  ;;  %v20336_v22 = vld [vmem:[%s22045_s1 + $0x22a4] ss:$100 sps:$4 sm:$0xff]   ;;  %v20339_v23 = vld [vmem:[%s22045_s1 + $0x22ac] ss:$100 sps:$4 sm:$0xff]  }
 0x5ed   : > { %v20334_v24 = vld [vmem:[%s22045_s1 + $0x22a0] ss:$100 sps:$4 sm:$0xff]  }
 0x5ef   : > { %12242 = vmatpush1.bf16.msra.mxu0 %v20274_v26  ;;  %12406 = vmatpush1.bf16.msra.mxu1 %v20277_v28  ;;  %v20337_v26 = vld [vmem:[%s22045_s1 + $0x22a8] ss:$100 sps:$4 sm:$0xff]  }
 0x5f0   : > { %12243 = vmatprep.subr.bf16.mxu0 %v20282_v29  ;;  %12407 = vmatprep.subr.bf16.mxu1 %v20285_v9  ;;  %v20342_v28 = vld [vmem:[%s22045_s1 + $0x236c] ss:$100 sps:$4 sm:$0xff]   ;;  %v20345_v29 = vld [vmem:[%s22045_s1 + $0x2374] ss:$100 sps:$4 sm:$0xff]  }
 0x5f1   : > { %v20340_v9 = vld [vmem:[%s22045_s1 + $0x2368] ss:$100 sps:$4 sm:$0xff]  }
 0x5f3   : > { %12244 = vmatpush1.bf16.msra.mxu0 %v20280_v31  ;;  %12408 = vmatpush1.bf16.msra.mxu1 %v20283_v32  ;;  %v20343_v31 = vld [vmem:[%s22045_s1 + $0x2370] ss:$100 sps:$4 sm:$0xff]  }
 0x5f4   : > { %12245 = vmatprep.subr.bf16.mxu0 %v20288_v33  ;;  %12409 = vmatprep.subr.bf16.mxu1 %v20291_v27  ;;  %v20348_v32 = vld [vmem:[%s22045_s1 + $0x2434] ss:$100 sps:$4 sm:$0xff]   ;;  %v20351_v33 = vld [vmem:[%s22045_s1 + $0x243c] ss:$100 sps:$4 sm:$0xff]  }
 0x5f5   : > { %v20346_v27 = vld [vmem:[%s22045_s1 + $0x2430] ss:$100 sps:$4 sm:$0xff]  }
 0x5f7   : > { %12246 = vmatpush1.bf16.msra.mxu0 %v20286_v36  ;;  %12410 = vmatpush1.bf16.msra.mxu1 %v20289_v37  ;;  %v20349_v36 = vld [vmem:[%s22045_s1 + $0x2438] ss:$100 sps:$4 sm:$0xff]  }
 0x5f8   : > { %12247 = vmatprep.subr.bf16.mxu0 %v20294_v39  ;;  %12411 = vmatprep.subr.bf16.mxu1 %v20297_v40  ;;  %v20354_v37 = vld [vmem:[%s22045_s1 + $0x24fc] ss:$100 sps:$4 sm:$0xff]   ;;  %v20357_v39 = vld [vmem:[%s22045_s1 + $0x2504] ss:$100 sps:$4 sm:$0xff]  }
 0x5f9   : > { %v20352_v40 = vld [vmem:[%s22045_s1 + $0x24f8] ss:$100 sps:$4 sm:$0xff]  }
 0x5fb   : > { %12248 = vmatpush1.bf16.msra.mxu0 %v20292_v49  ;;  %12412 = vmatpush1.bf16.msra.mxu1 %v20295_v42  ;;  %v20355_v49 = vld [vmem:[%s22045_s1 + $0x2500] ss:$100 sps:$4 sm:$0xff]  }
 0x5fc   : > { %12249 = vmatprep.subr.bf16.mxu0 %v20300_v44  ;;  %12413 = vmatprep.subr.bf16.mxu1 %v20303_v45  ;;  %v20360_v42 = vld [vmem:[%s22045_s1 + $0x25c4] ss:$100 sps:$4 sm:$0xff]   ;;  %v20363_v44 = vld [vmem:[%s22045_s1 + $0x25cc] ss:$100 sps:$4 sm:$0xff]  }
 0x5fd   : > { %v20358_v45 = vld [vmem:[%s22045_s1 + $0x25c0] ss:$100 sps:$4 sm:$0xff]  }
 0x5ff   : > { %12250 = vmatpush1.bf16.msra.mxu0 %v20298_v30  ;;  %12414 = vmatpush1.bf16.msra.mxu1 %v20301_v47  ;;  %v20361_v30 = vld [vmem:[%s22045_s1 + $0x25c8] ss:$100 sps:$4 sm:$0xff]  }
 0x600   : > { %12251 = vmatprep.subr.bf16.mxu0 %v20306_v48  ;;  %12415 = vmatprep.subr.bf16.mxu1 %v20309_v50  ;;  %v20366_v47 = vld [vmem:[%s22045_s1 + $0x268c] ss:$100 sps:$4 sm:$0xff]   ;;  %v20369_v48 = vld [vmem:[%s22045_s1 + $0x2694] ss:$100 sps:$4 sm:$0xff]  }
 0x601   : > { %v20364_v50 = vld [vmem:[%s22045_s1 + $0x2688] ss:$100 sps:$4 sm:$0xff]  }
 0x603   : > { %12252 = vmatpush1.bf16.msra.mxu0 %v20304_v51  ;;  %12416 = vmatpush1.bf16.msra.mxu1 %v20307_v52  ;;  %v20367_v51 = vld [vmem:[%s22045_s1 + $0x2690] ss:$100 sps:$4 sm:$0xff]  }
 0x604   : > { %12253 = vmatprep.subr.bf16.mxu0 %v20312_v34  ;;  %12417 = vmatprep.subr.bf16.mxu1 %v20315_v58  ;;  %v20372_v52 = vld [vmem:[%s22045_s1 + $0x2754] ss:$100 sps:$4 sm:$0xff]   ;;  %v20375_v34 = vld [vmem:[%s22045_s1 + $0x275c] ss:$100 sps:$4 sm:$0xff]  }
 0x605   : > { %v20370_v58 = vld [vmem:[%s22045_s1 + $0x2750] ss:$100 sps:$4 sm:$0xff]  }
 0x607   : > { %12254 = vmatpush1.bf16.msra.mxu0 %v20310_v61  ;;  %12418 = vmatpush1.bf16.msra.mxu1 %v20313_v2  ;;  %v20373_v61 = vld [vmem:[%s22045_s1 + $0x2758] ss:$100 sps:$4 sm:$0xff]  }
 0x608   : > { %12255 = vmatprep.subr.bf16.mxu0 %v20318_v3  ;;  %12419 = vmatprep.subr.bf16.mxu1 %v20321_v4  ;;  %v20378_v2 = vld [vmem:[%s22045_s1 + $0x281c] ss:$100 sps:$4 sm:$0xff]   ;;  %v20381_v3 = vld [vmem:[%s22045_s1 + $0x2824] ss:$100 sps:$4 sm:$0xff]  }
 0x609   : > { %v20376_v4 = vld [vmem:[%s22045_s1 + $0x2818] ss:$100 sps:$4 sm:$0xff]  }
 0x60b   : > { %12256 = vmatpush1.bf16.msra.mxu0 %v20316_v5  ;;  %12420 = vmatpush1.bf16.msra.mxu1 %v20319_v6  ;;  %v20379_v5 = vld [vmem:[%s22045_s1 + $0x2820] ss:$100 sps:$4 sm:$0xff]  }
 0x60c   : > { %12257 = vmatprep.subr.bf16.mxu0 %v20324_v8  ;;  %12421 = vmatprep.subr.bf16.mxu1 %v20327_v13  ;;  %v20384_v6 = vld [vmem:[%s22045_s1 + $0x28e4] ss:$100 sps:$4 sm:$0xff]   ;;  %v20387_v8 = vld [vmem:[%s22045_s1 + $0x28ec] ss:$100 sps:$4 sm:$0xff]  }
 0x60d   : > { %v20382_v13 = vld [vmem:[%s22045_s1 + $0x28e0] ss:$100 sps:$4 sm:$0xff]  }
 0x60f   : > { %12258 = vmatpush1.bf16.msra.mxu0 %v20322_v14  ;;  %12422 = vmatpush1.bf16.msra.mxu1 %v20325_v15  ;;  %v20385_v14 = vld [vmem:[%s22045_s1 + $0x28e8] ss:$100 sps:$4 sm:$0xff]  }
 0x610   : > { %12259 = vmatprep.subr.bf16.mxu0 %v20330_v17  ;;  %12423 = vmatprep.subr.bf16.mxu1 %v20333_v18  ;;  %v20390_v15 = vld [vmem:[%s22045_s1 + $0x29ac] ss:$100 sps:$4 sm:$0xff]   ;;  %v20393_v17 = vld [vmem:[%s22045_s1 + $0x29b4] ss:$100 sps:$4 sm:$0xff]  }
 0x611   : > { %v20388_v18 = vld [vmem:[%s22045_s1 + $0x29a8] ss:$100 sps:$4 sm:$0xff]  }
 0x613   : > { %12260 = vmatpush1.bf16.msra.mxu0 %v20328_v19  ;;  %12424 = vmatpush1.bf16.msra.mxu1 %v20331_v21  ;;  %v20391_v19 = vld [vmem:[%s22045_s1 + $0x29b0] ss:$100 sps:$4 sm:$0xff]  }
 0x614   : > { %12261 = vmatprep.subr.bf16.mxu0 %v20336_v22  ;;  %12425 = vmatprep.subr.bf16.mxu1 %v20339_v23  ;;  %v20396_v21 = vld [vmem:[%s22045_s1 + $0x2a74] ss:$100 sps:$4 sm:$0xff]   ;;  %v20399_v22 = vld [vmem:[%s22045_s1 + $0x2a7c] ss:$100 sps:$4 sm:$0xff]  }
 0x617   : > { %12262 = vmatpush1.bf16.msra.mxu0 %v20334_v24  ;;  %12426 = vmatpush1.bf16.msra.mxu1 %v20337_v26 }
 0x618   : > { %12263 = vmatprep.subr.bf16.mxu0 %v20342_v28  ;;  %12427 = vmatprep.subr.bf16.mxu1 %v20345_v29 }
 0x61b   : > { %12264 = vmatpush1.bf16.msra.mxu0 %v20340_v9  ;;  %12428 = vmatpush1.bf16.msra.mxu1 %v20343_v31  ;;  %v20394_v31 = vld [vmem:[%s22045_s1 + $0x2a70] ss:$100 sps:$4 sm:$0xff]  }
 0x61c   : > { %12265 = vmatprep.subr.bf16.mxu0 %v20348_v32  ;;  %12429 = vmatprep.subr.bf16.mxu1 %v20351_v33  ;;  %v20397_v32 = vld [vmem:[%s22045_s1 + $0x2a78] ss:$100 sps:$4 sm:$0xff]  }
 0x61f   : > { %12266 = vmatpush1.bf16.msra.mxu0 %v20346_v27  ;;  %12430 = vmatpush1.bf16.msra.mxu1 %v20349_v36  ;;  %v20402_v36 = vld [vmem:[%s22045_s1 + $0x2b3c] ss:$100 sps:$4 sm:$0xff]  }
 0x620   : > { %12267 = vmatprep.subr.bf16.mxu0 %v20354_v37  ;;  %12431 = vmatprep.subr.bf16.mxu1 %v20357_v39  ;;  %v20405_v37 = vld [vmem:[%s22045_s1 + $0x2b44] ss:$100 sps:$4 sm:$0xff]   ;;  %v20400_v39 = vld [vmem:[%s22045_s1 + $0x2b38] ss:$100 sps:$4 sm:$0xff]  }
 0x623   : > { %12268 = vmatpush1.bf16.msra.mxu0 %v20352_v40  ;;  %12432 = vmatpush1.bf16.msra.mxu1 %v20355_v49  ;;  %v20403_v40 = vld [vmem:[%s22045_s1 + $0x2b40] ss:$100 sps:$4 sm:$0xff]  }
 0x624   : > { %12278 = vmatprep.subr.bf16.mxu0 %v20360_v42  ;;  %12442 = vmatprep.subr.bf16.mxu1 %v20363_v44  ;;  %v20408_v49 = vld [vmem:[%s22045_s1 + $0x2c04] ss:$100 sps:$4 sm:$0xff]   ;;  %v20411_v42 = vld [vmem:[%s22045_s1 + $0x2c0c] ss:$100 sps:$4 sm:$0xff]  }
 0x625   : > { %v20406_v44 = vld [vmem:[%s22045_s1 + $0x2c00] ss:$100 sps:$4 sm:$0xff]  }
 0x626   : > { %12270 = vmatmul.mubr.bf16.vlgmr.msra.gmra.mrb[16].mxu0 %v22348_v41  ;;  %12434 = vmatmul.mubr.bf16.vlgmr.msra.gmra.mrb[16].mxu1 %v22348_v41 }
 0x627   : > { %12279 = vmatpush1.bf16.msra.mxu0 %v20358_v45  ;;  %12443 = vmatpush1.bf16.msra.mxu1 %v20361_v30  ;;  %v20409_v45 = vld [vmem:[%s22045_s1 + $0x2c08] ss:$100 sps:$4 sm:$0xff]  }
 0x628   : > { %12280 = vmatprep.subr.bf16.mxu0 %v20366_v47  ;;  %12444 = vmatprep.subr.bf16.mxu1 %v20369_v48  ;;  %v20414_v30 = vld [vmem:[%s22045_s1 + $0x2ccc] ss:$100 sps:$4 sm:$0xff]   ;;  %v20417_v47 = vld [vmem:[%s22045_s1 + $0x2cd4] ss:$100 sps:$4 sm:$0xff]  }
 0x629   : > { %12310 = vmatprep.mubr.bf16.mxu0 %v22354_v46  ;;  %12474 = vmatprep.mubr.bf16.mxu1 %v22354_v46  ;;  %v20412_v48 = vld [vmem:[%s22045_s1 + $0x2cc8] ss:$100 sps:$4 sm:$0xff]  }
 0x62b   : > { %12281 = vmatpush1.bf16.msra.mxu0 %v20364_v50  ;;  %12445 = vmatpush1.bf16.msra.mxu1 %v20367_v51  ;;  %v20415_v50 = vld [vmem:[%s22045_s1 + $0x2cd0] ss:$100 sps:$4 sm:$0xff]  }
 0x62c   : > { %12282 = vmatprep.subr.bf16.mxu0 %v20372_v52  ;;  %12446 = vmatprep.subr.bf16.mxu1 %v20375_v34  ;;  %v20420_v51 = vld [vmem:[%s22045_s1 + $0x2d94] ss:$100 sps:$4 sm:$0xff]   ;;  %v20423_v52 = vld [vmem:[%s22045_s1 + $0x2d9c] ss:$100 sps:$4 sm:$0xff]  }
 0x62d   : > { %v20418_v34 = vld [vmem:[%s22045_s1 + $0x2d90] ss:$100 sps:$4 sm:$0xff]  }
 0x62f   : > { %12283 = vmatpush1.bf16.msra.mxu0 %v20370_v58  ;;  %12447 = vmatpush1.bf16.msra.mxu1 %v20373_v61  ;;  %v20421_v58 = vld [vmem:[%s22045_s1 + $0x2d98] ss:$100 sps:$4 sm:$0xff]  }
 0x630   : > { %12284 = vmatprep.subr.bf16.mxu0 %v20378_v2  ;;  %12448 = vmatprep.subr.bf16.mxu1 %v20381_v3  ;;  %v20426_v61 = vld [vmem:[%s22045_s1 + $0x2e5c] ss:$100 sps:$4 sm:$0xff]   ;;  %v20429_v2 = vld [vmem:[%s22045_s1 + $0x2e64] ss:$100 sps:$4 sm:$0xff]  }
 0x631   : > { %v20424_v3 = vld [vmem:[%s22045_s1 + $0x2e58] ss:$100 sps:$4 sm:$0xff]  }
 0x633   : > { %12285 = vmatpush1.bf16.msra.mxu0 %v20376_v4  ;;  %12449 = vmatpush1.bf16.msra.mxu1 %v20379_v5  ;;  %v20427_v4 = vld [vmem:[%s22045_s1 + $0x2e60] ss:$100 sps:$4 sm:$0xff]  }
 0x634   : > { %12286 = vmatprep.subr.bf16.mxu0 %v20384_v6  ;;  %12450 = vmatprep.subr.bf16.mxu1 %v20387_v8  ;;  %v20432_v5 = vld [vmem:[%s22045_s1 + $0x2f24] ss:$100 sps:$4 sm:$0xff]   ;;  %v20435_v6 = vld [vmem:[%s22045_s1 + $0x2f2c] ss:$100 sps:$4 sm:$0xff]  }
 0x635   : > { %v20430_v8 = vld [vmem:[%s22045_s1 + $0x2f20] ss:$100 sps:$4 sm:$0xff]  }
 0x637   : > { %12287 = vmatpush1.bf16.msra.mxu0 %v20382_v13  ;;  %12451 = vmatpush1.bf16.msra.mxu1 %v20385_v14  ;;  %v20433_v13 = vld [vmem:[%s22045_s1 + $0x2f28] ss:$100 sps:$4 sm:$0xff]  }
 0x638   : > { %12288 = vmatprep.subr.bf16.mxu0 %v20390_v15  ;;  %12452 = vmatprep.subr.bf16.mxu1 %v20393_v17  ;;  %v20438_v14 = vld [vmem:[%s22045_s1 + $0x2fec] ss:$100 sps:$4 sm:$0xff]   ;;  %v20441_v15 = vld [vmem:[%s22045_s1 + $0x2ff4] ss:$100 sps:$4 sm:$0xff]  }
 0x639   : > { %v23501_v23 = vpop.f32.mrb[12].mxu0  ;;  %v23503_v24 = vpop.f32.mrb[12].mxu1  ;;  %v20436_v17 = vld [vmem:[%s22045_s1 + $0x2fe8] ss:$100 sps:$4 sm:$0xff]  }
 0x63a   : > { %v23505_v26 = vpop.f32.mrb[13].mxu0  ;;  %v23507_v28 = vpop.f32.mrb[13].mxu1 }
 0x63b   : > { %v11988_v29 = vpop.f32.mrb[14].mxu0  ;;  %v12152_v9 = vpop.f32.mrb[14].mxu1  ;;  %12289 = vmatpush1.bf16.msra.mxu0 %v20388_v18  ;;  %12453 = vmatpush1.bf16.msra.mxu1 %v20391_v19  ;;  %v20439_v18 = vld [vmem:[%s22045_s1 + $0x2ff0] ss:$100 sps:$4 sm:$0xff]  }
 0x63c   : > { %v11989_v33 = vpop.f32.mrb[15].mxu0  ;;  %v12153_v27 = vpop.f32.mrb[15].mxu1  ;;  %12290 = vmatprep.subr.bf16.mxu0 %v20396_v21  ;;  %12454 = vmatprep.subr.bf16.mxu1 %v20399_v22  ;;  %v20444_v19 = vld [vmem:[%s22045_s1 + $0x30b4] ss:$100 sps:$4 sm:$0xff]   ;;  %v20447_v21 = vld [vmem:[%s22045_s1 + $0x30bc] ss:$100 sps:$4 sm:$0xff]  }
 0x63d   : > { %v20442_v22 = vld [vmem:[%s22045_s1 + $0x30b0] ss:$100 sps:$4 sm:$0xff]   ;;  %v20445_v29 = vld [vmem:[%s22045_s1 + $0x30b8] ss:$100 sps:$4 sm:$0xff]   ;;  %v20451_v33 = vld [vmem:[%s22045_s1 + $0x3180] ss:$100 sps:$4 sm:$0xff]  }
 0x63e   : > { %v20450_v9 = vld [vmem:[%s22045_s1 + $0x317c] ss:$100 sps:$4 sm:$0xff]   ;;  %v20456_v27 = vld [vmem:[%s22045_s1 + $0x54] ss:$100 sps:$4 sm:$0xff]  }
 0x63f   : > { %12291 = vmatpush1.bf16.msra.mxu0 %v20394_v31  ;;  %12455 = vmatpush1.bf16.msra.mxu1 %v20397_v32  ;;  %v20453_v31 = vld [vmem:[%s22045_s1 + $0x3184] ss:$100 sps:$4 sm:$0xff]   ;;  %v20448_v32 = vld [vmem:[%s22045_s1 + $0x3178] ss:$100 sps:$4 sm:$0xff]  }
 0x640   : > { %12292 = vmatprep.subr.bf16.mxu0 %v20402_v36  ;;  %12456 = vmatprep.subr.bf16.mxu1 %v20405_v37  ;;  %v20459_v36 = vld [vmem:[%s22045_s1 + $0x5c] ss:$100 sps:$4 sm:$0xff]   ;;  %v20454_v37 = vld [vmem:[%s22045_s1 + $0x50] ss:$100 sps:$4 sm:$0xff]  }
 0x643   : > { %12293 = vmatpush1.bf16.msra.mxu0 %v20400_v39  ;;  %12457 = vmatpush1.bf16.msra.mxu1 %v20403_v40  ;;  %v20457_v39 = vld [vmem:[%s22045_s1 + $0x58] ss:$100 sps:$4 sm:$0xff]  }
 0x644   : > { %12294 = vmatprep.subr.bf16.mxu0 %v20408_v49  ;;  %12458 = vmatprep.subr.bf16.mxu1 %v20411_v42  ;;  %v20462_v40 = vld [vmem:[%s22045_s1 + $0x11c] ss:$100 sps:$4 sm:$0xff]   ;;  %v20465_v49 = vld [vmem:[%s22045_s1 + $0x124] ss:$100 sps:$4 sm:$0xff]  }
 0x645   : > { %v20460_v42 = vld [vmem:[%s22045_s1 + $0x118] ss:$100 sps:$4 sm:$0xff]  }
 0x647   : > { %12295 = vmatpush1.bf16.msra.mxu0 %v20406_v44  ;;  %12459 = vmatpush1.bf16.msra.mxu1 %v20409_v45  ;;  %v20463_v44 = vld [vmem:[%s22045_s1 + $0x120] ss:$100 sps:$4 sm:$0xff]  }
 0x648   : > { %12296 = vmatprep.subr.bf16.mxu0 %v20414_v30  ;;  %12460 = vmatprep.subr.bf16.mxu1 %v20417_v47  ;;  %v20468_v45 = vld [vmem:[%s22045_s1 + $0x1e4] ss:$100 sps:$4 sm:$0xff]   ;;  %v20471_v30 = vld [vmem:[%s22045_s1 + $0x1ec] ss:$100 sps:$4 sm:$0xff]  }
 0x649   : > { %v20466_v47 = vld [vmem:[%s22045_s1 + $0x1e0] ss:$100 sps:$4 sm:$0xff]  }
 0x64b   : > { %12297 = vmatpush1.bf16.msra.mxu0 %v20412_v48  ;;  %12461 = vmatpush1.bf16.msra.mxu1 %v20415_v50  ;;  %v20469_v48 = vld [vmem:[%s22045_s1 + $0x1e8] ss:$100 sps:$4 sm:$0xff]  }
 0x64c   : > { %12298 = vmatprep.subr.bf16.mxu0 %v20420_v51  ;;  %12462 = vmatprep.subr.bf16.mxu1 %v20423_v52  ;;  %v20474_v50 = vld [vmem:[%s22045_s1 + $0x2ac] ss:$100 sps:$4 sm:$0xff]   ;;  %v20477_v51 = vld [vmem:[%s22045_s1 + $0x2b4] ss:$100 sps:$4 sm:$0xff]  }
 0x64d   : > { %v20472_v52 = vld [vmem:[%s22045_s1 + $0x2a8] ss:$100 sps:$4 sm:$0xff]  }
 0x64f   : > { %12299 = vmatpush1.bf16.msra.mxu0 %v20418_v34  ;;  %12463 = vmatpush1.bf16.msra.mxu1 %v20421_v58  ;;  %v20475_v34 = vld [vmem:[%s22045_s1 + $0x2b0] ss:$100 sps:$4 sm:$0xff]  }
 0x650   : > { %12300 = vmatprep.subr.bf16.mxu0 %v20426_v61  ;;  %12464 = vmatprep.subr.bf16.mxu1 %v20429_v2  ;;  %v20480_v58 = vld [vmem:[%s22045_s1 + $0x374] ss:$100 sps:$4 sm:$0xff]   ;;  %v20483_v61 = vld [vmem:[%s22045_s1 + $0x37c] ss:$100 sps:$4 sm:$0xff]  }
 0x651   : > { %v20478_v2 = vld [vmem:[%s22045_s1 + $0x370] ss:$100 sps:$4 sm:$0xff]  }
 0x653   : > { %12301 = vmatpush1.bf16.msra.mxu0 %v20424_v3  ;;  %12465 = vmatpush1.bf16.msra.mxu1 %v20427_v4  ;;  %v20481_v3 = vld [vmem:[%s22045_s1 + $0x378] ss:$100 sps:$4 sm:$0xff]  }
 0x654   : > { %12302 = vmatprep.subr.bf16.mxu0 %v20432_v5  ;;  %12466 = vmatprep.subr.bf16.mxu1 %v20435_v6  ;;  %v20486_v4 = vld [vmem:[%s22045_s1 + $0x43c] ss:$100 sps:$4 sm:$0xff]   ;;  %v20489_v5 = vld [vmem:[%s22045_s1 + $0x444] ss:$100 sps:$4 sm:$0xff]  }
 0x655   : > { %v20484_v6 = vld [vmem:[%s22045_s1 + $0x438] ss:$100 sps:$4 sm:$0xff]  }
 0x657   : > { %12303 = vmatpush1.bf16.msra.mxu0 %v20430_v8  ;;  %12467 = vmatpush1.bf16.msra.mxu1 %v20433_v13  ;;  %v20487_v8 = vld [vmem:[%s22045_s1 + $0x440] ss:$100 sps:$4 sm:$0xff]  }
 0x658   : > { %12304 = vmatprep.subr.bf16.mxu0 %v20438_v14  ;;  %12468 = vmatprep.subr.bf16.mxu1 %v20441_v15  ;;  %v20492_v13 = vld [vmem:[%s22045_s1 + $0x504] ss:$100 sps:$4 sm:$0xff]   ;;  %v20495_v14 = vld [vmem:[%s22045_s1 + $0x50c] ss:$100 sps:$4 sm:$0xff]  }
 0x659   : > { %v20490_v15 = vld [vmem:[%s22045_s1 + $0x500] ss:$100 sps:$4 sm:$0xff]  }
 0x65b   : > { %12305 = vmatpush1.bf16.msra.mxu0 %v20436_v17  ;;  %12469 = vmatpush1.bf16.msra.mxu1 %v20439_v18  ;;  %v20493_v17 = vld [vmem:[%s22045_s1 + $0x508] ss:$100 sps:$4 sm:$0xff]  }
 0x65c   : > { %12306 = vmatprep.subr.bf16.mxu0 %v20444_v19  ;;  %12470 = vmatprep.subr.bf16.mxu1 %v20447_v21  ;;  %v20498_v18 = vld [vmem:[%s22045_s1 + $0x5cc] ss:$100 sps:$4 sm:$0xff]   ;;  %v20501_v19 = vld [vmem:[%s22045_s1 + $0x5d4] ss:$100 sps:$4 sm:$0xff]  }
 0x65d   : > { %v20496_v21 = vld [vmem:[%s22045_s1 + $0x5c8] ss:$100 sps:$4 sm:$0xff]  }
 0x65f   : > { %12307 = vmatpush1.bf16.msra.mxu0 %v20442_v22  ;;  %12471 = vmatpush1.bf16.msra.mxu1 %v20445_v29  ;;  %v20499_v22 = vld [vmem:[%s22045_s1 + $0x5d0] ss:$100 sps:$4 sm:$0xff]  }
 0x660   : > { %12308 = vmatprep.subr.bf16.mxu0 %v20450_v9  ;;  %12472 = vmatprep.subr.bf16.mxu1 %v20453_v31  ;;  %v20504_v29 = vld [vmem:[%s22045_s1 + $0x694] ss:$100 sps:$4 sm:$0xff]   ;;  %v20507_v9 = vld [vmem:[%s22045_s1 + $0x69c] ss:$100 sps:$4 sm:$0xff]  }
 0x661   : > { %v20502_v31 = vld [vmem:[%s22045_s1 + $0x690] ss:$100 sps:$4 sm:$0xff]  }
 0x663   : > { %12309 = vmatpush1.bf16.msra.mxu0 %v20448_v32  ;;  %12473 = vmatpush1.bf16.msra.mxu1 %v20451_v33  ;;  %v20505_v32 = vld [vmem:[%s22045_s1 + $0x698] ss:$100 sps:$4 sm:$0xff]  }
 0x664   : > { %12483 = vmatprep.subr.bf16.mxu0 %v20456_v27  ;;  %12647 = vmatprep.subr.bf16.mxu1 %v20459_v36  ;;  %v20510_v33 = vld [vmem:[%s22045_s1 + $0x75c] ss:$100 sps:$4 sm:$0xff]   ;;  %v20513_v27 = vld [vmem:[%s22045_s1 + $0x764] ss:$100 sps:$4 sm:$0xff]  }
 0x665   : > { %v20508_v36 = vld [vmem:[%s22045_s1 + $0x758] ss:$100 sps:$4 sm:$0xff]  }
 0x666   : > { %12311 = vmatmul.mubr.bf16.vlgmr.msra.gmra.mrb[16].mxu0 %v22422_v53  ;;  %12475 = vmatmul.mubr.bf16.vlgmr.msra.gmra.mrb[16].mxu1 %v22422_v53 }
 0x667   : > { %12484 = vmatpush1.bf16.msra.mxu0 %v20454_v37  ;;  %12648 = vmatpush1.bf16.msra.mxu1 %v20457_v39  ;;  %v20511_v37 = vld [vmem:[%s22045_s1 + $0x760] ss:$100 sps:$4 sm:$0xff]  }
 0x668   : > { %12485 = vmatprep.subr.bf16.mxu0 %v20462_v40  ;;  %12649 = vmatprep.subr.bf16.mxu1 %v20465_v49  ;;  %v20516_v39 = vld [vmem:[%s22045_s1 + $0x824] ss:$100 sps:$4 sm:$0xff]   ;;  %v20519_v40 = vld [vmem:[%s22045_s1 + $0x82c] ss:$100 sps:$4 sm:$0xff]  }
 0x669   : > { %12515 = vmatprep.mubr.bf16.mxu0 %v22160_v60  ;;  %12679 = vmatprep.mubr.bf16.mxu1 %v22160_v60  ;;  %v20514_v49 = vld [vmem:[%s22045_s1 + $0x820] ss:$100 sps:$4 sm:$0xff]  }
 0x66b   : > { %12486 = vmatpush1.bf16.msra.mxu0 %v20460_v42  ;;  %12650 = vmatpush1.bf16.msra.mxu1 %v20463_v44  ;;  %v20517_v42 = vld [vmem:[%s22045_s1 + $0x828] ss:$100 sps:$4 sm:$0xff]  }
 0x66c   : > { %12487 = vmatprep.subr.bf16.mxu0 %v20468_v45  ;;  %12651 = vmatprep.subr.bf16.mxu1 %v20471_v30  ;;  %v20522_v44 = vld [vmem:[%s22045_s1 + $0x8ec] ss:$100 sps:$4 sm:$0xff]   ;;  %v20525_v45 = vld [vmem:[%s22045_s1 + $0x8f4] ss:$100 sps:$4 sm:$0xff]  }
 0x66d   : > { %v20520_v30 = vld [vmem:[%s22045_s1 + $0x8e8] ss:$100 sps:$4 sm:$0xff]  }
 0x66f   : > { %12488 = vmatpush1.bf16.msra.mxu0 %v20466_v47  ;;  %12652 = vmatpush1.bf16.msra.mxu1 %v20469_v48  ;;  %v20523_v47 = vld [vmem:[%s22045_s1 + $0x8f0] ss:$100 sps:$4 sm:$0xff]  }
 0x670   : > { %12489 = vmatprep.subr.bf16.mxu0 %v20474_v50  ;;  %12653 = vmatprep.subr.bf16.mxu1 %v20477_v51  ;;  %v20528_v48 = vld [vmem:[%s22045_s1 + $0x9b4] ss:$100 sps:$4 sm:$0xff]   ;;  %v20531_v50 = vld [vmem:[%s22045_s1 + $0x9bc] ss:$100 sps:$4 sm:$0xff]  }
 0x671   : > { %v20526_v51 = vld [vmem:[%s22045_s1 + $0x9b0] ss:$100 sps:$4 sm:$0xff]  }
 0x673   : > { %12490 = vmatpush1.bf16.msra.mxu0 %v20472_v52  ;;  %12654 = vmatpush1.bf16.msra.mxu1 %v20475_v34  ;;  %v20529_v52 = vld [vmem:[%s22045_s1 + $0x9b8] ss:$100 sps:$4 sm:$0xff]  }
 0x674   : > { %12491 = vmatprep.subr.bf16.mxu0 %v20480_v58  ;;  %12655 = vmatprep.subr.bf16.mxu1 %v20483_v61  ;;  %v20534_v34 = vld [vmem:[%s22045_s1 + $0xa7c] ss:$100 sps:$4 sm:$0xff]   ;;  %v20537_v58 = vld [vmem:[%s22045_s1 + $0xa84] ss:$100 sps:$4 sm:$0xff]  }
 0x675   : > { %v20532_v61 = vld [vmem:[%s22045_s1 + $0xa78] ss:$100 sps:$4 sm:$0xff]  }
 0x677   : > { %12492 = vmatpush1.bf16.msra.mxu0 %v20478_v2  ;;  %12656 = vmatpush1.bf16.msra.mxu1 %v20481_v3  ;;  %v20535_v2 = vld [vmem:[%s22045_s1 + $0xa80] ss:$100 sps:$4 sm:$0xff]  }
 0x678   : > { %12493 = vmatprep.subr.bf16.mxu0 %v20486_v4  ;;  %12657 = vmatprep.subr.bf16.mxu1 %v20489_v5  ;;  %v20540_v3 = vld [vmem:[%s22045_s1 + $0xb44] ss:$100 sps:$4 sm:$0xff]   ;;  %v20543_v4 = vld [vmem:[%s22045_s1 + $0xb4c] ss:$100 sps:$4 sm:$0xff]  }
 0x679   : > { %v20538_v5 = vld [vmem:[%s22045_s1 + $0xb40] ss:$100 sps:$4 sm:$0xff]  }
 0x67b   : > { %12494 = vmatpush1.bf16.msra.mxu0 %v20484_v6  ;;  %12658 = vmatpush1.bf16.msra.mxu1 %v20487_v8  ;;  %v20541_v6 = vld [vmem:[%s22045_s1 + $0xb48] ss:$100 sps:$4 sm:$0xff]  }
 0x67c   : > { %12495 = vmatprep.subr.bf16.mxu0 %v20492_v13  ;;  %12659 = vmatprep.subr.bf16.mxu1 %v20495_v14  ;;  %v20546_v8 = vld [vmem:[%s22045_s1 + $0xc0c] ss:$100 sps:$4 sm:$0xff]   ;;  %v20549_v13 = vld [vmem:[%s22045_s1 + $0xc14] ss:$100 sps:$4 sm:$0xff]  }
 0x67d   : > { %v20544_v14 = vld [vmem:[%s22045_s1 + $0xc08] ss:$100 sps:$4 sm:$0xff]  }
 0x67f   : > { %12496 = vmatpush1.bf16.msra.mxu0 %v20490_v15  ;;  %12660 = vmatpush1.bf16.msra.mxu1 %v20493_v17  ;;  %v20547_v15 = vld [vmem:[%s22045_s1 + $0xc10] ss:$100 sps:$4 sm:$0xff]  }
 0x680   : > { %12497 = vmatprep.subr.bf16.mxu0 %v20498_v18  ;;  %12661 = vmatprep.subr.bf16.mxu1 %v20501_v19  ;;  %v20552_v17 = vld [vmem:[%s22045_s1 + $0xcd4] ss:$100 sps:$4 sm:$0xff]   ;;  %v20555_v18 = vld [vmem:[%s22045_s1 + $0xcdc] ss:$100 sps:$4 sm:$0xff]  }
 0x681   : > { %v20550_v19 = vld [vmem:[%s22045_s1 + $0xcd0] ss:$100 sps:$4 sm:$0xff]  }
 0x683   : > { %12498 = vmatpush1.bf16.msra.mxu0 %v20496_v21  ;;  %12662 = vmatpush1.bf16.msra.mxu1 %v20499_v22  ;;  %v20553_v21 = vld [vmem:[%s22045_s1 + $0xcd8] ss:$100 sps:$4 sm:$0xff]  }
 0x684   : > { %12499 = vmatprep.subr.bf16.mxu0 %v20504_v29  ;;  %12663 = vmatprep.subr.bf16.mxu1 %v20507_v9  ;;  %v20558_v22 = vld [vmem:[%s22045_s1 + $0xd9c] ss:$100 sps:$4 sm:$0xff]   ;;  %v20561_v29 = vld [vmem:[%s22045_s1 + $0xda4] ss:$100 sps:$4 sm:$0xff]  }
 0x685   : > { %v20556_v9 = vld [vmem:[%s22045_s1 + $0xd98] ss:$100 sps:$4 sm:$0xff]  }
 0x687   : > { %12500 = vmatpush1.bf16.msra.mxu0 %v20502_v31  ;;  %12664 = vmatpush1.bf16.msra.mxu1 %v20505_v32  ;;  %v20559_v31 = vld [vmem:[%s22045_s1 + $0xda0] ss:$100 sps:$4 sm:$0xff]  }
 0x688   : > { %12501 = vmatprep.subr.bf16.mxu0 %v20510_v33  ;;  %12665 = vmatprep.subr.bf16.mxu1 %v20513_v27  ;;  %v20564_v32 = vld [vmem:[%s22045_s1 + $0xe64] ss:$100 sps:$4 sm:$0xff]   ;;  %v20567_v33 = vld [vmem:[%s22045_s1 + $0xe6c] ss:$100 sps:$4 sm:$0xff]  }
 0x689   : > { %v20562_v27 = vld [vmem:[%s22045_s1 + $0xe60] ss:$100 sps:$4 sm:$0xff]  }
 0x68b   : > { %12502 = vmatpush1.bf16.msra.mxu0 %v20508_v36  ;;  %12666 = vmatpush1.bf16.msra.mxu1 %v20511_v37  ;;  %v20565_v36 = vld [vmem:[%s22045_s1 + $0xe68] ss:$100 sps:$4 sm:$0xff]  }
 0x68c   : > { %12503 = vmatprep.subr.bf16.mxu0 %v20516_v39  ;;  %12667 = vmatprep.subr.bf16.mxu1 %v20519_v40  ;;  %v20570_v37 = vld [vmem:[%s22045_s1 + $0xf2c] ss:$100 sps:$4 sm:$0xff]   ;;  %v20573_v39 = vld [vmem:[%s22045_s1 + $0xf34] ss:$100 sps:$4 sm:$0xff]  }
 0x68d   : > { %v20568_v40 = vld [vmem:[%s22045_s1 + $0xf28] ss:$100 sps:$4 sm:$0xff]  }
 0x68f   : > { %12504 = vmatpush1.bf16.msra.mxu0 %v20514_v49  ;;  %12668 = vmatpush1.bf16.msra.mxu1 %v20517_v42  ;;  %v20571_v49 = vld [vmem:[%s22045_s1 + $0xf30] ss:$100 sps:$4 sm:$0xff]  }
 0x690   : > { %12505 = vmatprep.subr.bf16.mxu0 %v20522_v44  ;;  %12669 = vmatprep.subr.bf16.mxu1 %v20525_v45  ;;  %v20576_v42 = vld [vmem:[%s22045_s1 + $0xff4] ss:$100 sps:$4 sm:$0xff]   ;;  %v20579_v44 = vld [vmem:[%s22045_s1 + $0xffc] ss:$100 sps:$4 sm:$0xff]  }
 0x691   : > { %v20574_v45 = vld [vmem:[%s22045_s1 + $0xff0] ss:$100 sps:$4 sm:$0xff]  }
 0x693   : > { %12506 = vmatpush1.bf16.msra.mxu0 %v20520_v30  ;;  %12670 = vmatpush1.bf16.msra.mxu1 %v20523_v47  ;;  %v20577_v30 = vld [vmem:[%s22045_s1 + $0xff8] ss:$100 sps:$4 sm:$0xff]  }
 0x694   : > { %12507 = vmatprep.subr.bf16.mxu0 %v20528_v48  ;;  %12671 = vmatprep.subr.bf16.mxu1 %v20531_v50  ;;  %v20582_v47 = vld [vmem:[%s22045_s1 + $0x10bc] ss:$100 sps:$4 sm:$0xff]   ;;  %v20585_v48 = vld [vmem:[%s22045_s1 + $0x10c4] ss:$100 sps:$4 sm:$0xff]  }
 0x695   : > { %v20580_v50 = vld [vmem:[%s22045_s1 + $0x10b8] ss:$100 sps:$4 sm:$0xff]  }
 0x697   : > { %12508 = vmatpush1.bf16.msra.mxu0 %v20526_v51  ;;  %12672 = vmatpush1.bf16.msra.mxu1 %v20529_v52  ;;  %v20583_v51 = vld [vmem:[%s22045_s1 + $0x10c0] ss:$100 sps:$4 sm:$0xff]  }
 0x698   : > { %12509 = vmatprep.subr.bf16.mxu0 %v20534_v34  ;;  %12673 = vmatprep.subr.bf16.mxu1 %v20537_v58  ;;  %v20588_v52 = vld [vmem:[%s22045_s1 + $0x1184] ss:$100 sps:$4 sm:$0xff]   ;;  %v20591_v34 = vld [vmem:[%s22045_s1 + $0x118c] ss:$100 sps:$4 sm:$0xff]  }
 0x699   : > { %v20586_v58 = vld [vmem:[%s22045_s1 + $0x1180] ss:$100 sps:$4 sm:$0xff]  }
 0x69b   : > { %12510 = vmatpush1.bf16.msra.mxu0 %v20532_v61  ;;  %12674 = vmatpush1.bf16.msra.mxu1 %v20535_v2  ;;  %v20589_v61 = vld [vmem:[%s22045_s1 + $0x1188] ss:$100 sps:$4 sm:$0xff]  }
 0x69c   : > { %12511 = vmatprep.subr.bf16.mxu0 %v20540_v3  ;;  %12675 = vmatprep.subr.bf16.mxu1 %v20543_v4  ;;  %v20594_v2 = vld [vmem:[%s22045_s1 + $0x124c] ss:$100 sps:$4 sm:$0xff]   ;;  %v20597_v3 = vld [vmem:[%s22045_s1 + $0x1254] ss:$100 sps:$4 sm:$0xff]  }
 0x69d   : > { %v20592_v4 = vld [vmem:[%s22045_s1 + $0x1248] ss:$100 sps:$4 sm:$0xff]  }
 0x69f   : > { %12512 = vmatpush1.bf16.msra.mxu0 %v20538_v5  ;;  %12676 = vmatpush1.bf16.msra.mxu1 %v20541_v6  ;;  %v20595_v5 = vld [vmem:[%s22045_s1 + $0x1250] ss:$100 sps:$4 sm:$0xff]  }
 0x6a0   : > { %12513 = vmatprep.subr.bf16.mxu0 %v20546_v8  ;;  %12677 = vmatprep.subr.bf16.mxu1 %v20549_v13  ;;  %v20600_v6 = vld [vmem:[%s22045_s1 + $0x1314] ss:$100 sps:$4 sm:$0xff]   ;;  %v20603_v8 = vld [vmem:[%s22045_s1 + $0x131c] ss:$100 sps:$4 sm:$0xff]  }
 0x6a1   : > { %v20598_v13 = vld [vmem:[%s22045_s1 + $0x1310] ss:$100 sps:$4 sm:$0xff]  }
 0x6a3   : > { %12514 = vmatpush1.bf16.msra.mxu0 %v20544_v14  ;;  %12678 = vmatpush1.bf16.msra.mxu1 %v20547_v15  ;;  %v20601_v14 = vld [vmem:[%s22045_s1 + $0x1318] ss:$100 sps:$4 sm:$0xff]  }
 0x6a4   : > { %12524 = vmatprep.subr.bf16.mxu0 %v20552_v17  ;;  %12688 = vmatprep.subr.bf16.mxu1 %v20555_v18  ;;  %v20606_v15 = vld [vmem:[%s22045_s1 + $0x13dc] ss:$100 sps:$4 sm:$0xff]   ;;  %v20609_v17 = vld [vmem:[%s22045_s1 + $0x13e4] ss:$100 sps:$4 sm:$0xff]  }
 0x6a5   : > { %v20604_v18 = vld [vmem:[%s22045_s1 + $0x13d8] ss:$100 sps:$4 sm:$0xff]  }
 0x6a6   : > { %12516 = vmatmul.mubr.bf16.vlgmr.msra.gmra.mrb[20].mxu0 %v22185_v16  ;;  %12680 = vmatmul.mubr.bf16.vlgmr.msra.gmra.mrb[20].mxu1 %v22185_v16 }
 0x6a7   : > { %12525 = vmatpush1.bf16.msra.mxu0 %v20550_v19  ;;  %12689 = vmatpush1.bf16.msra.mxu1 %v20553_v21  ;;  %v20607_v19 = vld [vmem:[%s22045_s1 + $0x13e0] ss:$100 sps:$4 sm:$0xff]  }
 0x6a8   : > { %12526 = vmatprep.subr.bf16.mxu0 %v20558_v22  ;;  %12690 = vmatprep.subr.bf16.mxu1 %v20561_v29  ;;  %v20612_v21 = vld [vmem:[%s22045_s1 + $0x14a4] ss:$100 sps:$4 sm:$0xff]   ;;  %v20615_v22 = vld [vmem:[%s22045_s1 + $0x14ac] ss:$100 sps:$4 sm:$0xff]  }
 0x6a9   : > { %12556 = vmatprep.mubr.bf16.mxu0 %v22190_v20  ;;  %12720 = vmatprep.mubr.bf16.mxu1 %v22190_v20  ;;  %v20610_v29 = vld [vmem:[%s22045_s1 + $0x14a0] ss:$100 sps:$4 sm:$0xff]  }
 0x6ab   : > { %12527 = vmatpush1.bf16.msra.mxu0 %v20556_v9  ;;  %12691 = vmatpush1.bf16.msra.mxu1 %v20559_v31  ;;  %v20613_v9 = vld [vmem:[%s22045_s1 + $0x14a8] ss:$100 sps:$4 sm:$0xff]  }
 0x6ac   : > { %12528 = vmatprep.subr.bf16.mxu0 %v20564_v32  ;;  %12692 = vmatprep.subr.bf16.mxu1 %v20567_v33  ;;  %v20618_v31 = vld [vmem:[%s22045_s1 + $0x156c] ss:$100 sps:$4 sm:$0xff]   ;;  %v20621_v32 = vld [vmem:[%s22045_s1 + $0x1574] ss:$100 sps:$4 sm:$0xff]  }
 0x6ad   : > { %v20616_v33 = vld [vmem:[%s22045_s1 + $0x1568] ss:$100 sps:$4 sm:$0xff]  }
 0x6af   : > { %12529 = vmatpush1.bf16.msra.mxu0 %v20562_v27  ;;  %12693 = vmatpush1.bf16.msra.mxu1 %v20565_v36  ;;  %v20619_v27 = vld [vmem:[%s22045_s1 + $0x1570] ss:$100 sps:$4 sm:$0xff]  }
 0x6b0   : > { %12530 = vmatprep.subr.bf16.mxu0 %v20570_v37  ;;  %12694 = vmatprep.subr.bf16.mxu1 %v20573_v39  ;;  %v20624_v36 = vld [vmem:[%s22045_s1 + $0x1634] ss:$100 sps:$4 sm:$0xff]   ;;  %v20627_v37 = vld [vmem:[%s22045_s1 + $0x163c] ss:$100 sps:$4 sm:$0xff]  }
 0x6b1   : > { %v20622_v39 = vld [vmem:[%s22045_s1 + $0x1630] ss:$100 sps:$4 sm:$0xff]  }
 0x6b3   : > { %12531 = vmatpush1.bf16.msra.mxu0 %v20568_v40  ;;  %12695 = vmatpush1.bf16.msra.mxu1 %v20571_v49  ;;  %v20625_v40 = vld [vmem:[%s22045_s1 + $0x1638] ss:$100 sps:$4 sm:$0xff]  }
 0x6b4   : > { %12532 = vmatprep.subr.bf16.mxu0 %v20576_v42  ;;  %12696 = vmatprep.subr.bf16.mxu1 %v20579_v44  ;;  %v20630_v49 = vld [vmem:[%s22045_s1 + $0x16fc] ss:$100 sps:$4 sm:$0xff]   ;;  %v20633_v42 = vld [vmem:[%s22045_s1 + $0x1704] ss:$100 sps:$4 sm:$0xff]  }
 0x6b5   : > { %v20628_v44 = vld [vmem:[%s22045_s1 + $0x16f8] ss:$100 sps:$4 sm:$0xff]  }
 0x6b7   : > { %12533 = vmatpush1.bf16.msra.mxu0 %v20574_v45  ;;  %12697 = vmatpush1.bf16.msra.mxu1 %v20577_v30  ;;  %v20631_v45 = vld [vmem:[%s22045_s1 + $0x1700] ss:$100 sps:$4 sm:$0xff]  }
 0x6b8   : > { %12534 = vmatprep.subr.bf16.mxu0 %v20582_v47  ;;  %12698 = vmatprep.subr.bf16.mxu1 %v20585_v48  ;;  %v20636_v30 = vld [vmem:[%s22045_s1 + $0x17c4] ss:$100 sps:$4 sm:$0xff]   ;;  %v20639_v47 = vld [vmem:[%s22045_s1 + $0x17cc] ss:$100 sps:$4 sm:$0xff]  }
 0x6b9   : > { %v20634_v48 = vld [vmem:[%s22045_s1 + $0x17c0] ss:$100 sps:$4 sm:$0xff]  }
 0x6bb   : > { %12535 = vmatpush1.bf16.msra.mxu0 %v20580_v50  ;;  %12699 = vmatpush1.bf16.msra.mxu1 %v20583_v51  ;;  %v20637_v50 = vld [vmem:[%s22045_s1 + $0x17c8] ss:$100 sps:$4 sm:$0xff]  }
 0x6bc   : > { %12536 = vmatprep.subr.bf16.mxu0 %v20588_v52  ;;  %12700 = vmatprep.subr.bf16.mxu1 %v20591_v34  ;;  %v20642_v51 = vld [vmem:[%s22045_s1 + $0x188c] ss:$100 sps:$4 sm:$0xff]   ;;  %v20645_v52 = vld [vmem:[%s22045_s1 + $0x1894] ss:$100 sps:$4 sm:$0xff]  }
 0x6bd   : > { %v20640_v34 = vld [vmem:[%s22045_s1 + $0x1888] ss:$100 sps:$4 sm:$0xff]  }
 0x6bf   : > { %12537 = vmatpush1.bf16.msra.mxu0 %v20586_v58  ;;  %12701 = vmatpush1.bf16.msra.mxu1 %v20589_v61  ;;  %v20643_v58 = vld [vmem:[%s22045_s1 + $0x1890] ss:$100 sps:$4 sm:$0xff]  }
 0x6c0   : > { %12538 = vmatprep.subr.bf16.mxu0 %v20594_v2  ;;  %12702 = vmatprep.subr.bf16.mxu1 %v20597_v3  ;;  %v20648_v61 = vld [vmem:[%s22045_s1 + $0x1954] ss:$100 sps:$4 sm:$0xff]   ;;  %v20651_v2 = vld [vmem:[%s22045_s1 + $0x195c] ss:$100 sps:$4 sm:$0xff]  }
 0x6c1   : > { %v20646_v3 = vld [vmem:[%s22045_s1 + $0x1950] ss:$100 sps:$4 sm:$0xff]  }
 0x6c3   : > { %12539 = vmatpush1.bf16.msra.mxu0 %v20592_v4  ;;  %12703 = vmatpush1.bf16.msra.mxu1 %v20595_v5  ;;  %v20649_v4 = vld [vmem:[%s22045_s1 + $0x1958] ss:$100 sps:$4 sm:$0xff]  }
 0x6c4   : > { %12540 = vmatprep.subr.bf16.mxu0 %v20600_v6  ;;  %12704 = vmatprep.subr.bf16.mxu1 %v20603_v8  ;;  %v20654_v5 = vld [vmem:[%s22045_s1 + $0x1a1c] ss:$100 sps:$4 sm:$0xff]   ;;  %v20657_v6 = vld [vmem:[%s22045_s1 + $0x1a24] ss:$100 sps:$4 sm:$0xff]  }
 0x6c5   : > { %v20652_v8 = vld [vmem:[%s22045_s1 + $0x1a18] ss:$100 sps:$4 sm:$0xff]  }
 0x6c7   : > { %12541 = vmatpush1.bf16.msra.mxu0 %v20598_v13  ;;  %12705 = vmatpush1.bf16.msra.mxu1 %v20601_v14  ;;  %v20655_v13 = vld [vmem:[%s22045_s1 + $0x1a20] ss:$100 sps:$4 sm:$0xff]  }
 0x6c8   : > { %12542 = vmatprep.subr.bf16.mxu0 %v20606_v15  ;;  %12706 = vmatprep.subr.bf16.mxu1 %v20609_v17  ;;  %v20660_v14 = vld [vmem:[%s22045_s1 + $0x1ae4] ss:$100 sps:$4 sm:$0xff]   ;;  %v20663_v15 = vld [vmem:[%s22045_s1 + $0x1aec] ss:$100 sps:$4 sm:$0xff]  }
 0x6c9   : > { %v20658_v17 = vld [vmem:[%s22045_s1 + $0x1ae0] ss:$100 sps:$4 sm:$0xff]  }
 0x6cb   : > { %12543 = vmatpush1.bf16.msra.mxu0 %v20604_v18  ;;  %12707 = vmatpush1.bf16.msra.mxu1 %v20607_v19  ;;  %v20661_v18 = vld [vmem:[%s22045_s1 + $0x1ae8] ss:$100 sps:$4 sm:$0xff]  }
 0x6cc   : > { %12544 = vmatprep.subr.bf16.mxu0 %v20612_v21  ;;  %12708 = vmatprep.subr.bf16.mxu1 %v20615_v22  ;;  %v20666_v19 = vld [vmem:[%s22045_s1 + $0x1bac] ss:$100 sps:$4 sm:$0xff]   ;;  %v20669_v21 = vld [vmem:[%s22045_s1 + $0x1bb4] ss:$100 sps:$4 sm:$0xff]  }
 0x6cd   : > { %v20664_v22 = vld [vmem:[%s22045_s1 + $0x1ba8] ss:$100 sps:$4 sm:$0xff]  }
 0x6cf   : > { %12545 = vmatpush1.bf16.msra.mxu0 %v20610_v29  ;;  %12709 = vmatpush1.bf16.msra.mxu1 %v20613_v9  ;;  %v20667_v29 = vld [vmem:[%s22045_s1 + $0x1bb0] ss:$100 sps:$4 sm:$0xff]  }
 0x6d0   : > { %12546 = vmatprep.subr.bf16.mxu0 %v20618_v31  ;;  %12710 = vmatprep.subr.bf16.mxu1 %v20621_v32  ;;  %v20672_v9 = vld [vmem:[%s22045_s1 + $0x1c74] ss:$100 sps:$4 sm:$0xff]   ;;  %v20675_v31 = vld [vmem:[%s22045_s1 + $0x1c7c] ss:$100 sps:$4 sm:$0xff]  }
 0x6d1   : > { %v20670_v32 = vld [vmem:[%s22045_s1 + $0x1c70] ss:$100 sps:$4 sm:$0xff]  }
 0x6d3   : > { %12547 = vmatpush1.bf16.msra.mxu0 %v20616_v33  ;;  %12711 = vmatpush1.bf16.msra.mxu1 %v20619_v27  ;;  %v20673_v33 = vld [vmem:[%s22045_s1 + $0x1c78] ss:$100 sps:$4 sm:$0xff]  }
 0x6d4   : > { %12548 = vmatprep.subr.bf16.mxu0 %v20624_v36  ;;  %12712 = vmatprep.subr.bf16.mxu1 %v20627_v37  ;;  %v20678_v27 = vld [vmem:[%s22045_s1 + $0x1d3c] ss:$100 sps:$4 sm:$0xff]   ;;  %v20681_v36 = vld [vmem:[%s22045_s1 + $0x1d44] ss:$100 sps:$4 sm:$0xff]  }
 0x6d5   : > { %v20676_v37 = vld [vmem:[%s22045_s1 + $0x1d38] ss:$100 sps:$4 sm:$0xff]  }
 0x6d7   : > { %12549 = vmatpush1.bf16.msra.mxu0 %v20622_v39  ;;  %12713 = vmatpush1.bf16.msra.mxu1 %v20625_v40  ;;  %v20679_v39 = vld [vmem:[%s22045_s1 + $0x1d40] ss:$100 sps:$4 sm:$0xff]  }
 0x6d8   : > { %12550 = vmatprep.subr.bf16.mxu0 %v20630_v49  ;;  %12714 = vmatprep.subr.bf16.mxu1 %v20633_v42  ;;  %v20684_v40 = vld [vmem:[%s22045_s1 + $0x1e04] ss:$100 sps:$4 sm:$0xff]   ;;  %v20687_v49 = vld [vmem:[%s22045_s1 + $0x1e0c] ss:$100 sps:$4 sm:$0xff]  }
 0x6d9   : > { %v20682_v42 = vld [vmem:[%s22045_s1 + $0x1e00] ss:$100 sps:$4 sm:$0xff]  }
 0x6db   : > { %12551 = vmatpush1.bf16.msra.mxu0 %v20628_v44  ;;  %12715 = vmatpush1.bf16.msra.mxu1 %v20631_v45  ;;  %v20685_v44 = vld [vmem:[%s22045_s1 + $0x1e08] ss:$100 sps:$4 sm:$0xff]  }
 0x6dc   : > { %12552 = vmatprep.subr.bf16.mxu0 %v20636_v30  ;;  %12716 = vmatprep.subr.bf16.mxu1 %v20639_v47  ;;  %v20690_v45 = vld [vmem:[%s22045_s1 + $0x1ecc] ss:$100 sps:$4 sm:$0xff]   ;;  %v20693_v30 = vld [vmem:[%s22045_s1 + $0x1ed4] ss:$100 sps:$4 sm:$0xff]  }
 0x6dd   : > { %v20688_v47 = vld [vmem:[%s22045_s1 + $0x1ec8] ss:$100 sps:$4 sm:$0xff]  }
 0x6df   : > { %12553 = vmatpush1.bf16.msra.mxu0 %v20634_v48  ;;  %12717 = vmatpush1.bf16.msra.mxu1 %v20637_v50  ;;  %v20691_v48 = vld [vmem:[%s22045_s1 + $0x1ed0] ss:$100 sps:$4 sm:$0xff]  }
 0x6e0   : > { %12554 = vmatprep.subr.bf16.mxu0 %v20642_v51  ;;  %12718 = vmatprep.subr.bf16.mxu1 %v20645_v52  ;;  %v20696_v50 = vld [vmem:[%s22045_s1 + $0x1f94] ss:$100 sps:$4 sm:$0xff]   ;;  %v20699_v51 = vld [vmem:[%s22045_s1 + $0x1f9c] ss:$100 sps:$4 sm:$0xff]  }
 0x6e1   : > { %v20694_v52 = vld [vmem:[%s22045_s1 + $0x1f90] ss:$100 sps:$4 sm:$0xff]  }
 0x6e3   : > { %12555 = vmatpush1.bf16.msra.mxu0 %v20640_v34  ;;  %12719 = vmatpush1.bf16.msra.mxu1 %v20643_v58  ;;  %v20697_v34 = vld [vmem:[%s22045_s1 + $0x1f98] ss:$100 sps:$4 sm:$0xff]  }
 0x6e4   : > { %12565 = vmatprep.subr.bf16.mxu0 %v20648_v61  ;;  %12729 = vmatprep.subr.bf16.mxu1 %v20651_v2  ;;  %v20702_v58 = vld [vmem:[%s22045_s1 + $0x205c] ss:$100 sps:$4 sm:$0xff]   ;;  %v20705_v61 = vld [vmem:[%s22045_s1 + $0x2064] ss:$100 sps:$4 sm:$0xff]  }
 0x6e5   : > { %v20700_v2 = vld [vmem:[%s22045_s1 + $0x2058] ss:$100 sps:$4 sm:$0xff]  }
 0x6e6   : > { %12557 = vmatmul.mubr.bf16.vlgmr.msra.gmra.mrb[20].mxu0 %v22259_v25  ;;  %12721 = vmatmul.mubr.bf16.vlgmr.msra.gmra.mrb[20].mxu1 %v22259_v25 }
 0x6e7   : > { %12566 = vmatpush1.bf16.msra.mxu0 %v20646_v3  ;;  %12730 = vmatpush1.bf16.msra.mxu1 %v20649_v4  ;;  %v20703_v3 = vld [vmem:[%s22045_s1 + $0x2060] ss:$100 sps:$4 sm:$0xff]  }
 0x6e8   : > { %12567 = vmatprep.subr.bf16.mxu0 %v20654_v5  ;;  %12731 = vmatprep.subr.bf16.mxu1 %v20657_v6  ;;  %v20708_v4 = vld [vmem:[%s22045_s1 + $0x2124] ss:$100 sps:$4 sm:$0xff]   ;;  %v20711_v5 = vld [vmem:[%s22045_s1 + $0x212c] ss:$100 sps:$4 sm:$0xff]  }
 0x6e9   : > { %12597 = vmatprep.mubr.bf16.mxu0 %v22279_v35  ;;  %12761 = vmatprep.mubr.bf16.mxu1 %v22279_v35  ;;  %v20706_v6 = vld [vmem:[%s22045_s1 + $0x2120] ss:$100 sps:$4 sm:$0xff]  }
 0x6eb   : > { %12568 = vmatpush1.bf16.msra.mxu0 %v20652_v8  ;;  %12732 = vmatpush1.bf16.msra.mxu1 %v20655_v13  ;;  %v20709_v8 = vld [vmem:[%s22045_s1 + $0x2128] ss:$100 sps:$4 sm:$0xff]  }
 0x6ec   : > { %12569 = vmatprep.subr.bf16.mxu0 %v20660_v14  ;;  %12733 = vmatprep.subr.bf16.mxu1 %v20663_v15  ;;  %v20714_v13 = vld [vmem:[%s22045_s1 + $0x21ec] ss:$100 sps:$4 sm:$0xff]   ;;  %v20717_v14 = vld [vmem:[%s22045_s1 + $0x21f4] ss:$100 sps:$4 sm:$0xff]  }
 0x6ed   : > { %v20712_v15 = vld [vmem:[%s22045_s1 + $0x21e8] ss:$100 sps:$4 sm:$0xff]  }
 0x6ef   : > { %12570 = vmatpush1.bf16.msra.mxu0 %v20658_v17  ;;  %12734 = vmatpush1.bf16.msra.mxu1 %v20661_v18  ;;  %v20715_v17 = vld [vmem:[%s22045_s1 + $0x21f0] ss:$100 sps:$4 sm:$0xff]  }
 0x6f0   : > { %12571 = vmatprep.subr.bf16.mxu0 %v20666_v19  ;;  %12735 = vmatprep.subr.bf16.mxu1 %v20669_v21  ;;  %v20720_v18 = vld [vmem:[%s22045_s1 + $0x22b4] ss:$100 sps:$4 sm:$0xff]   ;;  %v20723_v19 = vld [vmem:[%s22045_s1 + $0x22bc] ss:$100 sps:$4 sm:$0xff]  }
 0x6f1   : > { %v20718_v21 = vld [vmem:[%s22045_s1 + $0x22b0] ss:$100 sps:$4 sm:$0xff]  }
 0x6f3   : > { %12572 = vmatpush1.bf16.msra.mxu0 %v20664_v22  ;;  %12736 = vmatpush1.bf16.msra.mxu1 %v20667_v29  ;;  %v20721_v22 = vld [vmem:[%s22045_s1 + $0x22b8] ss:$100 sps:$4 sm:$0xff]  }
 0x6f4   : > { %12573 = vmatprep.subr.bf16.mxu0 %v20672_v9  ;;  %12737 = vmatprep.subr.bf16.mxu1 %v20675_v31  ;;  %v20726_v29 = vld [vmem:[%s22045_s1 + $0x237c] ss:$100 sps:$4 sm:$0xff]   ;;  %v20729_v9 = vld [vmem:[%s22045_s1 + $0x2384] ss:$100 sps:$4 sm:$0xff]  }
 0x6f5   : > { %v20724_v31 = vld [vmem:[%s22045_s1 + $0x2378] ss:$100 sps:$4 sm:$0xff]  }
 0x6f7   : > { %12574 = vmatpush1.bf16.msra.mxu0 %v20670_v32  ;;  %12738 = vmatpush1.bf16.msra.mxu1 %v20673_v33  ;;  %v20727_v32 = vld [vmem:[%s22045_s1 + $0x2380] ss:$100 sps:$4 sm:$0xff]  }
 0x6f8   : > { %12575 = vmatprep.subr.bf16.mxu0 %v20678_v27  ;;  %12739 = vmatprep.subr.bf16.mxu1 %v20681_v36  ;;  %v20732_v33 = vld [vmem:[%s22045_s1 + $0x2444] ss:$100 sps:$4 sm:$0xff]   ;;  %v20735_v27 = vld [vmem:[%s22045_s1 + $0x244c] ss:$100 sps:$4 sm:$0xff]  }
 0x6f9   : > { %v20730_v36 = vld [vmem:[%s22045_s1 + $0x2440] ss:$100 sps:$4 sm:$0xff]  }
 0x6fb   : > { %12576 = vmatpush1.bf16.msra.mxu0 %v20676_v37  ;;  %12740 = vmatpush1.bf16.msra.mxu1 %v20679_v39  ;;  %v20733_v37 = vld [vmem:[%s22045_s1 + $0x2448] ss:$100 sps:$4 sm:$0xff]  }
 0x6fc   : > { %12577 = vmatprep.subr.bf16.mxu0 %v20684_v40  ;;  %12741 = vmatprep.subr.bf16.mxu1 %v20687_v49  ;;  %v20738_v39 = vld [vmem:[%s22045_s1 + $0x250c] ss:$100 sps:$4 sm:$0xff]   ;;  %v20741_v40 = vld [vmem:[%s22045_s1 + $0x2514] ss:$100 sps:$4 sm:$0xff]  }
 0x6fd   : > { %v20736_v49 = vld [vmem:[%s22045_s1 + $0x2508] ss:$100 sps:$4 sm:$0xff]  }
 0x6ff   : > { %12578 = vmatpush1.bf16.msra.mxu0 %v20682_v42  ;;  %12742 = vmatpush1.bf16.msra.mxu1 %v20685_v44  ;;  %v20739_v42 = vld [vmem:[%s22045_s1 + $0x2510] ss:$100 sps:$4 sm:$0xff]  }
 0x700   : > { %12579 = vmatprep.subr.bf16.mxu0 %v20690_v45  ;;  %12743 = vmatprep.subr.bf16.mxu1 %v20693_v30  ;;  %v20744_v44 = vld [vmem:[%s22045_s1 + $0x25d4] ss:$100 sps:$4 sm:$0xff]   ;;  %v20747_v45 = vld [vmem:[%s22045_s1 + $0x25dc] ss:$100 sps:$4 sm:$0xff]  }
 0x701   : > { %v20742_v30 = vld [vmem:[%s22045_s1 + $0x25d0] ss:$100 sps:$4 sm:$0xff]  }
 0x703   : > { %12580 = vmatpush1.bf16.msra.mxu0 %v20688_v47  ;;  %12744 = vmatpush1.bf16.msra.mxu1 %v20691_v48  ;;  %v20745_v47 = vld [vmem:[%s22045_s1 + $0x25d8] ss:$100 sps:$4 sm:$0xff]  }
 0x704   : > { %12581 = vmatprep.subr.bf16.mxu0 %v20696_v50  ;;  %12745 = vmatprep.subr.bf16.mxu1 %v20699_v51  ;;  %v20750_v48 = vld [vmem:[%s22045_s1 + $0x269c] ss:$100 sps:$4 sm:$0xff]   ;;  %v20753_v50 = vld [vmem:[%s22045_s1 + $0x26a4] ss:$100 sps:$4 sm:$0xff]  }
 0x705   : > { %v20748_v51 = vld [vmem:[%s22045_s1 + $0x2698] ss:$100 sps:$4 sm:$0xff]  }
 0x707   : > { %12582 = vmatpush1.bf16.msra.mxu0 %v20694_v52  ;;  %12746 = vmatpush1.bf16.msra.mxu1 %v20697_v34  ;;  %v20751_v52 = vld [vmem:[%s22045_s1 + $0x26a0] ss:$100 sps:$4 sm:$0xff]  }
 0x708   : > { %12583 = vmatprep.subr.bf16.mxu0 %v20702_v58  ;;  %12747 = vmatprep.subr.bf16.mxu1 %v20705_v61  ;;  %v20756_v34 = vld [vmem:[%s22045_s1 + $0x2764] ss:$100 sps:$4 sm:$0xff]   ;;  %v20759_v58 = vld [vmem:[%s22045_s1 + $0x276c] ss:$100 sps:$4 sm:$0xff]  }
 0x709   : > { %v20754_v61 = vld [vmem:[%s22045_s1 + $0x2760] ss:$100 sps:$4 sm:$0xff]  }
 0x70b   : > { %12584 = vmatpush1.bf16.msra.mxu0 %v20700_v2  ;;  %12748 = vmatpush1.bf16.msra.mxu1 %v20703_v3  ;;  %v20757_v2 = vld [vmem:[%s22045_s1 + $0x2768] ss:$100 sps:$4 sm:$0xff]  }
 0x70c   : > { %12585 = vmatprep.subr.bf16.mxu0 %v20708_v4  ;;  %12749 = vmatprep.subr.bf16.mxu1 %v20711_v5  ;;  %v20762_v3 = vld [vmem:[%s22045_s1 + $0x282c] ss:$100 sps:$4 sm:$0xff]   ;;  %v20765_v4 = vld [vmem:[%s22045_s1 + $0x2834] ss:$100 sps:$4 sm:$0xff]  }
 0x70d   : > { %v20760_v5 = vld [vmem:[%s22045_s1 + $0x2828] ss:$100 sps:$4 sm:$0xff]  }
 0x70f   : > { %12586 = vmatpush1.bf16.msra.mxu0 %v20706_v6  ;;  %12750 = vmatpush1.bf16.msra.mxu1 %v20709_v8  ;;  %v20763_v6 = vld [vmem:[%s22045_s1 + $0x2830] ss:$100 sps:$4 sm:$0xff]  }
 0x710   : > { %12587 = vmatprep.subr.bf16.mxu0 %v20714_v13  ;;  %12751 = vmatprep.subr.bf16.mxu1 %v20717_v14  ;;  %v20768_v8 = vld [vmem:[%s22045_s1 + $0x28f4] ss:$100 sps:$4 sm:$0xff]   ;;  %v20771_v13 = vld [vmem:[%s22045_s1 + $0x28fc] ss:$100 sps:$4 sm:$0xff]  }
 0x711   : > { %v20766_v14 = vld [vmem:[%s22045_s1 + $0x28f0] ss:$100 sps:$4 sm:$0xff]  }
 0x713   : > { %12588 = vmatpush1.bf16.msra.mxu0 %v20712_v15  ;;  %12752 = vmatpush1.bf16.msra.mxu1 %v20715_v17  ;;  %v20769_v15 = vld [vmem:[%s22045_s1 + $0x28f8] ss:$100 sps:$4 sm:$0xff]  }
 0x714   : > { %12589 = vmatprep.subr.bf16.mxu0 %v20720_v18  ;;  %12753 = vmatprep.subr.bf16.mxu1 %v20723_v19  ;;  %v20774_v17 = vld [vmem:[%s22045_s1 + $0x29bc] ss:$100 sps:$4 sm:$0xff]   ;;  %v20777_v18 = vld [vmem:[%s22045_s1 + $0x29c4] ss:$100 sps:$4 sm:$0xff]  }
 0x715   : > { %v20772_v19 = vld [vmem:[%s22045_s1 + $0x29b8] ss:$100 sps:$4 sm:$0xff]  }
 0x717   : > { %12590 = vmatpush1.bf16.msra.mxu0 %v20718_v21  ;;  %12754 = vmatpush1.bf16.msra.mxu1 %v20721_v22  ;;  %v20775_v21 = vld [vmem:[%s22045_s1 + $0x29c0] ss:$100 sps:$4 sm:$0xff]  }
 0x718   : > { %12591 = vmatprep.subr.bf16.mxu0 %v20726_v29  ;;  %12755 = vmatprep.subr.bf16.mxu1 %v20729_v9  ;;  %v20780_v22 = vld [vmem:[%s22045_s1 + $0x2a84] ss:$100 sps:$4 sm:$0xff]   ;;  %v20783_v29 = vld [vmem:[%s22045_s1 + $0x2a8c] ss:$100 sps:$4 sm:$0xff]  }
 0x71b   : > { %12592 = vmatpush1.bf16.msra.mxu0 %v20724_v31  ;;  %12756 = vmatpush1.bf16.msra.mxu1 %v20727_v32 }
 0x71c   : > { %12593 = vmatprep.subr.bf16.mxu0 %v20732_v33  ;;  %12757 = vmatprep.subr.bf16.mxu1 %v20735_v27 }
 0x71f   : > { %12594 = vmatpush1.bf16.msra.mxu0 %v20730_v36  ;;  %12758 = vmatpush1.bf16.msra.mxu1 %v20733_v37  ;;  %v20778_v37 = vld [vmem:[%s22045_s1 + $0x2a80] ss:$100 sps:$4 sm:$0xff]  }
 0x720   : > { %12595 = vmatprep.subr.bf16.mxu0 %v20738_v39  ;;  %12759 = vmatprep.subr.bf16.mxu1 %v20741_v40  ;;  %v20781_v39 = vld [vmem:[%s22045_s1 + $0x2a88] ss:$100 sps:$4 sm:$0xff]  }
 0x723   : > { %12596 = vmatpush1.bf16.msra.mxu0 %v20736_v49  ;;  %12760 = vmatpush1.bf16.msra.mxu1 %v20739_v42  ;;  %v20786_v42 = vld [vmem:[%s22045_s1 + $0x2b4c] ss:$100 sps:$4 sm:$0xff]  }
 0x724   : > { %12606 = vmatprep.subr.bf16.mxu0 %v20744_v44  ;;  %12770 = vmatprep.subr.bf16.mxu1 %v20747_v45  ;;  %v20789_v44 = vld [vmem:[%s22045_s1 + $0x2b54] ss:$100 sps:$4 sm:$0xff]   ;;  %v20784_v45 = vld [vmem:[%s22045_s1 + $0x2b48] ss:$100 sps:$4 sm:$0xff]  }
 0x726   : > { %12598 = vmatmul.mubr.bf16.vlgmr.msra.gmra.mrb[20].mxu0 %v22348_v41  ;;  %12762 = vmatmul.mubr.bf16.vlgmr.msra.gmra.mrb[20].mxu1 %v22348_v41 }
 0x727   : > { %12607 = vmatpush1.bf16.msra.mxu0 %v20742_v30  ;;  %12771 = vmatpush1.bf16.msra.mxu1 %v20745_v47  ;;  %v20787_v30 = vld [vmem:[%s22045_s1 + $0x2b50] ss:$100 sps:$4 sm:$0xff]  }
 0x728   : > { %12608 = vmatprep.subr.bf16.mxu0 %v20750_v48  ;;  %12772 = vmatprep.subr.bf16.mxu1 %v20753_v50  ;;  %v20792_v47 = vld [vmem:[%s22045_s1 + $0x2c14] ss:$100 sps:$4 sm:$0xff]   ;;  %v20795_v48 = vld [vmem:[%s22045_s1 + $0x2c1c] ss:$100 sps:$4 sm:$0xff]  }
 0x729   : > { %12638 = vmatprep.mubr.bf16.mxu0 %v22354_v46  ;;  %12802 = vmatprep.mubr.bf16.mxu1 %v22354_v46  ;;  %v20790_v50 = vld [vmem:[%s22045_s1 + $0x2c10] ss:$100 sps:$4 sm:$0xff]  }
 0x72b   : > { %12609 = vmatpush1.bf16.msra.mxu0 %v20748_v51  ;;  %12773 = vmatpush1.bf16.msra.mxu1 %v20751_v52  ;;  %v20793_v51 = vld [vmem:[%s22045_s1 + $0x2c18] ss:$100 sps:$4 sm:$0xff]  }
 0x72c   : > { %12610 = vmatprep.subr.bf16.mxu0 %v20756_v34  ;;  %12774 = vmatprep.subr.bf16.mxu1 %v20759_v58  ;;  %v20798_v52 = vld [vmem:[%s22045_s1 + $0x2cdc] ss:$100 sps:$4 sm:$0xff]   ;;  %v20801_v34 = vld [vmem:[%s22045_s1 + $0x2ce4] ss:$100 sps:$4 sm:$0xff]  }
 0x72d   : > { %v20796_v58 = vld [vmem:[%s22045_s1 + $0x2cd8] ss:$100 sps:$4 sm:$0xff]  }
 0x72f   : > { %12611 = vmatpush1.bf16.msra.mxu0 %v20754_v61  ;;  %12775 = vmatpush1.bf16.msra.mxu1 %v20757_v2  ;;  %v20799_v61 = vld [vmem:[%s22045_s1 + $0x2ce0] ss:$100 sps:$4 sm:$0xff]  }
 0x730   : > { %12612 = vmatprep.subr.bf16.mxu0 %v20762_v3  ;;  %12776 = vmatprep.subr.bf16.mxu1 %v20765_v4  ;;  %v20804_v2 = vld [vmem:[%s22045_s1 + $0x2da4] ss:$100 sps:$4 sm:$0xff]   ;;  %v20807_v3 = vld [vmem:[%s22045_s1 + $0x2dac] ss:$100 sps:$4 sm:$0xff]  }
 0x731   : > { %v20802_v4 = vld [vmem:[%s22045_s1 + $0x2da0] ss:$100 sps:$4 sm:$0xff]  }
 0x733   : > { %12613 = vmatpush1.bf16.msra.mxu0 %v20760_v5  ;;  %12777 = vmatpush1.bf16.msra.mxu1 %v20763_v6  ;;  %v20805_v5 = vld [vmem:[%s22045_s1 + $0x2da8] ss:$100 sps:$4 sm:$0xff]  }
 0x734   : > { %12614 = vmatprep.subr.bf16.mxu0 %v20768_v8  ;;  %12778 = vmatprep.subr.bf16.mxu1 %v20771_v13  ;;  %v20810_v6 = vld [vmem:[%s22045_s1 + $0x2e6c] ss:$100 sps:$4 sm:$0xff]   ;;  %v20813_v8 = vld [vmem:[%s22045_s1 + $0x2e74] ss:$100 sps:$4 sm:$0xff]  }
 0x735   : > { %v20808_v13 = vld [vmem:[%s22045_s1 + $0x2e68] ss:$100 sps:$4 sm:$0xff]  }
 0x737   : > { %12615 = vmatpush1.bf16.msra.mxu0 %v20766_v14  ;;  %12779 = vmatpush1.bf16.msra.mxu1 %v20769_v15  ;;  %v20811_v14 = vld [vmem:[%s22045_s1 + $0x2e70] ss:$100 sps:$4 sm:$0xff]  }
 0x738   : > { %12616 = vmatprep.subr.bf16.mxu0 %v20774_v17  ;;  %12780 = vmatprep.subr.bf16.mxu1 %v20777_v18  ;;  %v20816_v15 = vld [vmem:[%s22045_s1 + $0x2f34] ss:$100 sps:$4 sm:$0xff]   ;;  %v20819_v17 = vld [vmem:[%s22045_s1 + $0x2f3c] ss:$100 sps:$4 sm:$0xff]  }
 0x739   : > { %v23781_v9 = vpop.f32.mrb[16].mxu0  ;;  %v23783_v31 = vpop.f32.mrb[16].mxu1  ;;  %v20814_v18 = vld [vmem:[%s22045_s1 + $0x2f30] ss:$100 sps:$4 sm:$0xff]  }
 0x73a   : > { %v23785_v32 = vpop.f32.mrb[17].mxu0  ;;  %v23787_v33 = vpop.f32.mrb[17].mxu1 }
 0x73b   : > { %v12316_v27 = vpop.f32.mrb[18].mxu0  ;;  %v12480_v36 = vpop.f32.mrb[18].mxu1  ;;  %12617 = vmatpush1.bf16.msra.mxu0 %v20772_v19  ;;  %12781 = vmatpush1.bf16.msra.mxu1 %v20775_v21  ;;  %v20817_v19 = vld [vmem:[%s22045_s1 + $0x2f38] ss:$100 sps:$4 sm:$0xff]  }
 0x73c   : > { %v12317_v40 = vpop.f32.mrb[19].mxu0  ;;  %v12481_v49 = vpop.f32.mrb[19].mxu1  ;;  %12618 = vmatprep.subr.bf16.mxu0 %v20780_v22  ;;  %12782 = vmatprep.subr.bf16.mxu1 %v20783_v29  ;;  %v20822_v21 = vld [vmem:[%s22045_s1 + $0x2ffc] ss:$100 sps:$4 sm:$0xff]   ;;  %v20825_v22 = vld [vmem:[%s22045_s1 + $0x3004] ss:$100 sps:$4 sm:$0xff]  }
 0x73d   : > { %v20820_v29 = vld [vmem:[%s22045_s1 + $0x2ff8] ss:$100 sps:$4 sm:$0xff]   ;;  %v20823_v27 = vld [vmem:[%s22045_s1 + $0x3000] ss:$100 sps:$4 sm:$0xff]   ;;  %v20829_v40 = vld [vmem:[%s22045_s1 + $0x30c8] ss:$100 sps:$4 sm:$0xff]  }
 0x73e   : > { %v20828_v36 = vld [vmem:[%s22045_s1 + $0x30c4] ss:$100 sps:$4 sm:$0xff]   ;;  %v20834_v49 = vld [vmem:[%s22045_s1 + $0x318c] ss:$100 sps:$4 sm:$0xff]  }
 0x73f   : > { %12619 = vmatpush1.bf16.msra.mxu0 %v20778_v37  ;;  %12783 = vmatpush1.bf16.msra.mxu1 %v20781_v39  ;;  %v20831_v37 = vld [vmem:[%s22045_s1 + $0x30cc] ss:$100 sps:$4 sm:$0xff]   ;;  %v20826_v39 = vld [vmem:[%s22045_s1 + $0x30c0] ss:$100 sps:$4 sm:$0xff]  }
 0x740   : > { %12620 = vmatprep.subr.bf16.mxu0 %v20786_v42  ;;  %12784 = vmatprep.subr.bf16.mxu1 %v20789_v44  ;;  %v20837_v42 = vld [vmem:[%s22045_s1 + $0x3194] ss:$100 sps:$4 sm:$0xff]   ;;  %v20832_v44 = vld [vmem:[%s22045_s1 + $0x3188] ss:$100 sps:$4 sm:$0xff]  }
 0x743   : > { %12621 = vmatpush1.bf16.msra.mxu0 %v20784_v45  ;;  %12785 = vmatpush1.bf16.msra.mxu1 %v20787_v30  ;;  %v20835_v45 = vld [vmem:[%s22045_s1 + $0x3190] ss:$100 sps:$4 sm:$0xff]   ;;  %v20838_v30 = vld [vmem:[%s22045_s1 + $0x6a0] ss:$100 sps:$4 sm:$0xff]  }
 0x744   : > { %12622 = vmatprep.subr.bf16.mxu0 %v20792_v47  ;;  %12786 = vmatprep.subr.bf16.mxu1 %v20795_v48  ;;  %v20839_v47 = vld [vmem:[%s22045_s1 + $0x1320] ss:$100 sps:$4 sm:$0xff]  }
 0x745   : > { %v20840_v48 = vld [vmem:[%s22045_s1 + $0x60] ss:$100 sps:$4 sm:$0xff]  }
 0x747   : > { %12623 = vmatpush1.bf16.msra.mxu0 %v20790_v50  ;;  %12787 = vmatpush1.bf16.msra.mxu1 %v20793_v51  ;;  %v20841_v50 = vld [vmem:[%s22045_s1 + $0xce0] ss:$100 sps:$4 sm:$0xff]   ;;  %v20842_v51 = vld [vmem:[%s22045_s1 + $0x768] ss:$100 sps:$4 sm:$0xff]  }
 0x748   : > { %12624 = vmatprep.subr.bf16.mxu0 %v20798_v52  ;;  %12788 = vmatprep.subr.bf16.mxu1 %v20801_v34  ;;  %v20843_v52 = vld [vmem:[%s22045_s1 + $0x13e8] ss:$100 sps:$4 sm:$0xff]  }
 0x749   : > { %v20844_v34 = vld [vmem:[%s22045_s1 + $0x128] ss:$100 sps:$4 sm:$0xff]  }
 0x74b   : > { %12625 = vmatpush1.bf16.msra.mxu0 %v20796_v58  ;;  %12789 = vmatpush1.bf16.msra.mxu1 %v20799_v61  ;;  %v20845_v58 = vld [vmem:[%s22045_s1 + $0xda8] ss:$100 sps:$4 sm:$0xff]   ;;  %v20846_v61 = vld [vmem:[%s22045_s1 + $0x830] ss:$100 sps:$4 sm:$0xff]  }
 0x74c   : > { %12626 = vmatprep.subr.bf16.mxu0 %v20804_v2  ;;  %12790 = vmatprep.subr.bf16.mxu1 %v20807_v3  ;;  %v20847_v2 = vld [vmem:[%s22045_s1 + $0x14b0] ss:$100 sps:$4 sm:$0xff]  }
 0x74d   : > { %v20848_v3 = vld [vmem:[%s22045_s1 + $0x1f0] ss:$100 sps:$4 sm:$0xff]  }
 0x74f   : > { %12627 = vmatpush1.bf16.msra.mxu0 %v20802_v4  ;;  %12791 = vmatpush1.bf16.msra.mxu1 %v20805_v5  ;;  %v20849_v4 = vld [vmem:[%s22045_s1 + $0xe70] ss:$100 sps:$4 sm:$0xff]   ;;  %v20850_v5 = vld [vmem:[%s22045_s1 + $0x8f8] ss:$100 sps:$4 sm:$0xff]  }
 0x750   : > { %12628 = vmatprep.subr.bf16.mxu0 %v20810_v6  ;;  %12792 = vmatprep.subr.bf16.mxu1 %v20813_v8  ;;  %v20851_v6 = vld [vmem:[%s22045_s1 + $0x1578] ss:$100 sps:$4 sm:$0xff]  }
 0x751   : > { %v20852_v8 = vld [vmem:[%s22045_s1 + $0x2b8] ss:$100 sps:$4 sm:$0xff]  }
 0x753   : > { %12629 = vmatpush1.bf16.msra.mxu0 %v20808_v13  ;;  %12793 = vmatpush1.bf16.msra.mxu1 %v20811_v14  ;;  %v20855_v13 = vld [vmem:[%s22045_s1 + $0x1640] ss:$100 sps:$4 sm:$0xff]  }
 0x754   : > { %12630 = vmatprep.subr.bf16.mxu0 %v20816_v15  ;;  %12794 = vmatprep.subr.bf16.mxu1 %v20819_v17  ;;  %v20856_v14 = vld [vmem:[%s22045_s1 + $0x380] ss:$100 sps:$4 sm:$0xff]   ;;  %v20858_v17 = vld [vmem:[%s22045_s1 + $0xa88] ss:$100 sps:$4 sm:$0xff]  }
 0x755   : > { %v20857_v15 = vld [vmem:[%s22045_s1 + $0x1000] ss:$100 sps:$4 sm:$0xff]  }
 0x757   : > { %12631 = vmatpush1.bf16.msra.mxu0 %v20814_v18  ;;  %12795 = vmatpush1.bf16.msra.mxu1 %v20817_v19  ;;  %v20859_v18 = vld [vmem:[%s22045_s1 + $0x1708] ss:$100 sps:$4 sm:$0xff]  }
 0x758   : > { %12632 = vmatprep.subr.bf16.mxu0 %v20822_v21  ;;  %12796 = vmatprep.subr.bf16.mxu1 %v20825_v22  ;;  %v20860_v19 = vld [vmem:[%s22045_s1 + $0x448] ss:$100 sps:$4 sm:$0xff]   ;;  %v20862_v22 = vld [vmem:[%s22045_s1 + $0xb50] ss:$100 sps:$4 sm:$0xff]  }
 0x759   : > { %v20861_v21 = vld [vmem:[%s22045_s1 + $0x10c8] ss:$100 sps:$4 sm:$0xff]  }
 0x75b   : > { %12633 = vmatpush1.bf16.msra.mxu0 %v20820_v29  ;;  %12797 = vmatpush1.bf16.msra.mxu1 %v20823_v27  ;;  %v20863_v29 = vld [vmem:[%s22045_s1 + $0x17d0] ss:$100 sps:$4 sm:$0xff]  }
 0x75c   : > { %12634 = vmatprep.subr.bf16.mxu0 %v20828_v36  ;;  %12798 = vmatprep.subr.bf16.mxu1 %v20831_v37  ;;  %v20864_v27 = vld [vmem:[%s22045_s1 + $0x510] ss:$100 sps:$4 sm:$0xff]   ;;  %v20866_v37 = vld [vmem:[%s22045_s1 + $0xc18] ss:$100 sps:$4 sm:$0xff]  }
 0x75d   : > { %v20865_v36 = vld [vmem:[%s22045_s1 + $0x1190] ss:$100 sps:$4 sm:$0xff]  }
 0x75f   : > { %12635 = vmatpush1.bf16.msra.mxu0 %v20826_v39  ;;  %12799 = vmatpush1.bf16.msra.mxu1 %v20829_v40  ;;  %v20867_v39 = vld [vmem:[%s22045_s1 + $0x1898] ss:$100 sps:$4 sm:$0xff]  }
 0x760   : > { %12636 = vmatprep.subr.bf16.mxu0 %v20834_v49  ;;  %12800 = vmatprep.subr.bf16.mxu1 %v20837_v42  ;;  %v20868_v40 = vld [vmem:[%s22045_s1 + $0x5d8] ss:$100 sps:$4 sm:$0xff]   ;;  %v20870_v42 = vld [vmem:[%s22045_s1 + $0x1fa0] ss:$100 sps:$4 sm:$0xff]  }
 0x761   : > { %v20869_v49 = vld [vmem:[%s22045_s1 + $0x1258] ss:$100 sps:$4 sm:$0xff]  }
 0x763   : > { %12637 = vmatpush1.bf16.msra.mxu0 %v20832_v44  ;;  %12801 = vmatpush1.bf16.msra.mxu1 %v20835_v45  ;;  %v20871_v44 = vld [vmem:[%s22045_s1 + $0x2c20] ss:$100 sps:$4 sm:$0xff]  }
 0x764   : > { %17783 = vmatprep.subr.bf16.mxu0 %v20838_v30  ;;  %17805 = vmatprep.subr.bf16.mxu1 %v20839_v47  ;;  %v20872_v45 = vld [vmem:[%s22045_s1 + $0x1960] ss:$100 sps:$4 sm:$0xff]   ;;  %v20874_v47 = vld [vmem:[%s22045_s1 + $0x2068] ss:$100 sps:$4 sm:$0xff]  }
 0x765   : > { %v20873_v30 = vld [vmem:[%s22045_s1 + $0x25e0] ss:$100 sps:$4 sm:$0xff]  }
 0x766   : > { %12639 = vmatmul.mubr.bf16.vlgmr.msra.gmra.mrb[20].mxu0 %v22422_v53  ;;  %12803 = vmatmul.mubr.bf16.vlgmr.msra.gmra.mrb[20].mxu1 %v22422_v53 }
 0x767   : > { %17784 = vmatpush3.bf16.msra.mxu0 %v20840_v48  ;;  %17806 = vmatpush3.bf16.msra.mxu1 %v20841_v50  ;;  %v20875_v48 = vld [vmem:[%s22045_s1 + $0x2ce8] ss:$100 sps:$4 sm:$0xff]  }
 0x768   : > { %17785 = vmatprep.subr.bf16.mxu0 %v20842_v51  ;;  %17807 = vmatprep.subr.bf16.mxu1 %v20843_v52  ;;  %v20876_v50 = vld [vmem:[%s22045_s1 + $0x1a28] ss:$100 sps:$4 sm:$0xff]   ;;  %v20878_v52 = vld [vmem:[%s22045_s1 + $0x2130] ss:$100 sps:$4 sm:$0xff]  }
 0x769   : > { %12843 = vmatprep.mubr.bf16.mxu0 %v22160_v60  ;;  %12883 = vmatprep.mubr.bf16.mxu1 %v22190_v20  ;;  %v20853_v60 = vld [vmem:[%s22045_s1 + $0xf38] ss:$100 sps:$4 sm:$0xff]   ;;  %v20854_v20 = vld [vmem:[%s22045_s1 + $0x9c0] ss:$100 sps:$4 sm:$0xff]   ;;  %v20877_v51 = vld [vmem:[%s22045_s1 + $0x26a8] ss:$100 sps:$4 sm:$0xff]  }
 0x76b   : > { %17786 = vmatpush3.bf16.msra.mxu0 %v20844_v34  ;;  %17808 = vmatpush3.bf16.msra.mxu1 %v20845_v58  ;;  %v20879_v34 = vld [vmem:[%s22045_s1 + $0x2db0] ss:$100 sps:$4 sm:$0xff]   ;;  %v20882_v58 = vld [vmem:[%s22045_s1 + $0x21f8] ss:$100 sps:$4 sm:$0xff]  }
 0x76c   : > { %17787 = vmatprep.subr.bf16.mxu0 %v20846_v61  ;;  %17809 = vmatprep.subr.bf16.mxu1 %v20847_v2  ;;  %v20883_v61 = vld [vmem:[%s22045_s1 + $0x2e78] ss:$100 sps:$4 sm:$0xff]  }
 0x76d   : > { %v20884_v2 = vld [vmem:[%s22045_s1 + $0x1bb8] ss:$100 sps:$4 sm:$0xff]  }
 0x76f   : > { %17788 = vmatpush3.bf16.msra.mxu0 %v20848_v3  ;;  %17810 = vmatpush3.bf16.msra.mxu1 %v20849_v4  ;;  %v20887_v3 = vld [vmem:[%s22045_s1 + $0x2f40] ss:$100 sps:$4 sm:$0xff]  }
 0x770   : > { %17789 = vmatprep.subr.bf16.mxu0 %v20850_v5  ;;  %17811 = vmatprep.subr.bf16.mxu1 %v20851_v6  ;;  %v20888_v4 = vld [vmem:[%s22045_s1 + $0x1c80] ss:$100 sps:$4 sm:$0xff]   ;;  %v20890_v6 = vld [vmem:[%s22045_s1 + $0x2388] ss:$100 sps:$4 sm:$0xff]  }
 0x771   : > { %v20889_v5 = vld [vmem:[%s22045_s1 + $0x2900] ss:$100 sps:$4 sm:$0xff]  }
 0x773   : > { %17790 = vmatpush3.bf16.msra.mxu0 %v20852_v8  ;;  %17812 = vmatpush3.bf16.msra.mxu1 %v20853_v60  ;;  %v20891_v8 = vld [vmem:[%s22045_s1 + $0x3008] ss:$100 sps:$4 sm:$0xff]   ;;  %v23890_v60 = vsub.s32 1, %v22135_v43 }
 0x774   : > { %17791 = vmatprep.subr.bf16.mxu0 %v20854_v20  ;;  %17813 = vmatprep.subr.bf16.mxu1 %v20855_v13  ;;  %v23893_v20 = vsub.s32 3, %v22135_v43  ;;  %v20892_v13 = vld [vmem:[%s22045_s1 + $0x1d48] ss:$100 sps:$4 sm:$0xff]  }
 0x777   : > { %17792 = vmatpush3.bf16.msra.mxu0 %v20856_v14  ;;  %17814 = vmatpush3.bf16.msra.mxu1 %v20857_v15  ;;  %v20893_v14 = vld [vmem:[%s22045_s1 + $0x29c8] ss:$100 sps:$4 sm:$0xff]   ;;  %v20894_v15 = vld [vmem:[%s22045_s1 + $0x2450] ss:$100 sps:$4 sm:$0xff]  }
 0x778   : > { %17793 = vmatprep.subr.bf16.mxu0 %v20858_v17  ;;  %17815 = vmatprep.subr.bf16.mxu1 %v20859_v18  ;;  %v20895_v17 = vld [vmem:[%s22045_s1 + $0x30d0] ss:$100 sps:$4 sm:$0xff]   ;;  %v23900_v18 = vld [vmem:[%s22053_s21] sm:$0xff] }
 0x77b   : > { %17794 = vmatpush3.bf16.msra.mxu0 %v20860_v19  ;;  %17816 = vmatpush3.bf16.msra.mxu1 %v20861_v21  ;;  %v2661_v19 = vrot.slane %v23900_v18, %v23890_v60  ;;  %v2669_v21 = vrot.slane %v23900_v18, %v23893_v20 }
 0x77c   : > { %17795 = vmatprep.subr.bf16.mxu0 %v20862_v22  ;;  %17817 = vmatprep.subr.bf16.mxu1 %v20863_v29  ;;  %v20896_v22 = vld [vmem:[%s22045_s1 + $0x1e10] ss:$100 sps:$4 sm:$0xff]  }
 0x77d   : > { %v20897_v29 = vld [vmem:[%s22045_s1 + $0x2a90] ss:$100 sps:$4 sm:$0xff]  }
 0x77f   : > { %17796 = vmatpush3.bf16.msra.mxu0 %v20864_v27  ;;  %17818 = vmatpush3.bf16.msra.mxu1 %v20865_v36  ;;  %v20898_v27 = vld [vmem:[%s22045_s1 + $0x2518] ss:$100 sps:$4 sm:$0xff]  }
 0x780   : > { %17797 = vmatprep.subr.bf16.mxu0 %v20866_v37  ;;  %17819 = vmatprep.subr.bf16.mxu1 %v20867_v39  ;;  %v20899_v36 = vld [vmem:[%s22045_s1 + $0x3198] ss:$100 sps:$4 sm:$0xff]   ;;  %v18260_v37 = vadd.f32 %v22660_v56, %v2661_v19  ;;  %v18262_v39 = vadd.f32 %v22662_v57, %v2669_v21 }
 0x781   : > { %v20904_v56 = vld [vmem:[%s22060_s5] sm:$0xff]   ;;  %v20924_v19 = vld [vmem:[%s22060_s5 + $0x28] sm:$0xff]  }
 0x782   : > { %v20905_v57 = vld [vmem:[%s22060_s5 + $0x80] sm:$0xff]  }
 0x783   : > { %17798 = vmatpush3.bf16.msra.mxu0 %v20868_v40  ;;  %17820 = vmatpush3.bf16.msra.mxu1 %v20869_v49  ;;  %v20900_v40 = vld [vmem:[%s22045_s1 + $0x1ed8] ss:$100 sps:$4 sm:$0xff]  }
 0x784   : > { %17827 = vmatprep.subr.bf16.mxu0 %v20870_v42  ;;  %17849 = vmatprep.subr.bf16.mxu1 %v20871_v44  ;;  %v20901_v49 = vld [vmem:[%s22045_s1 + $0x2b58] ss:$100 sps:$4 sm:$0xff]  }
 0x785   : > { %v20902_v42 = vld [vmem:[%s22060_s5 + $0x40] sm:$0xff]  }
 0x786   : > { %12844 = vmatmul.mubr.bf16.vlgmr.msra.gmra.mrb[24].mxu0 %v22185_v16  ;;  %12884 = vmatmul.mubr.bf16.vlgmr.msra.gmra.mrb[24].mxu1 %v22259_v25  ;;  %v20880_v16 = vld [vmem:[%s22045_s1 + $0x1af0] ss:$100 sps:$4 sm:$0xff]  }
 0x787   : > { %17828 = vmatpush3.bf16.msra.mxu0 %v20872_v45  ;;  %17850 = vmatpush3.bf16.msra.mxu1 %v20873_v30  ;;  %v20881_v25 = vld [vmem:[%s22045_s1 + $0x2770] ss:$100 sps:$4 sm:$0xff]   ;;  %v12972_v45 = vmax.f32 %v18260_v37, 0.0  ;;  %v12974_v30 = vmax.f32 %v18262_v39, 0.0 }
 0x788   : > { %17829 = vmatprep.subr.bf16.mxu0 %v20874_v47  ;;  %17851 = vmatprep.subr.bf16.mxu1 %v20875_v48  ;;  %v20903_v44 = vld [vmem:[%s22060_s5 + $0xc0] sm:$0xff]   ;;  %v20906_v48 = vld [vmem:[%s22060_s5 + $0x48] sm:$0xff]  }
 0x789   : > { %12923 = vmatprep.mubr.bf16.mxu0 %v22279_v35  ;;  %12963 = vmatprep.mubr.bf16.mxu1 %v22354_v46  ;;  %v20885_v35 = vld [vmem:[%s22045_s1 + $0x2838] ss:$100 sps:$4 sm:$0xff]   ;;  %v20886_v46 = vld [vmem:[%s22045_s1 + $0x22c0] ss:$100 sps:$4 sm:$0xff]   ;;  %v12997_v47 = vpack.c.bf16 %v12972_v45, %v12972_v45  ;;  %s24238_s1 = sshll.u32 %s24391_s29, 1  ;;  %s797_s29 = scalar_lea.vmem [#allocation18], %s22041_s14 }
 0x78b   : > { %17830 = vmatpush3.bf16.msra.mxu0 %v20876_v50  ;;  %17852 = vmatpush3.bf16.msra.mxu1 %v20877_v51  ;;  %v20907_v50 = vld [vmem:[%s22060_s5 + $0xc8] sm:$0xff]   ;;  %v12999_v51 = vpack.c.bf16 %v12974_v30, %v12974_v30  ;;  %v20931_v30 = vld [vmem:[%s22060_s5 + $0xf8] sm:$0xff]  }
 0x78c   : > { %17831 = vmatprep.subr.bf16.mxu0 %v20878_v52  ;;  %17853 = vmatprep.subr.bf16.mxu1 %v20879_v34  ;;  %v20908_v52 = vld [vmem:[%s22060_s5 + $0x8] sm:$0xff]  }
 0x78d   : > { %v20909_v34 = vld [vmem:[%s22060_s5 + $0x88] sm:$0xff]  }
 0x78f   : > { %17832 = vmatpush3.bf16.msra.mxu0 %v20880_v16  ;;  %17854 = vmatpush3.bf16.msra.mxu1 %v20881_v25  ;;  %v20910_v16 = vld [vmem:[%s22060_s5 + $0x50] sm:$0xff]  }
 0x790   : > { %17833 = vmatprep.subr.bf16.mxu0 %v20882_v58  ;;  %17855 = vmatprep.subr.bf16.mxu1 %v20883_v61  ;;  %v20911_v25 = vld [vmem:[%s22060_s5 + $0xd0] sm:$0xff]   ;;  %v20914_v58 = vld [vmem:[%s22060_s5 + $0x58] sm:$0xff]  }
 0x791   : > { %v20915_v61 = vld [vmem:[%s22060_s5 + $0xd8] sm:$0xff]  }
 0x793   : > { %17834 = vmatpush3.bf16.msra.mxu0 %v20884_v2  ;;  %17856 = vmatpush3.bf16.msra.mxu1 %v20885_v35  ;;  %v20916_v2 = vld [vmem:[%s22060_s5 + $0x18] sm:$0xff]  }
 0x794   : > { %17835 = vmatprep.subr.bf16.mxu0 %v20886_v46  ;;  %17857 = vmatprep.subr.bf16.mxu1 %v20887_v3  ;;  %v20917_v35 = vld [vmem:[%s22060_s5 + $0x98] sm:$0xff]   ;;  %v20918_v46 = vld [vmem:[%s22060_s5 + $0x60] sm:$0xff]  }
 0x795   : > { %v20919_v3 = vld [vmem:[%s22060_s5 + $0xe0] sm:$0xff]  }
 0x797   : > { %17836 = vmatpush3.bf16.msra.mxu0 %v20888_v4  ;;  %17858 = vmatpush3.bf16.msra.mxu1 %v20889_v5  ;;  %v20920_v4 = vld [vmem:[%s22060_s5 + $0x20] sm:$0xff]   ;;  %v23936_v5 = vsub.s32 0, %v22135_v43 }
 0x798   : > { %17837 = vmatprep.subr.bf16.mxu0 %v20890_v6  ;;  %17859 = vmatprep.subr.bf16.mxu1 %v20891_v8  ;;  %v20921_v6 = vld [vmem:[%s22060_s5 + $0xa0] sm:$0xff]   ;;  %v20922_v8 = vld [vmem:[%s22060_s5 + $0x68] sm:$0xff]  }
 0x799   : > { %v2657_v21 = vrot.slane %v23900_v18, %v23936_v5 }
 0x79b   : > { %17838 = vmatpush3.bf16.msra.mxu0 %v20892_v13  ;;  %17860 = vmatpush3.bf16.msra.mxu1 %v20893_v14  ;;  %v23941_v13 = vsub.s32 2, %v22135_v43  ;;  %v20923_v14 = vld [vmem:[%s22060_s5 + $0xe8] sm:$0xff]  }
 0x79c   : > { %17839 = vmatprep.subr.bf16.mxu0 %v20894_v15  ;;  %17861 = vmatprep.subr.bf16.mxu1 %v20895_v17  ;;  %v23945_v15 = vsub.s32 5, %v22135_v43  ;;  %v23948_v17 = vsub.s32 7, %v22135_v43 }
 0x79e   : > { %v2677_v37 = vrot.slane %v23900_v18, %v23945_v15  ;;  %v2685_v39 = vrot.slane %v23900_v18, %v23948_v17 }
 0x79f   : > { %17840 = vmatpush3.bf16.msra.mxu0 %v20896_v22  ;;  %17862 = vmatpush3.bf16.msra.mxu1 %v20897_v29  ;;  %v20925_v22 = vld [vmem:[%s22060_s5 + $0xa8] sm:$0xff]   ;;  %v20926_v29 = vld [vmem:[%s22060_s5 + $0x70] sm:$0xff]  }
 0x7a0   : > { %17841 = vmatprep.subr.bf16.mxu0 %v20898_v27  ;;  %17863 = vmatprep.subr.bf16.mxu1 %v20899_v36  ;;  %v2665_v27 = vrot.slane %v23900_v18, %v23941_v13  ;;  %v20927_v36 = vld [vmem:[%s22060_s5 + $0xf0] sm:$0xff]  }
 0x7a2   : > { %v18261_v45 = vadd.f32 %v22658_v55, %v2665_v27  ;;  %v20935_v55 = vld [vmem:[%s22060_s5 + $0x1c0] sm:$0xff]  }
 0x7a3   : > { %17842 = vmatpush3.bf16.msra.mxu0 %v20900_v40  ;;  %17864 = vmatpush3.bf16.msra.mxu1 %v20901_v49  ;;  %v20928_v40 = vld [vmem:[%s22060_s5 + $0x30] sm:$0xff]   ;;  %v18259_v49 = vadd.f32 %v22656_v54, %v2657_v21  ;;  %v20933_v54 = vld [vmem:[%s22060_s5 + $0xb8] sm:$0xff]   ;;  %v20952_v27 = vld [vmem:[%s22060_s5 + $0x120] sm:$0xff]  }
 0x7a4   : > { %17871 = vmatprep.subr.bf16.mxu0 %v20902_v42  ;;  %17893 = vmatprep.subr.bf16.mxu1 %v20903_v44  ;;  %v20929_v42 = vld [vmem:[%s22060_s5 + $0xb0] sm:$0xff]   ;;  %v20930_v44 = vld [vmem:[%s22060_s5 + $0x78] sm:$0xff]  }
 0x7a5   : > { %v20949_v21 = vld [vmem:[%s22060_s5 + $0x198] sm:$0xff]  }
 0x7a6   : > { %12924 = vmatmul.mubr.bf16.vlgmr.msra.gmra.mrb[28].mxu0 %v22348_v41  ;;  %12964 = vmatmul.mubr.bf16.vlgmr.msra.gmra.mrb[28].mxu1 %v22422_v53  ;;  %v20912_v41 = vld [vmem:[%s22060_s5 + $0x10] sm:$0xff]  }
 0x7a7   : > { %17872 = vmatpush3.bf16.msra.mxu0 %v20904_v56  ;;  %14660 = vmatprep.mubr.bf16.mxu0 %v12997_v47  ;;  %v20913_v53 = vld [vmem:[%s22060_s5 + $0x90] sm:$0xff]   ;;  %v18264_v56 = vadd.f32 %v22945_v11, %v2677_v37  ;;  %v20932_v47 = vld [vmem:[%s22060_s5 + $0x38] sm:$0xff]   ;;  %v20936_v11 = vld [vmem:[%s22060_s5 + $0x100] sm:$0xff]  }
 0x7a8   : > { %17894 = vmatpush3.bf16.msra.mxu1 %v20905_v57  ;;  %14700 = vmatprep.mubr.bf16.mxu1 %v12999_v51  ;;  %v18266_v57 = vadd.f32 %v22947_v12, %v2685_v39  ;;  %v12973_v51 = vmax.f32 %v18261_v45, 0.0  ;;  %v20937_v12 = vld [vmem:[%s22060_s5 + $0x180] sm:$0xff]   ;;  %v20954_v39 = vld [vmem:[%s22060_s5 + $0x168] sm:$0xff]   ;;  %v20958_v45 = vld [vmem:[%s22060_s5 + $0x170] sm:$0xff]  }
 0x7a9   : > { %17873 = vmatprep.subr.bf16.mxu0 %v20906_v48  ;;  %17895 = vmatprep.subr.bf16.mxu1 %v20907_v50  ;;  %v12971_v48 = vmax.f32 %v18259_v49, 0.0  ;;  %v20934_v50 = vld [vmem:[%s22060_s5 + $0x140] sm:$0xff]   ;;  %v23998_v49 = vld [vmem:[%s22053_s21 + $0x8] sm:$0xff] }
 0x7aa   : > { %v20953_v37 = vld [vmem:[%s22060_s5 + $0x1a0] sm:$0xff]  }
 0x7ab   : > { %17874 = vmatpush3.bf16.msra.mxu0 %v20908_v52  ;;  %v12976_v52 = vmax.f32 %v18264_v56, 0.0  ;;  %v2693_v56 = vrot.slane %v23998_v49, %v23890_v60 }
 0x7ac   : > { %17896 = vmatpush3.bf16.msra.mxu1 %v20909_v34  ;;  %17875 = vmatprep.subr.bf16.mxu0 %v20910_v16  ;;  %v12978_v34 = vmax.f32 %v18266_v57, 0.0  ;;  %v12996_v16 = vpack.c.bf16 %v12971_v48, %v12971_v48  ;;  %v2701_v57 = vrot.slane %v23998_v49, %v23893_v20  ;;  %v20961_v48 = vld [vmem:[%s22060_s5 + $0x1b0] sm:$0xff]  }
 0x7ad   : > { %17897 = vmatprep.subr.bf16.mxu1 %v20911_v25  ;;  %v12998_v25 = vpack.c.bf16 %v12973_v51, %v12973_v51  ;;  %v18268_v51 = vadd.f32 %v23225_v0, %v2693_v56  ;;  %v20968_v0 = vld [vmem:[%s22060_s5 + $0x200] sm:$0xff]   ;;  %v20990_v56 = vld [vmem:[%s22060_s5 + $0x270] sm:$0xff]  }
 0x7af   : > { %17876 = vmatpush3.bf16.msra.mxu0 %v20912_v41  ;;  %v20938_v41 = vld [vmem:[%s22060_s5 + $0x148] sm:$0xff]  }
 0x7b0   : > { %17898 = vmatpush3.bf16.msra.mxu1 %v20913_v53  ;;  %17877 = vmatprep.subr.bf16.mxu0 %v20914_v58  ;;  %v13001_v53 = vpack.c.bf16 %v12976_v52, %v12976_v52  ;;  %v20939_v58 = vld [vmem:[%s22060_s5 + $0x1c8] sm:$0xff]   ;;  %v20964_v52 = vld [vmem:[%s22060_s5 + $0x138] sm:$0xff]  }
 0x7b1   : > { %17899 = vmatprep.subr.bf16.mxu1 %v20915_v61  ;;  %v13003_v61 = vpack.c.bf16 %v12978_v34, %v12978_v34 }
 0x7b3   : > { %17878 = vmatpush3.bf16.msra.mxu0 %v20916_v2  ;;  %v20940_v2 = vld [vmem:[%s22060_s5 + $0x108] sm:$0xff]  }
 0x7b4   : > { %17900 = vmatpush3.bf16.msra.mxu1 %v20917_v35  ;;  %17879 = vmatprep.subr.bf16.mxu0 %v20918_v46  ;;  %v20941_v35 = vld [vmem:[%s22060_s5 + $0x188] sm:$0xff]   ;;  %v20942_v46 = vld [vmem:[%s22060_s5 + $0x150] sm:$0xff]  }
 0x7b5   : > { %17901 = vmatprep.subr.bf16.mxu1 %v20919_v3  ;;  %v20943_v3 = vld [vmem:[%s22060_s5 + $0x1d0] sm:$0xff]  }
 0x7b7   : > { %17880 = vmatpush3.bf16.msra.mxu0 %v20920_v4  ;;  %v20944_v4 = vld [vmem:[%s22060_s5 + $0x110] sm:$0xff]  }
 0x7b8   : > { %17902 = vmatpush3.bf16.msra.mxu1 %v20921_v6  ;;  %17881 = vmatprep.subr.bf16.mxu0 %v20922_v8  ;;  %v20945_v6 = vld [vmem:[%s22060_s5 + $0x190] sm:$0xff]   ;;  %v20946_v8 = vld [vmem:[%s22060_s5 + $0x158] sm:$0xff]  }
 0x7b9   : > { %17903 = vmatprep.subr.bf16.mxu1 %v20923_v14  ;;  %v20947_v14 = vld [vmem:[%s22060_s5 + $0x1d8] sm:$0xff]  }
 0x7bb   : > { %17882 = vmatpush3.bf16.msra.mxu0 %v20924_v19  ;;  %v20948_v19 = vld [vmem:[%s22060_s5 + $0x118] sm:$0xff]  }
 0x7bc   : > { %17904 = vmatpush3.bf16.msra.mxu1 %v20925_v22  ;;  %17883 = vmatprep.subr.bf16.mxu0 %v20926_v29  ;;  %v20950_v22 = vld [vmem:[%s22060_s5 + $0x160] sm:$0xff]  }
 0x7bd   : > { %17905 = vmatprep.subr.bf16.mxu1 %v20927_v36  ;;  %v20951_v29 = vld [vmem:[%s22060_s5 + $0x1e0] sm:$0xff]   ;;  %v23992_v36 = vsub.s32 4, %v22135_v43  ;;  %v20957_v43 = vld [vmem:[%s22060_s5 + $0x1a8] sm:$0xff]  }
 0x7bf   : > { %17884 = vmatpush3.bf16.msra.mxu0 %v20928_v40  ;;  %v20955_v40 = vld [vmem:[%s22060_s5 + $0x1e8] sm:$0xff]  }
 0x7c0   : > { %17906 = vmatpush3.bf16.msra.mxu1 %v20929_v42  ;;  %17885 = vmatprep.subr.bf16.mxu0 %v20930_v44  ;;  %v20956_v42 = vld [vmem:[%s22060_s5 + $0x128] sm:$0xff]   ;;  %v2673_v44 = vrot.slane %v23900_v18, %v23992_v36 }
 0x7c1   : > { %17907 = vmatprep.subr.bf16.mxu1 %v20931_v30  ;;  %v20959_v30 = vld [vmem:[%s22060_s5 + $0x1f0] sm:$0xff]  }
 0x7c2   : > { %v18263_v18 = vadd.f32 %v22941_v7, %v2673_v44  ;;  %v20965_v7 = vld [vmem:[%s22060_s5 + $0x1b8] sm:$0xff]   ;;  %v20987_v44 = vld [vmem:[%s22060_s5 + $0x2e8] sm:$0xff]  }
 0x7c3   : > { %17886 = vmatpush3.bf16.msra.mxu0 %v20932_v47  ;;  %v20960_v47 = vld [vmem:[%s22060_s5 + $0x130] sm:$0xff]  }
 0x7c4   : > { %17908 = vmatpush3.bf16.msra.mxu1 %v20933_v54  ;;  %17915 = vmatprep.subr.bf16.mxu0 %v20934_v50  ;;  %v20962_v54 = vld [vmem:[%s22060_s5 + $0x178] sm:$0xff]   ;;  %v12975_v34 = vmax.f32 %v18263_v18, 0.0  ;;  %v2709_v18 = vrot.slane %v23998_v49, %v23945_v15 }
 0x7c5   : > { %17937 = vmatprep.subr.bf16.mxu1 %v20935_v55  ;;  %v20963_v50 = vld [vmem:[%s22060_s5 + $0x1f8] sm:$0xff]   ;;  %v18270_v55 = vadd.f32 %v23227_v1, %v2701_v57  ;;  %v2697_v57 = vrot.slane %v23998_v49, %v23941_v13 }
 0x7c6   : > { %14661 = vmatmul.mubr.bf16.vlgmr.msra.gmra.mrb[32].mxu0 %v12996_v16  ;;  %v12977_v16 = vmax.f32 %v22943_v10, 0.0  ;;  %v13000_v1 = vpack.c.bf16 %v12975_v34, %v12975_v34  ;;  %v20971_v10 = vld [vmem:[%s22060_s5 + $0x2c8] sm:$0xff]   ;;  %v20995_v34 = vld [vmem:[%s22060_s5 + $0x2f8] sm:$0xff]  }
 0x7c7   : > { %14701 = vmatmul.mubr.bf16.vlgmr.msra.gmra.mrb[32].mxu1 %v12998_v25  ;;  %17916 = vmatpush3.bf16.msra.mxu0 %v20936_v11  ;;  %v20966_v11 = vld [vmem:[%s22060_s5 + $0x240] sm:$0xff]   ;;  %v12980_v25 = vmax.f32 %v18268_v51, 0.0  ;;  %v20993_v51 = vld [vmem:[%s22060_s5 + $0x2b0] sm:$0xff]  }
 0x7c8   : > { %14740 = vmatprep.mubr.bf16.mxu0 %v13001_v53  ;;  %17938 = vmatpush3.bf16.msra.mxu1 %v20937_v12  ;;  %v20967_v12 = vld [vmem:[%s22060_s5 + $0x2c0] sm:$0xff]  }
 0x7c9   : > { %14780 = vmatprep.mubr.bf16.mxu1 %v13003_v61  ;;  %17917 = vmatprep.subr.bf16.mxu0 %v20938_v41  ;;  %v12982_v41 = vmax.f32 %v18270_v55, 0.0  ;;  %v20969_v53 = vld [vmem:[%s22060_s5 + $0x280] sm:$0xff]   ;;  %v20970_v61 = vld [vmem:[%s22060_s5 + $0x248] sm:$0xff]   ;;  %v20994_v55 = vld [vmem:[%s22060_s5 + $0x278] sm:$0xff]  }
 0x7ca   : > { %17939 = vmatprep.subr.bf16.mxu1 %v20939_v58  ;;  %v13002_v58 = vpack.c.bf16 %v12977_v16, %v12977_v16  ;;  %v20996_v16 = vld [vmem:[%s22060_s5 + $0x238] sm:$0xff]  }
 0x7cb   : > { %17918 = vmatpush3.bf16.msra.mxu0 %v20940_v2  ;;  %v13005_v2 = vpack.c.bf16 %v12980_v25, %v12980_v25  ;;  %v20998_v25 = vld [vmem:[%s22060_s5 + $0x340] sm:$0xff]  }
 0x7cc   : > { %17940 = vmatpush3.bf16.msra.mxu1 %v20941_v35  ;;  %17919 = vmatprep.subr.bf16.mxu0 %v20942_v46  ;;  %v13007_v35 = vpack.c.bf16 %v12982_v41, %v12982_v41  ;;  %v20972_v46 = vld [vmem:[%s22060_s5 + $0x208] sm:$0xff]  }
 0x7cd   : > { %17941 = vmatprep.subr.bf16.mxu1 %v20943_v3  ;;  %v20973_v3 = vld [vmem:[%s22060_s5 + $0x288] sm:$0xff]  }
 0x7cf   : > { %17920 = vmatpush3.bf16.msra.mxu0 %v20944_v4  ;;  %v20974_v4 = vld [vmem:[%s22060_s5 + $0x250] sm:$0xff]  }
 0x7d0   : > { %17942 = vmatpush3.bf16.msra.mxu1 %v20945_v6  ;;  %17921 = vmatprep.subr.bf16.mxu0 %v20946_v8  ;;  %v20975_v6 = vld [vmem:[%s22060_s5 + $0x2d0] sm:$0xff]  }
 0x7d1   : > { %17943 = vmatprep.subr.bf16.mxu1 %v20947_v14  ;;  %v20976_v8 = vld [vmem:[%s22060_s5 + $0x210] sm:$0xff]  }
 0x7d2   : > { %v20977_v14 = vld [vmem:[%s22060_s5 + $0x290] sm:$0xff]  }
 0x7d3   : > { %17922 = vmatpush3.bf16.msra.mxu0 %v20948_v19  ;;  %v20978_v19 = vld [vmem:[%s22060_s5 + $0x258] sm:$0xff]  }
 0x7d4   : > { %17944 = vmatpush3.bf16.msra.mxu1 %v20949_v21  ;;  %17923 = vmatprep.subr.bf16.mxu0 %v20950_v22  ;;  %v20979_v21 = vld [vmem:[%s22060_s5 + $0x2d8] sm:$0xff]  }
 0x7d5   : > { %17945 = vmatprep.subr.bf16.mxu1 %v20951_v29  ;;  %v20980_v22 = vld [vmem:[%s22060_s5 + $0x218] sm:$0xff]  }
 0x7d6   : > { %v20981_v29 = vld [vmem:[%s22060_s5 + $0x298] sm:$0xff]  }
 0x7d7   : > { %17924 = vmatpush3.bf16.msra.mxu0 %v20952_v27  ;;  %v20982_v27 = vld [vmem:[%s22060_s5 + $0x260] sm:$0xff]  }
 0x7d8   : > { %17946 = vmatpush3.bf16.msra.mxu1 %v20953_v37  ;;  %17925 = vmatprep.subr.bf16.mxu0 %v20954_v39  ;;  %v20983_v37 = vld [vmem:[%s22060_s5 + $0x2e0] sm:$0xff]  }
 0x7d9   : > { %17947 = vmatprep.subr.bf16.mxu1 %v20955_v40  ;;  %v20984_v39 = vld [vmem:[%s22060_s5 + $0x220] sm:$0xff]  }
 0x7da   : > { %v20985_v40 = vld [vmem:[%s22060_s5 + $0x2a0] sm:$0xff]  }
 0x7db   : > { %17926 = vmatpush3.bf16.msra.mxu0 %v20956_v42  ;;  %v20986_v42 = vld [vmem:[%s22060_s5 + $0x268] sm:$0xff]  }
 0x7dc   : > { %17948 = vmatpush3.bf16.msra.mxu1 %v20957_v43  ;;  %17927 = vmatprep.subr.bf16.mxu0 %v20958_v45  ;;  %v20988_v43 = vld [vmem:[%s22060_s5 + $0x228] sm:$0xff]   ;;  %v2689_v45 = vrot.slane %v23998_v49, %v23936_v5 }
 0x7dd   : > { %17949 = vmatprep.subr.bf16.mxu1 %v20959_v30  ;;  %v20989_v30 = vld [vmem:[%s22060_s5 + $0x2a8] sm:$0xff]  }
 0x7df   : > { %17928 = vmatpush3.bf16.msra.mxu0 %v20960_v47  ;;  %v20991_v47 = vld [vmem:[%s22060_s5 + $0x2f0] sm:$0xff]  }
 0x7e0   : > { %17950 = vmatpush3.bf16.msra.mxu1 %v20961_v48  ;;  %17929 = vmatprep.subr.bf16.mxu0 %v20962_v54  ;;  %v2717_v48 = vrot.slane %v23998_v49, %v23948_v17  ;;  %v20992_v54 = vld [vmem:[%s22060_s5 + $0x230] sm:$0xff]  }
 0x7e1   : > { %17951 = vmatprep.subr.bf16.mxu1 %v20963_v50  ;;  %v18267_v50 = vadd.f32 %v23221_v62, %v2689_v45  ;;  %v20997_v62 = vld [vmem:[%s22060_s5 + $0x2b8] sm:$0xff]   ;;  %v21020_v45 = vld [vmem:[%s22060_s5 + $0x328] sm:$0xff]  }
 0x7e3   : > { %17930 = vmatpush3.bf16.msra.mxu0 %v20964_v52  ;;  %v18269_v52 = vadd.f32 %v23223_v63, %v2697_v57  ;;  %v20999_v63 = vld [vmem:[%s22060_s5 + $0x3c0] sm:$0xff]   ;;  %v21022_v57 = vld [vmem:[%s22060_s5 + $0x370] sm:$0xff]  }
 0x7e4   : > { %17952 = vmatpush3.bf16.msra.mxu1 %v20965_v7  ;;  %17959 = vmatprep.subr.bf16.mxu0 %v20966_v11  ;;  %v18272_v7 = vadd.f32 %v23505_v26, %v2709_v18  ;;  %v18274_v11 = vadd.f32 %v23507_v28, %v2717_v48  ;;  %v21000_v26 = vld [vmem:[%s22060_s5 + $0x300] sm:$0xff]   ;;  %v21023_v18 = vld [vmem:[%s22060_s5 + $0x3f0] sm:$0xff]  }
 0x7e5   : > { %17981 = vmatprep.subr.bf16.mxu1 %v20967_v12  ;;  %v12979_v12 = vmax.f32 %v18267_v50, 0.0  ;;  %v12981_v41 = vmax.f32 %v18269_v52, 0.0  ;;  %v21001_v28 = vld [vmem:[%s22060_s5 + $0x380] sm:$0xff]   ;;  %v21024_v50 = vld [vmem:[%s22060_s5 + $0x330] sm:$0xff]  }
 0x7e6   : > { %14741 = vmatmul.mubr.bf16.vlgmr.msra.gmra.mrb[36].mxu0 %v13000_v1  ;;  %v12986_v1 = vmax.f32 %v18274_v11, 0.0 }
 0x7e7   : > { %14781 = vmatmul.mubr.bf16.vlgmr.msra.gmra.mrb[36].mxu1 %v13002_v58  ;;  %17960 = vmatpush3.bf16.msra.mxu0 %v20968_v0  ;;  %v12984_v0 = vmax.f32 %v18272_v7, 0.0  ;;  %v13006_v58 = vpack.c.bf16 %v12981_v41, %v12981_v41  ;;  %v21028_v7 = vld [vmem:[%s22060_s5 + $0x338] sm:$0xff]  }
 0x7e8   : > { %14820 = vmatprep.mubr.bf16.mxu0 %v13005_v2  ;;  %17982 = vmatpush3.bf16.msra.mxu1 %v20969_v53  ;;  %v13004_v53 = vpack.c.bf16 %v12979_v12, %v12979_v12 }
 0x7e9   : > { %14860 = vmatprep.mubr.bf16.mxu1 %v13007_v35  ;;  %17961 = vmatprep.subr.bf16.mxu0 %v20970_v61  ;;  %v21002_v61 = vld [vmem:[%s22060_s5 + $0x348] sm:$0xff]   ;;  %v13009_v2 = vpack.c.bf16 %v12984_v0, %v12984_v0  ;;  %v13011_v35 = vpack.c.bf16 %v12986_v1, %v12986_v1 }
 0x7ea   : > { %17983 = vmatprep.subr.bf16.mxu1 %v20971_v10  ;;  %v21003_v10 = vld [vmem:[%s22060_s5 + $0x3c8] sm:$0xff]  }
 0x7eb   : > { %17962 = vmatpush3.bf16.msra.mxu0 %v20972_v46  ;;  %v21004_v46 = vld [vmem:[%s22060_s5 + $0x308] sm:$0xff]  }
 0x7ec   : > { %17984 = vmatpush3.bf16.msra.mxu1 %v20973_v3  ;;  %17963 = vmatprep.subr.bf16.mxu0 %v20974_v4  ;;  %v21005_v3 = vld [vmem:[%s22060_s5 + $0x388] sm:$0xff]   ;;  %v21006_v4 = vld [vmem:[%s22060_s5 + $0x350] sm:$0xff]  }
 0x7ed   : > { %17985 = vmatprep.subr.bf16.mxu1 %v20975_v6  ;;  %v21007_v6 = vld [vmem:[%s22060_s5 + $0x3d0] sm:$0xff]   ;;  %v21034_v0 = vld [vmem:[%s22060_s5 + $0x448] sm:$0xff]  }
 0x7ef   : > { %17964 = vmatpush3.bf16.msra.mxu0 %v20976_v8  ;;  %v21008_v8 = vld [vmem:[%s22060_s5 + $0x310] sm:$0xff]  }
 0x7f0   : > { %17986 = vmatpush3.bf16.msra.mxu1 %v20977_v14  ;;  %17965 = vmatprep.subr.bf16.mxu0 %v20978_v19  ;;  %v21009_v14 = vld [vmem:[%s22060_s5 + $0x390] sm:$0xff]   ;;  %v21010_v19 = vld [vmem:[%s22060_s5 + $0x358] sm:$0xff]  }
 0x7f1   : > { %17987 = vmatprep.subr.bf16.mxu1 %v20979_v21  ;;  %v21011_v21 = vld [vmem:[%s22060_s5 + $0x3d8] sm:$0xff]  }
 0x7f3   : > { %17966 = vmatpush3.bf16.msra.mxu0 %v20980_v22  ;;  %v21012_v22 = vld [vmem:[%s22060_s5 + $0x318] sm:$0xff]  }
 0x7f4   : > { %17988 = vmatpush3.bf16.msra.mxu1 %v20981_v29  ;;  %17967 = vmatprep.subr.bf16.mxu0 %v20982_v27  ;;  %v21013_v29 = vld [vmem:[%s22060_s5 + $0x398] sm:$0xff]   ;;  %v21014_v27 = vld [vmem:[%s22060_s5 + $0x360] sm:$0xff]  }
 0x7f5   : > { %17989 = vmatprep.subr.bf16.mxu1 %v20983_v37  ;;  %v21015_v37 = vld [vmem:[%s22060_s5 + $0x3e0] sm:$0xff]  }
 0x7f7   : > { %17968 = vmatpush3.bf16.msra.mxu0 %v20984_v39  ;;  %v21016_v39 = vld [vmem:[%s22060_s5 + $0x320] sm:$0xff]  }
 0x7f8   : > { %17990 = vmatpush3.bf16.msra.mxu1 %v20985_v40  ;;  %17969 = vmatprep.subr.bf16.mxu0 %v20986_v42  ;;  %v21017_v40 = vld [vmem:[%s22060_s5 + $0x3a0] sm:$0xff]   ;;  %v21018_v42 = vld [vmem:[%s22060_s5 + $0x368] sm:$0xff]  }
 0x7f9   : > { %17991 = vmatprep.subr.bf16.mxu1 %v20987_v44  ;;  %v21019_v44 = vld [vmem:[%s22060_s5 + $0x3e8] sm:$0xff]  }
 0x7fb   : > { %17970 = vmatpush3.bf16.msra.mxu0 %v20988_v43  ;;  %v24087_v43 = vld [vmem:[%s22053_s21 + $0x10] sm:$0xff] }
 0x7fc   : > { %17992 = vmatpush3.bf16.msra.mxu1 %v20989_v30  ;;  %17971 = vmatprep.subr.bf16.mxu0 %v20990_v56  ;;  %v2705_v30 = vrot.slane %v23998_v49, %v23992_v36  ;;  %v21021_v56 = vld [vmem:[%s22060_s5 + $0x3a8] sm:$0xff]   ;;  %v2725_v48 = vrot.slane %v24087_v43, %v23890_v60 }
 0x7fd   : > { %17993 = vmatprep.subr.bf16.mxu1 %v20991_v47  ;;  %v2713_v47 = vrot.slane %v23998_v49, %v22929_v59  ;;  %v21026_v49 = vld [vmem:[%s22060_s5 + $0x378] sm:$0xff]  }
 0x7fe   : > { %v18276_v60 = vadd.f32 %v23785_v32, %v2725_v48  ;;  %v21032_v32 = vld [vmem:[%s22060_s5 + $0x400] sm:$0xff]  }
 0x7ff   : > { %17972 = vmatpush3.bf16.msra.mxu0 %v20992_v54  ;;  %v2733_v54 = vrot.slane %v24087_v43, %v23893_v20  ;;  %v18273_v52 = vadd.f32 %v23503_v24, %v2713_v47  ;;  %v21031_v24 = vld [vmem:[%s22060_s5 + $0x4c0] sm:$0xff]   ;;  %v2749_v47 = vrot.slane %v24087_v43, %v23948_v17  ;;  %v21059_v17 = vld [vmem:[%s22060_s5 + $0x4f8] sm:$0xff]  }
 0x800   : > { %17994 = vmatpush3.bf16.msra.mxu1 %v20993_v51  ;;  %17973 = vmatprep.subr.bf16.mxu0 %v20994_v55  ;;  %v18271_v51 = vadd.f32 %v23501_v23, %v2705_v30  ;;  %v21025_v55 = vld [vmem:[%s22060_s5 + $0x3b0] sm:$0xff]   ;;  %v21029_v23 = vld [vmem:[%s22060_s5 + $0x3b8] sm:$0xff]  }
 0x801   : > { %17995 = vmatprep.subr.bf16.mxu1 %v20995_v34  ;;  %v21027_v34 = vld [vmem:[%s22060_s5 + $0x3f8] sm:$0xff]   ;;  %v18278_v20 = vadd.f32 %v23787_v33, %v2733_v54  ;;  %v12985_v12 = vmax.f32 %v18273_v52, 0.0  ;;  %v21033_v33 = vld [vmem:[%s22060_s5 + $0x480] sm:$0xff]   ;;  %v21055_v30 = vld [vmem:[%s22060_s5 + $0x4f0] sm:$0xff]  }
 0x802   : > { %v12983_v11 = vmax.f32 %v18271_v51, 0.0 }
 0x803   : > { %17974 = vmatpush3.bf16.msra.mxu0 %v20996_v16  ;;  %v21030_v16 = vld [vmem:[%s22060_s5 + $0x440] sm:$0xff]  }
 0x804   : > { %17996 = vmatpush3.bf16.msra.mxu1 %v20997_v62  ;;  %18003 = vmatprep.subr.bf16.mxu0 %v20998_v25  ;;  %v12988_v62 = vmax.f32 %v18276_v60, 0.0  ;;  %v12990_v25 = vmax.f32 %v18278_v20, 0.0  ;;  %v13008_v41 = vpack.c.bf16 %v12983_v11, %v12983_v11  ;;  %v21060_v60 = vld [vmem:[%s22060_s5 + $0x438] sm:$0xff]  }
 0x805   : > { %18025 = vmatprep.subr.bf16.mxu1 %v20999_v63  ;;  %v13010_v63 = vpack.c.bf16 %v12985_v12, %v12985_v12  ;;  %v21061_v20 = vld [vmem:[%s22060_s5 + $0x4b8] sm:$0xff]   ;;  %v21064_v12 = vld [vmem:[%s22060_s5 + $0x500] sm:$0xff]  }
 0x806   : > { %14821 = vmatmul.mubr.bf16.vlgmr.msra.gmra.mrb[40].mxu0 %v13004_v53  ;;  %v13013_v1 = vpack.c.bf16 %v12988_v62, %v12988_v62  ;;  %v13015_v53 = vpack.c.bf16 %v12990_v25, %v12990_v25  ;;  %v21065_v62 = vld [vmem:[%s22060_s5 + $0x580] sm:$0xff]  }
 0x807   : > { %14861 = vmatmul.mubr.bf16.vlgmr.msra.gmra.mrb[40].mxu1 %v13006_v58  ;;  %18004 = vmatpush3.bf16.msra.mxu0 %v21000_v26  ;;  %v21035_v26 = vld [vmem:[%s22060_s5 + $0x4c8] sm:$0xff]  }
 0x808   : > { %14900 = vmatprep.mubr.bf16.mxu0 %v13009_v2  ;;  %18026 = vmatpush3.bf16.msra.mxu1 %v21001_v28  ;;  %v21036_v28 = vld [vmem:[%s22060_s5 + $0x408] sm:$0xff]   ;;  %v21039_v2 = vld [vmem:[%s22060_s5 + $0x4d0] sm:$0xff]  }
 0x809   : > { %14940 = vmatprep.mubr.bf16.mxu1 %v13011_v35  ;;  %18005 = vmatprep.subr.bf16.mxu0 %v21002_v61  ;;  %v21037_v58 = vld [vmem:[%s22060_s5 + $0x488] sm:$0xff]   ;;  %v21038_v61 = vld [vmem:[%s22060_s5 + $0x450] sm:$0xff]  }
 0x80a   : > { %18027 = vmatprep.subr.bf16.mxu1 %v21003_v10  ;;  %v21040_v10 = vld [vmem:[%s22060_s5 + $0x410] sm:$0xff]  }
 0x80b   : > { %18006 = vmatpush3.bf16.msra.mxu0 %v21004_v46  ;;  %v21041_v35 = vld [vmem:[%s22060_s5 + $0x490] sm:$0xff]   ;;  %v21042_v46 = vld [vmem:[%s22060_s5 + $0x458] sm:$0xff]  }
 0x80c   : > { %18028 = vmatpush3.bf16.msra.mxu1 %v21005_v3  ;;  %18007 = vmatprep.subr.bf16.mxu0 %v21006_v4  ;;  %v21043_v3 = vld [vmem:[%s22060_s5 + $0x4d8] sm:$0xff]  }
 0x80d   : > { %18029 = vmatprep.subr.bf16.mxu1 %v21007_v6  ;;  %v21044_v4 = vld [vmem:[%s22060_s5 + $0x418] sm:$0xff]  }
 0x80e   : > { %v21045_v6 = vld [vmem:[%s22060_s5 + $0x498] sm:$0xff]  }
 0x80f   : > { %18008 = vmatpush3.bf16.msra.mxu0 %v21008_v8  ;;  %v21046_v8 = vld [vmem:[%s22060_s5 + $0x460] sm:$0xff]  }
 0x810   : > { %18030 = vmatpush3.bf16.msra.mxu1 %v21009_v14  ;;  %18009 = vmatprep.subr.bf16.mxu0 %v21010_v19  ;;  %v21047_v14 = vld [vmem:[%s22060_s5 + $0x4e0] sm:$0xff]  }
 0x811   : > { %18031 = vmatprep.subr.bf16.mxu1 %v21011_v21  ;;  %v21048_v19 = vld [vmem:[%s22060_s5 + $0x420] sm:$0xff]  }
 0x812   : > { %v21049_v21 = vld [vmem:[%s22060_s5 + $0x4a0] sm:$0xff]  }
 0x813   : > { %18010 = vmatpush3.bf16.msra.mxu0 %v21012_v22  ;;  %v21050_v22 = vld [vmem:[%s22060_s5 + $0x468] sm:$0xff]  }
 0x814   : > { %18032 = vmatpush3.bf16.msra.mxu1 %v21013_v29  ;;  %18011 = vmatprep.subr.bf16.mxu0 %v21014_v27  ;;  %v21051_v29 = vld [vmem:[%s22060_s5 + $0x4e8] sm:$0xff]  }
 0x815   : > { %18033 = vmatprep.subr.bf16.mxu1 %v21015_v37  ;;  %v21052_v27 = vld [vmem:[%s22060_s5 + $0x428] sm:$0xff]   ;;  %v2721_v37 = vrot.slane %v24087_v43, %v23936_v5 }
 0x817   : > { %18012 = vmatpush3.bf16.msra.mxu0 %v21016_v39  ;;  %v21053_v39 = vld [vmem:[%s22060_s5 + $0x4a8] sm:$0xff]   ;;  %v18275_v54 = vadd.f32 %v23781_v9, %v2721_v37 }
 0x818   : > { %18034 = vmatpush3.bf16.msra.mxu1 %v21017_v40  ;;  %18013 = vmatprep.subr.bf16.mxu0 %v21018_v42  ;;  %v21054_v40 = vld [vmem:[%s22060_s5 + $0x470] sm:$0xff]   ;;  %v2729_v42 = vrot.slane %v24087_v43, %v23941_v13 }
 0x819   : > { %18035 = vmatprep.subr.bf16.mxu1 %v21019_v44  ;;  %v21056_v13 = vld [vmem:[%s22060_s5 + $0x430] sm:$0xff]   ;;  %v12987_v9 = vmax.f32 %v18275_v54, 0.0  ;;  %v21090_v54 = vld [vmem:[%s22060_s5 + $0x578] sm:$0xff]  }
 0x81b   : > { %18014 = vmatpush3.bf16.msra.mxu0 %v21020_v45 }
 0x81c   : > { %18036 = vmatpush3.bf16.msra.mxu1 %v21021_v56  ;;  %18015 = vmatprep.subr.bf16.mxu0 %v21022_v57  ;;  %v2741_v56 = vrot.slane %v24087_v43, %v23945_v15  ;;  %v21057_v15 = vld [vmem:[%s22060_s5 + $0x4b0] sm:$0xff]  }
 0x81d   : > { %18037 = vmatprep.subr.bf16.mxu1 %v21023_v18 }
 0x81f   : > { %18016 = vmatpush3.bf16.msra.mxu0 %v21024_v50 }
 0x820   : > { %18038 = vmatpush3.bf16.msra.mxu1 %v21025_v55  ;;  %18017 = vmatprep.subr.bf16.mxu0 %v21026_v49  ;;  %v21058_v55 = vld [vmem:[%s22060_s5 + $0x478] sm:$0xff]   ;;  %v18277_v49 = vadd.f32 %v23783_v31, %v2729_v42 }
 0x821   : > { %18039 = vmatprep.subr.bf16.mxu1 %v21027_v34  ;;  %v15947_v42 = vld [vmem:[%s22053_s21 + $0x18] ss:$0 sm:$0xff] }
 0x822   : > { %v12989_v11 = vmax.f32 %v18277_v49, 0.0  ;;  %v21092_v49 = vld [vmem:[%s22060_s5 + $0x538] sm:$0xff]  }
 0x823   : > { %18018 = vmatpush3.bf16.msra.mxu0 %v21028_v7  ;;  %v21062_v7 = vld [vmem:[%s22060_s5 + $0x540] sm:$0xff]  }
 0x824   : > { %18040 = vmatpush3.bf16.msra.mxu1 %v21029_v23  ;;  %18047 = vmatprep.subr.bf16.mxu0 %v21030_v16  ;;  %v21063_v23 = vld [vmem:[%s22060_s5 + $0x5c0] sm:$0xff]   ;;  %v13014_v25 = vpack.c.bf16 %v12989_v11, %v12989_v11  ;;  %v21097_v11 = vld [vmem:[%s22060_s5 + $0x618] sm:$0xff]  }
 0x825   : > { %18069 = vmatprep.subr.bf16.mxu1 %v21031_v24  ;;  %v13012_v24 = vpack.c.bf16 %v12987_v9, %v12987_v9  ;;  %v21535_v9 = vmov 0.0  }
 0x826   : > { %14901 = vmatmul.mubr.bf16.vlgmr.msra.gmra.mrb[44].mxu0 %v13008_v41 }
 0x827   : > { %14941 = vmatmul.mubr.bf16.vlgmr.msra.gmra.mrb[44].mxu1 %v13010_v63  ;;  %18048 = vmatpush3.bf16.msra.mxu0 %v21032_v32  ;;  %v21066_v32 = vld [vmem:[%s22060_s5 + $0x548] sm:$0xff]  }
 0x828   : > { %14980 = vmatprep.mubr.bf16.mxu0 %v13013_v1  ;;  %18070 = vmatpush3.bf16.msra.mxu1 %v21033_v33  ;;  %v21067_v33 = vld [vmem:[%s22060_s5 + $0x5c8] sm:$0xff]  }
 0x829   : > { %15020 = vmatprep.mubr.bf16.mxu1 %v13015_v53  ;;  %18049 = vmatprep.subr.bf16.mxu0 %v21034_v0  ;;  %v21068_v0 = vld [vmem:[%s22060_s5 + $0x508] sm:$0xff]   ;;  %v21071_v53 = vld [vmem:[%s22060_s5 + $0x5d0] sm:$0xff]  }
 0x82a   : > { %18071 = vmatprep.subr.bf16.mxu1 %v21035_v26  ;;  %v21069_v1 = vld [vmem:[%s22060_s5 + $0x588] sm:$0xff]   ;;  %v21070_v26 = vld [vmem:[%s22060_s5 + $0x550] sm:$0xff]  }
 0x82b   : > { %18050 = vmatpush3.bf16.msra.mxu0 %v21036_v28  ;;  %v21072_v28 = vld [vmem:[%s22060_s5 + $0x510] sm:$0xff]  }
 0x82c   : > { %18072 = vmatpush3.bf16.msra.mxu1 %v21037_v58  ;;  %18051 = vmatprep.subr.bf16.mxu0 %v21038_v61  ;;  %v21073_v58 = vld [vmem:[%s22060_s5 + $0x590] sm:$0xff]   ;;  %v21074_v61 = vld [vmem:[%s22060_s5 + $0x558] sm:$0xff]  }
 0x82d   : > { %18073 = vmatprep.subr.bf16.mxu1 %v21039_v2  ;;  %v21075_v2 = vld [vmem:[%s22060_s5 + $0x5d8] sm:$0xff]  }
 0x82f   : > { %18052 = vmatpush3.bf16.msra.mxu0 %v21040_v10  ;;  %v21076_v10 = vld [vmem:[%s22060_s5 + $0x518] sm:$0xff]  }
 0x830   : > { %18074 = vmatpush3.bf16.msra.mxu1 %v21041_v35  ;;  %18053 = vmatprep.subr.bf16.mxu0 %v21042_v46  ;;  %v21077_v35 = vld [vmem:[%s22060_s5 + $0x598] sm:$0xff]   ;;  %v21078_v46 = vld [vmem:[%s22060_s5 + $0x560] sm:$0xff]  }
 0x831   : > { %18075 = vmatprep.subr.bf16.mxu1 %v21043_v3  ;;  %v21079_v3 = vld [vmem:[%s22060_s5 + $0x5e0] sm:$0xff]  }
 0x833   : > { %18054 = vmatpush3.bf16.msra.mxu0 %v21044_v4  ;;  %v21080_v4 = vld [vmem:[%s22060_s5 + $0x520] sm:$0xff]  }
 0x834   : > { %18076 = vmatpush3.bf16.msra.mxu1 %v21045_v6  ;;  %18055 = vmatprep.subr.bf16.mxu0 %v21046_v8  ;;  %v21081_v6 = vld [vmem:[%s22060_s5 + $0x5a0] sm:$0xff]   ;;  %v21082_v8 = vld [vmem:[%s22060_s5 + $0x568] sm:$0xff]  }
 0x835   : > { %18077 = vmatprep.subr.bf16.mxu1 %v21047_v14  ;;  %v21083_v14 = vld [vmem:[%s22060_s5 + $0x5e8] sm:$0xff]  }
 0x837   : > { %18056 = vmatpush3.bf16.msra.mxu0 %v21048_v19  ;;  %v21084_v19 = vld [vmem:[%s22060_s5 + $0x528] sm:$0xff]  }
 0x838   : > { %18078 = vmatpush3.bf16.msra.mxu1 %v21049_v21  ;;  %18057 = vmatprep.subr.bf16.mxu0 %v21050_v22  ;;  %v2737_v21 = vrot.slane %v24087_v43, %v23992_v36  ;;  %v21085_v22 = vld [vmem:[%s22060_s5 + $0x5a8] sm:$0xff]  }
 0x839   : > { %v24140_v44 = vpop.f32.mrb[20].mxu0  ;;  %v24142_v45 = vpop.f32.mrb[20].mxu1  ;;  %18079 = vmatprep.subr.bf16.mxu1 %v21051_v29  ;;  %v21086_v29 = vld [vmem:[%s22060_s5 + $0x570] sm:$0xff]  }
 0x83a   : > { %v12642_v5 = vpop.f32.mrb[21].mxu0  ;;  %v12806_v57 = vpop.f32.mrb[21].mxu1 }
 0x83b   : > { %v12644_v18 = vpop.f32.mrb[22].mxu0  ;;  %v12808_v48 = vpop.f32.mrb[22].mxu1  ;;  %18058 = vmatpush3.bf16.msra.mxu0 %v21052_v27  ;;  %v18280_v52 = vadd.f32 %v12642_v5, %v2741_v56  ;;  %v18282_v34 = vadd.f32 %v12806_v57, %v2749_v47  ;;  %v2745_v27 = vrot.slane %v24087_v43, %v22929_v59 }
 0x83c   : > { %18080 = vmatpush3.bf16.msra.mxu1 %v21053_v39  ;;  %v12645_v50 = vpop.f32.mrb[23].mxu0  ;;  %v12809_v51 = vpop.f32.mrb[23].mxu1  ;;  %18059 = vmatprep.subr.bf16.mxu0 %v21054_v40  ;;  %v21087_v40 = vld [vmem:[%s22060_s5 + $0x5f0] sm:$0xff]   ;;  %v18279_v48 = vadd.f32 %v24140_v44, %v2737_v21  ;;  %v21093_v44 = vld [vmem:[%s22060_s5 + $0x5b8] sm:$0xff]  }
 0x83d   : > { %18081 = vmatprep.subr.bf16.mxu1 %v21055_v30  ;;  %v12992_v16 = vmax.f32 %v18280_v52, 0.0  ;;  %v12994_v31 = vmax.f32 %v18282_v34, 0.0  ;;  %v21088_v18 = vld [vmem:[%s22060_s5 + $0x530] sm:$0xff]   ;;  %v18281_v50 = vadd.f32 %v24142_v45, %v2745_v27  ;;  %v21094_v34 = vld [vmem:[%s22060_s5 + $0x600] sm:$0xff]  }
 0x83f   : > { %18060 = vmatpush3.bf16.msra.mxu0 %v21056_v13  ;;  %v13017_v41 = vpack.c.bf16 %v12992_v16, %v12992_v16  ;;  %v13019_v63 = vpack.c.bf16 %v12994_v31, %v12994_v31  ;;  %v21089_v13 = vld [vmem:[%s22060_s5 + $0x5b0] sm:$0xff]   ;;  %v12993_v52 = vmax.f32 %v18281_v50, 0.0  ;;  %v21099_v16 = vld [vmem:[%s22060_s5 + $0x628] sm:$0xff]  }
 0x840   : > { %18082 = vmatpush3.bf16.msra.mxu1 %v21057_v15  ;;  %18061 = vmatprep.subr.bf16.mxu0 %v21058_v55  ;;  %v21091_v15 = vld [vmem:[%s22060_s5 + $0x5f8] sm:$0xff]   ;;  %v21105_v50 = vld [vmem:[%s22071_s28 + $0x18] sm:$0xff]  }
 0x841   : > { %18083 = vmatprep.subr.bf16.mxu1 %v21059_v17  ;;  %v12991_v17 = vmax.f32 %v18279_v48, 0.0  ;;  %v13018_v45 = vpack.c.bf16 %v12993_v52, %v12993_v52 }
 0x843   : > { %18062 = vmatpush3.bf16.msra.mxu0 %v21060_v60  ;;  %v13016_v60 = vpack.c.bf16 %v12991_v17, %v12991_v17 }
 0x844   : > { %18084 = vmatpush3.bf16.msra.mxu1 %v21061_v20  ;;  %18091 = vmatprep.subr.bf16.mxu0 %v21062_v7  ;;  %v21095_v20 = vld [vmem:[%s22060_s5 + $0x608] sm:$0xff]   ;;  %v21096_v7 = vld [vmem:[%s22060_s5 + $0x610] sm:$0xff]  }
 0x845   : > { %18113 = vmatprep.subr.bf16.mxu1 %v21063_v23  ;;  %v21098_v23 = vld [vmem:[%s22060_s5 + $0x620] sm:$0xff]  }
 0x846   : > { %14981 = vmatmul.mubr.bf16.vlgmr.msra.gmra.mrb[48].mxu0 %v13012_v24 }
 0x847   : > { %15021 = vmatmul.mubr.bf16.vlgmr.msra.gmra.mrb[48].mxu1 %v13014_v25  ;;  %18092 = vmatpush3.bf16.msra.mxu0 %v21064_v12 }
 0x848   : > { %15060 = vmatprep.mubr.bf16.mxu0 %v13017_v41  ;;  %18114 = vmatpush3.bf16.msra.mxu1 %v21065_v62 }
 0x849   : > { %15100 = vmatprep.mubr.bf16.mxu1 %v13019_v63  ;;  %18093 = vmatprep.subr.bf16.mxu0 %v21066_v32  ;;  %v21100_v63 = vld [vmem:[%s22060_s5 + $0x630] sm:$0xff]  }
 0x84a   : > { %18115 = vmatprep.subr.bf16.mxu1 %v21067_v33 }
 0x84b   : > { %18094 = vmatpush3.bf16.msra.mxu0 %v21068_v0 }
 0x84c   : > { %18116 = vmatpush3.bf16.msra.mxu1 %v21069_v1  ;;  %18095 = vmatprep.subr.bf16.mxu0 %v21070_v26 }
 0x84d   : > { %18117 = vmatprep.subr.bf16.mxu1 %v21071_v53 }
 0x84f   : > { %18096 = vmatpush3.bf16.msra.mxu0 %v21072_v28  ;;  %v21101_v28 = vld [vmem:[%s22060_s5 + $0x638] sm:$0xff]  }
 0x850   : > { %18118 = vmatpush3.bf16.msra.mxu1 %v21073_v58  ;;  %18097 = vmatprep.subr.bf16.mxu0 %v21074_v61 }
 0x851   : > { %18119 = vmatprep.subr.bf16.mxu1 %v21075_v2 }
 0x853   : > { %18098 = vmatpush3.bf16.msra.mxu0 %v21076_v10 }
 0x854   : > { %18120 = vmatpush3.bf16.msra.mxu1 %v21077_v35  ;;  %18099 = vmatprep.subr.bf16.mxu0 %v21078_v46  ;;  %v17548_v35 = vld [vmem:[%s737_s7] ss:$0 sm:$0xff]  ;;  %s914_s7 = scalar_lea.vmem %s24381_s26, %s24238_s1 }
 0x855   : > { %18121 = vmatprep.subr.bf16.mxu1 %v21079_v3 }
 0x857   : > { %18100 = vmatpush3.bf16.msra.mxu0 %v21080_v4 }
 0x858   : > { %18122 = vmatpush3.bf16.msra.mxu1 %v21081_v6  ;;  %18101 = vmatprep.subr.bf16.mxu0 %v21082_v8 }
 0x859   : > { %v17799_v37 = vpop.f32.mrb[24].mxu0  ;;  %v17821_v39 = vpop.f32.mrb[24].mxu1  ;;  %18123 = vmatprep.subr.bf16.mxu1 %v21083_v14 }
 0x85a   : > { %v17800_v30 = vpop.f32.mrb[25].mxu0  ;;  %v17822_v56 = vpop.f32.mrb[25].mxu1 }
 0x85b   : > { %v17801_v5 = vadd.f32 %v17800_v30, %v17799_v37  ;;  %v17802_v36 = vpop.f32.mrb[26].mxu0  ;;  %v17823_v57 = vadd.f32 %v17822_v56, %v17821_v39  ;;  %18102 = vmatpush3.bf16.msra.mxu0 %v21084_v19  ;;  %v17824_v47 = vpop.f32.mrb[26].mxu1 }
 0x85c   : > { %18124 = vmatpush3.bf16.msra.mxu1 %v21085_v22  ;;  %v17803_v59 = vpop.f32.mrb[27].mxu0  ;;  %v17825_v43 = vpop.f32.mrb[27].mxu1  ;;  %18103 = vmatprep.subr.bf16.mxu0 %v21086_v29 }
 0x85d   : > { %v12846_v51 = vadd.f32 %v17801_v5, %v15947_v42  ;;  %18125 = vmatprep.subr.bf16.mxu1 %v21087_v40  ;;  %v21103_v59 = vld [vmem:[%s22071_s28 + $0x8] sm:$0xff]   ;;  %v15151_v43 = vld [vmem:[%s22069_s18] sm:$0xf]  ;;  %s24382_s18 = sld [smem:[#allocation35_spill]] }
 0x85f   : > { %v12886_v55 = vadd.f32 %v17823_v57, %v12846_v51  ;;  %18104 = vmatpush3.bf16.msra.mxu0 %v21088_v18  ;;  %v21102_v18 = vld [vmem:[%s22071_s28] sm:$0xff]  }
 0x860   : > { %18126 = vmatpush3.bf16.msra.mxu1 %v21089_v13  ;;  %18105 = vmatprep.subr.bf16.mxu0 %v21090_v54  ;;  %v15263_v13 = vsel %vm15261_vm1, %v15151_v43, 0  ;;  %v21104_v54 = vld [vmem:[%s22071_s28 + $0x10] sm:$0xff]   ;;  %v21106_v51 = vld [vmem:[%s22071_s28 + $0x20] sm:$0xff]  }
 0x861   : > { %18127 = vmatprep.subr.bf16.mxu1 %v21091_v15  ;;  %v21107_v15 = vld [vmem:[%s22071_s28 + $0x28] sm:$0xff]  }
 0x863   : > { %18106 = vmatpush3.bf16.msra.mxu0 %v21092_v49  ;;  %v21108_v49 = vld [vmem:[%s22071_s28 + $0x30] sm:$0xff]   ;;  %s918_s9 = scalar_lea.vmem %s24382_s18, %s24238_s1 }
 0x864   : > { %18128 = vmatpush3.bf16.msra.mxu1 %v21093_v44  ;;  %18173 = vmatprep.subr.bf16.mxu0 %v21535_v9 }
 0x865   : > { %18193 = vmatprep.subr.bf16.mxu1 %v21535_v9 }
 0x866   : > { %15061 = vmatmul.mubr.bf16.vlgmr.msra.gmra.mrb[52].mxu0 %v13016_v60 }
 0x867   : > { %15101 = vmatmul.mubr.bf16.vlgmr.msra.gmra.mrb[52].mxu1 %v13018_v45  ;;  %18174 = vmatpush3.bf16.msra.mxu0 %v21094_v34 }
 0x868   : > { %18175 = vmatprep.subr.bf16.mxu0 %v21535_v9  ;;  %18189 = vmatprep.mubr.msk.bf16.mxu0 %vm21536_vm0, %v21535_v9 }
 0x869   : > { %18209 = vmatprep.mubr.msk.bf16.mxu1 %vm21536_vm0, %v21535_v9  ;;  %18194 = vmatpush3.bf16.msra.mxu1 %v21102_v18 }
 0x86a   : > { %18195 = vmatprep.subr.bf16.mxu1 %v21535_v9 }
 0x86b   : > { %18176 = vmatpush3.bf16.msra.mxu0 %v21095_v20 }
 0x86c   : > { %18177 = vmatprep.subr.bf16.mxu0 %v21535_v9 }
 0x86d   : > { %18196 = vmatpush3.bf16.msra.mxu1 %v21103_v59 }
 0x86e   : > { %18197 = vmatprep.subr.bf16.mxu1 %v21535_v9 }
 0x86f   : > { %18178 = vmatpush3.bf16.msra.mxu0 %v21096_v7 }
 0x870   : > { %18179 = vmatprep.subr.bf16.mxu0 %v21535_v9 }
 0x871   : > { %18198 = vmatpush3.bf16.msra.mxu1 %v21104_v54  ;;  %v21110_v54 = vld [vmem:[%s22078_s17] sm:$0xff]  }
 0x872   : > { %18199 = vmatprep.subr.bf16.mxu1 %v21535_v9 }
 0x873   : > { %18180 = vmatpush3.bf16.msra.mxu0 %v21097_v11  ;;  %v15149_v11 = vld [vmem:[%s914_s7] sm:$0x3] }
 0x874   : > { %18181 = vmatprep.subr.bf16.mxu0 %v21535_v9 }
 0x875   : > { %18200 = vmatpush3.bf16.msra.mxu1 %v21105_v50 }
 0x876   : > { %18201 = vmatprep.subr.bf16.mxu1 %v21535_v9 }
 0x877   : > { %18182 = vmatpush3.bf16.msra.mxu0 %v21098_v23 }
 0x878   : > { %18183 = vmatprep.subr.bf16.mxu0 %v21535_v9 }
 0x879   : > { %v17843_v31 = vpop.f32.mrb[28].mxu0  ;;  %v17865_v12 = vpop.f32.mrb[28].mxu1  ;;  %18202 = vmatpush3.bf16.msra.mxu1 %v21106_v51  ;;  %v21111_v51 = vld [vmem:[%s22078_s17 + $0x8] sm:$0xff]  }
 0x87a   : > { %v17844_v24 = vpop.f32.mrb[29].mxu0  ;;  %v17866_v62 = vpop.f32.mrb[29].mxu1  ;;  %18203 = vmatprep.subr.bf16.mxu1 %v21535_v9 }
 0x87b   : > { %v17845_v25 = vadd.f32 %v17844_v24, %v17843_v31  ;;  %v17867_v32 = vadd.f32 %v17866_v62, %v17865_v12  ;;  %v17846_v41 = vpop.f32.mrb[30].mxu0  ;;  %v17868_v33 = vpop.f32.mrb[30].mxu1  ;;  %18184 = vmatpush3.bf16.msra.mxu0 %v21099_v16  ;;  %v21109_v31 = vld [vmem:[%s22071_s28 + $0x38] sm:$0xff]   ;;  %v15150_v12 = vpack.c.bf16 %v15149_v11, %v15149_v11  ;;  %v21119_v11 = vld [vmem:[%s22085_s22 + $0x8] sm:$0xff]  }
 0x87c   : > { %v17847_v0 = vpop.f32.mrb[31].mxu0  ;;  %v17869_v1 = vpop.f32.mrb[31].mxu1  ;;  %18185 = vmatprep.subr.bf16.mxu0 %v21535_v9 }
 0x87d   : > { %v12926_v26 = vadd.f32 %v17845_v25, %v12886_v55  ;;  %18204 = vmatpush3.bf16.msra.mxu1 %v21107_v15  ;;  %v21112_v15 = vld [vmem:[%s22078_s17 + $0x10] sm:$0xff]  }
 0x87e   : > { %18205 = vmatprep.subr.bf16.mxu1 %v21535_v9 }
 0x87f   : > { %v12966_v53 = vadd.f32 %v17867_v32, %v12926_v26  ;;  %18186 = vmatpush3.bf16.msra.mxu0 %v21100_v63 }
 0x880   : > { %18187 = vmatprep.subr.bf16.mxu0 %v21535_v9 }
 0x881   : > { %v12995_v58 = vmax.f32 %v12966_v53, 0.0  ;;  %18206 = vmatpush3.bf16.msra.mxu1 %v21108_v49  ;;  %v21114_v49 = vld [vmem:[%s22078_s17 + $0x20] sm:$0xff]  }
 0x882   : > { %18207 = vmatprep.subr.bf16.mxu1 %v21535_v9 }
 0x883   : > { %v13020_v61 = vpack.c.bf16 %v12995_v58, %v12995_v58  ;;  %18188 = vmatpush3.bf16.msra.mxu0 %v21101_v28 }
 0x884   : > { %18213 = vmatprep.subr.bf16.mxu0 %v21535_v9 }
 0x885   : > { %18208 = vmatpush3.bf16.msra.mxu1 %v21109_v31  ;;  %v21122_v31 = vld [vmem:[%s22085_s22 + $0x20] sm:$0xff]  }
 0x886   : > { %18190 = vmatmul.mubr.bf16.vlgmr.msra.gmra.mrb[56].mxu0 %v13020_v61  ;;  %18219 = vmatprep.subr.bf16.mxu1 %v21535_v9 }
 0x887   : > { %18215 = vmatprep.mubr.msk.bf16.mxu0 %vm21536_vm0, %v21535_v9  ;;  %18214 = vmatpush3.bf16.msra.mxu0 %v15263_v13 }
 0x888   : > { %18239 = vmatprep.subr.bf16.mxu0 %v21535_v9 }
 0x88e   : > { %18216 = vmatmul.mubr.msk.bf16.vlgmr.msra.gmra.mrb[60].mxu0 %vm15257_vm2, %v15150_v12  ;;  %v21123_v12 = vld [vmem:[%s22085_s22 + $0x28] sm:$0xff]  }
 0x88f   : > { %18255 = vmatprep.mubr.msk.bf16.mxu0 %vm21536_vm0, %v21535_v9 }
 0x899   : > { %v17887_v2 = vpop.f32.mrb[32].mxu0 }
 0x89a   : > { %v17909_v10 = vpop.f32.mrb[32].mxu1  ;;  %v17888_v46 = vpop.f32.mrb[33].mxu0 }
 0x89b   : > { %v17889_v3 = vadd.f32 %v17888_v46, %v17887_v2  ;;  %v17910_v4 = vpop.f32.mrb[33].mxu1  ;;  %v17890_v6 = vpop.f32.mrb[34].mxu0 }
 0x89c   : > { %v17911_v8 = vadd.f32 %v17910_v4, %v17909_v10  ;;  %v17912_v14 = vpop.f32.mrb[34].mxu1  ;;  %v17891_v19 = vpop.f32.mrb[35].mxu0 }
 0x89d   : > { %v14663_v21 = vadd.f32 %v17889_v3, %v17548_v35  ;;  %v17913_v22 = vpop.f32.mrb[35].mxu1 }
 0x89f   : > { %v14703_v29 = vadd.f32 %v17911_v8, %v14663_v21 }
 0x8b9   : > { %v17931_v27 = vpop.f32.mrb[36].mxu0 }
 0x8ba   : > { %v17953_v37 = vpop.f32.mrb[36].mxu1  ;;  %v17932_v39 = vpop.f32.mrb[37].mxu0 }
 0x8bb   : > { %v17933_v40 = vadd.f32 %v17932_v39, %v17931_v27  ;;  %v17954_v42 = vpop.f32.mrb[37].mxu1  ;;  %v17934_v30 = vpop.f32.mrb[38].mxu0 }
 0x8bc   : > { %v17955_v56 = vadd.f32 %v17954_v42, %v17953_v37  ;;  %v17956_v5 = vpop.f32.mrb[38].mxu1  ;;  %v17935_v36 = vpop.f32.mrb[39].mxu0 }
 0x8bd   : > { %v14743_v57 = vadd.f32 %v17933_v40, %v14703_v29  ;;  %v17957_v47 = vpop.f32.mrb[39].mxu1 }
 0x8bf   : > { %v14783_v48 = vadd.f32 %v17955_v56, %v14743_v57 }
 0x8d9   : > { %v17975_v55 = vpop.f32.mrb[40].mxu0 }
 0x8da   : > { %v17997_v17 = vpop.f32.mrb[40].mxu1  ;;  %v17976_v44 = vpop.f32.mrb[41].mxu0 }
 0x8db   : > { %v17977_v52 = vadd.f32 %v17976_v44, %v17975_v55  ;;  %v17998_v34 = vpop.f32.mrb[41].mxu1  ;;  %v17978_v60 = vpop.f32.mrb[42].mxu0  ;;  %v21113_v55 = vld [vmem:[%s22078_s17 + $0x18] sm:$0xff]  }
 0x8dc   : > { %v17999_v45 = vadd.f32 %v17998_v34, %v17997_v17  ;;  %v18000_v20 = vpop.f32.mrb[42].mxu1  ;;  %v17979_v7 = vpop.f32.mrb[43].mxu0  ;;  %v21115_v17 = vld [vmem:[%s22078_s17 + $0x28] sm:$0xff]  }
 0x8dd   : > { %v14823_v23 = vadd.f32 %v17977_v52, %v14783_v48  ;;  %v18001_v16 = vpop.f32.mrb[43].mxu1  ;;  %v21117_v20 = vld [vmem:[%s22078_s17 + $0x38] sm:$0xff]   ;;  %v21118_v7 = vld [vmem:[%s22085_s22] sm:$0xff]  }
 0x8de   : > { %18240 = vmatpush3.bf16.msra.mxu0 %v21118_v7  ;;  %v21121_v16 = vld [vmem:[%s22085_s22 + $0x18] sm:$0xff]  }
 0x8df   : > { %v14863_v24 = vadd.f32 %v17999_v45, %v14823_v23  ;;  %v21116_v45 = vld [vmem:[%s22078_s17 + $0x30] sm:$0xff]   ;;  %18241 = vmatprep.subr.bf16.mxu0 %v21535_v9 }
 0x8e0   : > { %v21120_v23 = vld [vmem:[%s22085_s22 + $0x10] sm:$0xff]  }
 0x8e2   : > { %18242 = vmatpush3.bf16.msra.mxu0 %v21119_v11 }
 0x8e3   : > { %18243 = vmatprep.subr.bf16.mxu0 %v21535_v9 }
 0x8e6   : > { %18244 = vmatpush3.bf16.msra.mxu0 %v21120_v23 }
 0x8e7   : > { %18245 = vmatprep.subr.bf16.mxu0 %v21535_v9 }
 0x8ea   : > { %18246 = vmatpush3.bf16.msra.mxu0 %v21121_v16 }
 0x8eb   : > { %18247 = vmatprep.subr.bf16.mxu0 %v21535_v9 }
 0x8ee   : > { %18248 = vmatpush3.bf16.msra.mxu0 %v21122_v31 }
 0x8ef   : > { %18249 = vmatprep.subr.bf16.mxu0 %v21535_v9 }
 0x8f2   : > { %18250 = vmatpush3.bf16.msra.mxu0 %v21123_v12 }
 0x8f3   : > { %18251 = vmatprep.subr.bf16.mxu0 %v21535_v9 }
 0x8f9   : > { %v18019_v62 = vpop.f32.mrb[44].mxu0 }
 0x8fa   : > { %v18041_v25 = vpop.f32.mrb[44].mxu1  ;;  %v18020_v32 = vpop.f32.mrb[45].mxu0 }
 0x8fb   : > { %v18021_v41 = vadd.f32 %v18020_v32, %v18019_v62  ;;  %v18042_v33 = vpop.f32.mrb[45].mxu1  ;;  %v18022_v63 = vpop.f32.mrb[46].mxu0  ;;  %v17758_v62 = vld [vmem:[%s763_s16] ss:$0 sm:$0xff]  ;;  %s24383_s16 = sld [smem:[#allocation36_spill]] }
 0x8fc   : > { %v18043_v0 = vadd.f32 %v18042_v33, %v18041_v25  ;;  %v18044_v1 = vpop.f32.mrb[46].mxu1  ;;  %v18023_v26 = vpop.f32.mrb[47].mxu0 }
 0x8fd   : > { %v14903_v53 = vadd.f32 %v18021_v41, %v14863_v24  ;;  %v18045_v28 = vpop.f32.mrb[47].mxu1  ;;  %v21124_v26 = vld [vmem:[%s22085_s22 + $0x30] sm:$0xff]  }
 0x8fe   : > { %18252 = vmatpush3.bf16.msra.mxu0 %v21124_v26  ;;  %v17759_v28 = vld [vmem:[%s780_s20] ss:$0 sm:$0xff] }
 0x8ff   : > { %v14943_v58 = vadd.f32 %v18043_v0, %v14903_v53  ;;  %18253 = vmatprep.subr.bf16.mxu0 %v21535_v9  ;;  %v21125_v53 = vld [vmem:[%s22085_s22 + $0x38] sm:$0xff]   ;;  %s926_s22 = scalar_lea.vmem %s24384_s24, %s24238_s1 }
 0x901   : > { %s922_s13 = scalar_lea.vmem %s24383_s16, %s24238_s1 }
 0x902   : > { %18254 = vmatpush3.bf16.msra.mxu0 %v21125_v53 }
 0x919   : > { %v18063_v61 = vpop.f32.mrb[48].mxu0 }
 0x91a   : > { %v18085_v2 = vpop.f32.mrb[48].mxu1  ;;  %v18064_v10 = vpop.f32.mrb[49].mxu0 }
 0x91b   : > { %v18065_v35 = vadd.f32 %v18064_v10, %v18063_v61  ;;  %v18086_v46 = vpop.f32.mrb[49].mxu1  ;;  %v18066_v3 = vpop.f32.mrb[50].mxu0 }
 0x91c   : > { %v18087_v4 = vadd.f32 %v18086_v46, %v18085_v2  ;;  %v18088_v6 = vpop.f32.mrb[50].mxu1  ;;  %v18067_v8 = vpop.f32.mrb[51].mxu0 }
 0x91d   : > { %v14983_v14 = vadd.f32 %v18065_v35, %v14943_v58  ;;  %v18089_v19 = vpop.f32.mrb[51].mxu1  ;;  %v17768_v6 = vld [vmem:[%s797_s29] ss:$0 sm:$0xff] }
 0x91f   : > { %v15023_v21 = vadd.f32 %v18087_v4, %v14983_v14  ;;  %v15541_v4 = vand.u32 127, %v936_v38 }
 0x921   : > { %vm15542_vm3 = vcmp.lt.s32.totalorder %v15541_v4, 6 }
 0x939   : > { %v18107_v22 = vpop.f32.mrb[52].mxu0 }
 0x93a   : > { %v18129_v29 = vpop.f32.mrb[52].mxu1  ;;  %v18108_v27 = vpop.f32.mrb[53].mxu0 }
 0x93b   : > { %v18109_v37 = vadd.f32 %v18108_v27, %v18107_v22  ;;  %v18130_v39 = vpop.f32.mrb[53].mxu1  ;;  %v18110_v40 = vpop.f32.mrb[54].mxu0 }
 0x93c   : > { %v18131_v42 = vadd.f32 %v18130_v39, %v18129_v29  ;;  %v18132_v30 = vpop.f32.mrb[54].mxu1  ;;  %v18111_v56 = vpop.f32.mrb[55].mxu0 }
 0x93d   : > { %v15063_v5 = vadd.f32 %v18109_v37, %v15023_v21  ;;  %v18133_v36 = vpop.f32.mrb[55].mxu1 }
 0x93f   : > { %v15103_v57 = vadd.f32 %v18131_v42, %v15063_v5 }
 0x959   : > { %v15142_v47 = vpop.f32.mrb[56].mxu0 }
 0x95a   : > { %v15143_v18 = vadd.f32 %v15142_v47, %v15103_v57  ;;  %v18191_v48 = vpop.f32.mrb[57].mxu0 }
 0x95b   : > { %v15145_v59 = vpop.f32.mrb[58].mxu0 }
 0x95c   : > { %v15148_v43 = vmax.f32 %v15143_v18, 0.0  ;;  %v18192_v13 = vpop.f32.mrb[59].mxu0 }
 0x95e   : > { %v15152_v50 = vpack.c.bf16 %v15148_v43, %v15148_v43 }
 0x960   : > { %18210 = vmatmul.mubr.bf16.vlgmr.msra.gmra.mrb[56].mxu1 %v15152_v50 }
 0x961   : > { %18220 = vmatpush3.bf16.msra.mxu1 %v21110_v54  ;;  %18235 = vmatprep.mubr.msk.bf16.mxu1 %vm21536_vm0, %v21535_v9  ;;  %v15299_v44 = vpop.f32.mrb[60].mxu0 }
 0x962   : > { %18221 = vmatprep.subr.bf16.mxu1 %v21535_v9  ;;  %v18217_v52 = vpop.f32.mrb[61].mxu0 }
 0x963   : > { %v15302_v34 = vpop.f32.mrb[62].mxu0 }
 0x964   : > { %v18218_v60 = vpop.f32.mrb[63].mxu0 }
 0x965   : > { %18222 = vmatpush3.bf16.msra.mxu1 %v21111_v51 }
 0x966   : > { %18223 = vmatprep.subr.bf16.mxu1 %v21535_v9 }
 0x969   : > { %18224 = vmatpush3.bf16.msra.mxu1 %v21112_v15 }
 0x96a   : > { %18225 = vmatprep.subr.bf16.mxu1 %v21535_v9 }
 0x96d   : > { %18226 = vmatpush3.bf16.msra.mxu1 %v21113_v55 }
 0x96e   : > { %18227 = vmatprep.subr.bf16.mxu1 %v21535_v9 }
 0x971   : > { %18228 = vmatpush3.bf16.msra.mxu1 %v21114_v49 }
 0x972   : > { %18229 = vmatprep.subr.bf16.mxu1 %v21535_v9 }
 0x975   : > { %18230 = vmatpush3.bf16.msra.mxu1 %v21115_v17 }
 0x976   : > { %18231 = vmatprep.subr.bf16.mxu1 %v21535_v9 }
 0x979   : > { %18232 = vmatpush3.bf16.msra.mxu1 %v21116_v45 }
 0x97a   : > { %18233 = vmatprep.subr.bf16.mxu1 %v21535_v9 }
 0x97d   : > { %18234 = vmatpush3.bf16.msra.mxu1 %v21117_v20 }
 0xa33   : > { %v15251_v24 = vpop.f32.mrb[56].mxu1 }
 0xa34   : > { %v15300_v25 = vadd.f32 %v15299_v44, %v15251_v24  ;;  %v18211_v32 = vpop.f32.mrb[57].mxu1 }
 0xa35   : > { %v15254_v41 = vpop.f32.mrb[58].mxu1 }
 0xa36   : > { %v15312_v33 = vadd.f32 %v17758_v62, %v15300_v25  ;;  %v18212_v63 = vpop.f32.mrb[59].mxu1 }
 0xa38   : > { %v15313_v0 = vmax.f32 %v15312_v33, 0.0 }
 0xa3a   : > { %v15314_v1 = vpack.c.bf16 %v15313_v0, %v15313_v0 }
 0xa3c   : > { %18236 = vmatmul.mubr.bf16.vlgmr.msra.gmra.mrb[60].mxu1 %v15314_v1 }
 0xb0f   : > { %v15420_v58 = vpop.f32.mrb[60].mxu1 }
 0xb10   : > { %v15421_v61 = vadd.f32 %v17759_v28, %v15420_v58  ;;  %v18237_v2 = vpop.f32.mrb[61].mxu1 }
 0xb11   : > { %v15423_v10 = vpop.f32.mrb[62].mxu1 }
 0xb12   : > { %v15426_v35 = vmax.f32 %v15421_v61, 0.0  ;;  %v18238_v46 = vpop.f32.mrb[63].mxu1 }
 0xb14   : > { %v15427_v3 = vpack.c.bf16 %v15426_v35, %v15426_v35 }
 0xb16   : > { %18256 = vmatmul.mubr.bf16.vlgmr.msra.gmra.mrb[64].mxu0 %v15427_v3 }
 0xbe9   : > { %v15533_v9 = vpop.f32.mrb[64].mxu0 }
 0xbea   : > { %v15534_v8 = vadd.f32 %v17768_v6, %v15533_v9  ;;  %v18257_v14 = vpop.f32.mrb[65].mxu0 }
 0xbeb   : > { %v15536_v19 = vpop.f32.mrb[66].mxu0 }
 0xbec   : > { %15539 = vst [vmem:[%s918_s9] sm:$0x3] %v15534_v8  ;;  %v18258_v21 = vpop.f32.mrb[67].mxu0  ;;  %v15543_v22 = vsel %vm15542_vm3, %v15534_v8, -1e+30 }
 0xbed   : > { %v15545_v29 = vsel %vm15544_vm4, %v15543_v22, -inf }
 0xbee   : > { %15546 = vmax.xlane.f32.xlu0 %v15545_v29 }
 0xc7b   : > { %v15547_v38 = vpop.xlane.xlu0 %15546 }
 0xc7c   : > { %v15548_v27 = vsub.f32 %v15543_v22, %v15547_v38 }
 0xc7e   : > { %v15549_v37 = vmul.f32 1.442695, %v15548_v27 }
 0xc80   : > { %21126 = vpow2.f32 %v15549_v37 }
 0xc8a   : > { %v21127_v39 = vpop.eup %21126 }
 0xc8b   : > { %v15551_v40 = vsel %vm15544_vm4, %v21127_v39, 0.0 }
 0xc8c   : > { %15552 = vadd.xlane.f32.xlu0 %v15551_v40 }
 0xd19   : > { %v15553_v42 = vpop.xlane.xlu0 %15552 }
 0xd1a   : > { %21128 = vrcp.f32 %v15553_v42 }
 0xd1b   : > { %21130 = vlog2.f32 %v15553_v42 }
 0xd24   : > { %v21129_v30 = vpop.eup %21128 }
 0xd25   : > { %v21131_v56 = vpop.eup %21130  ;;  %v15555_v5 = vmul.f32 %v21129_v30, %v21127_v39 }
 0xd26   : > { %v15558_v36 = vmul.f32 0.6931472, %v21131_v56 }
 0xd27   : > { %15556 = vst [vmem:[%s922_s13] sm:$0x3] %v15555_v5 }
 0xd28   : > { %v15559_v57 = vsub.f32 %v15548_v27, %v15558_v36 }
 0xd2a   : > { %15560 = vst [vmem:[%s926_s22] sm:$0x3] %v15559_v57 }
 0xd2b PF: > { %s24385_s21 = sld [smem:[#allocation27_spill]]  ;;  %s24386_s27 = sld [smem:[#allocation25_spill]] }
 0xd2c   : > { %s24387_s20 = sld [smem:[#allocation28_spill]]  ;;  %s24388_s18 = smov %s21509_s19 }
 0xd31   : > { %p41_p8 = scmp.ge.s32.totalorder %s24385_s21, 5   ;;  %s24389_s19 = smov %s24386_s27 }
 0xd33   :  { %43 = sbr.rel (!%p41_p8) target bundleno = 23 (0x17), region = 262 }
 0xd3a   :  { %15608 = vsyncpa [#allocation3], 1 }
 0xd3b   :  { %15610 = vsyncpa [#allocation3 + $0x1], 1 }
 0xd3c   :  { %15611 = vsyncpa [#allocation5], 1 }
 0xd3d   :  { %15613 = vsyncpa [#allocation5 + $0x1], 1 }
 0xd3e   :  { %15614 = vsyncpa [#allocation8], 1 }
 0xd3f   :  { %15616 = vsyncpa [#allocation8 + $0x1], 1 }
 0xd40   :  { %15617 = vsyncpa [#allocation11], 1 }
 0xd41   :  { %15619 = vsyncpa [#allocation11 + $0x1], 1 }
 0xd42   :  { %15620 = vsyncpa [#allocation14], 1 }
 0xd43   :  { %15622 = vsyncpa [#allocation14 + $0x1], 1 }
 0xd44   :  { %15623 = vsyncpa [#allocation17], 1 }
 0xd45   :  { %15625 = vsyncpa [#allocation17 + $0x1], 1 }

</bundles_post_ra>
